<compile_context>
chip_gen: v5e
topology: v5e:2x2
jax: 0.10.0
libtpu: 0.0.40
codegen_flags: <defaults>
</compile_context>

<pallas_src>
import functools

import jax
import jax.numpy as jnp
from jax import lax
from jax.experimental import pallas as pl
from jax.experimental.pallas import tpu as pltpu


def _vmem_capacity_bytes():
    try:
        info = pltpu.get_tpu_info()
        cap = getattr(info, "vmem_capacity_bytes", None)
        if cap:
            return int(cap)
    except Exception:
        pass
    return 64 * 1024 * 1024  # conservative fallback (assume small-VMEM generation)


_VMEM_CAP = _vmem_capacity_bytes()
_SMALL_VMEM = _VMEM_CAP <= 96 * 1024 * 1024            # v7x: 64 MiB per TensorCore
_VMEM_LIMIT = (48 if _SMALL_VMEM else 96) * 1024 * 1024
_BM_FUSED = 512 if _SMALL_VMEM else 1024               # M-tile of fused-norm matmuls
_BM_MM, _BN_MM, _BK_MM = 512, 512, 1024                # o_proj / down_proj tiles
_BQ, _BKV = 512, 512                                   # flash-attention tiles


def _cparams(dims):
    return pltpu.CompilerParams(
        dimension_semantics=dims, vmem_limit_bytes=_VMEM_LIMIT
    )


# ----------------------------------------------------------------------------
# Fused RMSNorm -> qkv matmul -> neox RoPE (+ q scaling) epilogue
# ----------------------------------------------------------------------------
def _qkv_kernel(x_ref, g_ref, w_ref, cos_ref, sin_ref, o_ref, xn_ref, *,
                eps, nh, nkv, head_dim, hpb, scale):
    j = pl.program_id(1)  # column block of hpb heads (q heads, then k, then v)

    @pl.when(j == 0)  # norm the (bm, H) x-tile once per M-block
    def _():
        x = x_ref[...].astype(jnp.float32)
        var = jnp.mean(x * x, axis=-1, keepdims=True)
        g = g_ref[...].astype(jnp.float32)
        xn_ref[...] = (x * lax.rsqrt(var + eps) * g).astype(xn_ref.dtype)

    y = jnp.dot(xn_ref[...], w_ref[...], preferred_element_type=jnp.float32)
    cos = cos_ref[...]
    sin = sin_ref[...]  # rotate-half sign already folded into the table
    d = head_dim
    for h in range(hpb):  # static unroll over the heads of this column block
        head_idx = j * hpb + h
        sub = y[:, h * d:(h + 1) * d]
        roped = sub * cos + pltpu.roll(sub, shift=d // 2, axis=1) * sin
        mult = jnp.where(head_idx < nh, scale, 1.0)        # 1/sqrt(d) on q heads only
        out = jnp.where(head_idx < nh + nkv, roped * mult, sub)  # v heads pass through
        o_ref[:, h * d:(h + 1) * d] = out.astype(o_ref.dtype)


def rmsnorm_qkv_rope(x, gamma, w_qkv, cos, sin, *, nh, nkv, head_dim, eps, bm=None):
    t, h = x.shape
    n_heads_total = nh + 2 * nkv
    bm = min(bm or _BM_FUSED, t)
    assert t % bm == 0
    assert w_qkv.shape == (h, n_heads_total * head_dim)
    # Widen the N block to up to 4 heads (512 lanes) to fill the 256-wide MXU.
    hpb = next(c for c in (4, 2, 1) if n_heads_total % c == 0)
    bn = hpb * head_dim
    kernel = functools.partial(
        _qkv_kernel, eps=eps, nh=nh, nkv=nkv, head_dim=head_dim, hpb=hpb,
        scale=head_dim ** -0.5)
    return pl.pallas_call(
        kernel,
        out_shape=jax.ShapeDtypeStruct((t, n_heads_total * head_dim), jnp.bfloat16),
        grid=(t // bm, n_heads_total // hpb),
        in_specs=[
            pl.BlockSpec((bm, h), lambda i, j: (i, 0)),
            pl.BlockSpec((1, h), lambda i, j: (0, 0)),
            pl.BlockSpec((h, bn), lambda i, j: (0, j)),
            pl.BlockSpec((bm, head_dim), lambda i, j: (i, 0)),
            pl.BlockSpec((bm, head_dim), lambda i, j: (i, 0)),
        ],
        out_specs=pl.BlockSpec((bm, bn), lambda i, j: (i, j)),
        scratch_shapes=[pltpu.VMEM((bm, h), jnp.bfloat16)],
        compiler_params=_cparams(("parallel", "arbitrary")),
    )(x, gamma, w_qkv, cos, sin)


# ----------------------------------------------------------------------------
# Flash-style causal attention (online softmax, GQA: group q heads per K/V head)
# ----------------------------------------------------------------------------
def _flash_kernel(q_ref, k_ref, v_ref, o_ref, m_sc, l_sc, acc_sc, *,
                  bq, bkv, group, head_dim):
    qi = pl.program_id(1)
    ki = pl.program_id(2)

    @pl.when(ki == 0)
    def _():
        m_sc[...] = jnp.full_like(m_sc, -jnp.inf)
        l_sc[...] = jnp.zeros_like(l_sc)
        acc_sc[...] = jnp.zeros_like(acc_sc)

    # Skip compute for kv blocks entirely above the causal diagonal (their DMA is
    # already skipped via the clamped index_map; this guard prevents the clamped
    # duplicate block from being accumulated twice).
    @pl.when(ki * bkv <= qi * bq + (bq - 1))
    def _():
        k = k_ref[...]
        v = v_ref[...]
        row = qi * bq + lax.broadcasted_iota(jnp.int32, (bq, bkv), 0)
        col = ki * bkv + lax.broadcasted_iota(jnp.int32, (bq, bkv), 1)
        causal = col <= row
        d = head_dim
        for g in range(group):  # all q heads that share this K/V head
            q = q_ref[:, g * d:(g + 1) * d]          # bf16, pre-scaled by 1/sqrt(d)
            s = lax.dot_general(q, k, (((1,), (1,)), ((), ())),
                                preferred_element_type=jnp.float32)
            s = jnp.where(causal, s, -jnp.inf)
            m_prev = m_sc[g]
            m_new = jnp.maximum(m_prev, jnp.max(s, axis=-1, keepdims=True))
            alpha = jnp.exp(m_prev - m_new)
            p = jnp.exp(s - m_new)
            l_sc[g] = alpha * l_sc[g] + jnp.sum(p, axis=-1, keepdims=True)
            acc_sc[:, g * d:(g + 1) * d] = (
                alpha * acc_sc[:, g * d:(g + 1) * d]
                + jnp.dot(p.astype(jnp.bfloat16), v,
                          preferred_element_type=jnp.float32))
            m_sc[g] = m_new

    @pl.when(ki == pl.num_programs(2) - 1)
    def _():
        d = head_dim
        for g in range(group):
            inv_l = pl.reciprocal(l_sc[g], approx=True)
            o_ref[:, g * d:(g + 1) * d] = (
                acc_sc[:, g * d:(g + 1) * d] * inv_l).astype(o_ref.dtype)


def causal_flash_attention(qkv, *, nh, nkv, head_dim, bq=None, bkv=None):
    t = qkv.shape[0]
    group = nh // nkv
    bq = min(bq or _BQ, t)
    bkv = min(bkv or _BKV, t)
    assert t % bq == 0 and t % bkv == 0

    def kv_block(qi, ki):
        # Clamp to the causal limit so fully-masked kv blocks are never DMA'd
        # (Pallas skips the re-fetch when the block index repeats).
        return jnp.minimum(ki, (qi * bq + bq - 1) // bkv)

    kernel = functools.partial(_flash_kernel, bq=bq, bkv=bkv, group=group,
                               head_dim=head_dim)
    return pl.pallas_call(
        kernel,
        out_shape=jax.ShapeDtypeStruct((t, nh * head_dim), jnp.bfloat16),
        grid=(nkv, t // bq, t // bkv),
        in_specs=[
            # the `group` q heads that share kv head g are contiguous column blocks
            pl.BlockSpec((bq, group * head_dim), lambda g, qi, ki: (qi, g)),
            # k head g lives at column block nh + g of qkv (head_dim-wide blocks)
            pl.BlockSpec((bkv, head_dim),
                         lambda g, qi, ki: (kv_block(qi, ki), nh + g)),
            # v head g lives at column block nh + nkv + g
            pl.BlockSpec((bkv, head_dim),
                         lambda g, qi, ki: (kv_block(qi, ki), nh + nkv + g)),
        ],
        out_specs=pl.BlockSpec((bq, group * head_dim), lambda g, qi, ki: (qi, g)),
        scratch_shapes=[
            pltpu.VMEM((group, bq, 1), jnp.float32),              # running max m
            pltpu.VMEM((group, bq, 1), jnp.float32),              # running denom l
            pltpu.VMEM((bq, group * head_dim), jnp.float32),      # accumulator
        ],
        compiler_params=_cparams(("parallel", "parallel", "arbitrary")),
    )(qkv, qkv, qkv)


# ----------------------------------------------------------------------------
# Fused RMSNorm -> gate/up matmuls -> SiluAndMul epilogue
# ----------------------------------------------------------------------------
def _gateup_silu_kernel(x_ref, g_ref, wg_ref, wu_ref, o_ref, xn_ref, *, eps):
    @pl.when(pl.program_id(1) == 0)
    def _():
        x = x_ref[...].astype(jnp.float32)
        var = jnp.mean(x * x, axis=-1, keepdims=True)
        g = g_ref[...].astype(jnp.float32)
        xn_ref[...] = (x * lax.rsqrt(var + eps) * g).astype(xn_ref.dtype)

    xn = xn_ref[...]
    gate = jnp.dot(xn, wg_ref[...], preferred_element_type=jnp.float32)
    up = jnp.dot(xn, wu_ref[...], preferred_element_type=jnp.float32)
    o_ref[...] = (gate * lax.logistic(gate) * up).astype(o_ref.dtype)


def rmsnorm_gateup_silu(x, gamma, w_gate, w_up, *, eps, bm=None, bn=512):
    t, h = x.shape
    inter = w_gate.shape[1]
    bm = min(bm or _BM_FUSED, t)
    bn = min(bn, inter)
    assert t % bm == 0 and inter % bn == 0
    kernel = functools.partial(_gateup_silu_kernel, eps=eps)
    return pl.pallas_call(
        kernel,
        out_shape=jax.ShapeDtypeStruct((t, inter), jnp.bfloat16),
        grid=(t // bm, inter // bn),
        in_specs=[
            pl.BlockSpec((bm, h), lambda i, j: (i, 0)),
            pl.BlockSpec((1, h), lambda i, j: (0, 0)),
            pl.BlockSpec((h, bn), lambda i, j: (0, j)),
            pl.BlockSpec((h, bn), lambda i, j: (0, j)),
        ],
        out_specs=pl.BlockSpec((bm, bn), lambda i, j: (i, j)),
        scratch_shapes=[pltpu.VMEM((bm, h), jnp.bfloat16)],
        compiler_params=_cparams(("parallel", "arbitrary")),
    )(x, gamma, w_gate, w_up)


# ----------------------------------------------------------------------------
# K-tiled matmul with fused residual add (o_proj, down_proj)
# ----------------------------------------------------------------------------
def _matmul_residual_kernel(x_ref, w_ref, r_ref, o_ref, acc_ref):
    k = pl.program_id(2)

    @pl.when(k == 0)
    def _():
        acc_ref[...] = jnp.zeros_like(acc_ref)

    acc_ref[...] += jnp.dot(x_ref[...], w_ref[...],
                            preferred_element_type=jnp.float32)

    @pl.when(k == pl.num_programs(2) - 1)
    def _():
        o_ref[...] = (acc_ref[...] + r_ref[...].astype(jnp.float32)
                      ).astype(o_ref.dtype)


def matmul_residual(x, w, residual, *, bm=None, bn=None, bk=None):
    t, kdim = x.shape
    n = w.shape[1]
    bm = min(bm or _BM_MM, t)
    bn = min(bn or _BN_MM, n)
    bk = min(bk or _BK_MM, kdim)
    assert t % bm == 0 and n % bn == 0 and kdim % bk == 0
    return pl.pallas_call(
        _matmul_residual_kernel,
        out_shape=jax.ShapeDtypeStruct((t, n), jnp.bfloat16),
        grid=(t // bm, n // bn, kdim // bk),
        in_specs=[
            pl.BlockSpec((bm, bk), lambda i, j, k: (i, k)),
            pl.BlockSpec((bk, bn), lambda i, j, k: (k, j)),
            pl.BlockSpec((bm, bn), lambda i, j, k: (i, j)),
        ],
        out_specs=pl.BlockSpec((bm, bn), lambda i, j, k: (i, j)),
        scratch_shapes=[pltpu.VMEM((bm, bn), jnp.float32)],
        compiler_params=_cparams(("parallel", "parallel", "arbitrary")),
    )(x, w, residual)


# ----------------------------------------------------------------------------
# Decoder layer glue
# ----------------------------------------------------------------------------
def rope_tables(t, head_dim, theta):
    pos = jnp.arange(t, dtype=jnp.float32)[:, None]                      # [T, 1]
    inv_freq = 1.0 / (theta ** (jnp.arange(0, head_dim, 2, dtype=jnp.float32) / head_dim))
    ang = pos * inv_freq[None, :]                                        # [T, D/2]
    cos = jnp.concatenate([jnp.cos(ang), jnp.cos(ang)], axis=-1)         # [T, D]
    # rotate-half sign folded into sin (first half negated): rope = x*cos + roll(x,D/2)*sin
    sin = jnp.concatenate([-jnp.sin(ang), jnp.sin(ang)], axis=-1)
    return cos, sin


def llama_decoder_layer(hidden_states, params, cfg):
    t = hidden_states.shape[0]
    nh, nkv, d = cfg["num_heads"], cfg["num_kv_heads"], cfg["head_dim"]
    eps = cfg["rms_norm_eps"]

    cos, sin = rope_tables(t, d, cfg["rope_theta"])

    # --- self attention block (input_layernorm + qkv_proj + RoPE + q-scale fused) ---
    residual = hidden_states
    qkv = rmsnorm_qkv_rope(hidden_states, params["ln1_w"], params["w_qkv"],
                           cos, sin, nh=nh, nkv=nkv, head_dim=d, eps=eps)
    attn = causal_flash_attention(qkv, nh=nh, nkv=nkv, head_dim=d)       # [T, nh*d]
    hidden_states = matmul_residual(attn, params["w_o"], residual)       # o_proj + residual

    # --- MLP block (post_attention_layernorm + gate_up + SiLU*mul fused) ---
    residual = hidden_states
    act = rmsnorm_gateup_silu(hidden_states, params["ln2_w"],
                              params["w_gate"], params["w_up"], eps=eps)  # [T, I]
    hidden_states = matmul_residual(act, params["w_down"], residual)     # down_proj + residual
    return hidden_states


def init_params(key, cfg):
    h = cfg["hidden_size"]
    nh, nkv, d = cfg["num_heads"], cfg["num_kv_heads"], cfg["head_dim"]
    inter = cfg["intermediate_size"]
    k1, k2, k3, k4, k5 = jax.random.split(key, 5)
    scale = 0.05
    bf16 = jnp.bfloat16
    # weights stored [in, out] (transposed nn.Linear weight); bias=False everywhere
    return {
        "ln1_w": jnp.ones((1, h), jnp.float32),
        "ln2_w": jnp.ones((1, h), jnp.float32),
        "w_qkv": (scale * jax.random.normal(k1, (h, (nh + 2 * nkv) * d), jnp.float32)).astype(bf16),
        "w_o": (scale * jax.random.normal(k2, (nh * d, h), jnp.float32)).astype(bf16),
        "w_gate": (scale * jax.random.normal(k3, (h, inter), jnp.float32)).astype(bf16),
        "w_up": (scale * jax.random.normal(k4, (h, inter), jnp.float32)).astype(bf16),
        "w_down": (scale * jax.random.normal(k5, (inter, h), jnp.float32)).astype(bf16),
    }


# ----------------------------------------------------------------------------
# Pure-JAX reference (matches the kernels' bf16 cast points) for verification
# ----------------------------------------------------------------------------
def reference_decoder_layer(hidden_states, params, cfg):
    f32, bf16 = jnp.float32, jnp.bfloat16
    t = hidden_states.shape[0]
    nh, nkv, d = cfg["num_heads"], cfg["num_kv_heads"], cfg["head_dim"]
    eps = cfg["rms_norm_eps"]
    group = nh // nkv
    cos, sin = rope_tables(t, d, cfg["rope_theta"])   # sin has rotate-half sign folded

    def rms(x, g):
        xf = x.astype(f32)
        var = jnp.mean(xf * xf, axis=-1, keepdims=True)
        return (xf * lax.rsqrt(var + eps) * g.astype(f32)).astype(bf16)

    def rope(x):  # x: [T, n, d] f32
        d2 = d // 2
        rolled = jnp.concatenate([x[..., d2:], x[..., :d2]], axis=-1)
        return x * cos[:, None, :] + rolled * sin[:, None, :]

    residual = hidden_states
    h = rms(hidden_states, params["ln1_w"])
    qkv = jnp.dot(h.astype(f32), params["w_qkv"].astype(f32))
    q = (rope(qkv[:, : nh * d].reshape(t, nh, d)) * d ** -0.5).astype(bf16)
    k = rope(qkv[:, nh * d:(nh + nkv) * d].reshape(t, nkv, d)).astype(bf16)
    v = qkv[:, (nh + nkv) * d:].reshape(t, nkv, d).astype(bf16)

    kx = jnp.repeat(k, group, axis=1).astype(f32)
    vx = jnp.repeat(v, group, axis=1).astype(f32)
    s = jnp.einsum("tnd,snd->nts", q.astype(f32), kx)
    mask = jnp.tril(jnp.ones((t, t), bool))
    s = jnp.where(mask[None], s, -jnp.inf)
    p = jax.nn.softmax(s, axis=-1).astype(bf16).astype(f32)
    attn = jnp.einsum("nts,snd->tnd", p, vx).astype(bf16).reshape(t, nh * d)

    h = (jnp.dot(attn.astype(f32), params["w_o"].astype(f32))
         + residual.astype(f32)).astype(bf16)

    residual = h
    hn = rms(h, params["ln2_w"])
    g = jnp.dot(hn.astype(f32), params["w_gate"].astype(f32))
    u = jnp.dot(hn.astype(f32), params["w_up"].astype(f32))
    act = (g * lax.logistic(g) * u).astype(bf16)
    out = (jnp.dot(act.astype(f32), params["w_down"].astype(f32))
           + residual.astype(f32)).astype(bf16)
    return out


if __name__ == "__main__":
    # Small but lane-aligned shapes (head_dim=128 so vregs/MXU tiles are full).
    cfg = {
        "hidden_size": 256,
        "num_heads": 2,
        "num_kv_heads": 1,     # GQA group = 2
        "head_dim": 128,       # hidden_size // num_heads
        "intermediate_size": 512,
        "rms_norm_eps": 1e-6,
        "rope_theta": 10000.0,
    }
    T = 512  # total (un-padded) tokens of one prefill sequence

    key = jax.random.PRNGKey(0)
    pkey, xkey = jax.random.split(key)
    params = init_params(pkey, cfg)
    hidden_states = jax.random.normal(
        xkey, (T, cfg["hidden_size"]), jnp.float32).astype(jnp.bfloat16)

    out = jax.block_until_ready(llama_decoder_layer(hidden_states, params, cfg))
    assert out.shape == (T, cfg["hidden_size"])
    assert out.dtype == jnp.bfloat16
    assert bool(jnp.all(jnp.isfinite(out.astype(jnp.float32))))

    ref = reference_decoder_layer(hidden_states, params, cfg)
    err = float(jnp.max(jnp.abs(out.astype(jnp.float32) - ref.astype(jnp.float32))))
    tol = 0.1 + 0.05 * float(jnp.max(jnp.abs(ref.astype(jnp.float32))))
    assert err <= tol, f"mismatch vs reference: {err} > {tol}"

    print("KERNEL_OK")
</pallas_src>

<mosaic_0001>
module attributes {stable_mosaic.version = 11 : i64} {
  func.func @_qkv_kernel(%arg0: i32, %arg1: i32, %arg2: memref<512x256xbf16, #tpu.memory_space<vmem>>, %arg3: memref<1x256xf32, #tpu.memory_space<vmem>>, %arg4: memref<256x512xbf16, #tpu.memory_space<vmem>>, %arg5: memref<512x128xf32, #tpu.memory_space<vmem>>, %arg6: memref<512x128xf32, #tpu.memory_space<vmem>>, %arg7: memref<512x512xbf16, #tpu.memory_space<vmem>>, %arg8: memref<512x256xbf16, #tpu.memory_space<vmem>>) attributes {dimension_semantics = [#tpu.dimension_semantics<parallel>, #tpu.dimension_semantics<arbitrary>], iteration_bounds = array<i64: 1, 1>, scalar_prefetch = 0 : i64, scratch_operands = 1 : i64, tpu.core_type = #tpu.core_type<tc>, window_params = [{transform_indices = @transform_0, window_bounds = array<i64: 512, 256>}, {pipeline_mode = #tpu.pipeline_mode<synchronous>, transform_indices = @transform_1, window_bounds = array<i64: 1, 256>}, {transform_indices = @transform_2, window_bounds = array<i64: 256, 512>}, {transform_indices = @transform_3, window_bounds = array<i64: 512, 128>}, {transform_indices = @transform_4, window_bounds = array<i64: 512, 128>}, {transform_indices = @transform_5, window_bounds = array<i64: 512, 512>}]} {
    %c0_i32 = arith.constant 0 : i32
    %0 = arith.cmpi eq, %arg1, %c0_i32 : i32
    %1 = arith.extui %0 : i1 to i32
    %c0_i32_0 = arith.constant 0 : i32
    %2 = arith.cmpi ne, %1, %c0_i32_0 : i32
    scf.if %2 {
      %c0_36 = arith.constant 0 : index
      %c0_37 = arith.constant 0 : index
      %68 = vector.load %arg2[%c0_36, %c0_37] : memref<512x256xbf16, #tpu.memory_space<vmem>>, vector<512x256xbf16>
      %69 = arith.extf %68 : vector<512x256xbf16> to vector<512x256xf32>
      %70 = arith.mulf %69, %69 : vector<512x256xf32>
      %cst_38 = arith.constant dense<0.000000e+00> : vector<512xf32>
      %71 = vector.multi_reduction <add>, %70, %cst_38 [1] : vector<512x256xf32> to vector<512xf32>
      %72 = vector.shape_cast %71 : vector<512xf32> to vector<512x1xf32>
      %cst_39 = arith.constant 2.560000e+02 : f32
      %73 = vector.broadcast %cst_39 : f32 to vector<512x1xf32>
      %74 = arith.divf %72, %73 : vector<512x1xf32>
      %c0_40 = arith.constant 0 : index
      %c0_41 = arith.constant 0 : index
      %75 = vector.load %arg3[%c0_40, %c0_41] : memref<1x256xf32, #tpu.memory_space<vmem>>, vector<1x256xf32>
      %cst_42 = arith.constant 9.99999997E-7 : f32
      %76 = vector.broadcast %cst_42 : f32 to vector<512x1xf32>
      %77 = arith.addf %74, %76 : vector<512x1xf32>
      %78 = math.rsqrt %77 : vector<512x1xf32>
      %79 = vector.broadcast %78 : vector<512x1xf32> to vector<512x256xf32>
      %80 = arith.mulf %69, %79 : vector<512x256xf32>
      %81 = vector.broadcast %75 : vector<1x256xf32> to vector<512x256xf32>
      %82 = arith.mulf %80, %81 : vector<512x256xf32>
      %83 = arith.truncf %82 : vector<512x256xf32> to vector<512x256xbf16>
      %c0_43 = arith.constant 0 : index
      %c0_44 = arith.constant 0 : index
      %84 = vector.load %arg8[%c0_43, %c0_44] : memref<512x256xbf16, #tpu.memory_space<vmem>>, vector<512x256xbf16>
      tpu.vector_store %arg8[%c0_43, %c0_44], %83 {strides = array<i32>} : memref<512x256xbf16, #tpu.memory_space<vmem>>, vector<512x256xbf16>,
    } else {
    }
    %c0 = arith.constant 0 : index
    %c0_1 = arith.constant 0 : index
    %3 = vector.load %arg8[%c0, %c0_1] : memref<512x256xbf16, #tpu.memory_space<vmem>>, vector<512x256xbf16>
    %c0_2 = arith.constant 0 : index
    %c0_3 = arith.constant 0 : index
    %4 = vector.load %arg4[%c0_2, %c0_3] : memref<256x512xbf16, #tpu.memory_space<vmem>>, vector<256x512xbf16>
    %cst = arith.constant dense<0.000000e+00> : vector<512x512xf32>
    %5 = tpu.matmul %3, %4, %cst {dimension_numbers = #tpu.dot_dimension_numbers<[1], [0], [0], [1], [0, 0, 1, 1], [], []>} : vector<512x256xbf16>, vector<256x512xbf16>, vector<512x512xf32> -> vector<512x512xf32>
    %c0_4 = arith.constant 0 : index
    %c0_5 = arith.constant 0 : index
    %6 = vector.load %arg5[%c0_4, %c0_5] : memref<512x128xf32, #tpu.memory_space<vmem>>, vector<512x128xf32>
    %c0_6 = arith.constant 0 : index
    %c0_7 = arith.constant 0 : index
    %7 = vector.load %arg6[%c0_6, %c0_7] : memref<512x128xf32, #tpu.memory_space<vmem>>, vector<512x128xf32>
    %c4_i32 = arith.constant 4 : i32
    %8 = arith.muli %arg1, %c4_i32 : i32
    %c0_i32_8 = arith.constant 0 : i32
    %9 = arith.addi %8, %c0_i32_8 : i32
    %10 = vector.extract_strided_slice %5 {offsets = [0, 0], sizes = [512, 128], strides = [1, 1]} : vector<512x512xf32> to vector<512x128xf32>
    %11 = arith.mulf %10, %6 : vector<512x128xf32>
    %c64_i32 = arith.constant 64 : i32
    %12 = tpu.dynamic_rotate %10 by %c64_i32 dim 1 : vector<512x128xf32>, i32 -> vector<512x128xf32>
    %13 = arith.mulf %12, %7 : vector<512x128xf32>
    %14 = arith.addf %11, %13 : vector<512x128xf32>
    %c2_i32 = arith.constant 2 : i32
    %15 = arith.cmpi slt, %9, %c2_i32 : i32
    %cst_9 = arith.constant 0.0883883461 : f32
    %cst_10 = arith.constant 1.000000e+00 : f32
    %16 = arith.select %15, %cst_9, %cst_10 : f32
    %c3_i32 = arith.constant 3 : i32
    %17 = arith.cmpi slt, %9, %c3_i32 : i32
    %18 = vector.broadcast %16 : f32 to vector<512x128xf32>
    %19 = arith.mulf %14, %18 : vector<512x128xf32>
    %20 = arith.select %17, %19, %10 : vector<512x128xf32>
    %21 = arith.truncf %20 : vector<512x128xf32> to vector<512x128xbf16>
    %c0_11 = arith.constant 0 : index
    %c0_12 = arith.constant 0 : index
    %22 = vector.load %arg7[%c0_11, %c0_12] : memref<512x512xbf16, #tpu.memory_space<vmem>>, vector<512x128xbf16>
    tpu.vector_store %arg7[%c0_11, %c0_12], %21 {strides = array<i32>} : memref<512x512xbf16, #tpu.memory_space<vmem>>, vector<512x128xbf16>,
    %c4_i32_13 = arith.constant 4 : i32
    %23 = arith.muli %arg1, %c4_i32_13 : i32
    %c1_i32 = arith.constant 1 : i32
    %24 = arith.addi %23, %c1_i32 : i32
    %25 = vector.extract_strided_slice %5 {offsets = [0, 128], sizes = [512, 128], strides = [1, 1]} : vector<512x512xf32> to vector<512x128xf32>
    %26 = arith.mulf %25, %6 : vector<512x128xf32>
    %c64_i32_14 = arith.constant 64 : i32
    %27 = tpu.dynamic_rotate %25 by %c64_i32_14 dim 1 : vector<512x128xf32>, i32 -> vector<512x128xf32>
    %28 = arith.mulf %27, %7 : vector<512x128xf32>
    %29 = arith.addf %26, %28 : vector<512x128xf32>
    %c2_i32_15 = arith.constant 2 : i32
    %30 = arith.cmpi slt, %24, %c2_i32_15 : i32
    %cst_16 = arith.constant 0.0883883461 : f32
    %cst_17 = arith.constant 1.000000e+00 : f32
    %31 = arith.select %30, %cst_16, %cst_17 : f32
    %c3_i32_18 = arith.constant 3 : i32
    %32 = arith.cmpi slt, %24, %c3_i32_18 : i32
    %33 = vector.broadcast %31 : f32 to vector<512x128xf32>
    %34 = arith.mulf %29, %33 : vector<512x128xf32>
    %35 = arith.select %32, %34, %25 : vector<512x128xf32>
    %36 = arith.truncf %35 : vector<512x128xf32> to vector<512x128xbf16>
    %c0_19 = arith.constant 0 : index
    %c128 = arith.constant 128 : index
    %37 = vector.load %arg7[%c0_19, %c128] : memref<512x512xbf16, #tpu.memory_space<vmem>>, vector<512x128xbf16>
    tpu.vector_store %arg7[%c0_19, %c128], %36 {strides = array<i32>} : memref<512x512xbf16, #tpu.memory_space<vmem>>, vector<512x128xbf16>,
    %c4_i32_20 = arith.constant 4 : i32
    %38 = arith.muli %arg1, %c4_i32_20 : i32
    %c2_i32_21 = arith.constant 2 : i32
    %39 = arith.addi %38, %c2_i32_21 : i32
    %40 = vector.extract_strided_slice %5 {offsets = [0, 256], sizes = [512, 128], strides = [1, 1]} : vector<512x512xf32> to vector<512x128xf32>
    %41 = arith.mulf %40, %6 : vector<512x128xf32>
    %c64_i32_22 = arith.constant 64 : i32
    %42 = tpu.dynamic_rotate %40 by %c64_i32_22 dim 1 : vector<512x128xf32>, i32 -> vector<512x128xf32>
    %43 = arith.mulf %42, %7 : vector<512x128xf32>
    %44 = arith.addf %41, %43 : vector<512x128xf32>
    %c2_i32_23 = arith.constant 2 : i32
    %45 = arith.cmpi slt, %39, %c2_i32_23 : i32
    %cst_24 = arith.constant 0.0883883461 : f32
    %cst_25 = arith.constant 1.000000e+00 : f32
    %46 = arith.select %45, %cst_24, %cst_25 : f32
    %c3_i32_26 = arith.constant 3 : i32
    %47 = arith.cmpi slt, %39, %c3_i32_26 : i32
    %48 = vector.broadcast %46 : f32 to vector<512x128xf32>
    %49 = arith.mulf %44, %48 : vector<512x128xf32>
    %50 = arith.select %47, %49, %40 : vector<512x128xf32>
    %51 = arith.truncf %50 : vector<512x128xf32> to vector<512x128xbf16>
    %c0_27 = arith.constant 0 : index
    %c256 = arith.constant 256 : index
    %52 = vector.load %arg7[%c0_27, %c256] : memref<512x512xbf16, #tpu.memory_space<vmem>>, vector<512x128xbf16>
    tpu.vector_store %arg7[%c0_27, %c256], %51 {strides = array<i32>} : memref<512x512xbf16, #tpu.memory_space<vmem>>, vector<512x128xbf16>,
    %c4_i32_28 = arith.constant 4 : i32
    %53 = arith.muli %arg1, %c4_i32_28 : i32
    %c3_i32_29 = arith.constant 3 : i32
    %54 = arith.addi %53, %c3_i32_29 : i32
    %55 = vector.extract_strided_slice %5 {offsets = [0, 384], sizes = [512, 128], strides = [1, 1]} : vector<512x512xf32> to vector<512x128xf32>
    %56 = arith.mulf %55, %6 : vector<512x128xf32>
    %c64_i32_30 = arith.constant 64 : i32
    %57 = tpu.dynamic_rotate %55 by %c64_i32_30 dim 1 : vector<512x128xf32>, i32 -> vector<512x128xf32>
    %58 = arith.mulf %57, %7 : vector<512x128xf32>
    %59 = arith.addf %56, %58 : vector<512x128xf32>
    %c2_i32_31 = arith.constant 2 : i32
    %60 = arith.cmpi slt, %54, %c2_i32_31 : i32
    %cst_32 = arith.constant 0.0883883461 : f32
    %cst_33 = arith.constant 1.000000e+00 : f32
    %61 = arith.select %60, %cst_32, %cst_33 : f32
    %c3_i32_34 = arith.constant 3 : i32
    %62 = arith.cmpi slt, %54, %c3_i32_34 : i32
    %63 = vector.broadcast %61 : f32 to vector<512x128xf32>
    %64 = arith.mulf %59, %63 : vector<512x128xf32>
    %65 = arith.select %62, %64, %55 : vector<512x128xf32>
    %66 = arith.truncf %65 : vector<512x128xf32> to vector<512x128xbf16>
    %c0_35 = arith.constant 0 : index
    %c384 = arith.constant 384 : index
    %67 = vector.load %arg7[%c0_35, %c384] : memref<512x512xbf16, #tpu.memory_space<vmem>>, vector<512x128xbf16>
    tpu.vector_store %arg7[%c0_35, %c384], %66 {strides = array<i32>} : memref<512x512xbf16, #tpu.memory_space<vmem>>, vector<512x128xbf16>,
    return
  }
  func.func @transform_0(%arg0: i32, %arg1: i32) -> (i32, i32) {
    %c0_i32 = arith.constant 0 : i32
    %c0_i32_0 = arith.constant 0 : i32
    return %arg0, %c0_i32 : i32, i32
  }
  func.func @transform_1(%arg0: i32, %arg1: i32) -> (i32, i32) {
    %c0_i32 = arith.constant 0 : i32
    %c0_i32_0 = arith.constant 0 : i32
    %c0_i32_1 = arith.constant 0 : i32
    return %c0_i32, %c0_i32_0 : i32, i32
  }
  func.func @transform_2(%arg0: i32, %arg1: i32) -> (i32, i32) {
    %c0_i32 = arith.constant 0 : i32
    %c0_i32_0 = arith.constant 0 : i32
    return %c0_i32, %arg1 : i32, i32
  }
  func.func @transform_3(%arg0: i32, %arg1: i32) -> (i32, i32) {
    %c0_i32 = arith.constant 0 : i32
    %c0_i32_0 = arith.constant 0 : i32
    return %arg0, %c0_i32 : i32, i32
  }
  func.func @transform_4(%arg0: i32, %arg1: i32) -> (i32, i32) {
    %c0_i32 = arith.constant 0 : i32
    %c0_i32_0 = arith.constant 0 : i32
    return %arg0, %c0_i32 : i32, i32
  }
  func.func @transform_5(%arg0: i32, %arg1: i32) -> (i32, i32) {
    %c0_i32 = arith.constant 0 : i32
    return %arg0, %arg1 : i32, i32
  }
}

</mosaic_0001>

<bundles_post_ra>
// kernel: tpu_custom_call.1
= control target key start
LH: loop header
LB: loop body
LE: loop exit
PB: predicated region body
PF: predicated region fallthrough
CT: control target
= control target key end

     0   :  { %10 = vsyncpa [#allocation4], 0  ;;  %s11416_s0 = inlined_call_operand.hbm [shape: bf16[512,256], index: 0, kind: input, shape index: {}]   ;;  %s11417_s1 = inlined_call_operand.hbm [shape: f32[1,256], index: 1, kind: input, shape index: {}]   ;;  %s11418_s2 = inlined_call_operand.hbm [shape: bf16[256,512], index: 2, kind: input, shape index: {}]   ;;  %s11419_s3 = inlined_call_operand.hbm [shape: f32[512,128], index: 3, kind: input, shape index: {}]   ;;  %s11420_s4 = inlined_call_operand.hbm [shape: f32[512,128], index: 4, kind: input, shape index: {}]   ;;  %s11421_s5 = inlined_call_operand.hbm [shape: bf16[512,512], index: 5, kind: output, shape index: {}]  }
   0x1   :  { %11 = vsyncpa [#allocation7], 0 }
   0x2   :  { %12 = vsyncpa [#allocation10], 0  ;;  %s32_s20 = sshll.u32 %s11417_s1, 4  ;;  %s33_s20 = int_to_ptr.hbm [resolvable:$true] %s32_s20 }
   0x3   :  { %13 = vsyncpa [#allocation5], 0  ;;  %s7445_s21 = smov [#allocation6]   ;;  %s55_s25 = sshll.u32 %s11419_s3, 4  ;;  %s56_s25 = int_to_ptr.hbm [resolvable:$true] %s55_s25 }
   0x4   :  { %s34_s22 = sshll.u32 %s7445_s21, 4  ;;  %s7446_s26 = smov [#allocation9]   ;;  %s35_s22 = int_to_ptr.vmem [resolvable:$true] %s34_s22 }
   0x5   :  { %37 = dma.hbm_to_vmem [thread:$0]  %s33_s20, 32, %s35_s22, [#allocation7]  }
   0x6   :  { %s57_s27 = sshll.u32 %s7446_s26, 4  ;;  %s18_s30 = sshll.u32 %s11416_s0, 4  ;;  %s58_s27 = int_to_ptr.vmem [resolvable:$true] %s57_s27  ;;  %s19_s30 = int_to_ptr.hbm [resolvable:$true] %s18_s30 }
   0x7   :  { %s7447_s1 = smov 128   ;;  %s7448_s6 = smov 8  }
   0x8   :  { %63 = dma.hbm_to_vmem [thread:$0]  %s56_s25, 8192, %s58_s27, [#allocation10], %s7447_s1, %s7447_s1, %s7448_s6  }
   0x9   :  { %s42_s9 = sshll.u32 %s11418_s2, 4  ;;  %s7449_s10 = smov [#allocation3]   ;;  %s43_s9 = int_to_ptr.hbm [resolvable:$true] %s42_s9 }
   0xa   :  { %s20_s11 = sshll.u32 %s7449_s10, 4  ;;  %s7450_s3 = smov [#allocation8]   ;;  %s21_s11 = int_to_ptr.vmem [resolvable:$true] %s20_s11 }
   0xb   :  { %26 = dma.hbm_to_vmem [thread:$0]  %s19_s30, 8192, %s21_s11, [#allocation4], %s7447_s1, %s7447_s1, %s7448_s6  }
   0xc   :  { %s44_s12 = sshll.u32 %s7450_s3, 4  ;;  %s7451_s13 = smov 256   ;;  %s45_s12 = int_to_ptr.vmem [resolvable:$true] %s44_s12 }
   0xd   :  { %s7452_s14 = smov 16   ;;  %s68_s16 = sshll.u32 %s11420_s4, 4  ;;  %s69_s16 = int_to_ptr.hbm [resolvable:$true] %s68_s16 }
   0xe   :  { %50 = dma.hbm_to_vmem [thread:$0]  %s43_s9, 8192, %s45_s12, [#allocation7], %s7451_s13, %s7451_s13, %s7452_s14  }
   0xf   :  { %s7453_s2 = smov [#allocation11]  }
  0x10   :  { %s70_s17 = sshll.u32 %s7453_s2, 4  ;;  %s71_s17 = int_to_ptr.vmem [resolvable:$true] %s70_s17 }
  0x11   :  { %76 = dma.hbm_to_vmem [thread:$0]  %s69_s16, 8192, %s71_s17, [#allocation10], %s7447_s1, %s7447_s1, %s7448_s6  }
  0x12   :  { %7437 = dma.done.wait [#allocation4], 8192  }
  0x13   :  { %7438 = vsyncadd [#allocation4], 4294959104 }
  0x14   :  { %7439 = dma.done.wait [#allocation7], 8224  }
  0x15   :  { %7440 = vsyncadd [#allocation7], 4294959072 }
  0x16   :  { %7441 = dma.done.wait [#allocation10], 16384  }
  0x17   :  { %7442 = vsyncadd [#allocation10], 4294950912  ;;  %v103_v0 = vld [vmem:[#allocation3 + $0x10] sm:$0xff]  ;;  %v101_v1 = vld [vmem:[#allocation3] sm:$0xff]  ;;  %s7455_s4 = smov 64   ;;  %s7456_s18 = smov [#allocation12]  }
  0x18   :  { %v104_v2 = vld [vmem:[#allocation3 + $0x18] sm:$0xff]  ;;  %v7505_v3 = vunpack.c.l.bf16 %v103_v0  ;;  %v7507_v4 = vunpack.c.h.bf16 %v103_v0  ;;  %v7509_v5 = vunpack.c.l.bf16 %v101_v1  ;;  %v7511_v6 = vunpack.c.h.bf16 %v101_v1  ;;  %v102_v7 = vld [vmem:[#allocation3 + $0x8] sm:$0xff]  ;;  %v105_v12 = vld [vmem:[#allocation3 + $0x20] sm:$0xff]  ;;  %s6366_s19 = sshll.u32 %s7456_s18, 4  ;;  %s6368_s22 = sshll.u32 %s11421_s5, 4  ;;  %s6367_s19 = int_to_ptr.vmem [resolvable:$true] %s6366_s19  ;;  %s6369_s22 = int_to_ptr.hbm [resolvable:$true] %s6368_s22 }
  0x19   :  { %v7513_v8 = vunpack.c.l.bf16 %v104_v2  ;;  %v7515_v9 = vunpack.c.h.bf16 %v104_v2  ;;  %v7517_v10 = vunpack.c.l.bf16 %v102_v7  ;;  %v7519_v11 = vunpack.c.h.bf16 %v102_v7  ;;  %v106_v17 = vld [vmem:[#allocation3 + $0x28] sm:$0xff]  ;;  %v108_v30 = vld [vmem:[#allocation3 + $0x38] sm:$0xff]  ;;  %v107_v31 = vld [vmem:[#allocation3 + $0x30] sm:$0xff] }
  0x1a   :  { %v297_v13 = vmul.f32 %v7505_v3, %v7505_v3  ;;  %v298_v14 = vmul.f32 %v7507_v4, %v7507_v4  ;;  %v293_v15 = vmul.f32 %v7509_v5, %v7509_v5  ;;  %v294_v16 = vmul.f32 %v7511_v6, %v7511_v6  ;;  %v109_v41 = vld [vmem:[#allocation3 + $0x40] sm:$0xff]  ;;  %v110_v49 = vld [vmem:[#allocation3 + $0x48] sm:$0xff]  ;;  %v111_v50 = vld [vmem:[#allocation3 + $0x50] sm:$0xff] }
  0x1b   :  { %v7529_v20 = vunpack.c.l.bf16 %v105_v12  ;;  %v7531_v21 = vunpack.c.h.bf16 %v105_v12  ;;  %v299_v22 = vmul.f32 %v7513_v8, %v7513_v8  ;;  %v300_v23 = vmul.f32 %v7515_v9, %v7515_v9  ;;  %v112_v57 = vld [vmem:[#allocation3 + $0x58] sm:$0xff]  ;;  %v114_v7 = vld [vmem:[#allocation3 + $0x68] sm:$0xff]  ;;  %v113_v12 = vld [vmem:[#allocation3 + $0x60] sm:$0xff] }
  0x1c   :  { %v427_v18 = vadd.f32 %v298_v14, %v297_v13  ;;  %v421_v19 = vadd.f32 %v294_v16, %v293_v15  ;;  %v295_v24 = vmul.f32 %v7517_v10, %v7517_v10  ;;  %v296_v25 = vmul.f32 %v7519_v11, %v7519_v11 }
  0x1d   :  { %v301_v26 = vmul.f32 %v7529_v20, %v7529_v20  ;;  %v302_v27 = vmul.f32 %v7531_v21, %v7531_v21  ;;  %v7545_v28 = vunpack.c.l.bf16 %v106_v17  ;;  %v7547_v29 = vunpack.c.h.bf16 %v106_v17 }
  0x1e   :  { %428 = vadd.xlane.f32.xlu1 %v427_v18  ;;  %422 = vadd.xlane.f32.xlu0 %v421_v19  ;;  %v430_v33 = vadd.f32 %v300_v23, %v299_v22  ;;  %v424_v34 = vadd.f32 %v296_v25, %v295_v24  ;;  %v7549_v35 = vunpack.c.l.bf16 %v108_v30  ;;  %v7551_v36 = vunpack.c.h.bf16 %v108_v30  ;;  %v115_v23 = vld [vmem:[#allocation3 + $0x70] sm:$0xff] }
  0x1f   :  { %v433_v32 = vadd.f32 %v302_v27, %v301_v26  ;;  %v303_v37 = vmul.f32 %v7545_v28, %v7545_v28  ;;  %v304_v38 = vmul.f32 %v7547_v29, %v7547_v29  ;;  %v7557_v39 = vunpack.c.l.bf16 %v107_v31 }
  0x20   :  { %v7559_v40 = vunpack.c.h.bf16 %v107_v31  ;;  %v307_v42 = vmul.f32 %v7549_v35, %v7549_v35  ;;  %v308_v43 = vmul.f32 %v7551_v36, %v7551_v36  ;;  %v7565_v44 = vunpack.c.l.bf16 %v109_v41 }
  0x21   :  { %434 = vadd.xlane.f32.xlu2 %v433_v32  ;;  %v436_v45 = vadd.f32 %v304_v38, %v303_v37  ;;  %v305_v46 = vmul.f32 %v7557_v39, %v7557_v39  ;;  %v7571_v48 = vunpack.c.h.bf16 %v109_v41  ;;  %v7575_v53 = vunpack.c.l.bf16 %v110_v49 }
  0x22   :  { %v306_v47 = vmul.f32 %v7559_v40, %v7559_v40  ;;  %v442_v51 = vadd.f32 %v308_v43, %v307_v42  ;;  %v309_v52 = vmul.f32 %v7565_v44, %v7565_v44  ;;  %v7577_v54 = vunpack.c.h.bf16 %v110_v49 }
  0x23   :  { %v310_v56 = vmul.f32 %v7571_v48, %v7571_v48  ;;  %v7581_v58 = vunpack.c.l.bf16 %v111_v50  ;;  %v7583_v59 = vunpack.c.h.bf16 %v111_v50  ;;  %v311_v60 = vmul.f32 %v7575_v53, %v7575_v53  ;;  %v118_v50 = vld [vmem:[#allocation3 + $0x88] sm:$0xff] }
  0x24   :  { %v439_v55 = vadd.f32 %v306_v47, %v305_v46  ;;  %v312_v61 = vmul.f32 %v7577_v54, %v7577_v54  ;;  %v7589_v62 = vunpack.c.l.bf16 %v112_v57  ;;  %v7591_v63 = vunpack.c.h.bf16 %v112_v57 }
  0x25   :  { %v445_v0 = vadd.f32 %v310_v56, %v309_v52  ;;  %v313_v1 = vmul.f32 %v7581_v58, %v7581_v58  ;;  %v314_v2 = vmul.f32 %v7583_v59, %v7583_v59  ;;  %v7601_v15 = vunpack.c.l.bf16 %v114_v7 }
  0x26   :  { %431 = vadd.xlane.f32.xlu1 %v430_v33  ;;  %425 = vadd.xlane.f32.xlu0 %v424_v34  ;;  %v315_v13 = vmul.f32 %v7589_v62, %v7589_v62  ;;  %v316_v14 = vmul.f32 %v7591_v63, %v7591_v63  ;;  %v7603_v16 = vunpack.c.h.bf16 %v114_v7  ;;  %v448_v17 = vadd.f32 %v312_v61, %v311_v60  ;;  %v116_v33 = vld [vmem:[#allocation3 + $0x78] sm:$0xff] }
  0x27   :  { %v451_v18 = vadd.f32 %v314_v2, %v313_v1  ;;  %v7605_v19 = vunpack.c.l.bf16 %v113_v12  ;;  %v7607_v22 = vunpack.c.h.bf16 %v113_v12  ;;  %v319_v25 = vmul.f32 %v7601_v15, %v7601_v15 }
  0x28   :  { %v454_v24 = vadd.f32 %v316_v14, %v315_v13  ;;  %v320_v26 = vmul.f32 %v7603_v16, %v7603_v16  ;;  %v7617_v31 = vunpack.c.l.bf16 %v115_v23  ;;  %v7619_v32 = vunpack.c.h.bf16 %v115_v23  ;;  %v6881_v23 = vld [vmem:[#allocation8 + $0x1e0] sm:$0xf] }
  0x29   :  { %437 = vadd.xlane.f32.xlu2 %v436_v45  ;;  %v317_v27 = vmul.f32 %v7605_v19, %v7605_v19  ;;  %v318_v30 = vmul.f32 %v7607_v22, %v7607_v22  ;;  %v7621_v34 = vunpack.c.l.bf16 %v116_v33  ;;  %v7623_v37 = vunpack.c.h.bf16 %v116_v33 }
  0x2a   :  { %v460_v38 = vadd.f32 %v320_v26, %v319_v25  ;;  %v321_v42 = vmul.f32 %v7617_v31, %v7617_v31  ;;  %v322_v43 = vmul.f32 %v7619_v32, %v7619_v32  ;;  %v7633_v52 = vunpack.c.l.bf16 %v118_v50  ;;  %v7021_v25 = vld [vmem:[#allocation8 + $0x1ec] sm:$0xf0]  ;;  %v6987_v26 = vld [vmem:[#allocation8 + $0xe4] sm:$0xf] }
  0x2b   :  { %11609 = vst [vmem:[#allocation17_spill] sm:$0xff] %v7621_v34  ;;  %v457_v41 = vadd.f32 %v318_v30, %v317_v27  ;;  %v323_v46 = vmul.f32 %v7621_v34, %v7621_v34  ;;  %v324_v47 = vmul.f32 %v7623_v37, %v7623_v37  ;;  %v7454_v2 = vmov 256.0   ;;  %v6755_v27 = vld [vmem:[#allocation8 + $0xf0] sm:$0xf0] }
  0x2c   :  { %11610 = vst [vmem:[#allocation18_spill] sm:$0xff] %v7623_v37  ;;  %v463_v45 = vadd.f32 %v322_v43, %v321_v42  ;;  %v327_v60 = vmul.f32 %v7633_v52, %v7633_v52  ;;  %7035 = vrcp.f32 %v7454_v2  ;;  %v6882_v30 = vor.u32 %v7021_v25, %v6881_v23  ;;  %v120_v42 = vld [vmem:[#allocation3 + $0x98] sm:$0xff]  ;;  %v7017_v2 = vld [vmem:[#allocation8 + $0x1cc] sm:$0xf0] }
  0x2d   :  { %v466_v49 = vadd.f32 %v324_v47, %v323_v46  ;;  %11611 = vst [vmem:[#allocation19_spill] sm:$0xff] %v7633_v52  ;;  %v6758_v33 = vor.u32 %v6987_v26, %v6755_v27  ;;  %v7652_v46 = vunpack.c.l.bf16 %v120_v42  ;;  %v7654_v47 = vunpack.c.h.bf16 %v120_v42  ;;  %v6867_v25 = vld [vmem:[#allocation8 + $0x1d0] sm:$0xf0]  ;;  %v6721_v42 = vld [vmem:[#allocation8 + $0xa0] sm:$0xf] }
  0x2e   :  { %443 = vadd.xlane.f32.xlu1 %v442_v51  ;;  %440 = vadd.xlane.f32.xlu0 %v439_v55  ;;  %v117_v51 = vld [vmem:[#allocation3 + $0x80] sm:$0xff]  ;;  %v7635_v55 = vunpack.c.h.bf16 %v118_v50 }
  0x2f   :  { %v7637_v56 = vunpack.c.l.bf16 %v117_v51  ;;  %v7639_v57 = vunpack.c.h.bf16 %v117_v51  ;;  %11615 = vst [vmem:[#allocation23_spill] sm:$0xff] %v7652_v46  ;;  %2715 = vmatpush.bf16.msra.mxu1 %v6882_v30  ;;  %2884 = vmatpush.bf16.msra.mxu2 %v6758_v33  ;;  %v6737_v50 = vld [vmem:[#allocation8 + $0xc0] sm:$0xf]  ;;  %v6985_v51 = vld [vmem:[#allocation8 + $0xcc] sm:$0xf0] }
  0x30   :  { %11612 = vst [vmem:[#allocation20_spill] sm:$0xff] %v7635_v55  ;;  %v328_v61 = vmul.f32 %v7635_v55, %v7635_v55  ;;  %v6995_v55 = vld [vmem:[#allocation8 + $0x124] sm:$0xf] }
  0x31   :  { %446 = vadd.xlane.f32.xlu2 %v445_v0  ;;  %11613 = vst [vmem:[#allocation21_spill] sm:$0xff] %v7637_v56  ;;  %v325_v0 = vmul.f32 %v7637_v56, %v7637_v56  ;;  %v326_v1 = vmul.f32 %v7639_v57, %v7639_v57 }
  0x32   :  { %11614 = vst [vmem:[#allocation22_spill] sm:$0xff] %v7639_v57  ;;  %v472_v7 = vadd.f32 %v328_v61, %v327_v60  ;;  %v7649_v13 = vpop.eup %7035  ;;  %v6865_v60 = vld [vmem:[#allocation8 + $0x1c0] sm:$0xf] }
  0x33   :  { %v469_v12 = vadd.f32 %v326_v1, %v325_v0  ;;  %v614_v14 = vmul.f32 256.0, %v7649_v13  ;;  %11616 = vst [vmem:[#allocation24_spill] sm:$0xff] %v7654_v47  ;;  %v6738_v1 = vor.u32 %v6985_v51, %v6737_v50  ;;  %v7013_v51 = vld [vmem:[#allocation8 + $0x1ac] sm:$0xf0]  ;;  %vm618_vm0 = vweird.f32 %v7649_v13 }
  0x35   :  { %v615_v43 = vsub.f32 1.0, %v614_v14  ;;  %v331_v14 = vmul.f32 %v7652_v46, %v7652_v46  ;;  %v6963_v46 = vld [vmem:[#allocation8 + $0x24] sm:$0xf] }
  0x36   :  { %449 = vadd.xlane.f32.xlu0 %v448_v17  ;;  %452 = vadd.xlane.f32.xlu1 %v451_v18  ;;  %v6753_v17 = vld [vmem:[#allocation8 + $0xe0] sm:$0xf]  ;;  %v6989_v18 = vld [vmem:[#allocation8 + $0xec] sm:$0xf0] }
  0x39   :  { %455 = vadd.xlane.f32.xlu2 %v454_v24  ;;  %v6754_v24 = vor.u32 %v6989_v18, %v6753_v17  ;;  %v332_v17 = vmul.f32 %v7654_v47, %v7654_v47  ;;  %v6866_v18 = vor.u32 %v7017_v2, %v6865_v60  ;;  %v6979_v60 = vld [vmem:[#allocation8 + $0xa4] sm:$0xf]  ;;  %v6723_v2 = vld [vmem:[#allocation8 + $0xb0] sm:$0xf0]  ;;  %v6997_v47 = vld [vmem:[#allocation8 + $0x12c] sm:$0xf0] }
  0x3b   :  { %2546 = vmatpush.bf16.msra.mxu0 %v6754_v24  ;;  %v7015_v24 = vld [vmem:[#allocation8 + $0x1c4] sm:$0xf]  ;;  %v478_v33 = vadd.f32 %v332_v17, %v331_v14  ;;  %2716 = vmatpush.bf16.msra.mxu1 %v6866_v18  ;;  %v6705_v17 = vld [vmem:[#allocation8 + $0x80] sm:$0xf]  ;;  %v6977_v18 = vld [vmem:[#allocation8 + $0x8c] sm:$0xf0] }
  0x3c   :  { %v6870_v30 = vor.u32 %v7015_v24, %v6867_v25  ;;  %v6851_v24 = vld [vmem:[#allocation8 + $0x1b0] sm:$0xf0]  ;;  %v6706_v25 = vor.u32 %v6977_v18, %v6705_v17 }
  0x3e   :  { %461 = vadd.xlane.f32.xlu1 %v460_v38  ;;  %458 = vadd.xlane.f32.xlu0 %v457_v41  ;;  %v7019_v38 = vld [vmem:[#allocation8 + $0x1e4] sm:$0xf]  ;;  %v6883_v41 = vld [vmem:[#allocation8 + $0x1f0] sm:$0xf0] }
  0x3f   :  { %2547 = vmatpush.bf16.msra.mxu0 %v6738_v1  ;;  %v7011_v1 = vld [vmem:[#allocation8 + $0x1a4] sm:$0xf] }
  0x40   :  { %v6854_v14 = vor.u32 %v7011_v1, %v6851_v24  ;;  %v6691_v1 = vld [vmem:[#allocation8 + $0x70] sm:$0xf0] }
  0x41   :  { %464 = vadd.xlane.f32.xlu2 %v463_v45  ;;  %v6886_v45 = vor.u32 %v7019_v38, %v6883_v41  ;;  %v616_v38 = vmul.f32 %v7649_v13, %v615_v43 }
  0x43   :  { %3053 = vmatpush.bf16.msra.mxu3 %v6886_v45  ;;  %v6981_v45 = vld [vmem:[#allocation8 + $0xac] sm:$0xf0]  ;;  %v617_v43 = vadd.f32 %v7649_v13, %v616_v38 }
  0x44   :  { %v6722_v50 = vor.u32 %v6981_v45, %v6721_v42  ;;  %v7007_v42 = vld [vmem:[#allocation8 + $0x184] sm:$0xf]  ;;  %v6835_v45 = vld [vmem:[#allocation8 + $0x190] sm:$0xf0] }
  0x45   :  { %v7672_v38 = vsel %vm618_vm0, %v7649_v13, %v617_v43 }
  0x46   :  { %467 = vadd.xlane.f32.xlu0 %v466_v49  ;;  %470 = vadd.xlane.f32.xlu1 %v469_v12  ;;  %v119_v49 = vld [vmem:[#allocation3 + $0x90] sm:$0xff] }
  0x47   :  { %v7656_v61 = vunpack.c.l.bf16 %v119_v49  ;;  %v7658_v0 = vunpack.c.h.bf16 %v119_v49  ;;  %v6739_v12 = vld [vmem:[#allocation8 + $0xd0] sm:$0xf0]  ;;  %v6849_v49 = vld [vmem:[#allocation8 + $0x1a0] sm:$0xf]  ;;  %3054 = vmatpush.bf16.msra.mxu3 %v6870_v30  ;;  %2548 = vmatpush.bf16.msra.mxu0 %v6722_v50 }
  0x48   :  { %v6707_v30 = vld [vmem:[#allocation8 + $0x90] sm:$0xf0]  ;;  %v6689_v50 = vld [vmem:[#allocation8 + $0x60] sm:$0xf] }
  0x49   :  { %473 = vadd.xlane.f32.xlu2 %v472_v7  ;;  %11617 = vst [vmem:[#allocation25_spill] sm:$0xff] %v7656_v61  ;;  %v6983_v7 = vld [vmem:[#allocation8 + $0xc4] sm:$0xf]  ;;  %v329_v26 = vmul.f32 %v7656_v61, %v7656_v61  ;;  %v330_v27 = vmul.f32 %v7658_v0, %v7658_v0 }
  0x4a   :  { %11618 = vst [vmem:[#allocation26_spill] sm:$0xff] %v7658_v0  ;;  %v6742_v23 = vor.u32 %v6983_v7, %v6739_v12  ;;  %v6850_v7 = vor.u32 %v7013_v51, %v6849_v49  ;;  %v6726_v12 = vor.u32 %v6979_v60, %v6723_v2  ;;  %v6838_v49 = vor.u32 %v7007_v42, %v6835_v45  ;;  %v6973_v51 = vld [vmem:[#allocation8 + $0x6c] sm:$0xf0]  ;;  %v6817_v60 = vld [vmem:[#allocation8 + $0x160] sm:$0xf] }
  0x4b   :  { %v475_v41 = vadd.f32 %v330_v27, %v329_v26  ;;  %3055 = vmatpush.bf16.msra.mxu3 %v6854_v14  ;;  %v7009_v26 = vld [vmem:[#allocation8 + $0x18c] sm:$0xf0]  ;;  %v6975_v27 = vld [vmem:[#allocation8 + $0x84] sm:$0xf]  ;;  %2549 = vmatpush.bf16.msra.mxu0 %v6706_v25  ;;  %v6690_v2 = vor.u32 %v6973_v51, %v6689_v50  ;;  %v6819_v25 = vld [vmem:[#allocation8 + $0x170] sm:$0xf0] }
  0x4c   :  { %2885 = vmatpush.bf16.msra.mxu2 %v6742_v23  ;;  %2717 = vmatpush.bf16.msra.mxu1 %v6850_v7  ;;  %v6833_v23 = vld [vmem:[#allocation8 + $0x180] sm:$0xf]  ;;  %v7005_v7 = vld [vmem:[#allocation8 + $0x16c] sm:$0xf0] }
  0x4d   :  { %v6818_v17 = vor.u32 %v7005_v7, %v6817_v60  ;;  %v6673_v42 = vld [vmem:[#allocation8 + $0x40] sm:$0xf]  ;;  %v6969_v45 = vld [vmem:[#allocation8 + $0x4c] sm:$0xf0] }
  0x4e   :  { %479 = vadd.xlane.f32.xlu1 %v478_v33  ;;  %476 = vadd.xlane.f32.xlu0 %v475_v41  ;;  %v6834_v33 = vor.u32 %v7009_v26, %v6833_v23  ;;  %v6710_v41 = vor.u32 %v6975_v27, %v6707_v30  ;;  %v7003_v23 = vld [vmem:[#allocation8 + $0x164] sm:$0xf]  ;;  %v684_v27 = vld [vmem:[#allocation6] sm:$0x3] }
  0x4f   :  { %3056 = vmatpush.bf16.msra.mxu3 %v6838_v49  ;;  %v121_v26 = vld [vmem:[#allocation3 + $0xa0] sm:$0xff]  ;;  %2550 = vmatpush.bf16.msra.mxu0 %v6690_v2  ;;  %v6822_v30 = vor.u32 %v7003_v23, %v6819_v25  ;;  %v6674_v2 = vor.u32 %v6969_v45, %v6673_v42  ;;  %v6675_v23 = vld [vmem:[#allocation8 + $0x50] sm:$0xf0] }
  0x50   :  { %2886 = vmatpush.bf16.msra.mxu2 %v6726_v12  ;;  %2718 = vmatpush.bf16.msra.mxu1 %v6834_v33  ;;  %v6971_v12 = vld [vmem:[#allocation8 + $0x64] sm:$0xf]  ;;  %v7676_v33 = vunpack.c.l.bf16 %v121_v26  ;;  %v6801_v49 = vld [vmem:[#allocation8 + $0x140] sm:$0xf]  ;;  %v7678_v50 = vunpack.c.h.bf16 %v121_v26  ;;  %v6803_v42 = vld [vmem:[#allocation8 + $0x150] sm:$0xf0] }
  0x51   :  { %v6694_v18 = vor.u32 %v6971_v12, %v6691_v1  ;;  %v7001_v1 = vld [vmem:[#allocation8 + $0x14c] sm:$0xf0]  ;;  %v6999_v25 = vld [vmem:[#allocation8 + $0x144] sm:$0xf] }
  0x52   :  { %11619 = vst [vmem:[#allocation27_spill] sm:$0xff] %v7676_v33  ;;  %v334_v26 = vmul.f32 %v7678_v50, %v7678_v50 }
  0x53   :  { %11620 = vst [vmem:[#allocation28_spill] sm:$0xff] %v7678_v50  ;;  %3057 = vmatpush.bf16.msra.mxu3 %v6822_v30  ;;  %v7696_v30 = vperm.slane %v684_v27, 0  ;;  %2551 = vmatpush.bf16.msra.mxu0 %v6674_v2  ;;  %v6657_v50 = vld [vmem:[#allocation8 + $0x20] sm:$0xf] }
  0x54   :  { %2887 = vmatpush.bf16.msra.mxu2 %v6710_v41  ;;  %v122_v41 = vld [vmem:[#allocation3 + $0xa8] sm:$0xff]  ;;  %2719 = vmatpush.bf16.msra.mxu1 %v6818_v17  ;;  %v6802_v17 = vor.u32 %v7001_v1, %v6801_v49  ;;  %v6806_v49 = vor.u32 %v6999_v25, %v6803_v42 }
  0x55   :  { %v7680_v51 = vunpack.c.l.bf16 %v122_v41  ;;  %v7682_v60 = vunpack.c.h.bf16 %v122_v41 }
  0x57   :  { %11621 = vst [vmem:[#allocation29_spill] sm:$0xff] %v7680_v51  ;;  %3058 = vmatpush.bf16.msra.mxu3 %v6806_v49  ;;  %v6959_v49 = vld [vmem:[#allocation8 + $0x4] sm:$0xf] }
  0x58   :  { %2888 = vmatpush.bf16.msra.mxu2 %v6694_v18  ;;  %11622 = vst [vmem:[#allocation30_spill] sm:$0xff] %v7682_v60  ;;  %v6967_v18 = vld [vmem:[#allocation8 + $0x44] sm:$0xf]  ;;  %2720 = vmatpush.bf16.msra.mxu1 %v6802_v17  ;;  %v6787_v17 = vld [vmem:[#allocation8 + $0x130] sm:$0xf0] }
  0x59   :  { %v6678_v45 = vor.u32 %v6967_v18, %v6675_v23  ;;  %v7703_v18 = vperm.slane %v684_v27, 1 }
  0x5c   :  { %2889 = vmatpush.bf16.msra.mxu2 %v6678_v45 }
  0x91   :  { %v429_v24 = vpop.xlane.xlu1 %428  ;;  %v423_v14 = vpop.xlane.xlu0 %422 }
  0x92   :  { %v622_v13 = vmul.f32 %v7672_v38, %v429_v24  ;;  %v620_v43 = vmul.f32 %v7672_v38, %v423_v14  ;;  %v333_v24 = vmul.f32 %v7676_v33, %v7676_v33  ;;  %v6965_v33 = vld [vmem:[#allocation8 + $0x2c] sm:$0xf0] }
  0x93   :  { %v6658_v61 = vor.u32 %v6965_v33, %v6657_v50  ;;  %v124_v33 = vld [vmem:[#allocation3 + $0xb8] sm:$0xff]  ;;  %v7708_v50 = vld [vmem:[#allocation3 + $0xb0] sm:$0xff] }
  0x94   :  { %v7684_v7 = vadd.f32 1e-06, %v622_v13  ;;  %v7686_v12 = vadd.f32 1e-06, %v620_v43  ;;  %v435_v14 = vpop.xlane.xlu2 %434  ;;  %v335_v13 = vmul.f32 %v7680_v51, %v7680_v51  ;;  %v336_v43 = vmul.f32 %v7682_v60, %v7682_v60  ;;  %v6785_v51 = vld [vmem:[#allocation8 + $0x120] sm:$0xf] }
  0x95   :  { %v624_v41 = vmul.f32 %v7672_v38, %v435_v14  ;;  %v481_v1 = vadd.f32 %v334_v26, %v333_v24  ;;  %v6786_v2 = vor.u32 %v6997_v47, %v6785_v51  ;;  %v6659_v14 = vld [vmem:[#allocation8 + $0x30] sm:$0xf0]  ;;  %2552 = vmatpush.bf16.msra.mxu0 %v6658_v61  ;;  %v6790_v47 = vor.u32 %v6995_v55, %v6787_v17  ;;  %v6641_v51 = vld [vmem:[#allocation8] sm:$0xf]  ;;  %v6961_v26 = vld [vmem:[#allocation8 + $0xc] sm:$0xf0] }
  0x96   :  { %7037 = vrsqrt.f32 %v7684_v7  ;;  %v484_v60 = vadd.f32 %v336_v43, %v335_v13  ;;  %v6662_v25 = vor.u32 %v6963_v46, %v6659_v14  ;;  %v6769_v13 = vld [vmem:[#allocation8 + $0x100] sm:$0xf]  ;;  %v7710_v27 = vunpack.c.l.bf16 %v124_v33  ;;  %v6771_v17 = vld [vmem:[#allocation8 + $0x110] sm:$0xf0] }
  0x97   :  { %7039 = vrsqrt.f32 %v7686_v12  ;;  %v7701_v0 = vadd.f32 1e-06, %v624_v41  ;;  %482 = vadd.xlane.f32.xlu2 %v481_v1  ;;  %2721 = vmatpush.bf16.msra.mxu1 %v6786_v2  ;;  %v6642_v41 = vor.u32 %v6961_v26, %v6641_v51  ;;  %v7718_v42 = vunpack.c.h.bf16 %v124_v33  ;;  %v6643_v1 = vld [vmem:[#allocation8 + $0x10] sm:$0xf0]  ;;  %v6991_v2 = vld [vmem:[#allocation8 + $0x104] sm:$0xf] }
  0x98   :  { %485 = vadd.xlane.f32.xlu0 %v484_v60  ;;  %11623 = vst [vmem:[#allocation31_spill] sm:$0xff] %v7710_v27  ;;  %v6993_v60 = vld [vmem:[#allocation8 + $0x10c] sm:$0xf0]  ;;  %vm775_vm1 = vweird.f32 %v7684_v7  ;;  %2890 = vmatpush.bf16.msra.mxu2 %v6662_v25  ;;  %vm755_vm3 = vweird.f32 %v7686_v12  ;;  %v6646_v26 = vor.u32 %v6959_v49, %v6643_v1 }
  0x99   :  { %v432_v57 = vpop.xlane.xlu1 %431  ;;  %v426_v56 = vpop.xlane.xlu0 %425  ;;  %7041 = vrsqrt.f32 %v7701_v0  ;;  %vm795_vm2 = vweird.f32 %v7701_v0  ;;  %3059 = vmatpush.bf16.msra.mxu3 %v6790_v47  ;;  %v6770_v61 = vor.u32 %v6993_v60, %v6769_v13  ;;  %2553 = vmatpush.bf16.msra.mxu0 %v6642_v41  ;;  %v6774_v13 = vor.u32 %v6991_v2, %v6771_v17 }
  0x9a   :  { %v623_v24 = vmul.f32 %v7672_v38, %v432_v57  ;;  %v621_v23 = vmul.f32 %v7672_v38, %v426_v56  ;;  %v340_v60 = vmul.f32 %v7718_v42, %v7718_v42 }
  0x9b   :  { %2722 = vmatpush.bf16.msra.mxu1 %v6770_v61 }
  0x9c   :  { %v7712_v43 = vpop.eup %7037  ;;  %v7714_v57 = vadd.f32 1e-06, %v623_v24  ;;  %v7716_v56 = vadd.f32 1e-06, %v621_v23  ;;  %v438_v46 = vpop.xlane.xlu2 %437  ;;  %v339_v24 = vmul.f32 %v7710_v27, %v7710_v27  ;;  %v7733_v23 = vunpack.c.l.bf16 %v7708_v50  ;;  %2891 = vmatpush.bf16.msra.mxu2 %v6646_v26 }
  0x9d   :  { %v7720_v45 = vpop.eup %7039  ;;  %v770_v55 = vmul.f32 %v7712_v43, %v7684_v7  ;;  %vm776_vm4 = vweird.f32 %v7712_v43  ;;  %v625_v25 = vmul.f32 %v7672_v38, %v438_v46  ;;  %3060 = vmatpush.bf16.msra.mxu3 %v6774_v13  ;;  %v7765_v26 = vunpack.c.h.bf16 %v7708_v50 }
  0x9e   :  { %v750_v14 = vmul.f32 %v7720_v45, %v7686_v12  ;;  %7043 = vrsqrt.f32 %v7714_v57  ;;  %vm756_vm5 = vweird.f32 %v7720_v45  ;;  %v490_v49 = vadd.f32 %v340_v60, %v339_v24  ;;  %vm7754_vm7 = vmor %vm775_vm1, %vm776_vm4 }
  0x9f   :  { %v771_v33 = vmul.f32 %v7712_v43, %v770_v55  ;;  %7045 = vrsqrt.f32 %v7716_v56  ;;  %v7042_v47 = vpop.eup %7041  ;;  %v7744_v52 = vadd.f32 1e-06, %v625_v25  ;;  %vm785_vm6 = vweird.f32 %v7714_v57  ;;  %vm757_vm11 = vmor %vm755_vm3, %vm756_vm5 }
  0xa0   :  { %v751_v51 = vmul.f32 %v7720_v45, %v750_v14  ;;  %v790_v55 = vmul.f32 %v7042_v47, %v7701_v0  ;;  %vm796_vm8 = vweird.f32 %v7042_v47  ;;  %491 = vadd.xlane.f32.xlu2 %v490_v49  ;;  %vm765_vm10 = vweird.f32 %v7716_v56 }
  0xa1   :  { %v772_v27 = vmul.f32 0.5, %v771_v33  ;;  %v444_v37 = vpop.xlane.xlu1 %443  ;;  %v441_v34 = vpop.xlane.xlu0 %440  ;;  %7047 = vrsqrt.f32 %v7744_v52  ;;  %vm805_vm13 = vweird.f32 %v7744_v52  ;;  %vm797_vm14 = vmor %vm795_vm2, %vm796_vm8 }
  0xa2   :  { %v752_v46 = vmul.f32 0.5, %v751_v51  ;;  %v627_v41 = vmul.f32 %v7672_v38, %v444_v37  ;;  %v626_v61 = vmul.f32 %v7672_v38, %v441_v34  ;;  %v791_v2 = vmul.f32 %v7042_v47, %v790_v55 }
  0xa3   :  { %v773_v1 = vsub.f32 1.5, %v772_v27 }
  0xa4   :  { %v7044_v14 = vpop.eup %7043  ;;  %v753_v37 = vsub.f32 1.5, %v752_v46  ;;  %v7758_v34 = vadd.f32 1e-06, %v627_v41  ;;  %v7760_v24 = vadd.f32 1e-06, %v626_v61  ;;  %v792_v51 = vmul.f32 0.5, %v791_v2 }
  0xa5   :  { %v7046_v27 = vpop.eup %7045  ;;  %v774_v33 = vmul.f32 %v7712_v43, %v773_v1  ;;  %v780_v25 = vmul.f32 %v7044_v14, %v7714_v57  ;;  %vm786_vm9 = vweird.f32 %v7044_v14 }
  0xa6   :  { %v754_v7 = vmul.f32 %v7720_v45, %v753_v37  ;;  %v760_v13 = vmul.f32 %v7046_v27, %v7716_v56  ;;  %7049 = vrsqrt.f32 %v7758_v34  ;;  %vm766_vm12 = vweird.f32 %v7046_v27  ;;  %vm787_vm0 = vmor %vm785_vm6, %vm786_vm9 }
  0xa7   :  { %v778_v60 = vsel %vm7754_vm7, %v7712_v43, %v774_v33  ;;  %v781_v50 = vmul.f32 %v7044_v14, %v780_v25  ;;  %v793_v55 = vsub.f32 1.5, %v792_v51  ;;  %v7785_v43 = vpop.eup %7047  ;;  %vm825_vm15 = vweird.f32 %v7758_v34  ;;  %vm767_vm2 = vmor %vm765_vm10, %vm766_vm12 }
  0xa8   :  { %v1393_v46 = vmul.f32 %v778_v60, %v7505_v3  ;;  %v1394_v41 = vmul.f32 %v778_v60, %v7507_v4  ;;  %v758_v61 = vsel %vm757_vm11, %v7720_v45, %v754_v7  ;;  %v761_v49 = vmul.f32 %v7046_v27, %v760_v13 }
  0xa9   :  { %v1389_v12 = vmul.f32 %v758_v61, %v7509_v5  ;;  %v1390_v1 = vmul.f32 %v758_v61, %v7511_v6  ;;  %v782_v2 = vmul.f32 0.5, %v781_v50  ;;  %v794_v17 = vmul.f32 %v7042_v47, %v793_v55 }
  0xaa   :  { %v1526_v37 = vmul.f32 %v7696_v30, %v1393_v46  ;;  %v1527_v3 = vmul.f32 %v7703_v18, %v1394_v41  ;;  %v762_v4 = vmul.f32 0.5, %v761_v49  ;;  %v800_v45 = vmul.f32 %v7785_v43, %v7744_v52 }
  0xab   :  { %v1522_v33 = vmul.f32 %v7696_v30, %v1389_v12  ;;  %v1523_v0 = vmul.f32 %v7703_v18, %v1390_v1  ;;  %v783_v25 = vsub.f32 1.5, %v782_v2  ;;  %v798_v51 = vsel %vm797_vm14, %v7042_v47, %v794_v17  ;;  %v6761_v17 = vld [vmem:[#allocation8 + $0xe8] sm:$0xf] }
  0xac   :  { %v7796_v5 = vpop.eup %7049  ;;  %v1652_v6 = vpack.c.bf16 %v1527_v3, %v1526_v37  ;;  %v763_v7 = vsub.f32 1.5, %v762_v4  ;;  %v1397_v13 = vmul.f32 %v798_v51, %v7529_v20  ;;  %v1398_v60 = vmul.f32 %v798_v51, %v7531_v21  ;;  %v6990_v37 = vld [vmem:[#allocation8 + $0xf4] sm:$0xf0] }
  0xad   :  { %v1650_v50 = vpack.c.bf16 %v1523_v0, %v1522_v33  ;;  %v784_v55 = vmul.f32 %v7044_v14, %v783_v25  ;;  %v801_v46 = vmul.f32 %v7785_v43, %v800_v45  ;;  %vm806_vm1 = vweird.f32 %v7785_v43  ;;  %v6889_v45 = vld [vmem:[#allocation8 + $0x1e8] sm:$0xf]  ;;  %v7022_v33 = vld [vmem:[#allocation8 + $0x1f4] sm:$0xf0] }
  0xae   :  { %1716 = vst [vmem:[#allocation2 + $0x10] sm:$0xff] %v1652_v6  ;;  %v764_v47 = vmul.f32 %v7046_v27, %v763_v7  ;;  %v1530_v41 = vmul.f32 %v7696_v30, %v1397_v13  ;;  %v1531_v61 = vmul.f32 %v7703_v18, %v1398_v60  ;;  %v820_v57 = vmul.f32 %v7796_v5, %v7758_v34  ;;  %vm807_vm4 = vmor %vm805_vm13, %vm806_vm1 }
  0xaf   :  { %1714 = vst [vmem:[#allocation2] sm:$0xff] %v1650_v50  ;;  %v788_v49 = vsel %vm787_vm0, %v7044_v14, %v784_v55  ;;  %v802_v20 = vmul.f32 0.5, %v801_v46  ;;  %vm826_vm3 = vweird.f32 %v7796_v5  ;;  %7051 = vrsqrt.f32 %v7760_v24 }
  0xb0   :  { %v1395_v21 = vmul.f32 %v788_v49, %v7513_v8  ;;  %v1396_v12 = vmul.f32 %v788_v49, %v7515_v9  ;;  %v768_v1 = vsel %vm767_vm2, %v7046_v27, %v764_v47  ;;  %v1654_v2 = vpack.c.bf16 %v1531_v61, %v1530_v41  ;;  %v127_v9 = vld [vmem:[#allocation3 + $0xd0] sm:$0xff]  ;;  %v126_v41 = vld [vmem:[#allocation3 + $0xc8] sm:$0xff]  ;;  %vm827_vm6 = vmor %vm825_vm15, %vm826_vm3 }
  0xb1   :  { %v1391_v3 = vmul.f32 %v768_v1, %v7517_v10  ;;  %v1392_v14 = vmul.f32 %v768_v1, %v7519_v11  ;;  %v803_v4 = vsub.f32 1.5, %v802_v20  ;;  %v821_v56 = vmul.f32 %v7796_v5, %v820_v57 }
  0xb2   :  { %v1528_v0 = vmul.f32 %v7696_v30, %v1395_v21  ;;  %v1529_v25 = vmul.f32 %v7703_v18, %v1396_v12  ;;  %1718 = vst [vmem:[#allocation2 + $0x20] sm:$0xff] %v1654_v2  ;;  %vm815_vm5 = vweird.f32 %v7760_v24  ;;  %v337_v8 = vmul.f32 %v7733_v23, %v7733_v23 }
  0xb3   :  { %v1524_v10 = vmul.f32 %v7696_v30, %v1391_v3  ;;  %v1525_v11 = vmul.f32 %v7703_v18, %v1392_v14  ;;  %v804_v27 = vmul.f32 %v7785_v43, %v803_v4  ;;  %v822_v51 = vmul.f32 0.5, %v821_v56  ;;  %v450_v4 = vpop.xlane.xlu0 %449 }
  0xb4   :  { %v1653_v6 = vpack.c.bf16 %v1529_v25, %v1528_v0  ;;  %v338_v7 = vmul.f32 %v7765_v26, %v7765_v26  ;;  %v6762_v13 = vor.u32 %v6990_v37, %v6761_v17  ;;  %v6890_v52 = vor.u32 %v7022_v33, %v6889_v45  ;;  %v130_v25 = vld [vmem:[#allocation3 + $0xe8] sm:$0xff] }
  0xb5   :  { %v7833_v60 = vpop.eup %7051  ;;  %v1651_v50 = vpack.c.bf16 %v1525_v11, %v1524_v10  ;;  %v808_v55 = vsel %vm807_vm4, %v7785_v43, %v804_v27  ;;  %v823_v46 = vsub.f32 1.5, %v822_v51  ;;  %v7836_v47 = vunpack.c.l.bf16 %v127_v9  ;;  %v447_v43 = vpop.xlane.xlu2 %446 }
  0xb6   :  { %1717 = vst [vmem:[#allocation2 + $0x18] sm:$0xff] %v1653_v6  ;;  %v1399_v61 = vmul.f32 %v808_v55, %v7545_v28  ;;  %v1400_v57 = vmul.f32 %v808_v55, %v7547_v29  ;;  %v810_v49 = vmul.f32 %v7833_v60, %v7760_v24  ;;  %vm816_vm7 = vweird.f32 %v7833_v60  ;;  %3222 = vmatpush.bf16.msrb.mxu0 %v6762_v13  ;;  %v6895_v13 = vld [vmem:[#allocation2 + $0x4] sm:$0xf] }
  0xb7   :  { %1715 = vst [vmem:[#allocation2 + $0x8] sm:$0xff] %v1651_v50  ;;  %v824_v20 = vmul.f32 %v7796_v5, %v823_v46  ;;  %v487_v21 = vadd.f32 %v338_v7, %v337_v8  ;;  %3391 = vmatpush.bf16.msrb.mxu1 %v6890_v52  ;;  %v7848_v28 = vunpack.c.h.bf16 %v127_v9  ;;  %v345_v29 = vmul.f32 %v7836_v47, %v7836_v47  ;;  %vm7878_vm8 = vmor %vm815_vm5, %vm816_vm7  ;;  %v6385_v7 = vld [vmem:[#allocation2] sm:$0xf] }
  0xb8   :  { %v1532_v34 = vmul.f32 %v7696_v30, %v1399_v61  ;;  %v1533_v12 = vmul.f32 %v7703_v18, %v1400_v57  ;;  %v811_v1 = vmul.f32 %v7833_v60, %v810_v49  ;;  %v7855_v2 = vunpack.c.l.bf16 %v126_v41 }
  0xb9   :  { %v828_v17 = vsel %vm827_vm6, %v7796_v5, %v824_v20  ;;  %488 = vadd.xlane.f32.xlu1 %v487_v21  ;;  %v346_v37 = vmul.f32 %v7848_v28, %v7848_v28  ;;  %v7860_v3 = vunpack.c.h.bf16 %v126_v41  ;;  %v628_v14 = vmul.f32 %v7672_v38, %v447_v43 }
  0xba   :  { %v1655_v56 = vpack.c.bf16 %v1533_v12, %v1532_v34  ;;  %v1403_v45 = vmul.f32 %v828_v17, %v7549_v35  ;;  %v1404_v33 = vmul.f32 %v828_v17, %v7551_v36  ;;  %v812_v0 = vmul.f32 0.5, %v811_v1  ;;  %v129_v36 = vld [vmem:[#allocation3 + $0xe0] sm:$0xff] }
  0xbb   :  { %v499_v8 = vadd.f32 %v346_v37, %v345_v29  ;;  %v343_v5 = vmul.f32 %v7855_v2, %v7855_v2  ;;  %v344_v9 = vmul.f32 %v7860_v3, %v7860_v3  ;;  %v7869_v10 = vadd.f32 1e-06, %v628_v14  ;;  %v125_v29 = vld [vmem:[#allocation3 + $0xc0] sm:$0xff] }
  0xbc   :  { %1719 = vst [vmem:[#allocation2 + $0x28] sm:$0xff] %v1655_v56  ;;  %v1536_v11 = vmul.f32 %v7696_v30, %v1403_v45  ;;  %v1537_v27 = vmul.f32 %v7703_v18, %v1404_v33  ;;  %v813_v51 = vsub.f32 1.5, %v812_v0  ;;  %v629_v35 = vmul.f32 %v7672_v38, %v450_v4  ;;  %v133_v4 = vld [vmem:[#allocation3 + $0x100] sm:$0xff] }
  0xbd   :  { %500 = vadd.xlane.f32.xlu2 %v499_v8  ;;  %v496_v52 = vadd.f32 %v344_v9, %v343_v5  ;;  %7053 = vrsqrt.f32 %v7869_v10  ;;  %v7883_v50 = vunpack.c.l.bf16 %v130_v25  ;;  %v7888_v24 = vunpack.c.h.bf16 %v130_v25  ;;  %v6898_v14 = vld [vmem:[#allocation2 + $0x14] sm:$0xf0]  ;;  %v6393_v25 = vld [vmem:[#allocation2 + $0x10] sm:$0xf] }
  0xbe   :  { %v1657_v55 = vpack.c.bf16 %v1537_v27, %v1536_v11  ;;  %v814_v46 = vmul.f32 %v7833_v60, %v813_v51  ;;  %v6896_v41 = vld [vmem:[#allocation2 + $0x4] sm:$0xf0]  ;;  %v6387_v61 = vld [vmem:[#allocation2 + $0x8] sm:$0xf0]  ;;  %v7886_v57 = vadd.f32 1e-06, %v629_v35  ;;  %v7896_v21 = vunpack.c.l.bf16 %v129_v36 }
  0xbf   :  { %v7890_v49 = vor.u32 %v6896_v41, %v6385_v7  ;;  %v7892_v43 = vor.u32 %v6895_v13, %v6387_v61  ;;  %v351_v20 = vmul.f32 %v7883_v50, %v7883_v50  ;;  %v352_v12 = vmul.f32 %v7888_v24, %v7888_v24  ;;  %v132_v5 = vld [vmem:[#allocation3 + $0xf8] sm:$0xff]  ;;  %v456_v7 = vpop.xlane.xlu2 %455  ;;  %v453_v61 = vpop.xlane.xlu1 %452 }
  0xc0   :  { %1721 = vst [vmem:[#allocation2 + $0x38] sm:$0xff] %v1657_v55  ;;  %v818_v34 = vsel %vm7878_vm8, %v7833_v60, %v814_v46  ;;  %7055 = vrsqrt.f32 %v7886_v57  ;;  %v7908_v37 = vunpack.c.h.bf16 %v129_v36  ;;  %vm835_vm9 = vweird.f32 %v7869_v10 }
  0xc1   :  { %11628 = vst [vmem:[#allocation32_spill] sm:$0xff] %v7890_v49  ;;  %v1401_v1 = vmul.f32 %v818_v34, %v7557_v39  ;;  %v1402_v17 = vmul.f32 %v818_v34, %v7559_v40  ;;  %2554 = vmatmul.bf16.vlgmr.msra.gmra.mxu0 %v7890_v49  ;;  %2723 = vmatmul.bf16.vlgmr.msra.gmra.mxu1 %v7892_v43  ;;  %v7915_v56 = vunpack.c.l.bf16 %v125_v29  ;;  %vm845_vm10 = vweird.f32 %v7886_v57 }
  0xc2   :  { %11629 = vst [vmem:[#allocation33_spill] sm:$0xff] %v7892_v43  ;;  %2892 = vmatmul.bf16.vlgmr.msra.gmra.mxu2 %v7890_v49  ;;  %3061 = vmatmul.bf16.vlgmr.msra.gmra.mxu3 %v7892_v43  ;;  %v508_v60 = vadd.f32 %v352_v12, %v351_v20  ;;  %v349_v39 = vmul.f32 %v7896_v21, %v7896_v21  ;;  %v7924_v8 = vunpack.c.h.bf16 %v125_v29  ;;  %v7932_v51 = vunpack.c.l.bf16 %v133_v4  ;;  %v128_v20 = vld [vmem:[#allocation3 + $0xd8] sm:$0xff]  ;;  %v134_v43 = vld [vmem:[#allocation3 + $0x108] sm:$0xff]  ;;  %v6899_v49 = vld [vmem:[#allocation2 + $0x24] sm:$0xf] }
  0xc3   :  { %v7917_v40 = vpop.eup %7053  ;;  %v1534_v45 = vmul.f32 %v7696_v30, %v1401_v1  ;;  %v1535_v33 = vmul.f32 %v7703_v18, %v1402_v17  ;;  %497 = vadd.xlane.f32.xlu1 %v496_v52  ;;  %v350_v0 = vmul.f32 %v7908_v37, %v7908_v37  ;;  %v7928_v11 = vor.u32 %v6898_v14, %v6393_v25  ;;  %v6395_v25 = vld [vmem:[#allocation2 + $0x18] sm:$0xf0] }
  0xc4   :  { %v830_v9 = vmul.f32 %v7917_v40, %v7869_v10  ;;  %v341_v27 = vmul.f32 %v7915_v56, %v7915_v56  ;;  %vm836_vm11 = vweird.f32 %v7917_v40  ;;  %v342_v36 = vmul.f32 %v7924_v8, %v7924_v8 }
  0xc5   :  { %11630 = vst [vmem:[#allocation34_spill] sm:$0xff] %v7928_v11  ;;  %v1656_v35 = vpack.c.bf16 %v1535_v33, %v1534_v45  ;;  %509 = vadd.xlane.f32.xlu2 %v508_v60  ;;  %v7937_v6 = vunpack.c.h.bf16 %v133_v4  ;;  %v357_v55 = vmul.f32 %v7932_v51, %v7932_v51  ;;  %v7944_v46 = vunpack.c.l.bf16 %v132_v5  ;;  %v136_v45 = vld [vmem:[#allocation3 + $0x118] sm:$0xff]  ;;  %vm7970_vm13 = vmor %vm835_vm9, %vm836_vm11 }
  0xc6   :  { %v7939_v13 = vpop.eup %7055  ;;  %v831_v52 = vmul.f32 %v7917_v40, %v830_v9  ;;  %v7946_v41 = vunpack.c.h.bf16 %v132_v5  ;;  %v505_v34 = vadd.f32 %v350_v0, %v349_v39  ;;  %v493_v12 = vadd.f32 %v342_v36, %v341_v27 }
  0xc7   :  { %1720 = vst [vmem:[#allocation2 + $0x30] sm:$0xff] %v1656_v35  ;;  %v840_v29 = vmul.f32 %v7939_v13, %v7886_v57  ;;  %v358_v1 = vmul.f32 %v7937_v6, %v7937_v6  ;;  %v355_v14 = vmul.f32 %v7944_v46, %v7944_v46  ;;  %v631_v60 = vmul.f32 %v7672_v38, %v456_v7 }
  0xc8   :  { %v832_v17 = vmul.f32 0.5, %v831_v52  ;;  %v356_v4 = vmul.f32 %v7946_v41, %v7946_v41  ;;  %494 = vadd.xlane.f32.xlu0 %v493_v12  ;;  %v630_v39 = vmul.f32 %v7672_v38, %v453_v61  ;;  %v7959_v0 = vunpack.c.l.bf16 %v128_v20  ;;  %v6897_v52 = vld [vmem:[#allocation2 + $0x14] sm:$0xf] }
  0xc9   :  { %v841_v33 = vmul.f32 %v7939_v13, %v840_v29  ;;  %v517_v5 = vadd.f32 %v358_v1, %v357_v55  ;;  %vm846_vm12 = vweird.f32 %v7939_v13  ;;  %v7962_v27 = vadd.f32 1e-06, %v631_v60 }
  0xca   :  { %v833_v9 = vsub.f32 1.5, %v832_v17  ;;  %v7964_v35 = vunpack.c.h.bf16 %v128_v20  ;;  %v7974_v55 = vadd.f32 1e-06, %v630_v39  ;;  %v347_v61 = vmul.f32 %v7959_v0, %v7959_v0  ;;  %v135_v20 = vld [vmem:[#allocation3 + $0x110] sm:$0xff]  ;;  %v6900_v39 = vld [vmem:[#allocation2 + $0x24] sm:$0xf0]  ;;  %vm7996_vm14 = vmor %vm845_vm10, %vm846_vm12 }
  0xcb   :  { %v842_v7 = vmul.f32 0.5, %v841_v33  ;;  %506 = vadd.xlane.f32.xlu1 %v505_v34  ;;  %v7978_v29 = vunpack.c.l.bf16 %v136_v45  ;;  %v7981_v1 = vor.u32 %v6897_v52, %v6395_v25  ;;  %7057 = vrsqrt.f32 %v7962_v27  ;;  %v6401_v33 = vld [vmem:[#allocation2 + $0x20] sm:$0xf] }
  0xcc   :  { %v834_v12 = vmul.f32 %v7917_v40, %v833_v9  ;;  %v348_v10 = vmul.f32 %v7964_v35, %v7964_v35  ;;  %v514_v34 = vadd.f32 %v356_v4, %v355_v14  ;;  %7059 = vrsqrt.f32 %v7974_v55 }
  0xcd   :  { %11633 = vst [vmem:[#allocation35_spill] sm:$0xff] %v7981_v1  ;;  %v843_v17 = vsub.f32 1.5, %v842_v7  ;;  %518 = vadd.xlane.f32.xlu2 %v517_v5  ;;  %v7987_v60 = vunpack.c.h.bf16 %v136_v45  ;;  %v363_v14 = vmul.f32 %v7978_v29, %v7978_v29  ;;  %v8002_v4 = vunpack.c.l.bf16 %v135_v20  ;;  %v131_v45 = vld [vmem:[#allocation3 + $0xf0] sm:$0xff] }
  0xce   :  { %v838_v9 = vsel %vm7970_vm13, %v7917_v40, %v834_v12  ;;  %v502_v5 = vadd.f32 %v348_v10, %v347_v61  ;;  %vm865_vm15 = vweird.f32 %v7962_v27  ;;  %vm855_vm0 = vweird.f32 %v7974_v55 }
  0xcf   :  { %11636 = vst [vmem:[#allocation36_spill] sm:$0xff] %v8002_v4  ;;  %v1405_v7 = vmul.f32 %v838_v9, %v7565_v44  ;;  %v1406_v36 = vmul.f32 %v838_v9, %v7571_v48  ;;  %v844_v40 = vmul.f32 %v7939_v13, %v843_v17  ;;  %v364_v57 = vmul.f32 %v7987_v60, %v7987_v60 }
  0xd0   :  { %v8011_v52 = vunpack.c.h.bf16 %v135_v20  ;;  %v361_v61 = vmul.f32 %v8002_v4, %v8002_v4  ;;  %v8015_v12 = vor.u32 %v6900_v39, %v6401_v33  ;;  %v8024_v17 = vunpack.c.l.bf16 %v131_v45  ;;  %503 = vadd.xlane.f32.xlu0 %v502_v5 }
  0xd1   :  { %v1538_v44 = vmul.f32 %v7696_v30, %v1405_v7  ;;  %v1539_v48 = vmul.f32 %v7703_v18, %v1406_v36  ;;  %v848_v10 = vsel %vm7996_vm14, %v7939_v13, %v844_v40  ;;  %2559 = vmatmul.bf16.gmra.mxu0 %v7928_v11  ;;  %2728 = vmatmul.bf16.gmra.mxu1 %v7981_v1  ;;  %v8026_v20 = vpop.eup %7057  ;;  %v8032_v7 = vunpack.c.h.bf16 %v131_v45  ;;  %v139_v13 = vld [vmem:[#allocation3 + $0x130] sm:$0xff] }
  0xd2   :  { %11637 = vst [vmem:[#allocation37_spill] sm:$0xff] %v8011_v52  ;;  %v1407_v9 = vmul.f32 %v848_v10, %v7575_v53  ;;  %v1408_v33 = vmul.f32 %v848_v10, %v7577_v54  ;;  %2897 = vmatmul.bf16.gmra.mxu2 %v7928_v11  ;;  %3066 = vmatmul.bf16.gmra.mxu3 %v7981_v1  ;;  %v8034_v25 = vpop.eup %7059  ;;  %vm866_vm1 = vweird.f32 %v8026_v20  ;;  %v462_v10 = vpop.xlane.xlu1 %461  ;;  %v8054_v11 = vunpack.c.h.bf16 %v139_v13 }
  0xd3   :  { %11638 = vst [vmem:[#allocation38_spill] sm:$0xff] %v8015_v12  ;;  %v526_v39 = vadd.f32 %v364_v57, %v363_v14  ;;  %v1658_v36 = vpack.c.bf16 %v1539_v48, %v1538_v44  ;;  %515 = vadd.xlane.f32.xlu1 %v514_v34  ;;  %v860_v40 = vmul.f32 %v8026_v20, %v7962_v27  ;;  %vm856_vm2 = vweird.f32 %v8034_v25  ;;  %v138_v57 = vld [vmem:[#allocation3 + $0x128] sm:$0xff]  ;;  %vm8075_vm3 = vmor %vm865_vm15, %vm866_vm1 }
  0xd4   :  { %11639 = vst [vmem:[#allocation39_spill] sm:$0xff] %v8024_v17  ;;  %v362_v53 = vmul.f32 %v8011_v52, %v8011_v52  ;;  %v1540_v54 = vmul.f32 %v7696_v30, %v1407_v9  ;;  %v1541_v14 = vmul.f32 %v7703_v18, %v1408_v33  ;;  %v850_v45 = vmul.f32 %v8034_v25, %v7974_v55  ;;  %v142_v52 = vld [vmem:[#allocation3 + $0x148] sm:$0xff]  ;;  %vm8088_vm4 = vmor %vm855_vm0, %vm856_vm2 }
  0xd5   :  { %11640 = vst [vmem:[#allocation40_spill] sm:$0xff] %v8032_v7  ;;  %v861_v34 = vmul.f32 %v8026_v20, %v860_v40  ;;  %527 = vadd.xlane.f32.xlu2 %v526_v39  ;;  %v353_v5 = vmul.f32 %v8024_v17, %v8024_v17  ;;  %v8049_v48 = vunpack.c.l.bf16 %v139_v13  ;;  %v354_v1 = vmul.f32 %v8032_v7, %v8032_v7 }
  0xd6   :  { %1722 = vst [vmem:[#allocation2 + $0x40] sm:$0xff] %v1658_v36  ;;  %v523_v44 = vadd.f32 %v362_v53, %v361_v61  ;;  %v1659_v9 = vpack.c.bf16 %v1541_v14, %v1540_v54  ;;  %v851_v33 = vmul.f32 %v8034_v25, %v850_v45  ;;  %v8058_v39 = vunpack.c.l.bf16 %v138_v57  ;;  %v6403_v54 = vld [vmem:[#allocation2 + $0x28] sm:$0xf0] }
  0xd7   :  { %v862_v36 = vmul.f32 0.5, %v861_v34  ;;  %v369_v61 = vmul.f32 %v8049_v48, %v8049_v48  ;;  %v8060_v40 = vunpack.c.h.bf16 %v138_v57  ;;  %v511_v14 = vadd.f32 %v354_v1, %v353_v5 }
  0xd8   :  { %11641 = vst [vmem:[#allocation41_spill] sm:$0xff] %v8058_v39  ;;  %v852_v53 = vmul.f32 0.5, %v851_v33  ;;  %v370_v45 = vmul.f32 %v8054_v11, %v8054_v11  ;;  %v633_v13 = vmul.f32 %v7672_v38, %v462_v10  ;;  %v367_v34 = vmul.f32 %v8058_v39, %v8058_v39  ;;  %v459_v33 = vpop.xlane.xlu0 %458 }
  0xd9   :  { %11642 = vst [vmem:[#allocation42_spill] sm:$0xff] %v8060_v40  ;;  %v863_v4 = vsub.f32 1.5, %v862_v36  ;;  %v368_v7 = vmul.f32 %v8060_v40, %v8060_v40  ;;  %v8069_v17 = vunpack.c.l.bf16 %v134_v43  ;;  %v8092_v27 = vor.u32 %v6899_v49, %v6403_v54  ;;  %512 = vadd.xlane.f32.xlu0 %v511_v14 }
  0xda   :  { %1723 = vst [vmem:[#allocation2 + $0x48] sm:$0xff] %v1659_v9  ;;  %v853_v57 = vsub.f32 1.5, %v852_v53  ;;  %v535_v5 = vadd.f32 %v370_v45, %v369_v61  ;;  %v8079_v10 = vadd.f32 1e-06, %v633_v13  ;;  %v8081_v9 = vunpack.c.h.bf16 %v134_v43  ;;  %v141_v45 = vld [vmem:[#allocation3 + $0x140] sm:$0xff] }
  0xdb   :  { %11643 = vst [vmem:[#allocation43_spill] sm:$0xff] %v8069_v17  ;;  %v864_v36 = vmul.f32 %v8026_v20, %v863_v4  ;;  %524 = vadd.xlane.f32.xlu1 %v523_v44  ;;  %v359_v61 = vmul.f32 %v8069_v17, %v8069_v17  ;;  %v8096_v43 = vunpack.c.l.bf16 %v142_v52  ;;  %v532_v4 = vadd.f32 %v368_v7, %v367_v34  ;;  %v148_v17 = vld [vmem:[#allocation3 + $0x178] sm:$0xff] }
  0xdc   :  { %11646 = vst [vmem:[#allocation44_spill] sm:$0xff] %v8081_v9  ;;  %v854_v53 = vmul.f32 %v8034_v25, %v853_v57  ;;  %7061 = vrsqrt.f32 %v8079_v10  ;;  %v360_v55 = vmul.f32 %v8081_v9, %v8081_v9  ;;  %v632_v49 = vmul.f32 %v7672_v38, %v459_v33  ;;  %v137_v33 = vld [vmem:[#allocation3 + $0x120] sm:$0xff] }
  0xdd   :  { %11649 = vst [vmem:[#allocation45_spill] sm:$0xff] %v8092_v27  ;;  %v868_v44 = vsel %vm8075_vm3, %v8026_v20, %v864_v36  ;;  %536 = vadd.xlane.f32.xlu2 %v535_v5  ;;  %v8106_v54 = vunpack.c.h.bf16 %v142_v52  ;;  %v375_v14 = vmul.f32 %v8096_v43, %v8096_v43  ;;  %vm885_vm5 = vweird.f32 %v8079_v10 }
  0xde   :  { %v1411_v7 = vmul.f32 %v868_v44, %v7589_v62  ;;  %v1412_v13 = vmul.f32 %v868_v44, %v7591_v63  ;;  %v858_v34 = vsel %vm8088_vm4, %v8034_v25, %v854_v53  ;;  %v520_v57 = vadd.f32 %v360_v55, %v359_v61 }
  0xdf   :  { %v1409_v20 = vmul.f32 %v858_v34, %v7581_v58  ;;  %v1410_v1 = vmul.f32 %v858_v34, %v7583_v59  ;;  %v8117_v5 = vadd.f32 1e-06, %v632_v49  ;;  %v376_v52 = vmul.f32 %v8106_v54, %v8106_v54  ;;  %v145_v49 = vld [vmem:[#allocation3 + $0x160] sm:$0xff]  ;;  %v144_v34 = vld [vmem:[#allocation3 + $0x158] sm:$0xff] }
  0xe0   :  { %v1544_v36 = vmul.f32 %v7696_v30, %v1411_v7  ;;  %v1545_v62 = vmul.f32 %v7703_v18, %v1412_v13  ;;  %v8123_v63 = vunpack.c.l.bf16 %v141_v45  ;;  %v8125_v44 = vunpack.c.h.bf16 %v141_v45 }
  0xe1   :  { %v1542_v25 = vmul.f32 %v7696_v30, %v1409_v20  ;;  %v1543_v58 = vmul.f32 %v7703_v18, %v1410_v1  ;;  %2564 = vmatmul.bf16.gmra.mxu0 %v8015_v12  ;;  %2733 = vmatmul.bf16.gmra.mxu1 %v8092_v27  ;;  %7063 = vrsqrt.f32 %v8117_v5  ;;  %v544_v61 = vadd.f32 %v376_v52, %v375_v14  ;;  %v465_v20 = vpop.xlane.xlu2 %464  ;;  %v6902_v14 = vld [vmem:[#allocation2 + $0x34] sm:$0xf0]  ;;  %v6411_v1 = vld [vmem:[#allocation2 + $0x38] sm:$0xf0] }
  0xe2   :  { %11650 = vst [vmem:[#allocation46_spill] sm:$0xff] %v8123_v63  ;;  %v8132_v59 = vpop.eup %7061  ;;  %v1661_v40 = vpack.c.bf16 %v1545_v62, %v1544_v36  ;;  %2902 = vmatmul.bf16.gmra.mxu2 %v8015_v12  ;;  %3071 = vmatmul.bf16.gmra.mxu3 %v8092_v27  ;;  %v373_v53 = vmul.f32 %v8123_v63, %v8123_v63  ;;  %v8138_v55 = vunpack.c.l.bf16 %v137_v33  ;;  %vm875_vm7 = vweird.f32 %v8117_v5  ;;  %v140_v36 = vld [vmem:[#allocation3 + $0x138] sm:$0xff] }
  0xe3   :  { %11651 = vst [vmem:[#allocation47_spill] sm:$0xff] %v8125_v44  ;;  %v1660_v45 = vpack.c.bf16 %v1543_v58, %v1542_v25  ;;  %533 = vadd.xlane.f32.xlu1 %v532_v4  ;;  %v880_v7 = vmul.f32 %v8132_v59, %v8079_v10  ;;  %521 = vadd.xlane.f32.xlu0 %v520_v57  ;;  %vm886_vm6 = vweird.f32 %v8132_v59  ;;  %v8147_v52 = vunpack.c.h.bf16 %v137_v33  ;;  %v6409_v25 = vld [vmem:[#allocation2 + $0x30] sm:$0xf]  ;;  %v6901_v58 = vld [vmem:[#allocation2 + $0x34] sm:$0xf] }
  0xe4   :  { %11652 = vst [vmem:[#allocation48_spill] sm:$0xff] %v8138_v55  ;;  %v374_v13 = vmul.f32 %v8125_v44, %v8125_v44  ;;  %v365_v4 = vmul.f32 %v8138_v55, %v8138_v55  ;;  %v8154_v27 = vunpack.c.h.bf16 %v145_v49  ;;  %v8158_v33 = vunpack.c.l.bf16 %v144_v34  ;;  %vm8185_vm8 = vmor %vm885_vm5, %vm886_vm6 }
  0xe5   :  { %1725 = vst [vmem:[#allocation2 + $0x58] sm:$0xff] %v1661_v40  ;;  %v881_v57 = vmul.f32 %v8132_v59, %v880_v7  ;;  %545 = vadd.xlane.f32.xlu2 %v544_v61  ;;  %v8152_v40 = vunpack.c.l.bf16 %v145_v49  ;;  %v366_v12 = vmul.f32 %v8147_v52, %v8147_v52  ;;  %v8160_v44 = vunpack.c.h.bf16 %v144_v34 }
  0xe6   :  { %11653 = vst [vmem:[#allocation49_spill] sm:$0xff] %v8147_v52  ;;  %v541_v62 = vadd.f32 %v374_v13, %v373_v53  ;;  %v634_v63 = vmul.f32 %v7672_v38, %v465_v20  ;;  %v382_v53 = vmul.f32 %v8154_v27, %v8154_v27  ;;  %v8169_v49 = vunpack.c.l.bf16 %v140_v36  ;;  %v468_v13 = vpop.xlane.xlu0 %467 }
  0xe7   :  { %1724 = vst [vmem:[#allocation2 + $0x50] sm:$0xff] %v1660_v45  ;;  %v8163_v45 = vpop.eup %7063  ;;  %v882_v7 = vmul.f32 0.5, %v881_v57  ;;  %v381_v61 = vmul.f32 %v8152_v40, %v8152_v40  ;;  %v8173_v55 = vor.u32 %v6902_v14, %v6409_v25  ;;  %v8175_v34 = vor.u32 %v6901_v58, %v6411_v1 }
  0xe8   :  { %11654 = vst [vmem:[#allocation50_spill] sm:$0xff] %v8152_v40  ;;  %v870_v52 = vmul.f32 %v8163_v45, %v8117_v5  ;;  %v529_v20 = vadd.f32 %v366_v12, %v365_v4  ;;  %v379_v57 = vmul.f32 %v8158_v33, %v8158_v33  ;;  %v8179_v40 = vadd.f32 1e-06, %v634_v63  ;;  %v147_v63 = vld [vmem:[#allocation3 + $0x170] sm:$0xff] }
  0xe9   :  { %11655 = vst [vmem:[#allocation51_spill] sm:$0xff] %v8154_v27  ;;  %v883_v39 = vsub.f32 1.5, %v882_v7  ;;  %v553_v9 = vadd.f32 %v382_v53, %v381_v61  ;;  %v380_v12 = vmul.f32 %v8160_v44, %v8160_v44  ;;  %v8192_v1 = vunpack.c.h.bf16 %v140_v36 }
  0xea   :  { %11656 = vst [vmem:[#allocation52_spill] sm:$0xff] %v8158_v33  ;;  %v871_v14 = vmul.f32 %v8163_v45, %v870_v52  ;;  %v635_v4 = vmul.f32 %v7672_v38, %v468_v13  ;;  %vm876_vm9 = vweird.f32 %v8163_v45  ;;  %7065 = vrsqrt.f32 %v8179_v40 }
  0xeb   :  { %11657 = vst [vmem:[#allocation53_spill] sm:$0xff] %v8160_v44  ;;  %v884_v25 = vmul.f32 %v8132_v59, %v883_v39  ;;  %542 = vadd.xlane.f32.xlu1 %v541_v62  ;;  %530 = vadd.xlane.f32.xlu0 %v529_v20  ;;  %v371_v10 = vmul.f32 %v8169_v49, %v8169_v49  ;;  %v8204_v7 = vunpack.c.l.bf16 %v148_v17  ;;  %v8209_v62 = vunpack.c.h.bf16 %v148_v17  ;;  %v143_v44 = vld [vmem:[#allocation3 + $0x150] sm:$0xff]  ;;  %vm8221_vm10 = vmor %vm875_vm7, %vm876_vm9 }
  0xec   :  { %11658 = vst [vmem:[#allocation54_spill] sm:$0xff] %v8173_v55  ;;  %v872_v52 = vmul.f32 0.5, %v871_v14  ;;  %v372_v58 = vmul.f32 %v8192_v1, %v8192_v1  ;;  %v8202_v36 = vadd.f32 1e-06, %v635_v4  ;;  %v8211_v61 = vunpack.c.l.bf16 %v147_v63 }
  0xed   :  { %11659 = vst [vmem:[#allocation55_spill] sm:$0xff] %v8175_v34  ;;  %v888_v39 = vsel %vm8185_vm8, %v8132_v59, %v884_v25  ;;  %554 = vadd.xlane.f32.xlu2 %v553_v9  ;;  %v8213_v53 = vunpack.c.h.bf16 %v147_v63  ;;  %v550_v4 = vadd.f32 %v380_v12, %v379_v57  ;;  %v387_v9 = vmul.f32 %v8204_v7, %v8204_v7  ;;  %v6745_v12 = vld [vmem:[#allocation8 + $0xc8] sm:$0xf] }
  0xee   :  { %11662 = vst [vmem:[#allocation56_spill] sm:$0xff] %v8211_v61  ;;  %v1415_v13 = vmul.f32 %v888_v39, %v7601_v15  ;;  %v1416_v20 = vmul.f32 %v888_v39, %v7603_v16  ;;  %v873_v14 = vsub.f32 1.5, %v872_v52  ;;  %v538_v17 = vadd.f32 %v372_v58, %v371_v10  ;;  %v6986_v52 = vld [vmem:[#allocation8 + $0xd4] sm:$0xf0]  ;;  %v6873_v58 = vld [vmem:[#allocation8 + $0x1c8] sm:$0xf] }
  0xef   :  { %11663 = vst [vmem:[#allocation57_spill] sm:$0xff] %v8213_v53  ;;  %7067 = vrsqrt.f32 %v8202_v36  ;;  %v388_v15 = vmul.f32 %v8209_v62, %v8209_v62  ;;  %v385_v5 = vmul.f32 %v8211_v61, %v8211_v61  ;;  %vm895_vm11 = vweird.f32 %v8179_v40  ;;  %v7018_v39 = vld [vmem:[#allocation8 + $0x1d4] sm:$0xf0] }
  0xf0   :  { %v1548_v16 = vmul.f32 %v7696_v30, %v1415_v13  ;;  %v1549_v59 = vmul.f32 %v7703_v18, %v1416_v20  ;;  %v874_v57 = vmul.f32 %v8163_v45, %v873_v14  ;;  %v8235_v63 = vpop.eup %7065  ;;  %v386_v10 = vmul.f32 %v8213_v53, %v8213_v53 }
  0xf1   :  { %2569 = vmatmul.bf16.gmra.mxu0 %v8173_v55  ;;  %2738 = vmatmul.bf16.gmra.mxu1 %v8175_v34  ;;  %v562_v25 = vadd.f32 %v388_v15, %v387_v9  ;;  %v8242_v13 = vunpack.c.l.bf16 %v143_v44  ;;  %v890_v9 = vmul.f32 %v8235_v63, %v8179_v40  ;;  %vm905_vm12 = vweird.f32 %v8202_v36  ;;  %v6903_v40 = vld [vmem:[#allocation2 + $0x44] sm:$0xf] }
  0xf2   :  { %v1663_v20 = vpack.c.bf16 %v1549_v59, %v1548_v16  ;;  %v878_v14 = vsel %vm8221_vm10, %v8163_v45, %v874_v57  ;;  %2907 = vmatmul.bf16.gmra.mxu2 %v8173_v55  ;;  %3076 = vmatmul.bf16.gmra.mxu3 %v8175_v34  ;;  %vm896_vm13 = vweird.f32 %v8235_v63  ;;  %v8255_v16 = vunpack.c.h.bf16 %v143_v44  ;;  %v151_v45 = vld [vmem:[#allocation3 + $0x190] sm:$0xff]  ;;  %v150_v55 = vld [vmem:[#allocation3 + $0x188] sm:$0xff] }
  0xf3   :  { %11666 = vst [vmem:[#allocation58_spill] sm:$0xff] %v8242_v13  ;;  %v1413_v15 = vmul.f32 %v878_v14, %v7605_v19  ;;  %v1414_v53 = vmul.f32 %v878_v14, %v7607_v22  ;;  %551 = vadd.xlane.f32.xlu1 %v550_v4  ;;  %539 = vadd.xlane.f32.xlu0 %v538_v17  ;;  %vm8284_vm15 = vmor %vm895_vm11, %vm896_vm13 }
  0xf4   :  { %11667 = vst [vmem:[#allocation59_spill] sm:$0xff] %v8255_v16  ;;  %v891_v27 = vmul.f32 %v8235_v63, %v890_v9  ;;  %v559_v59 = vadd.f32 %v386_v10, %v385_v5  ;;  %v6746_v57 = vor.u32 %v6986_v52, %v6745_v12  ;;  %v6874_v34 = vor.u32 %v7018_v39, %v6873_v58  ;;  %v474_v10 = vpop.xlane.xlu2 %473  ;;  %v471_v52 = vpop.xlane.xlu1 %470 }
  0xf5   :  { %1727 = vst [vmem:[#allocation2 + $0x68] sm:$0xff] %v1663_v20  ;;  %v8258_v61 = vpop.eup %7067  ;;  %v1546_v19 = vmul.f32 %v7696_v30, %v1413_v15  ;;  %v1547_v22 = vmul.f32 %v7703_v18, %v1414_v53  ;;  %563 = vadd.xlane.f32.xlu2 %v562_v25  ;;  %v377_v4 = vmul.f32 %v8242_v13, %v8242_v13  ;;  %v8269_v12 = vunpack.c.l.bf16 %v151_v45  ;;  %v146_v20 = vld [vmem:[#allocation3 + $0x168] sm:$0xff] }
  0xf6   :  { %v378_v44 = vmul.f32 %v8255_v16, %v8255_v16  ;;  %v892_v17 = vmul.f32 0.5, %v891_v27  ;;  %v900_v5 = vmul.f32 %v8258_v61, %v8202_v36  ;;  %vm906_vm14 = vweird.f32 %v8258_v61  ;;  %3223 = vmatpush.bf16.msrb.mxu0 %v6746_v57  ;;  %3392 = vmatpush.bf16.msrb.mxu1 %v6874_v34  ;;  %v6904_v57 = vld [vmem:[#allocation2 + $0x44] sm:$0xf0] }
  0xf7   :  { %v1662_v53 = vpack.c.bf16 %v1547_v22, %v1546_v19  ;;  %v8271_v58 = vunpack.c.h.bf16 %v151_v45  ;;  %v8273_v39 = vunpack.c.l.bf16 %v150_v55  ;;  %v393_v15 = vmul.f32 %v8269_v12, %v8269_v12  ;;  %v6417_v45 = vld [vmem:[#allocation2 + $0x40] sm:$0xf]  ;;  %vm907_vm0 = vmor %vm905_vm12, %vm906_vm14 }
  0xf8   :  { %v547_v25 = vadd.f32 %v378_v44, %v377_v4  ;;  %v893_v14 = vsub.f32 1.5, %v892_v17  ;;  %v901_v9 = vmul.f32 %v8258_v61, %v900_v5  ;;  %v8278_v27 = vunpack.c.h.bf16 %v150_v55  ;;  %v6419_v5 = vld [vmem:[#allocation2 + $0x48] sm:$0xf0] }
  0xf9   :  { %11668 = vst [vmem:[#allocation60_spill] sm:$0xff] %v8271_v58  ;;  %v394_v19 = vmul.f32 %v8271_v58, %v8271_v58  ;;  %v391_v22 = vmul.f32 %v8273_v39, %v8273_v39  ;;  %v637_v55 = vmul.f32 %v7672_v38, %v474_v10  ;;  %v636_v4 = vmul.f32 %v7672_v38, %v471_v52  ;;  %v154_v58 = vld [vmem:[#allocation3 + $0x1a8] sm:$0xff] }
  0xfa   :  { %11669 = vst [vmem:[#allocation61_spill] sm:$0xff] %v8273_v39  ;;  %v894_v44 = vmul.f32 %v8235_v63, %v893_v14  ;;  %v902_v17 = vmul.f32 0.5, %v901_v9  ;;  %v8297_v16 = vunpack.c.l.bf16 %v146_v20  ;;  %v8303_v10 = vunpack.c.h.bf16 %v146_v20 }
  0xfb   :  { %11670 = vst [vmem:[#allocation62_spill] sm:$0xff] %v8278_v27  ;;  %560 = vadd.xlane.f32.xlu1 %v559_v59  ;;  %548 = vadd.xlane.f32.xlu0 %v547_v25  ;;  %v571_v13 = vadd.f32 %v394_v19, %v393_v15  ;;  %v8299_v33 = vadd.f32 1e-06, %v637_v55  ;;  %v8301_v39 = vadd.f32 1e-06, %v636_v4  ;;  %v8308_v9 = vor.u32 %v6904_v57, %v6417_v45 }
  0xfc   :  { %1726 = vst [vmem:[#allocation2 + $0x60] sm:$0xff] %v1662_v53  ;;  %v392_v53 = vmul.f32 %v8278_v27, %v8278_v27  ;;  %v898_v52 = vsel %vm8284_vm15, %v8235_v63, %v894_v44  ;;  %v903_v14 = vsub.f32 1.5, %v902_v17  ;;  %v383_v27 = vmul.f32 %v8297_v16, %v8297_v16  ;;  %v153_v63 = vld [vmem:[#allocation3 + $0x1a0] sm:$0xff] }
  0xfd   :  { %11673 = vst [vmem:[#allocation63_spill] sm:$0xff] %v8297_v16  ;;  %v1417_v59 = vmul.f32 %v898_v52, %v7617_v31  ;;  %v1418_v25 = vmul.f32 %v898_v52, %v7619_v32  ;;  %v8318_v20 = vor.u32 %v6903_v40, %v6419_v5  ;;  %572 = vadd.xlane.f32.xlu2 %v571_v13  ;;  %7069 = vrsqrt.f32 %v8299_v33  ;;  %v149_v32 = vld [vmem:[#allocation3 + $0x180] sm:$0xff]  ;;  %v11681_v5 = vld [vmem:[#allocation18_spill] sm:$0xff] }
  0xfe   :  { %11674 = vst [vmem:[#allocation64_spill] sm:$0xff] %v8303_v10  ;;  %v904_v15 = vmul.f32 %v8258_v61, %v903_v14  ;;  %v568_v34 = vadd.f32 %v392_v53, %v391_v22  ;;  %7071 = vrsqrt.f32 %v8301_v39  ;;  %v384_v31 = vmul.f32 %v8303_v10, %v8303_v10  ;;  %v11680_v17 = vld [vmem:[#allocation17_spill] sm:$0xff]  ;;  %v6425_v14 = vld [vmem:[#allocation2 + $0x50] sm:$0xf] }
  0xff   :  { %11675 = vst [vmem:[#allocation65_spill] sm:$0xff] %v8308_v9  ;;  %v1550_v45 = vmul.f32 %v7696_v30, %v1417_v59  ;;  %v1551_v36 = vmul.f32 %v7703_v18, %v1418_v25  ;;  %v8327_v57 = vunpack.c.l.bf16 %v154_v58  ;;  %v8329_v19 = vunpack.c.h.bf16 %v154_v58  ;;  %v6906_v59 = vld [vmem:[#allocation2 + $0x54] sm:$0xf0]  ;;  %v11700_v16 = vld [vmem:[#allocation22_spill] sm:$0xff] }
 0x100   :  { %11676 = vst [vmem:[#allocation66_spill] sm:$0xff] %v8318_v20  ;;  %v908_v13 = vsel %vm907_vm0, %v8258_v61, %v904_v15  ;;  %vm925_vm1 = vweird.f32 %v8299_v33  ;;  %v556_v55 = vadd.f32 %v384_v31, %v383_v27  ;;  %v8333_v22 = vunpack.c.l.bf16 %v153_v63 }
 0x101   :  { %11677 = vst [vmem:[#allocation67_spill] sm:$0xff] %v8329_v19  ;;  %v8335_v4 = vunpack.c.h.bf16 %v153_v63  ;;  %v1664_v44 = vpack.c.bf16 %v1551_v36, %v1550_v45  ;;  %v1419_v40 = vmul.f32 %v908_v13, %v11680_v17  ;;  %v1420_v53 = vmul.f32 %v908_v13, %v11681_v5  ;;  %2574 = vmatmul.bf16.gmra.mxu0 %v8308_v9  ;;  %v156_v17 = vld [vmem:[#allocation3 + $0x1b8] sm:$0xff]  ;;  %v480_v5 = vpop.xlane.xlu1 %479 }
 0x102   :  { %11678 = vst [vmem:[#allocation68_spill] sm:$0xff] %v8333_v22  ;;  %2743 = vmatmul.bf16.gmra.mxu1 %v8318_v20  ;;  %v8341_v58 = vunpack.c.l.bf16 %v149_v32  ;;  %2912 = vmatmul.bf16.gmra.mxu2 %v8308_v9  ;;  %v399_v61 = vmul.f32 %v8327_v57, %v8327_v57  ;;  %v400_v27 = vmul.f32 %v8329_v19, %v8329_v19  ;;  %v8351_v25 = vunpack.c.h.bf16 %v149_v32 }
 0x103   :  { %11679 = vst [vmem:[#allocation69_spill] sm:$0xff] %v8335_v4  ;;  %3081 = vmatmul.bf16.gmra.mxu3 %v8318_v20  ;;  %v397_v52 = vmul.f32 %v8333_v22, %v8333_v22  ;;  %v8353_v63 = vpop.eup %7069  ;;  %v1552_v15 = vmul.f32 %v7696_v30, %v1419_v40  ;;  %v1553_v31 = vmul.f32 %v7703_v18, %v1420_v53  ;;  %vm915_vm3 = vweird.f32 %v8301_v39 }
 0x104   :  { %11682 = vst [vmem:[#allocation17_spill] sm:$0xff] %v8341_v58  ;;  %569 = vadd.xlane.f32.xlu1 %v568_v34  ;;  %557 = vadd.xlane.f32.xlu0 %v556_v55  ;;  %v398_v45 = vmul.f32 %v8335_v4, %v8335_v4  ;;  %v8359_v36 = vpop.eup %7071  ;;  %v920_v13 = vmul.f32 %v8353_v63, %v8299_v33  ;;  %vm926_vm2 = vweird.f32 %v8353_v63 }
 0x105   :  { %11683 = vst [vmem:[#allocation18_spill] sm:$0xff] %v8351_v25  ;;  %v580_v32 = vadd.f32 %v400_v27, %v399_v61  ;;  %v1665_v40 = vpack.c.bf16 %v1553_v31, %v1552_v15  ;;  %v910_v34 = vmul.f32 %v8359_v36, %v8301_v39  ;;  %vm916_vm4 = vweird.f32 %v8359_v36  ;;  %vm8401_vm5 = vmor %vm925_vm1, %vm926_vm2 }
 0x106   :  { %1728 = vst [vmem:[#allocation2 + $0x70] sm:$0xff] %v1664_v44  ;;  %v157_v44 = vld [vmem:[#allocation3 + $0x1c0] sm:$0xff]  ;;  %v8368_v55 = vor.u32 %v6906_v59, %v6425_v14  ;;  %v921_v53 = vmul.f32 %v8353_v63, %v920_v13  ;;  %v577_v20 = vadd.f32 %v398_v45, %v397_v52  ;;  %v389_v9 = vmul.f32 %v8341_v58, %v8341_v58  ;;  %v152_v59 = vld [vmem:[#allocation3 + $0x198] sm:$0xff]  ;;  %v477_v45 = vpop.xlane.xlu0 %476  ;;  %v6905_v58 = vld [vmem:[#allocation2 + $0x54] sm:$0xf] }
 0x107   :  { %581 = vadd.xlane.f32.xlu2 %v580_v32  ;;  %v390_v61 = vmul.f32 %v8351_v25, %v8351_v25  ;;  %1729 = vst [vmem:[#allocation2 + $0x78] sm:$0xff] %v1665_v40  ;;  %v911_v27 = vmul.f32 %v8359_v36, %v910_v34  ;;  %v8376_v15 = vunpack.c.l.bf16 %v157_v44  ;;  %v8378_v31 = vunpack.c.h.bf16 %v157_v44  ;;  %v6427_v25 = vld [vmem:[#allocation2 + $0x58] sm:$0xf0]  ;;  %vm917_vm6 = vmor %vm915_vm3, %vm916_vm4 }
 0x108   :  { %11684 = vst [vmem:[#allocation70_spill] sm:$0xff] %v8368_v55  ;;  %v8380_v14 = vunpack.c.l.bf16 %v156_v17  ;;  %v922_v4 = vmul.f32 0.5, %v921_v53  ;;  %v8382_v32 = vunpack.c.h.bf16 %v156_v17  ;;  %v639_v52 = vmul.f32 %v7672_v38, %v480_v5 }
 0x109   :  { %11685 = vst [vmem:[#allocation71_spill] sm:$0xff] %v8376_v15  ;;  %v565_v13 = vadd.f32 %v390_v61, %v389_v9  ;;  %v912_v22 = vmul.f32 0.5, %v911_v27  ;;  %v405_v40 = vmul.f32 %v8376_v15, %v8376_v15  ;;  %v406_v44 = vmul.f32 %v8378_v31, %v8378_v31 }
 0x10a   :  { %11686 = vst [vmem:[#allocation72_spill] sm:$0xff] %v8378_v31  ;;  %v403_v34 = vmul.f32 %v8380_v14, %v8380_v14  ;;  %v923_v10 = vsub.f32 1.5, %v922_v4  ;;  %v404_v9 = vmul.f32 %v8382_v32, %v8382_v32  ;;  %v8393_v17 = vadd.f32 1e-06, %v639_v52  ;;  %v160_v52 = vld [vmem:[#allocation3 + $0x1d8] sm:$0xff] }
 0x10b   :  { %11687 = vst [vmem:[#allocation73_spill] sm:$0xff] %v8380_v14  ;;  %v8395_v5 = vunpack.c.l.bf16 %v152_v59  ;;  %v913_v61 = vsub.f32 1.5, %v912_v22  ;;  %v589_v27 = vadd.f32 %v406_v44, %v405_v40  ;;  %v8405_v4 = vunpack.c.h.bf16 %v152_v59  ;;  %v159_v14 = vld [vmem:[#allocation3 + $0x1d0] sm:$0xff]  ;;  %v11698_v44 = vld [vmem:[#allocation20_spill] sm:$0xff] }
 0x10c   :  { %11688 = vst [vmem:[#allocation74_spill] sm:$0xff] %v8382_v32  ;;  %578 = vadd.xlane.f32.xlu1 %v577_v20  ;;  %566 = vadd.xlane.f32.xlu0 %v565_v13  ;;  %v638_v32 = vmul.f32 %v7672_v38, %v477_v45  ;;  %v924_v31 = vmul.f32 %v8353_v63, %v923_v10  ;;  %7073 = vrsqrt.f32 %v8393_v17  ;;  %v8426_v10 = vunpack.c.l.bf16 %v160_v52  ;;  %v11697_v45 = vld [vmem:[#allocation19_spill] sm:$0xff] }
 0x10d   :  { %11689 = vst [vmem:[#allocation75_spill] sm:$0xff] %v8395_v5  ;;  %v8413_v33 = vor.u32 %v6905_v58, %v6427_v25  ;;  %v586_v15 = vadd.f32 %v404_v9, %v403_v34  ;;  %v914_v20 = vmul.f32 %v8359_v36, %v913_v61  ;;  %v395_v22 = vmul.f32 %v8395_v5, %v8395_v5 }
 0x10e   :  { %11692 = vst [vmem:[#allocation76_spill] sm:$0xff] %v8405_v4  ;;  %v396_v59 = vmul.f32 %v8405_v4, %v8405_v4  ;;  %v8421_v13 = vadd.f32 1e-06, %v638_v32  ;;  %v928_v39 = vsel %vm8401_vm5, %v8353_v63, %v924_v31  ;;  %v8428_v58 = vunpack.c.h.bf16 %v160_v52  ;;  %v155_v32 = vld [vmem:[#allocation3 + $0x1b0] sm:$0xff]  ;;  %v11699_v4 = vld [vmem:[#allocation21_spill] sm:$0xff] }
 0x10f   :  { %11693 = vst [vmem:[#allocation77_spill] sm:$0xff] %v8413_v33  ;;  %590 = vadd.xlane.f32.xlu2 %v589_v27  ;;  %v8430_v25 = vunpack.c.l.bf16 %v159_v14  ;;  %v1423_v40 = vmul.f32 %v928_v39, %v11697_v45  ;;  %v1424_v34 = vmul.f32 %v928_v39, %v11698_v44  ;;  %v918_v9 = vsel %vm917_vm6, %v8359_v36, %v914_v20  ;;  %v163_v39 = vld [vmem:[#allocation3 + $0x1f0] sm:$0xff]  ;;  %v162_v45 = vld [vmem:[#allocation3 + $0x1e8] sm:$0xff] }
 0x110   :  { %11694 = vst [vmem:[#allocation78_spill] sm:$0xff] %v8426_v10  ;;  %v574_v61 = vadd.f32 %v396_v59, %v395_v22  ;;  %v1421_v5 = vmul.f32 %v918_v9, %v11699_v4  ;;  %v1422_v53 = vmul.f32 %v918_v9, %v11700_v16  ;;  %7075 = vrsqrt.f32 %v8421_v13 }
 0x111   :  { %11695 = vst [vmem:[#allocation79_spill] sm:$0xff] %v8428_v58  ;;  %v1556_v63 = vmul.f32 %v7696_v30, %v1423_v40  ;;  %v1557_v31 = vmul.f32 %v7703_v18, %v1424_v34  ;;  %2579 = vmatmul.bf16.gmra.mxu0 %v8368_v55  ;;  %v411_v27 = vmul.f32 %v8426_v10, %v8426_v10  ;;  %v8444_v36 = vunpack.c.h.bf16 %v159_v14  ;;  %v11714_v10 = vld [vmem:[#allocation24_spill] sm:$0xff] }
 0x112   :  { %11696 = vst [vmem:[#allocation80_spill] sm:$0xff] %v8430_v25  ;;  %2748 = vmatmul.bf16.gmra.mxu1 %v8413_v33  ;;  %v8446_v52 = vpop.eup %7073  ;;  %v1554_v4 = vmul.f32 %v7696_v30, %v1421_v5  ;;  %v1555_v16 = vmul.f32 %v7703_v18, %v1422_v53  ;;  %2917 = vmatmul.bf16.gmra.mxu2 %v8368_v55  ;;  %v8454_v22 = vunpack.c.l.bf16 %v155_v32  ;;  %vm945_vm7 = vweird.f32 %v8393_v17  ;;  %v6908_v55 = vld [vmem:[#allocation2 + $0x64] sm:$0xf0] }
 0x113   :  { %11701 = vst [vmem:[#allocation19_spill] sm:$0xff] %v8444_v36  ;;  %3086 = vmatmul.bf16.gmra.mxu3 %v8413_v33  ;;  %v412_v20 = vmul.f32 %v8428_v58, %v8428_v58  ;;  %v1667_v59 = vpack.c.bf16 %v1557_v31, %v1556_v63  ;;  %v940_v14 = vmul.f32 %v8446_v52, %v8393_v17  ;;  %vm935_vm8 = vweird.f32 %v8421_v13  ;;  %v6763_v58 = vld [vmem:[#allocation8 + $0xf8] sm:$0xf0] }
 0x114   :  { %11702 = vst [vmem:[#allocation20_spill] sm:$0xff] %v8454_v22  ;;  %587 = vadd.xlane.f32.xlu1 %v586_v15  ;;  %575 = vadd.xlane.f32.xlu0 %v574_v61  ;;  %v409_v5 = vmul.f32 %v8430_v25, %v8430_v25  ;;  %v1666_v40 = vpack.c.bf16 %v1555_v16, %v1554_v4  ;;  %vm946_vm9 = vweird.f32 %v8446_v52  ;;  %v8466_v9 = vunpack.c.h.bf16 %v155_v32  ;;  %v483_v16 = vpop.xlane.xlu2 %482 }
 0x115   :  { %v598_v44 = vadd.f32 %v412_v20, %v411_v27  ;;  %v410_v34 = vmul.f32 %v8444_v36, %v8444_v36  ;;  %1731 = vst [vmem:[#allocation2 + $0x88] sm:$0xff] %v1667_v59  ;;  %v941_v15 = vmul.f32 %v8446_v52, %v940_v14  ;;  %v401_v61 = vmul.f32 %v8454_v22, %v8454_v22  ;;  %v158_v14 = vld [vmem:[#allocation3 + $0x1c8] sm:$0xff]  ;;  %vm8497_vm11 = vmor %vm945_vm7, %vm946_vm9 }
 0x116   :  { %11703 = vst [vmem:[#allocation21_spill] sm:$0xff] %v8466_v9  ;;  %v8470_v53 = vpop.eup %7075  ;;  %v8472_v31 = vunpack.c.l.bf16 %v163_v39  ;;  %v8474_v27 = vunpack.c.h.bf16 %v163_v39  ;;  %v8476_v4 = vunpack.c.l.bf16 %v162_v45  ;;  %v402_v59 = vmul.f32 %v8466_v9, %v8466_v9  ;;  %v6435_v22 = vld [vmem:[#allocation2 + $0x68] sm:$0xf0] }
 0x117   :  { %1730 = vst [vmem:[#allocation2 + $0x80] sm:$0xff] %v1666_v40  ;;  %599 = vadd.xlane.f32.xlu2 %v598_v44  ;;  %v595_v63 = vadd.f32 %v410_v34, %v409_v5  ;;  %v942_v20 = vmul.f32 0.5, %v941_v15  ;;  %v930_v32 = vmul.f32 %v8470_v53, %v8421_v13  ;;  %vm936_vm10 = vweird.f32 %v8470_v53  ;;  %v486_v34 = vpop.xlane.xlu0 %485 }
 0x118   :  { %11704 = vst [vmem:[#allocation22_spill] sm:$0xff] %v8472_v31  ;;  %v417_v5 = vmul.f32 %v8472_v31, %v8472_v31  ;;  %v418_v39 = vmul.f32 %v8474_v27, %v8474_v27  ;;  %v8487_v40 = vunpack.c.h.bf16 %v162_v45  ;;  %v415_v44 = vmul.f32 %v8476_v4, %v8476_v4  ;;  %v6433_v45 = vld [vmem:[#allocation2 + $0x60] sm:$0xf]  ;;  %vm937_vm12 = vmor %vm935_vm8, %vm936_vm10 }
 0x119   :  { %11705 = vst [vmem:[#allocation81_spill] sm:$0xff] %v8474_v27  ;;  %v943_v15 = vsub.f32 1.5, %v942_v20  ;;  %v931_v33 = vmul.f32 %v8470_v53, %v930_v32  ;;  %v583_v36 = vadd.f32 %v402_v59, %v401_v61  ;;  %v640_v25 = vmul.f32 %v7672_v38, %v483_v16  ;;  %v6907_v59 = vld [vmem:[#allocation2 + $0x64] sm:$0xf] }
 0x11a   :  { %11706 = vst [vmem:[#allocation82_spill] sm:$0xff] %v8476_v4  ;;  %v607_v27 = vadd.f32 %v418_v39, %v417_v5  ;;  %v416_v20 = vmul.f32 %v8487_v40, %v8487_v40  ;;  %v8503_v4 = vunpack.c.l.bf16 %v158_v14  ;;  %v8505_v32 = vunpack.c.h.bf16 %v158_v14 }
 0x11b   :  { %11707 = vst [vmem:[#allocation83_spill] sm:$0xff] %v8487_v40  ;;  %v944_v61 = vmul.f32 %v8446_v52, %v943_v15  ;;  %v932_v16 = vmul.f32 0.5, %v931_v33  ;;  %v8508_v17 = vadd.f32 1e-06, %v640_v25  ;;  %v641_v31 = vmul.f32 %v7672_v38, %v486_v34  ;;  %v6988_v40 = vld [vmem:[#allocation8 + $0xec] sm:$0xf] }
 0x11c   :  { %11710 = vst [vmem:[#allocation84_spill] sm:$0xff] %v8503_v4  ;;  %596 = vadd.xlane.f32.xlu1 %v595_v63  ;;  %584 = vadd.xlane.f32.xlu0 %v583_v36  ;;  %v407_v5 = vmul.f32 %v8503_v4, %v8503_v4  ;;  %v408_v39 = vmul.f32 %v8505_v32, %v8505_v32  ;;  %v7020_v25 = vld [vmem:[#allocation8 + $0x1ec] sm:$0xf]  ;;  %v6891_v36 = vld [vmem:[#allocation8 + $0x1f8] sm:$0xf0]  ;;  %v11713_v34 = vld [vmem:[#allocation23_spill] sm:$0xff]  ;;  %v492_v13 = vpop.xlane.xlu2 %491 }
 0x11d   :  { %11711 = vst [vmem:[#allocation85_spill] sm:$0xff] %v8505_v32  ;;  %v948_v14 = vsel %vm8497_vm11, %v8446_v52, %v944_v61  ;;  %v933_v33 = vsub.f32 1.5, %v932_v16  ;;  %v8518_v63 = vor.u32 %v6908_v55, %v6433_v45  ;;  %7077 = vrsqrt.f32 %v8508_v17  ;;  %v161_v55 = vld [vmem:[#allocation3 + $0x1e0] sm:$0xff] }
 0x11e   :  { %v1427_v15 = vmul.f32 %v948_v14, %v11713_v34  ;;  %v1428_v4 = vmul.f32 %v948_v14, %v11714_v10  ;;  %v8527_v32 = vor.u32 %v6907_v59, %v6435_v22  ;;  %v8529_v52 = vadd.f32 1e-06, %v641_v31 }
 0x11f   :  { %11712 = vst [vmem:[#allocation86_spill] sm:$0xff] %v8518_v63  ;;  %608 = vadd.xlane.f32.xlu2 %v607_v27  ;;  %v934_v9 = vmul.f32 %v8470_v53, %v933_v33  ;;  %v604_v45 = vadd.f32 %v416_v20, %v415_v44  ;;  %v592_v61 = vadd.f32 %v408_v39, %v407_v5  ;;  %v8539_v27 = vunpack.c.l.bf16 %v161_v55 }
 0x120   :  { %11715 = vst [vmem:[#allocation23_spill] sm:$0xff] %v8527_v32  ;;  %v6766_v16 = vor.u32 %v6988_v40, %v6763_v58  ;;  %v1560_v34 = vmul.f32 %v7696_v30, %v1427_v15  ;;  %v1561_v10 = vmul.f32 %v7703_v18, %v1428_v4  ;;  %7079 = vrsqrt.f32 %v8529_v52  ;;  %v11718_v40 = vld [vmem:[#allocation25_spill] sm:$0xff]  ;;  %v11719_v4 = vld [vmem:[#allocation26_spill] sm:$0xff] }
 0x121   :  { %v6894_v14 = vor.u32 %v7020_v25, %v6891_v36  ;;  %v938_v22 = vsel %vm937_vm12, %v8470_v53, %v934_v9  ;;  %2584 = vmatmul.bf16.gmra.mxu0 %v8518_v63  ;;  %v643_v31 = vmul.f32 %v7672_v38, %v492_v13  ;;  %11716 = vst [vmem:[#allocation24_spill] sm:$0xff] %v8539_v27  ;;  %v8541_v44 = vunpack.c.h.bf16 %v161_v55  ;;  %v164_v25 = vld [vmem:[#allocation3 + $0x1f8] sm:$0xff] }
 0x122   :  { %2753 = vmatmul.bf16.gmra.mxu1 %v8527_v32  ;;  %v1669_v58 = vpack.c.bf16 %v1561_v10, %v1560_v34  ;;  %v1425_v20 = vmul.f32 %v938_v22, %v11718_v40  ;;  %v1426_v59 = vmul.f32 %v938_v22, %v11719_v4  ;;  %2922 = vmatmul.bf16.gmra.mxu2 %v8518_v63  ;;  %v8557_v34 = vunpack.c.l.bf16 %v164_v25  ;;  %v6443_v4 = vld [vmem:[#allocation2 + $0x78] sm:$0xf0] }
 0x123   :  { %11717 = vst [vmem:[#allocation87_spill] sm:$0xff] %v8541_v44  ;;  %3091 = vmatmul.bf16.gmra.mxu3 %v8527_v32  ;;  %v7078_v53 = vpop.eup %7077  ;;  %v8547_v5 = vadd.f32 1e-06, %v643_v31  ;;  %v413_v39 = vmul.f32 %v8539_v27, %v8539_v27  ;;  %v414_v33 = vmul.f32 %v8541_v44, %v8541_v44  ;;  %3560 = vmatpush.bf16.msrb.mxu2 %v6766_v16  ;;  %v8559_v10 = vunpack.c.h.bf16 %v164_v25  ;;  %v6441_v16 = vld [vmem:[#allocation2 + $0x70] sm:$0xf] }
 0x124   :  { %605 = vadd.xlane.f32.xlu1 %v604_v45  ;;  %593 = vadd.xlane.f32.xlu0 %v592_v61  ;;  %1733 = vst [vmem:[#allocation2 + $0x98] sm:$0xff] %v1669_v58  ;;  %v1558_v36 = vmul.f32 %v7696_v30, %v1425_v20  ;;  %v1559_v15 = vmul.f32 %v7703_v18, %v1426_v59  ;;  %vm955_vm13 = vweird.f32 %v8508_v17  ;;  %vm956_vm14 = vweird.f32 %v7078_v53  ;;  %v6910_v20 = vld [vmem:[#allocation2 + $0x74] sm:$0xf0] }
 0x125   :  { %v950_v55 = vmul.f32 %v7078_v53, %v8508_v17  ;;  %3729 = vmatpush.bf16.msrb.mxu3 %v6894_v14  ;;  %7081 = vrsqrt.f32 %v8547_v5  ;;  %11720 = vst [vmem:[#allocation25_spill] sm:$0xff] %v8557_v34  ;;  %v601_v22 = vadd.f32 %v414_v33, %v413_v39  ;;  %vm965_vm15 = vweird.f32 %v8529_v52  ;;  %v6909_v14 = vld [vmem:[#allocation2 + $0x74] sm:$0xf]  ;;  %vm957_vm1 = vmor %vm955_vm13, %vm956_vm14  ;;  %v6982_v63 = vld [vmem:[#allocation8 + $0xb4] sm:$0xf0] }
 0x126   :  { %v7080_v9 = vpop.eup %7079  ;;  %v1668_v45 = vpack.c.bf16 %v1559_v15, %v1558_v36  ;;  %11721 = vst [vmem:[#allocation26_spill] sm:$0xff] %v8559_v10  ;;  %v419_v59 = vmul.f32 %v8557_v34, %v8557_v34  ;;  %v420_v39 = vmul.f32 %v8559_v10, %v8559_v10  ;;  %vm985_vm3 = vweird.f32 %v8547_v5  ;;  %v11726_v10 = vld [vmem:[#allocation27_spill] sm:$0xff]  ;;  %v11727_v34 = vld [vmem:[#allocation28_spill] sm:$0xff] }
 0x127   :  { %v951_v61 = vmul.f32 %v7078_v53, %v950_v55  ;;  %v960_v13 = vmul.f32 %v7080_v9, %v8529_v52  ;;  %vm966_vm0 = vweird.f32 %v7080_v9 }
 0x128   :  { %1732 = vst [vmem:[#allocation2 + $0x90] sm:$0xff] %v1668_v45  ;;  %vm8571_vm2 = vmor %vm965_vm15, %vm966_vm0 }
 0x129   :  { %v952_v31 = vmul.f32 0.5, %v951_v61  ;;  %v961_v58 = vmul.f32 %v7080_v9, %v960_v13  ;;  %v8575_v61 = vor.u32 %v6910_v20, %v6441_v16  ;;  %v8577_v13 = vor.u32 %v6909_v14, %v6443_v4  ;;  %v7014_v16 = vld [vmem:[#allocation8 + $0x1b4] sm:$0xf0] }
 0x12b   :  { %v953_v40 = vsub.f32 1.5, %v952_v31  ;;  %v7082_v33 = vpop.eup %7081  ;;  %v962_v25 = vmul.f32 0.5, %v961_v58  ;;  %11724 = vst [vmem:[#allocation88_spill] sm:$0xff] %v8575_v61 }
 0x12c   :  { %602 = vadd.xlane.f32.xlu0 %v601_v22  ;;  %v980_v36 = vmul.f32 %v7082_v33, %v8547_v5  ;;  %v489_v15 = vpop.xlane.xlu1 %488  ;;  %11725 = vst [vmem:[#allocation89_spill] sm:$0xff] %v8577_v13  ;;  %v610_v22 = vadd.f32 %v420_v39, %v419_v59  ;;  %vm986_vm4 = vweird.f32 %v7082_v33 }
 0x12d   :  { %v954_v17 = vmul.f32 %v7078_v53, %v953_v40  ;;  %v963_v55 = vsub.f32 1.5, %v962_v25  ;;  %v642_v31 = vmul.f32 %v7672_v38, %v489_v15  ;;  %v6729_v40 = vld [vmem:[#allocation8 + $0xa8] sm:$0xf]  ;;  %vm987_vm5 = vmor %vm985_vm3, %vm986_vm4 }
 0x12e   :  { %v981_v58 = vmul.f32 %v7082_v33, %v980_v36  ;;  %v6857_v25 = vld [vmem:[#allocation8 + $0x1a8] sm:$0xf]  ;;  %v6730_v4 = vor.u32 %v6982_v63, %v6729_v40 }
 0x12f   :  { %v958_v32 = vsel %vm957_vm1, %v7078_v53, %v954_v17  ;;  %v964_v27 = vmul.f32 %v7080_v9, %v963_v55  ;;  %v8583_v19 = vadd.f32 1e-06, %v642_v31  ;;  %v6858_v53 = vor.u32 %v7014_v16, %v6857_v25 }
 0x130   :  { %v1429_v52 = vmul.f32 %v958_v32, %v11726_v10  ;;  %v1430_v44 = vmul.f32 %v958_v32, %v11727_v34  ;;  %v982_v14 = vmul.f32 0.5, %v981_v58  ;;  %v501_v20 = vpop.xlane.xlu2 %500  ;;  %v11728_v32 = vld [vmem:[#allocation29_spill] sm:$0xff]  ;;  %v11729_v10 = vld [vmem:[#allocation30_spill] sm:$0xff]  ;;  %3224 = vmatpush.bf16.msrb.mxu0 %v6730_v4 }
 0x131   :  { %v968_v39 = vsel %vm8571_vm2, %v7080_v9, %v964_v27  ;;  %2589 = vmatmul.bf16.gmra.mxu0 %v8575_v61  ;;  %7083 = vrsqrt.f32 %v8583_v19  ;;  %3393 = vmatpush.bf16.msrb.mxu1 %v6858_v53  ;;  %vm975_vm6 = vweird.f32 %v8583_v19 }
 0x132   :  { %v1562_v17 = vmul.f32 %v7696_v30, %v1429_v52  ;;  %v1563_v59 = vmul.f32 %v7703_v18, %v1430_v44  ;;  %2758 = vmatmul.bf16.gmra.mxu1 %v8577_v13  ;;  %v1431_v34 = vmul.f32 %v968_v39, %v11728_v32  ;;  %v1432_v36 = vmul.f32 %v968_v39, %v11729_v10  ;;  %v11730_v52 = vld [vmem:[#allocation31_spill] sm:$0xff]  ;;  %v6449_v10 = vld [vmem:[#allocation2 + $0x80] sm:$0xf] }
 0x133   :  { %2927 = vmatmul.bf16.gmra.mxu2 %v8575_v61  ;;  %3096 = vmatmul.bf16.gmra.mxu3 %v8577_v13  ;;  %v983_v63 = vsub.f32 1.5, %v982_v14  ;;  %v646_v44 = vmul.f32 %v7672_v38, %v501_v20  ;;  %v11833_v61 = vld [vmem:[#allocation79_spill] sm:$0xff] }
 0x134   :  { %v1670_v15 = vpack.c.bf16 %v1563_v59, %v1562_v17  ;;  %611 = vadd.xlane.f32.xlu0 %v610_v22  ;;  %v1564_v27 = vmul.f32 %v7696_v30, %v1431_v34  ;;  %v1565_v9 = vmul.f32 %v7703_v18, %v1432_v36  ;;  %v6912_v36 = vld [vmem:[#allocation2 + $0x84] sm:$0xf0] }
 0x135   :  { %v984_v55 = vmul.f32 %v7082_v33, %v983_v63  ;;  %v8602_v45 = vadd.f32 1e-06, %v646_v44 }
 0x136   :  { %1734 = vst [vmem:[#allocation2 + $0xa0] sm:$0xff] %v1670_v15  ;;  %v1671_v31 = vpack.c.bf16 %v1565_v9, %v1564_v27  ;;  %v498_v40 = vpop.xlane.xlu1 %497  ;;  %v6911_v15 = vld [vmem:[#allocation2 + $0x84] sm:$0xf]  ;;  %v6451_v27 = vld [vmem:[#allocation2 + $0x88] sm:$0xf0] }
 0x137   :  { %v988_v58 = vsel %vm987_vm5, %v7082_v33, %v984_v55  ;;  %7085 = vrsqrt.f32 %v8602_v45  ;;  %v7084_v25 = vpop.eup %7083  ;;  %v645_v16 = vmul.f32 %v7672_v38, %v498_v40  ;;  %vm1015_vm9 = vweird.f32 %v8602_v45 }
 0x138   :  { %v1435_v5 = vmul.f32 %v988_v58, %v11730_v52  ;;  %v1436_v22 = vmul.f32 %v988_v58, %v7718_v42  ;;  %1735 = vst [vmem:[#allocation2 + $0xa8] sm:$0xff] %v1671_v31  ;;  %v970_v14 = vmul.f32 %v7084_v25, %v8583_v19  ;;  %v510_v20 = vpop.xlane.xlu2 %509  ;;  %vm976_vm7 = vweird.f32 %v7084_v25 }
 0x139   :  { %v649_v33 = vmul.f32 %v7672_v38, %v510_v20  ;;  %v8612_v17 = vadd.f32 1e-06, %v645_v16  ;;  %vm8627_vm8 = vmor %vm975_vm6, %vm976_vm7 }
 0x13a   :  { %v1568_v4 = vmul.f32 %v7696_v30, %v1435_v5  ;;  %v1569_v53 = vmul.f32 %v7703_v18, %v1436_v22  ;;  %v971_v59 = vmul.f32 %v7084_v25, %v970_v14  ;;  %v8633_v22 = vor.u32 %v6912_v36, %v6449_v10 }
 0x13b   :  { %v8614_v32 = vadd.f32 1e-06, %v649_v33  ;;  %7087 = vrsqrt.f32 %v8612_v17  ;;  %v495_v63 = vpop.xlane.xlu0 %494  ;;  %v8635_v14 = vor.u32 %v6911_v15, %v6451_v27  ;;  %vm1005_vm13 = vweird.f32 %v8612_v17 }
 0x13c   :  { %v1673_v39 = vpack.c.bf16 %v1569_v53, %v1568_v4  ;;  %v972_v34 = vmul.f32 0.5, %v971_v59  ;;  %v644_v58 = vmul.f32 %v7672_v38, %v495_v63  ;;  %11733 = vst [vmem:[#allocation27_spill] sm:$0xff] %v8633_v22  ;;  %v6457_v59 = vld [vmem:[#allocation2 + $0x90] sm:$0xf] }
 0x13d   :  { %v8617_v42 = vpop.eup %7085  ;;  %7089 = vrsqrt.f32 %v8614_v32  ;;  %11734 = vst [vmem:[#allocation28_spill] sm:$0xff] %v8635_v14  ;;  %vm1045_vm12 = vweird.f32 %v8614_v32 }
 0x13e   :  { %1737 = vst [vmem:[#allocation2 + $0xb8] sm:$0xff] %v1673_v39  ;;  %v1010_v44 = vmul.f32 %v8617_v42, %v8602_v45  ;;  %v973_v9 = vsub.f32 1.5, %v972_v34  ;;  %v2555_v55 = vpop.f32.mrf.mxu0  ;;  %v2724_v31 = vpop.f32.mrf.mxu1  ;;  %v8637_v4 = vadd.f32 1e-06, %v644_v58  ;;  %vm1016_vm10 = vweird.f32 %v8617_v42  ;;  %v6914_v39 = vld [vmem:[#allocation2 + $0x94] sm:$0xf0] }
 0x13f   :  { %v8631_v5 = vadd.f32 %v2724_v31, %v2555_v55  ;;  %vm8665_vm11 = vmor %vm1015_vm9, %vm1016_vm10 }
 0x140   :  { %v1011_v40 = vmul.f32 %v8617_v42, %v1010_v44  ;;  %v974_v16 = vmul.f32 %v7084_v25, %v973_v9  ;;  %v519_v20 = vpop.xlane.xlu2 %518  ;;  %7091 = vrsqrt.f32 %v8637_v4  ;;  %vm995_vm0 = vweird.f32 %v8637_v4 }
 0x141   :  { %v8639_v53 = vpop.eup %7087  ;;  %4091 = vrot.lane.b32.xlu1 %v8631_v5, %s7455_s4  ;;  %2594 = vmatmul.bf16.gmra.mxu0 %v8633_v22  ;;  %v652_v19 = vmul.f32 %v7672_v38, %v519_v20 }
 0x142   :  { %v1012_v33 = vmul.f32 0.5, %v1011_v40  ;;  %v978_v34 = vsel %vm8627_vm8, %v7084_v25, %v974_v16  ;;  %2763 = vmatmul.bf16.gmra.mxu1 %v8635_v14  ;;  %v1000_v10 = vmul.f32 %v8639_v53, %v8612_v17  ;;  %vm1006_vm14 = vweird.f32 %v8639_v53 }
 0x143   :  { %2932 = vmatmul.bf16.gmra.mxu2 %v8633_v22  ;;  %v8654_v36 = vpop.eup %7089  ;;  %v1433_v44 = vmul.f32 %v978_v34, %v7733_v23  ;;  %v1434_v15 = vmul.f32 %v978_v34, %v7765_v26  ;;  %3101 = vmatmul.bf16.gmra.mxu3 %v8635_v14  ;;  %v8659_v27 = vadd.f32 1e-06, %v652_v19  ;;  %v8673_v26 = vor.u32 %v6914_v39, %v6457_v59  ;;  %v6913_v19 = vld [vmem:[#allocation2 + $0x94] sm:$0xf]  ;;  %v6459_v59 = vld [vmem:[#allocation2 + $0x98] sm:$0xf0]  ;;  %v507_v22 = vpop.xlane.xlu1 %506  ;;  %vm1007_vm1 = vmor %vm1005_vm13, %vm1006_vm14 }
 0x144   :  { %v1013_v63 = vsub.f32 1.5, %v1012_v33  ;;  %v1040_v9 = vmul.f32 %v8654_v36, %v8614_v32  ;;  %v1001_v23 = vmul.f32 %v8639_v53, %v1000_v10  ;;  %vm1046_vm15 = vweird.f32 %v8654_v36 }
 0x145   :  { %11737 = vst [vmem:[#allocation29_spill] sm:$0xff] %v8673_v26  ;;  %v1566_v31 = vmul.f32 %v7696_v30, %v1433_v44  ;;  %v1567_v58 = vmul.f32 %v7703_v18, %v1434_v15  ;;  %v2893_v45 = vpop.f32.mrf.mxu2  ;;  %v3062_v40 = vpop.f32.mrf.mxu3  ;;  %7093 = vrsqrt.f32 %v8659_v27  ;;  %vm8714_vm2 = vmor %vm1045_vm12, %vm1046_vm15  ;;  %vm1075_vm3 = vweird.f32 %v8659_v27 }
 0x146   :  { %v1014_v55 = vmul.f32 %v8617_v42, %v1013_v63  ;;  %v1041_v52 = vmul.f32 %v8654_v36, %v1040_v9  ;;  %v2557_v16 = vpop.f32.mrf.mxu0  ;;  %v2726_v20 = vpop.f32.mrf.mxu1  ;;  %v1002_v33 = vmul.f32 0.5, %v1001_v23  ;;  %v8685_v10 = vadd.f32 %v3062_v40, %v2893_v45 }
 0x147   :  { %v1672_v34 = vpack.c.bf16 %v1567_v58, %v1566_v31  ;;  %v8687_v63 = vadd.f32 %v2726_v20, %v2557_v16  ;;  %v8689_v44 = vpop.eup %7091  ;;  %v648_v17 = vmul.f32 %v7672_v38, %v507_v22 }
 0x148   :  { %v1018_v39 = vsel %vm8665_vm11, %v8617_v42, %v1014_v55  ;;  %v1042_v23 = vmul.f32 0.5, %v1041_v52  ;;  %v528_v14 = vpop.xlane.xlu2 %527  ;;  %v1003_v42 = vsub.f32 1.5, %v1002_v33  ;;  %v990_v25 = vmul.f32 %v8689_v44, %v8637_v4 }
 0x149   :  { %v1441_v15 = vmul.f32 %v1018_v39, %v7836_v47  ;;  %v1442_v9 = vmul.f32 %v1018_v39, %v7848_v28  ;;  %1736 = vst [vmem:[#allocation2 + $0xb0] sm:$0xff] %v1672_v34  ;;  %4093 = vrot.lane.b32.xlu2 %v8687_v63, %s7455_s4  ;;  %4675 = vrot.lane.b32.xlu1 %v8685_v10, %s7455_s4  ;;  %vm996_vm4 = vweird.f32 %v8689_v44 }
 0x14a   :  { %v8701_v47 = vor.u32 %v6913_v19, %v6459_v59  ;;  %v1043_v31 = vsub.f32 1.5, %v1042_v23  ;;  %v655_v58 = vmul.f32 %v7672_v38, %v528_v14  ;;  %v1004_v52 = vmul.f32 %v8639_v53, %v1003_v42  ;;  %vm8745_vm6 = vmor %vm995_vm0, %vm996_vm4 }
 0x14b   :  { %v1574_v28 = vmul.f32 %v7696_v30, %v1441_v15  ;;  %v1575_v55 = vmul.f32 %v7703_v18, %v1442_v9  ;;  %v7094_v45 = vpop.eup %7093  ;;  %v991_v16 = vmul.f32 %v8689_v44, %v990_v25  ;;  %v8728_v15 = vadd.f32 1e-06, %v648_v17  ;;  %v516_v4 = vpop.xlane.xlu1 %515 }
 0x14c   :  { %11738 = vst [vmem:[#allocation30_spill] sm:$0xff] %v8701_v47  ;;  %v1044_v14 = vmul.f32 %v8654_v36, %v1043_v31  ;;  %v1070_v33 = vmul.f32 %v7094_v45, %v8659_v27  ;;  %v1008_v32 = vsel %vm1007_vm1, %v8639_v53, %v1004_v52  ;;  %v8726_v34 = vadd.f32 1e-06, %v655_v58 }
 0x14d   :  { %v1676_v20 = vpack.c.bf16 %v1575_v55, %v1574_v28  ;;  %v992_v19 = vmul.f32 0.5, %v991_v16  ;;  %v2895_v59 = vpop.f32.mrf.mxu2  ;;  %v3064_v39 = vpop.f32.mrf.mxu3  ;;  %v1439_v23 = vmul.f32 %v1008_v32, %v7855_v2  ;;  %v1440_v42 = vmul.f32 %v1008_v32, %v7860_v3  ;;  %v6467_v2 = vld [vmem:[#allocation2 + $0xa8] sm:$0xf0] }
 0x14e   :  { %v1048_v22 = vsel %vm8714_vm2, %v8654_v36, %v1044_v14  ;;  %v1071_v9 = vmul.f32 %v7094_v45, %v1070_v33  ;;  %v2560_v25 = vpop.f32.mrf.mxu0  ;;  %v2729_v28 = vpop.f32.mrf.mxu1  ;;  %v8737_v58 = vadd.f32 %v3064_v39, %v2895_v59  ;;  %vm1076_vm5 = vweird.f32 %v7094_v45 }
 0x14f   :  { %1740 = vst [vmem:[#allocation2 + $0xd0] sm:$0xff] %v1676_v20  ;;  %v1447_v53 = vmul.f32 %v1048_v22, %v7883_v50  ;;  %v1448_v55 = vmul.f32 %v1048_v22, %v7888_v24  ;;  %v993_v31 = vsub.f32 1.5, %v992_v19  ;;  %v1572_v16 = vmul.f32 %v7696_v30, %v1439_v23  ;;  %v504_v3 = vpop.xlane.xlu0 %503  ;;  %vm1077_vm7 = vmor %vm1075_vm3, %vm1076_vm5 }
 0x150   :  { %v1072_v52 = vmul.f32 0.5, %v1071_v9  ;;  %v1573_v36 = vmul.f32 %v7703_v18, %v1440_v42  ;;  %4677 = vrot.lane.b32.xlu0 %v8737_v58, %s7455_s4  ;;  %v647_v17 = vmul.f32 %v7672_v38, %v504_v3  ;;  %v537_v20 = vpop.xlane.xlu2 %536  ;;  %7095 = vrsqrt.f32 %v8726_v34 }
 0x151   :  { %v1580_v50 = vmul.f32 %v7696_v30, %v1447_v53  ;;  %v1581_v24 = vmul.f32 %v7703_v18, %v1448_v55  ;;  %v994_v40 = vmul.f32 %v8689_v44, %v993_v31  ;;  %2599 = vmatmul.bf16.gmra.mxu0 %v8673_v26  ;;  %7097 = vrsqrt.f32 %v8728_v15 }
 0x152   :  { %v1073_v14 = vsub.f32 1.5, %v1072_v52  ;;  %v1675_v33 = vpack.c.bf16 %v1573_v36, %v1572_v16  ;;  %2768 = vmatmul.bf16.gmra.mxu1 %v8701_v47  ;;  %v8769_v9 = vadd.f32 %v2729_v28, %v2560_v25  ;;  %v8771_v42 = vadd.f32 1e-06, %v647_v17  ;;  %v6465_v16 = vld [vmem:[#allocation2 + $0xa0] sm:$0xf] }
 0x153   :  { %v1679_v32 = vpack.c.bf16 %v1581_v24, %v1580_v50  ;;  %v998_v19 = vsel %vm8745_vm6, %v8689_v44, %v994_v40  ;;  %2937 = vmatmul.bf16.gmra.mxu2 %v8673_v26  ;;  %3106 = vmatmul.bf16.gmra.mxu3 %v8701_v47  ;;  %v658_v44 = vmul.f32 %v7672_v38, %v537_v20  ;;  %v6915_v36 = vld [vmem:[#allocation2 + $0xa4] sm:$0xf]  ;;  %vm1105_vm8 = vweird.f32 %v8726_v34  ;;  %v11832_v26 = vld [vmem:[#allocation78_spill] sm:$0xff] }
 0x154   :  { %v1074_v59 = vmul.f32 %v7094_v45, %v1073_v14  ;;  %1739 = vst [vmem:[#allocation2 + $0xc8] sm:$0xff] %v1675_v33  ;;  %v1437_v39 = vmul.f32 %v998_v19, %v7915_v56  ;;  %v1438_v22 = vmul.f32 %v998_v19, %v7924_v8  ;;  %v6916_v56 = vld [vmem:[#allocation2 + $0xa4] sm:$0xf0]  ;;  %7099 = vrsqrt.f32 %v8771_v42 }
 0x155   :  { %1743 = vst [vmem:[#allocation2 + $0xe8] sm:$0xff] %v1679_v32  ;;  %v2898_v27 = vpop.f32.mrf.mxu2  ;;  %v3067_v23 = vpop.f32.mrf.mxu3  ;;  %v651_v28 = vmul.f32 %v7672_v38, %v516_v4  ;;  %v8786_v40 = vadd.f32 1e-06, %v658_v44  ;;  %v8796_v14 = vor.u32 %v6916_v56, %v6465_v16  ;;  %v8802_v4 = vor.u32 %v6915_v36, %v6467_v2  ;;  %v6918_v16 = vld [vmem:[#allocation2 + $0xb4] sm:$0xf0] }
 0x156   :  { %v1078_v53 = vsel %vm1077_vm7, %v7094_v45, %v1074_v59  ;;  %v1570_v55 = vmul.f32 %v7696_v30, %v1437_v39  ;;  %v1571_v31 = vmul.f32 %v7703_v18, %v1438_v22  ;;  %v8776_v52 = vadd.f32 %v3067_v23, %v2898_v27  ;;  %v8782_v3 = vpop.eup %7095  ;;  %v2562_v50 = vpop.f32.mrf.mxu0 }
 0x157   :  { %v1453_v8 = vmul.f32 %v1078_v53, %v7932_v51  ;;  %v1454_v25 = vmul.f32 %v1078_v53, %v7937_v6  ;;  %v2731_v24 = vpop.f32.mrf.mxu1  ;;  %v8788_v17 = vpop.eup %7097  ;;  %v1100_v20 = vmul.f32 %v8782_v3, %v8726_v34  ;;  %11743 = vst [vmem:[#allocation31_spill] sm:$0xff] %v8796_v14  ;;  %7101 = vrsqrt.f32 %v8786_v40 }
 0x158   :  { %v1674_v45 = vpack.c.bf16 %v1571_v31, %v1570_v55  ;;  %4679 = vrot.lane.b32.xlu2 %v8776_v52, %s7455_s4  ;;  %4095 = vrot.lane.b32.xlu0 %v8769_v9, %s7455_s4  ;;  %v1030_v33 = vmul.f32 %v8788_v17, %v8728_v15  ;;  %11744 = vst [vmem:[#allocation90_spill] sm:$0xff] %v8802_v4  ;;  %vm1035_vm9 = vweird.f32 %v8728_v15  ;;  %v8806_v59 = vadd.f32 1e-06, %v651_v28  ;;  %v513_v39 = vpop.xlane.xlu0 %512  ;;  %v546_v22 = vpop.xlane.xlu2 %545  ;;  %v6473_v31 = vld [vmem:[#allocation2 + $0xb0] sm:$0xf] }
 0x159   :  { %v1586_v51 = vmul.f32 %v7696_v30, %v1453_v8  ;;  %v1587_v6 = vmul.f32 %v7703_v18, %v1454_v25  ;;  %v1101_v19 = vmul.f32 %v8782_v3, %v1100_v20  ;;  %v8809_v23 = vadd.f32 %v2731_v24, %v2562_v50  ;;  %v525_v55 = vpop.xlane.xlu1 %524  ;;  %v6917_v24 = vld [vmem:[#allocation2 + $0xb4] sm:$0xf] }
 0x15a   :  { %1738 = vst [vmem:[#allocation2 + $0xc0] sm:$0xff] %v1674_v45  ;;  %v1031_v27 = vmul.f32 %v8788_v17, %v1030_v33  ;;  %v650_v44 = vmul.f32 %v7672_v38, %v513_v39  ;;  %v661_v53 = vmul.f32 %v7672_v38, %v546_v22  ;;  %v8813_v56 = vpop.eup %7099  ;;  %vm1106_vm10 = vweird.f32 %v8782_v3 }
 0x15b   :  { %v1682_v32 = vpack.c.bf16 %v1587_v6, %v1586_v51  ;;  %v1102_v8 = vmul.f32 0.5, %v1101_v19  ;;  %vm1036_vm11 = vweird.f32 %v8788_v17  ;;  %7103 = vrsqrt.f32 %v8806_v59  ;;  %v6475_v51 = vld [vmem:[#allocation2 + $0xb8] sm:$0xf0]  ;;  %vm8835_vm12 = vmor %vm1105_vm8, %vm1106_vm10 }
 0x15c   :  { %v1032_v36 = vmul.f32 0.5, %v1031_v27  ;;  %v1020_v2 = vmul.f32 %v8813_v56, %v8771_v42  ;;  %v654_v50 = vmul.f32 %v7672_v38, %v525_v55  ;;  %v8823_v20 = vadd.f32 1e-06, %v650_v44  ;;  %vm8851_vm15 = vmor %vm1035_vm9, %vm1036_vm11 }
 0x15d   :  { %1746 = vst [vmem:[#allocation2 + $0x100] sm:$0xff] %v1682_v32  ;;  %v2900_v25 = vpop.f32.mrf.mxu2  ;;  %v3069_v28 = vpop.f32.mrf.mxu3  ;;  %v1103_v6 = vsub.f32 1.5, %v1102_v8  ;;  %v8825_v33 = vadd.f32 1e-06, %v661_v53  ;;  %v8827_v32 = vor.u32 %v6918_v16, %v6473_v31  ;;  %vm1025_vm13 = vweird.f32 %v8771_v42 }
 0x15e   :  { %v8820_v45 = vadd.f32 %v3069_v28, %v2900_v25  ;;  %v8829_v19 = vpop.eup %7101  ;;  %v1033_v22 = vsub.f32 1.5, %v1032_v36  ;;  %v1021_v27 = vmul.f32 %v8813_v56, %v1020_v2  ;;  %vm1135_vm14 = vweird.f32 %v8786_v40  ;;  %v2565_v8 = vpop.f32.mrf.mxu0 }
 0x15f   :  { %11745 = vst [vmem:[#allocation91_spill] sm:$0xff] %v8827_v32  ;;  %v1104_v44 = vmul.f32 %v8782_v3, %v1103_v6  ;;  %vm1026_vm0 = vweird.f32 %v8813_v56  ;;  %v1130_v53 = vmul.f32 %v8829_v19, %v8786_v40  ;;  %v8858_v55 = vor.u32 %v6917_v24, %v6475_v51  ;;  %v2734_v25 = vpop.f32.mrf.mxu1 }
 0x160   :  { %4097 = vrot.lane.b32.xlu2 %v8809_v23, %s7455_s4  ;;  %4681 = vrot.lane.b32.xlu1 %v8820_v45, %s7455_s4  ;;  %v1034_v31 = vmul.f32 %v8788_v17, %v1033_v22  ;;  %v1022_v16 = vmul.f32 0.5, %v1021_v27  ;;  %vm1065_vm1 = vweird.f32 %v8806_v59  ;;  %7105 = vrsqrt.f32 %v8823_v20  ;;  %vm1027_vm3 = vmor %vm1025_vm13, %vm1026_vm0 }
 0x161   :  { %11750 = vst [vmem:[#allocation92_spill] sm:$0xff] %v8858_v55  ;;  %2604 = vmatmul.bf16.gmra.mxu0 %v8796_v14  ;;  %v8865_v15 = vadd.f32 1e-06, %v654_v50  ;;  %v8867_v28 = vpop.eup %7103  ;;  %v1108_v36 = vsel %vm8835_vm12, %v8782_v3, %v1104_v44  ;;  %v1131_v2 = vmul.f32 %v8829_v19, %v1130_v53  ;;  %vm1136_vm2 = vweird.f32 %v8829_v19 }
 0x162   :  { %2773 = vmatmul.bf16.gmra.mxu1 %v8802_v4  ;;  %7107 = vrsqrt.f32 %v8825_v33  ;;  %v1459_v24 = vmul.f32 %v1108_v36, %v7978_v29  ;;  %v1460_v50 = vmul.f32 %v1108_v36, %v7987_v60  ;;  %v1038_v51 = vsel %vm8851_vm15, %v8788_v17, %v1034_v31  ;;  %vm8905_vm4 = vmor %vm1135_vm14, %vm1136_vm2 }
 0x163   :  { %2942 = vmatmul.bf16.gmra.mxu2 %v8796_v14  ;;  %3111 = vmatmul.bf16.gmra.mxu3 %v8802_v4  ;;  %v1023_v6 = vsub.f32 1.5, %v1022_v16  ;;  %v1445_v3 = vmul.f32 %v1038_v51, %v7896_v21  ;;  %v1446_v39 = vmul.f32 %v1038_v51, %v7908_v37  ;;  %v1132_v22 = vmul.f32 0.5, %v1131_v2 }
 0x164   :  { %v1060_v29 = vmul.f32 %v8867_v28, %v8806_v59  ;;  %v1592_v44 = vmul.f32 %v7696_v30, %v1459_v24  ;;  %v1593_v17 = vmul.f32 %v7703_v18, %v1460_v50  ;;  %v8893_v21 = vadd.f32 %v2734_v25, %v2565_v8 }
 0x165   :  { %v2903_v27 = vpop.f32.mrf.mxu2  ;;  %v3072_v60 = vpop.f32.mrf.mxu3  ;;  %v1024_v34 = vmul.f32 %v8813_v56, %v1023_v6  ;;  %v1578_v37 = vmul.f32 %v7696_v30, %v1445_v3  ;;  %v1579_v53 = vmul.f32 %v7703_v18, %v1446_v39  ;;  %v1133_v42 = vsub.f32 1.5, %v1132_v22 }
 0x166   :  { %v1061_v31 = vmul.f32 %v8867_v28, %v1060_v29  ;;  %v8898_v16 = vpop.eup %7105  ;;  %v1685_v36 = vpack.c.bf16 %v1593_v17, %v1592_v44  ;;  %vm1055_vm5 = vweird.f32 %v8823_v20  ;;  %7109 = vrsqrt.f32 %v8865_v15 }
 0x167   :  { %v1028_v2 = vsel %vm1027_vm3, %v8813_v56, %v1024_v34  ;;  %v1678_v25 = vpack.c.bf16 %v1579_v53, %v1578_v37  ;;  %v1134_v40 = vmul.f32 %v8829_v19, %v1133_v42  ;;  %vm1066_vm6 = vweird.f32 %v8867_v28  ;;  %v2567_v34 = vpop.f32.mrf.mxu0  ;;  %v2736_v37 = vpop.f32.mrf.mxu1 }
 0x168   :  { %4099 = vrot.lane.b32.xlu1 %v8893_v21, %s7455_s4  ;;  %v8913_v8 = vpop.eup %7107  ;;  %v1443_v56 = vmul.f32 %v1028_v2, %v7959_v0  ;;  %v1444_v50 = vmul.f32 %v1028_v2, %v7964_v35  ;;  %1749 = vst [vmem:[#allocation2 + $0x118] sm:$0xff] %v1685_v36  ;;  %v1062_v51 = vmul.f32 0.5, %v1061_v31  ;;  %v1050_v6 = vmul.f32 %v8898_v16, %v8823_v20  ;;  %vm8937_vm9 = vmor %vm1065_vm1, %vm1066_vm6  ;;  %v522_v42 = vpop.xlane.xlu0 %521 }
 0x169   :  { %v1160_v3 = vmul.f32 %v8913_v8, %v8825_v33  ;;  %1742 = vst [vmem:[#allocation2 + $0xe0] sm:$0xff] %v1678_v25  ;;  %v1138_v0 = vsel %vm8905_vm4, %v8829_v19, %v1134_v40  ;;  %vm1165_vm7 = vweird.f32 %v8825_v33  ;;  %vm1095_vm8 = vweird.f32 %v8865_v15 }
 0x16a   :  { %v1576_v39 = vmul.f32 %v7696_v30, %v1443_v56  ;;  %v1577_v22 = vmul.f32 %v7703_v18, %v1444_v50  ;;  %v1465_v35 = vmul.f32 %v1138_v0, %v8049_v48  ;;  %v1466_v29 = vmul.f32 %v1138_v0, %v8054_v11 }
 0x16b   :  { %v1063_v44 = vsub.f32 1.5, %v1062_v51  ;;  %v1051_v17 = vmul.f32 %v8898_v16, %v1050_v6  ;;  %vm1056_vm10 = vweird.f32 %v8898_v16  ;;  %v1161_v11 = vmul.f32 %v8913_v8, %v1160_v3 }
 0x16c   :  { %v1677_v53 = vpack.c.bf16 %v1577_v22, %v1576_v39  ;;  %v8943_v48 = vadd.f32 %v3072_v60, %v2903_v27  ;;  %v8945_v31 = vpop.eup %7109  ;;  %v1598_v36 = vmul.f32 %v7696_v30, %v1465_v35  ;;  %v1599_v2 = vmul.f32 %v7703_v18, %v1466_v29  ;;  %vm8967_vm13 = vmor %vm1055_vm5, %vm1056_vm10  ;;  %v555_v29 = vpop.xlane.xlu2 %554 }
 0x16d   :  { %v1064_v24 = vmul.f32 %v8867_v28, %v1063_v44  ;;  %v1052_v59 = vmul.f32 0.5, %v1051_v17  ;;  %v1162_v25 = vmul.f32 0.5, %v1161_v11  ;;  %vm1166_vm11 = vweird.f32 %v8913_v8  ;;  %v2905_v27 = vpop.f32.mrf.mxu2  ;;  %v3074_v60 = vpop.f32.mrf.mxu3 }
 0x16e   :  { %1741 = vst [vmem:[#allocation2 + $0xd8] sm:$0xff] %v1677_v53  ;;  %v1090_v56 = vmul.f32 %v8945_v31, %v8865_v15  ;;  %v8953_v50 = vadd.f32 %v2736_v37, %v2567_v34  ;;  %4683 = vrot.lane.b32.xlu0 %v8943_v48, %s7455_s4  ;;  %v1688_v40 = vpack.c.bf16 %v1599_v2, %v1598_v36  ;;  %vm1096_vm12 = vweird.f32 %v8945_v31  ;;  %vm8977_vm14 = vmor %vm1165_vm7, %vm1166_vm11 }
 0x16f   :  { %v1068_v51 = vsel %vm8937_vm9, %v8867_v28, %v1064_v24  ;;  %v1053_v6 = vsub.f32 1.5, %v1052_v59  ;;  %v1163_v0 = vsub.f32 1.5, %v1162_v25  ;;  %v534_v28 = vpop.xlane.xlu1 %533  ;;  %v664_v20 = vmul.f32 %v7672_v38, %v555_v29  ;;  %v11759_v24 = vld [vmem:[#allocation39_spill] sm:$0xff]  ;;  %v11760_v25 = vld [vmem:[#allocation40_spill] sm:$0xff]  ;;  %vm9014_vm15 = vmor %vm1095_vm8, %vm1096_vm12  ;;  %v2739_v29 = vpop.f32.mrf.mxu1 }
 0x170   :  { %v1451_v3 = vmul.f32 %v1068_v51, %v7944_v46  ;;  %v1452_v39 = vmul.f32 %v1068_v51, %v7946_v41  ;;  %v1091_v35 = vmul.f32 %v8945_v31, %v1090_v56  ;;  %1752 = vst [vmem:[#allocation2 + $0x130] sm:$0xff] %v1688_v40  ;;  %v653_v41 = vmul.f32 %v7672_v38, %v522_v42  ;;  %v6747_v46 = vld [vmem:[#allocation8 + $0xd8] sm:$0xf0]  ;;  %v6923_v4 = vld [vmem:[#allocation2 + $0xe4] sm:$0xf] }
 0x171   :  { %v1054_v44 = vmul.f32 %v8898_v16, %v1053_v6  ;;  %v657_v17 = vmul.f32 %v7672_v38, %v534_v28  ;;  %v1164_v53 = vmul.f32 %v8913_v8, %v1163_v0  ;;  %2609 = vmatmul.bf16.gmra.mxu0 %v8827_v32  ;;  %v8994_v42 = vadd.f32 1e-06, %v664_v20  ;;  %v6984_v28 = vld [vmem:[#allocation8 + $0xcc] sm:$0xf]  ;;  %v6875_v20 = vld [vmem:[#allocation8 + $0x1d8] sm:$0xf0] }
 0x172   :  { %v1584_v34 = vmul.f32 %v7696_v30, %v1451_v3  ;;  %v1585_v37 = vmul.f32 %v7703_v18, %v1452_v39  ;;  %v1092_v19 = vmul.f32 0.5, %v1091_v35  ;;  %2778 = vmatmul.bf16.gmra.mxu1 %v8858_v55  ;;  %v8992_v11 = vadd.f32 1e-06, %v653_v41  ;;  %v2570_v35 = vpop.f32.mrf.mxu0  ;;  %v7016_v41 = vld [vmem:[#allocation8 + $0x1cc] sm:$0xf] }
 0x173   :  { %v1058_v33 = vsel %vm8967_vm13, %v8898_v16, %v1054_v44  ;;  %v8996_v36 = vadd.f32 1e-06, %v657_v17  ;;  %2947 = vmatmul.bf16.gmra.mxu2 %v8827_v32  ;;  %3116 = vmatmul.bf16.gmra.mxu3 %v8858_v55  ;;  %v1168_v40 = vsel %vm8977_vm14, %v8913_v8, %v1164_v53  ;;  %v9025_v44 = vadd.f32 %v3074_v60, %v2905_v27  ;;  %v6924_v32 = vld [vmem:[#allocation2 + $0xe4] sm:$0xf0] }
 0x174   :  { %v1681_v2 = vpack.c.bf16 %v1585_v37, %v1584_v34  ;;  %v1449_v59 = vmul.f32 %v1058_v33, %v11759_v24  ;;  %v1450_v56 = vmul.f32 %v1058_v33, %v11760_v25  ;;  %v1471_v16 = vmul.f32 %v1168_v40, %v8096_v43  ;;  %v531_v43 = vpop.xlane.xlu0 %530  ;;  %v11763_v33 = vld [vmem:[#allocation36_spill] sm:$0xff]  ;;  %v11764_v24 = vld [vmem:[#allocation37_spill] sm:$0xff]  ;;  %v564_v27 = vpop.xlane.xlu2 %563 }
 0x175   :  { %v1472_v51 = vmul.f32 %v1168_v40, %v8106_v54  ;;  %v1093_v6 = vsub.f32 1.5, %v1092_v19  ;;  %7111 = vrsqrt.f32 %v8992_v11  ;;  %v2908_v17 = vpop.f32.mrf.mxu2  ;;  %v3077_v34 = vpop.f32.mrf.mxu3  ;;  %v656_v19 = vmul.f32 %v7672_v38, %v531_v43  ;;  %4685 = vrot.lane.b32.xlu2 %v9025_v44, %s7455_s4 }
 0x176   :  { %1745 = vst [vmem:[#allocation2 + $0xf8] sm:$0xff] %v1681_v2  ;;  %v1582_v3 = vmul.f32 %v7696_v30, %v1449_v59  ;;  %v1583_v39 = vmul.f32 %v7703_v18, %v1450_v56  ;;  %7113 = vrsqrt.f32 %v8994_v42  ;;  %4101 = vrot.lane.b32.xlu0 %v8953_v50, %s7455_s4  ;;  %v1604_v54 = vmul.f32 %v7696_v30, %v1471_v16 }
 0x177   :  { %v1605_v8 = vmul.f32 %v7703_v18, %v1472_v51  ;;  %v1094_v0 = vmul.f32 %v8945_v31, %v1093_v6  ;;  %7115 = vrsqrt.f32 %v8996_v36  ;;  %v9037_v25 = vadd.f32 1e-06, %v656_v19 }
 0x178   :  { %v1680_v15 = vpack.c.bf16 %v1583_v39, %v1582_v3  ;;  %v6750_v56 = vor.u32 %v6984_v28, %v6747_v46  ;;  %v6878_v40 = vor.u32 %v7016_v41, %v6875_v20  ;;  %vm1085_vm0 = vweird.f32 %v8992_v11  ;;  %v543_v39 = vpop.xlane.xlu1 %542 }
 0x179   :  { %v1691_v37 = vpack.c.bf16 %v1605_v8, %v1604_v54  ;;  %v1098_v53 = vsel %vm9014_vm15, %v8945_v31, %v1094_v0  ;;  %vm1195_vm1 = vweird.f32 %v8994_v42  ;;  %7117 = vrsqrt.f32 %v9037_v25 }
 0x17a   :  { %1744 = vst [vmem:[#allocation2 + $0xf0] sm:$0xff] %v1680_v15  ;;  %v1457_v2 = vmul.f32 %v1098_v53, %v11763_v33  ;;  %v1458_v59 = vmul.f32 %v1098_v53, %v11764_v24  ;;  %3561 = vmatpush.bf16.msrb.mxu2 %v6750_v56  ;;  %3730 = vmatpush.bf16.msrb.mxu3 %v6878_v40  ;;  %v2572_v24 = vpop.f32.mrf.mxu0  ;;  %vm1125_vm4 = vweird.f32 %v8996_v36  ;;  %vm1115_vm5 = vweird.f32 %v9037_v25 }
 0x17b   :  { %v9035_v60 = vpop.eup %7111  ;;  %1755 = vst [vmem:[#allocation2 + $0x148] sm:$0xff] %v1691_v37  ;;  %v667_v8 = vmul.f32 %v7672_v38, %v564_v27  ;;  %v660_v0 = vmul.f32 %v7672_v38, %v543_v39  ;;  %v9058_v46 = vadd.f32 %v2739_v29, %v2570_v35  ;;  %v9060_v41 = vadd.f32 %v3077_v34, %v2908_v17 }
 0x17c   :  { %v9039_v16 = vpop.eup %7113  ;;  %v1590_v31 = vmul.f32 %v7696_v30, %v1457_v2  ;;  %v1591_v51 = vmul.f32 %v7703_v18, %v1458_v59  ;;  %v1080_v6 = vmul.f32 %v9035_v60, %v8992_v11  ;;  %vm1086_vm2 = vweird.f32 %v9035_v60  ;;  %v540_v19 = vpop.xlane.xlu0 %539 }
 0x17d   :  { %v1190_v3 = vmul.f32 %v9039_v16, %v8994_v42  ;;  %v9050_v22 = vpop.eup %7115  ;;  %v9063_v37 = vadd.f32 1e-06, %v667_v8  ;;  %v9065_v53 = vadd.f32 1e-06, %v660_v0  ;;  %vm1196_vm3 = vweird.f32 %v9039_v16  ;;  %v2741_v59 = vpop.f32.mrf.mxu1  ;;  %4687 = vrot.lane.b32.xlu1 %v9060_v41, %s7455_s4  ;;  %4103 = vrot.lane.b32.xlu2 %v9058_v46, %s7455_s4  ;;  %vm9083_vm6 = vmor %vm1085_vm0, %vm1086_vm2 }
 0x17e   :  { %v1684_v43 = vpack.c.bf16 %v1591_v51, %v1590_v31  ;;  %v1081_v54 = vmul.f32 %v9035_v60, %v1080_v6  ;;  %v1120_v15 = vmul.f32 %v9050_v22, %v8996_v36  ;;  %v659_v35 = vmul.f32 %v7672_v38, %v540_v19  ;;  %v2910_v17 = vpop.f32.mrf.mxu2  ;;  %v3079_v34 = vpop.f32.mrf.mxu3  ;;  %vm9094_vm8 = vmor %vm1195_vm1, %vm1196_vm3  ;;  %v11772_v19 = vld [vmem:[#allocation43_spill] sm:$0xff] }
 0x17f   :  { %v1191_v28 = vmul.f32 %v9039_v16, %v1190_v3  ;;  %7119 = vrsqrt.f32 %v9063_v37  ;;  %v9077_v27 = vpop.eup %7117  ;;  %vm1126_vm7 = vweird.f32 %v9050_v22  ;;  %v9100_v3 = vadd.f32 %v2741_v59, %v2572_v24 }
 0x180   :  { %1748 = vst [vmem:[#allocation2 + $0x110] sm:$0xff] %v1684_v43  ;;  %v1082_v20 = vmul.f32 0.5, %v1081_v54  ;;  %v1121_v2 = vmul.f32 %v9050_v22, %v1120_v15  ;;  %7121 = vrsqrt.f32 %v9065_v53  ;;  %v1110_v11 = vmul.f32 %v9077_v27, %v9037_v25  ;;  %v573_v43 = vpop.xlane.xlu2 %572  ;;  %vm9114_vm10 = vmor %vm1125_vm4, %vm1126_vm7 }
 0x181   :  { %v1192_v33 = vmul.f32 0.5, %v1191_v28  ;;  %v9102_v39 = vadd.f32 1e-06, %v659_v35  ;;  %vm1225_vm9 = vweird.f32 %v9063_v37  ;;  %v670_v0 = vmul.f32 %v7672_v38, %v573_v43  ;;  %v11774_v35 = vld [vmem:[#allocation50_spill] sm:$0xff] }
 0x182   :  { %v1083_v29 = vsub.f32 1.5, %v1082_v20  ;;  %v1122_v31 = vmul.f32 0.5, %v1121_v2  ;;  %v9107_v42 = vadd.f32 %v3079_v34, %v2910_v17  ;;  %v1111_v20 = vmul.f32 %v9077_v27, %v1110_v11  ;;  %v11773_v2 = vld [vmem:[#allocation44_spill] sm:$0xff]  ;;  %v11775_v17 = vld [vmem:[#allocation51_spill] sm:$0xff]  ;;  %v2575_v25 = vpop.f32.mrf.mxu0 }
 0x183   :  { %v1193_v40 = vsub.f32 1.5, %v1192_v33  ;;  %vm1116_vm11 = vweird.f32 %v9077_v27  ;;  %7123 = vrsqrt.f32 %v9102_v39  ;;  %vm1155_vm12 = vweird.f32 %v9065_v53 }
 0x184   :  { %v1084_v51 = vmul.f32 %v9035_v60, %v1083_v29  ;;  %v1123_v8 = vsub.f32 1.5, %v1122_v31  ;;  %11769 = vst [vmem:[#allocation39_spill] sm:$0xff] %v9107_v42  ;;  %4689 = vrot.lane.b32.xlu0 %v9107_v42, %s7455_s4  ;;  %v1112_v56 = vmul.f32 0.5, %v1111_v20  ;;  %vm1117_vm13 = vmor %vm1115_vm5, %vm1116_vm11  ;;  %vm1145_vm15 = vweird.f32 %v9102_v39 }
 0x185   :  { %v1194_v54 = vmul.f32 %v9039_v16, %v1193_v40  ;;  %v7120_v59 = vpop.eup %7119  ;;  %v9131_v40 = vadd.f32 1e-06, %v670_v0  ;;  %4105 = vrot.lane.b32.xlu1 %v9100_v3, %s7455_s4 }
 0x186   :  { %v1088_v28 = vsel %vm9083_vm6, %v9035_v60, %v1084_v51  ;;  %v1124_v36 = vmul.f32 %v9050_v22, %v1123_v8  ;;  %v9133_v31 = vpop.eup %7121  ;;  %v1220_v11 = vmul.f32 %v7120_v59, %v9063_v37  ;;  %v11776_v8 = vld [vmem:[#allocation41_spill] sm:$0xff]  ;;  %vm1226_vm14 = vweird.f32 %v7120_v59 }
 0x187   :  { %v1455_v33 = vmul.f32 %v1088_v28, %v11772_v19  ;;  %v1456_v24 = vmul.f32 %v1088_v28, %v11773_v2  ;;  %v1198_v60 = vsel %vm9094_vm8, %v9039_v16, %v1194_v54  ;;  %v11777_v28 = vld [vmem:[#allocation42_spill] sm:$0xff]  ;;  %7125 = vrsqrt.f32 %v9131_v40  ;;  %vm1227_vm1 = vmor %vm1225_vm9, %vm1226_vm14 }
 0x188   :  { %v1477_v29 = vmul.f32 %v1198_v60, %v11774_v35  ;;  %v1478_v34 = vmul.f32 %v1198_v60, %v11775_v17  ;;  %v1128_v16 = vsel %vm9114_vm10, %v9050_v22, %v1124_v36  ;;  %v1221_v2 = vmul.f32 %v7120_v59, %v1220_v11 }
 0x189   :  { %v1588_v51 = vmul.f32 %v7696_v30, %v1455_v33  ;;  %v1589_v6 = vmul.f32 %v7703_v18, %v1456_v24  ;;  %v1463_v0 = vmul.f32 %v1128_v16, %v11776_v8  ;;  %v1464_v20 = vmul.f32 %v1128_v16, %v11777_v28  ;;  %v9148_v15 = vpop.eup %7123 }
 0x18a   :  { %v1610_v43 = vmul.f32 %v7696_v30, %v1477_v29  ;;  %v1611_v54 = vmul.f32 %v7703_v18, %v1478_v34  ;;  %v1113_v33 = vsub.f32 1.5, %v1112_v56  ;;  %v1150_v36 = vmul.f32 %v9133_v31, %v9065_v53  ;;  %v552_v34 = vpop.xlane.xlu1 %551 }
 0x18b   :  { %v1683_v19 = vpack.c.bf16 %v1589_v6, %v1588_v51  ;;  %v1596_v24 = vmul.f32 %v7696_v30, %v1463_v0  ;;  %v1597_v60 = vmul.f32 %v7703_v18, %v1464_v20  ;;  %v1222_v29 = vmul.f32 0.5, %v1221_v2  ;;  %v2744_v6 = vpop.f32.mrf.mxu1  ;;  %v11779_v0 = vld [vmem:[#allocation49_spill] sm:$0xff] }
 0x18c   :  { %v1694_v22 = vpack.c.bf16 %v1611_v54, %v1610_v43  ;;  %v1114_v35 = vmul.f32 %v9077_v27, %v1113_v33  ;;  %v1140_v17 = vmul.f32 %v9148_v15, %v9102_v39  ;;  %v1151_v51 = vmul.f32 %v9133_v31, %v1150_v36  ;;  %v11778_v54 = vld [vmem:[#allocation48_spill] sm:$0xff]  ;;  %v6920_v2 = vld [vmem:[#allocation2 + $0xc4] sm:$0xf0] }
 0x18d   :  { %1747 = vst [vmem:[#allocation2 + $0x108] sm:$0xff] %v1683_v19  ;;  %v1687_v56 = vpack.c.bf16 %v1597_v60, %v1596_v24  ;;  %v1223_v11 = vsub.f32 1.5, %v1222_v29  ;;  %vm1156_vm0 = vweird.f32 %v9133_v31  ;;  %v663_v19 = vmul.f32 %v7672_v38, %v552_v34  ;;  %v6481_v33 = vld [vmem:[#allocation2 + $0xc0] sm:$0xf] }
 0x18e   :  { %1758 = vst [vmem:[#allocation2 + $0x160] sm:$0xff] %v1694_v22  ;;  %v1118_v16 = vsel %vm1117_vm13, %v9077_v27, %v1114_v35  ;;  %v1141_v43 = vmul.f32 %v9148_v15, %v1140_v17  ;;  %v1152_v20 = vmul.f32 0.5, %v1151_v51  ;;  %vm1146_vm2 = vweird.f32 %v9148_v15  ;;  %vm9184_vm3 = vmor %vm1155_vm12, %vm1156_vm0  ;;  %v549_v51 = vpop.xlane.xlu0 %548 }
 0x18f   :  { %1751 = vst [vmem:[#allocation2 + $0x128] sm:$0xff] %v1687_v56  ;;  %v1461_v8 = vmul.f32 %v1118_v16, %v11778_v54  ;;  %v1462_v28 = vmul.f32 %v1118_v16, %v11779_v0  ;;  %v1224_v27 = vmul.f32 %v7120_v59, %v1223_v11  ;;  %v9174_v24 = vadd.f32 %v2744_v6, %v2575_v25  ;;  %v9192_v25 = vpop.eup %7125  ;;  %vm9201_vm4 = vmor %vm1145_vm15, %vm1146_vm2 }
 0x190   :  { %v1142_v22 = vmul.f32 0.5, %v1141_v43  ;;  %v1153_v35 = vsub.f32 1.5, %v1152_v20  ;;  %v9178_v29 = vadd.f32 1e-06, %v663_v19  ;;  %v9188_v56 = vor.u32 %v6920_v2, %v6481_v33  ;;  %v6978_v20 = vld [vmem:[#allocation8 + $0x94] sm:$0xf0]  ;;  %v2913_v19 = vpop.f32.mrf.mxu2  ;;  %v3082_v33 = vpop.f32.mrf.mxu3 }
 0x191   :  { %11780 = vst [vmem:[#allocation40_spill] sm:$0xff] %v9174_v24  ;;  %v1594_v60 = vmul.f32 %v7696_v30, %v1461_v8  ;;  %v1595_v36 = vmul.f32 %v7703_v18, %v1462_v28  ;;  %v1228_v37 = vsel %vm1227_vm1, %v7120_v59, %v1224_v27  ;;  %4107 = vrot.lane.b32.xlu0 %v9174_v24, %s7455_s4  ;;  %vm1255_vm5 = vweird.f32 %v9131_v40  ;;  %v6713_v28 = vld [vmem:[#allocation8 + $0x88] sm:$0xf] }
 0x192   :  { %v1143_v34 = vsub.f32 1.5, %v1142_v22  ;;  %11783 = vst [vmem:[#allocation36_spill] sm:$0xff] %v9188_v56  ;;  %v1483_v59 = vmul.f32 %v1228_v37, %v8204_v7  ;;  %v1484_v16 = vmul.f32 %v1228_v37, %v8209_v62  ;;  %v1154_v53 = vmul.f32 %v9133_v31, %v1153_v35  ;;  %2614 = vmatmul.bf16.gmra.mxu0 %v9188_v56  ;;  %v6919_v7 = vld [vmem:[#allocation2 + $0xc4] sm:$0xf]  ;;  %v6483_v62 = vld [vmem:[#allocation2 + $0xc8] sm:$0xf0] }
 0x193   :  { %v1686_v6 = vpack.c.bf16 %v1595_v36, %v1594_v60  ;;  %v1250_v54 = vmul.f32 %v9192_v25, %v9131_v40  ;;  %7127 = vrsqrt.f32 %v9178_v29  ;;  %2952 = vmatmul.bf16.gmra.mxu2 %v9188_v56  ;;  %vm1256_vm6 = vweird.f32 %v9192_v25  ;;  %v11786_v2 = vld [vmem:[#allocation46_spill] sm:$0xff]  ;;  %v11787_v22 = vld [vmem:[#allocation47_spill] sm:$0xff] }
 0x194   :  { %v1144_v43 = vmul.f32 %v9148_v15, %v1143_v34  ;;  %v1616_v39 = vmul.f32 %v7696_v30, %v1483_v59  ;;  %v1617_v8 = vmul.f32 %v7703_v18, %v1484_v16  ;;  %v1158_v0 = vsel %vm9184_vm3, %v9133_v31, %v1154_v53  ;;  %v6841_v37 = vld [vmem:[#allocation8 + $0x188] sm:$0xf]  ;;  %v7010_v34 = vld [vmem:[#allocation8 + $0x194] sm:$0xf0]  ;;  %v582_v16 = vpop.xlane.xlu2 %581  ;;  %v561_v53 = vpop.xlane.xlu1 %560  ;;  %vm1257_vm7 = vmor %vm1255_vm5, %vm1256_vm6 }
 0x195   :  { %1750 = vst [vmem:[#allocation2 + $0x120] sm:$0xff] %v1686_v6  ;;  %v1469_v27 = vmul.f32 %v1158_v0, %v11786_v2  ;;  %v1470_v60 = vmul.f32 %v1158_v0, %v11787_v22  ;;  %v1251_v35 = vmul.f32 %v9192_v25, %v1250_v54  ;;  %v9226_v59 = vor.u32 %v6919_v7, %v6483_v62 }
 0x196   :  { %v1148_v36 = vsel %vm9201_vm4, %v9148_v15, %v1144_v43  ;;  %v1697_v17 = vpack.c.bf16 %v1617_v8, %v1616_v39  ;;  %v6714_v11 = vor.u32 %v6978_v20, %v6713_v28  ;;  %v2577_v15 = vpop.f32.mrf.mxu0  ;;  %v2746_v43 = vpop.f32.mrf.mxu1  ;;  %v662_v8 = vmul.f32 %v7672_v38, %v549_v51 }
 0x197   :  { %v1467_v31 = vmul.f32 %v1148_v36, %v8169_v49  ;;  %v1468_v6 = vmul.f32 %v1148_v36, %v8192_v1  ;;  %11788 = vst [vmem:[#allocation37_spill] sm:$0xff] %v9226_v59  ;;  %v1602_v2 = vmul.f32 %v7696_v30, %v1469_v27  ;;  %v1603_v0 = vmul.f32 %v7703_v18, %v1470_v60 }
 0x198   :  { %v1252_v22 = vmul.f32 0.5, %v1251_v35  ;;  %1761 = vst [vmem:[#allocation2 + $0x178] sm:$0xff] %v1697_v17  ;;  %2783 = vmatmul.bf16.gmra.mxu1 %v9226_v59  ;;  %3121 = vmatmul.bf16.gmra.mxu3 %v9226_v59  ;;  %v6842_v49 = vor.u32 %v7010_v34, %v6841_v37  ;;  %v673_v28 = vmul.f32 %v7672_v38, %v582_v16  ;;  %v9243_v35 = vadd.f32 1e-06, %v662_v8  ;;  %v558_v34 = vpop.xlane.xlu0 %557 }
 0x199   :  { %v1600_v54 = vmul.f32 %v7696_v30, %v1467_v31  ;;  %v1601_v39 = vmul.f32 %v7703_v18, %v1468_v6  ;;  %v7128_v1 = vpop.eup %7127  ;;  %v1690_v7 = vpack.c.bf16 %v1603_v0, %v1602_v2  ;;  %3225 = vmatpush.bf16.msrb.mxu0 %v6714_v11  ;;  %v666_v60 = vmul.f32 %v7672_v38, %v561_v53  ;;  %v2915_v2 = vpop.f32.mrf.mxu2 }
 0x19a   :  { %v1253_v62 = vsub.f32 1.5, %v1252_v22  ;;  %v1180_v27 = vmul.f32 %v7128_v1, %v9178_v29  ;;  %3394 = vmatpush.bf16.msrb.mxu1 %v6842_v49  ;;  %v9245_v37 = vadd.f32 1e-06, %v673_v28  ;;  %v9247_v51 = vadd.f32 %v3082_v33, %v2913_v19  ;;  %v11789_v33 = vld [vmem:[#allocation60_spill] sm:$0xff]  ;;  %v3084_v0 = vpop.f32.mrf.mxu3 }
 0x19b   :  { %v1689_v20 = vpack.c.bf16 %v1601_v39, %v1600_v54  ;;  %1754 = vst [vmem:[#allocation2 + $0x140] sm:$0xff] %v1690_v7  ;;  %v9249_v31 = vadd.f32 1e-06, %v666_v60  ;;  %v665_v40 = vmul.f32 %v7672_v38, %v558_v34  ;;  %vm1185_vm8 = vweird.f32 %v9178_v29  ;;  %v6922_v60 = vld [vmem:[#allocation2 + $0xd4] sm:$0xf0] }
 0x19c   :  { %v1254_v36 = vmul.f32 %v9192_v25, %v1253_v62  ;;  %v1181_v17 = vmul.f32 %v7128_v1, %v1180_v27  ;;  %vm1186_vm9 = vweird.f32 %v7128_v1  ;;  %7129 = vrsqrt.f32 %v9243_v35  ;;  %4691 = vrot.lane.b32.xlu2 %v9247_v51, %s7455_s4  ;;  %v591_v39 = vpop.xlane.xlu2 %590  ;;  %v570_v49 = vpop.xlane.xlu1 %569  ;;  %v6489_v27 = vld [vmem:[#allocation2 + $0xd0] sm:$0xf] }
 0x19d   :  { %1753 = vst [vmem:[#allocation2 + $0x138] sm:$0xff] %v1689_v20  ;;  %7131 = vrsqrt.f32 %v9245_v37  ;;  %v9263_v54 = vadd.f32 1e-06, %v665_v40  ;;  %vm9268_vm10 = vmor %vm1185_vm8, %vm1186_vm9  ;;  %v676_v7 = vmul.f32 %v7672_v38, %v591_v39  ;;  %v669_v62 = vmul.f32 %v7672_v38, %v570_v49 }
 0x19e   :  { %v1258_v6 = vsel %vm1257_vm7, %v9192_v25, %v1254_v36  ;;  %v1182_v53 = vmul.f32 0.5, %v1181_v17  ;;  %7133 = vrsqrt.f32 %v9249_v31  ;;  %v9274_v8 = vadd.f32 %v3084_v0, %v2915_v2  ;;  %v2580_v28 = vpop.f32.mrf.mxu0  ;;  %v2749_v20 = vpop.f32.mrf.mxu1  ;;  %v11797_v0 = vld [vmem:[#allocation53_spill] sm:$0xff] }
 0x19f   :  { %v1489_v19 = vmul.f32 %v1258_v6, %v8269_v12  ;;  %v1490_v16 = vmul.f32 %v1258_v6, %v11789_v33  ;;  %v9276_v17 = vadd.f32 %v2746_v43, %v2577_v15  ;;  %7135 = vrsqrt.f32 %v9263_v54 }
 0x1a0   :  { %v1183_v11 = vsub.f32 1.5, %v1182_v53  ;;  %11792 = vst [vmem:[#allocation43_spill] sm:$0xff] %v9274_v8  ;;  %vm1175_vm11 = vweird.f32 %v9243_v35  ;;  %vm1285_vm12 = vweird.f32 %v9245_v37  ;;  %vm1215_vm13 = vweird.f32 %v9249_v31  ;;  %4693 = vrot.lane.b32.xlu1 %v9274_v8, %s7455_s4  ;;  %v11796_v53 = vld [vmem:[#allocation52_spill] sm:$0xff]  ;;  %v11852_v8 = vld [vmem:[#allocation21_spill] sm:$0xff] }
 0x1a1   :  { %v1622_v25 = vmul.f32 %v7696_v30, %v1489_v19  ;;  %v1623_v22 = vmul.f32 %v7703_v18, %v1490_v16  ;;  %11793 = vst [vmem:[#allocation44_spill] sm:$0xff] %v9276_v17  ;;  %v9284_v40 = vadd.f32 1e-06, %v676_v7  ;;  %v9294_v19 = vadd.f32 %v2749_v20, %v2580_v28  ;;  %v6491_v28 = vld [vmem:[#allocation2 + $0xd8] sm:$0xf0]  ;;  %v567_v20 = vpop.xlane.xlu0 %566 }
 0x1a2   :  { %v1184_v34 = vmul.f32 %v7128_v1, %v1183_v11  ;;  %v9279_v29 = vpop.eup %7129  ;;  %v9296_v33 = vor.u32 %v6922_v60, %v6489_v27  ;;  %v9304_v11 = vadd.f32 1e-06, %v669_v62  ;;  %vm1205_vm14 = vweird.f32 %v9263_v54  ;;  %v6921_v62 = vld [vmem:[#allocation2 + $0xd4] sm:$0xf] }
 0x1a3   :  { %v1700_v36 = vpack.c.bf16 %v1623_v22, %v1622_v25  ;;  %v9288_v6 = vpop.eup %7131  ;;  %v1170_v43 = vmul.f32 %v9279_v29, %v9243_v35  ;;  %11794 = vst [vmem:[#allocation50_spill] sm:$0xff] %v9294_v19  ;;  %7137 = vrsqrt.f32 %v9284_v40  ;;  %vm1176_vm15 = vweird.f32 %v9279_v29 }
 0x1a4   :  { %v1188_v15 = vsel %vm9268_vm10, %v7128_v1, %v1184_v34  ;;  %11795 = vst [vmem:[#allocation51_spill] sm:$0xff] %v9296_v33  ;;  %v9298_v16 = vpop.eup %7133  ;;  %v1280_v22 = vmul.f32 %v9288_v6, %v9245_v37  ;;  %4109 = vrot.lane.b32.xlu2 %v9276_v17, %s7455_s4  ;;  %2619 = vmatmul.bf16.gmra.mxu0 %v9296_v33  ;;  %vm1286_vm0 = vweird.f32 %v9288_v6  ;;  %v2918_v34 = vpop.f32.mrf.mxu2  ;;  %7139 = vrsqrt.f32 %v9304_v11  ;;  %vm9334_vm2 = vmor %vm1175_vm11, %vm1176_vm15 }
 0x1a5   :  { %1764 = vst [vmem:[#allocation2 + $0x190] sm:$0xff] %v1700_v36  ;;  %v1475_v2 = vmul.f32 %v1188_v15, %v11796_v53  ;;  %v1476_v25 = vmul.f32 %v1188_v15, %v11797_v0  ;;  %v1171_v1 = vmul.f32 %v9279_v29, %v1170_v43  ;;  %v1210_v39 = vmul.f32 %v9298_v16, %v9249_v31  ;;  %v9319_v27 = vpop.eup %7135  ;;  %v3087_v15 = vpop.f32.mrf.mxu3  ;;  %vm9353_vm4 = vmor %vm1285_vm12, %vm1286_vm0 }
 0x1a6   :  { %2957 = vmatmul.bf16.gmra.mxu2 %v9296_v33  ;;  %v1281_v7 = vmul.f32 %v9288_v6, %v1280_v22  ;;  %vm1216_vm1 = vweird.f32 %v9298_v16  ;;  %v9327_v22 = vor.u32 %v6921_v62, %v6491_v28  ;;  %vm1315_vm3 = vweird.f32 %v9284_v40  ;;  %v11807_v33 = vld [vmem:[#allocation59_spill] sm:$0xff] }
 0x1a7   :  { %v1608_v49 = vmul.f32 %v7696_v30, %v1475_v2  ;;  %v1609_v12 = vmul.f32 %v7703_v18, %v1476_v25  ;;  %v1172_v60 = vmul.f32 0.5, %v1171_v1  ;;  %v1211_v36 = vmul.f32 %v9298_v16, %v1210_v39  ;;  %vm9367_vm6 = vmor %vm1215_vm13, %vm1216_vm1  ;;  %v11808_v39 = vld [vmem:[#allocation67_spill] sm:$0xff] }
 0x1a8   :  { %v1282_v53 = vmul.f32 0.5, %v1281_v7  ;;  %v1200_v2 = vmul.f32 %v9319_v27, %v9263_v54  ;;  %11798 = vst [vmem:[#allocation41_spill] sm:$0xff] %v9327_v22  ;;  %v668_v1 = vmul.f32 %v7672_v38, %v567_v20  ;;  %v600_v7 = vpop.xlane.xlu2 %599  ;;  %v9342_v62 = vadd.f32 %v3087_v15, %v2918_v34  ;;  %4111 = vrot.lane.b32.xlu1 %v9294_v19, %s7455_s4  ;;  %v2582_v15 = vpop.f32.mrf.mxu0 }
 0x1a9   :  { %v1693_v43 = vpack.c.bf16 %v1609_v12, %v1608_v49  ;;  %v1173_v0 = vsub.f32 1.5, %v1172_v60  ;;  %v1212_v25 = vmul.f32 0.5, %v1211_v36  ;;  %v9340_v60 = vpop.xlane.xlu1 %578  ;;  %v9346_v28 = vpop.eup %7137  ;;  %vm1206_vm5 = vweird.f32 %v9319_v27  ;;  %2788 = vmatmul.bf16.gmra.mxu1 %v9327_v22  ;;  %3126 = vmatmul.bf16.gmra.mxu3 %v9327_v22 }
 0x1aa   :  { %v1283_v49 = vsub.f32 1.5, %v1282_v53  ;;  %v1201_v12 = vmul.f32 %v9319_v27, %v1200_v2  ;;  %11801 = vst [vmem:[#allocation42_spill] sm:$0xff] %v9342_v62  ;;  %v9360_v34 = vadd.f32 1e-06, %v668_v1  ;;  %4695 = vrot.lane.b32.xlu0 %v9342_v62, %s7455_s4  ;;  %vm1316_vm7 = vweird.f32 %v9346_v28  ;;  %v9382_v31 = vpop.eup %7139  ;;  %vm1207_vm9 = vmor %vm1205_vm14, %vm1206_vm5 }
 0x1ab   :  { %1757 = vst [vmem:[#allocation2 + $0x158] sm:$0xff] %v1693_v43  ;;  %v1174_v35 = vmul.f32 %v9279_v29, %v1173_v0  ;;  %v1213_v36 = vsub.f32 1.5, %v1212_v25  ;;  %v2751_v43 = vpop.f32.mrf.mxu1  ;;  %v1310_v0 = vmul.f32 %v9346_v28, %v9284_v40  ;;  %v679_v25 = vmul.f32 %v7672_v38, %v600_v7  ;;  %vm9426_vm10 = vmor %vm1315_vm3, %vm1316_vm7 }
 0x1ac   :  { %v1284_v53 = vmul.f32 %v9288_v6, %v1283_v49  ;;  %v1202_v2 = vmul.f32 0.5, %v1201_v12  ;;  %7141 = vrsqrt.f32 %v9360_v34  ;;  %v11806_v12 = vld [vmem:[#allocation58_spill] sm:$0xff]  ;;  %vm1245_vm8 = vweird.f32 %v9304_v11 }
 0x1ad   :  { %v1178_v1 = vsel %vm9334_vm2, %v9279_v29, %v1174_v35  ;;  %v1214_v49 = vmul.f32 %v9298_v16, %v1213_v36  ;;  %v1311_v55 = vmul.f32 %v9346_v28, %v1310_v0  ;;  %vm1246_vm11 = vweird.f32 %v9382_v31 }
 0x1ae   :  { %v1473_v22 = vmul.f32 %v1178_v1, %v11806_v12  ;;  %v1474_v59 = vmul.f32 %v1178_v1, %v11807_v33  ;;  %v1288_v7 = vsel %vm9353_vm4, %v9288_v6, %v1284_v53  ;;  %v1203_v56 = vsub.f32 1.5, %v1202_v2  ;;  %v11809_v1 = vld [vmem:[#allocation56_spill] sm:$0xff]  ;;  %v11810_v6 = vld [vmem:[#allocation57_spill] sm:$0xff]  ;;  %vm9458_vm12 = vmor %vm1245_vm8, %vm1246_vm11 }
 0x1af   :  { %v1495_v29 = vmul.f32 %v1288_v7, %v8327_v57  ;;  %v1496_v35 = vmul.f32 %v1288_v7, %v11808_v39  ;;  %v1218_v36 = vsel %vm9367_vm6, %v9298_v16, %v1214_v49  ;;  %v576_v57 = vpop.xlane.xlu0 %575  ;;  %v1312_v0 = vmul.f32 0.5, %v1311_v55 }
 0x1b0   :  { %v1606_v12 = vmul.f32 %v7696_v30, %v1473_v22  ;;  %v1607_v33 = vmul.f32 %v7703_v18, %v1474_v59  ;;  %v1481_v20 = vmul.f32 %v1218_v36, %v11809_v1  ;;  %v1482_v53 = vmul.f32 %v1218_v36, %v11810_v6 }
 0x1b1   :  { %v1628_v2 = vmul.f32 %v7696_v30, %v1495_v29  ;;  %v1629_v16 = vmul.f32 %v7703_v18, %v1496_v35  ;;  %v1204_v37 = vmul.f32 %v9319_v27, %v1203_v56  ;;  %v1240_v7 = vmul.f32 %v9382_v31, %v9304_v11  ;;  %v9416_v35 = vpop.f32.mrf.mxu2  ;;  %v9418_v56 = vpop.f32.mrf.mxu3 }
 0x1b2   :  { %v1692_v22 = vpack.c.bf16 %v1607_v33, %v1606_v12  ;;  %v1614_v59 = vmul.f32 %v7696_v30, %v1481_v20  ;;  %v1615_v49 = vmul.f32 %v7703_v18, %v1482_v53  ;;  %v9411_v39 = vpop.eup %7141  ;;  %v1313_v1 = vsub.f32 1.5, %v1312_v0  ;;  %v11812_v12 = vld [vmem:[#allocation63_spill] sm:$0xff]  ;;  %v11813_v20 = vld [vmem:[#allocation64_spill] sm:$0xff] }
 0x1b3   :  { %v1703_v54 = vpack.c.bf16 %v1629_v16, %v1628_v2  ;;  %v1208_v36 = vsel %vm1207_vm9, %v9319_v27, %v1204_v37  ;;  %v9414_v29 = vadd.f32 %v2751_v43, %v2582_v15  ;;  %v1241_v27 = vmul.f32 %v9382_v31, %v1240_v7  ;;  %v588_v15 = vpop.xlane.xlu1 %587  ;;  %v9437_v37 = vpop.f32.mrf.mxu0 }
 0x1b4   :  { %1756 = vst [vmem:[#allocation2 + $0x150] sm:$0xff] %v1692_v22  ;;  %v1696_v55 = vpack.c.bf16 %v1615_v49, %v1614_v59  ;;  %v1479_v33 = vmul.f32 %v1208_v36, %v11812_v12  ;;  %v1480_v6 = vmul.f32 %v1208_v36, %v11813_v20  ;;  %v1314_v43 = vmul.f32 %v9346_v28, %v1313_v1  ;;  %v9439_v40 = vpop.f32.mrf.mxu1  ;;  %v11816_v36 = vld [vmem:[#allocation71_spill] sm:$0xff] }
 0x1b5   :  { %11811 = vst [vmem:[#allocation48_spill] sm:$0xff] %v9414_v29  ;;  %v1230_v2 = vmul.f32 %v9411_v39, %v9360_v34  ;;  %v9435_v16 = vadd.f32 1e-06, %v679_v25  ;;  %4113 = vrot.lane.b32.xlu0 %v9414_v29, %s7455_s4  ;;  %v1242_v59 = vmul.f32 0.5, %v1241_v27  ;;  %v672_v49 = vmul.f32 %v7672_v38, %v9340_v60 }
 0x1b6   :  { %1767 = vst [vmem:[#allocation2 + $0x1a8] sm:$0xff] %v1703_v54  ;;  %v1612_v0 = vmul.f32 %v7696_v30, %v1479_v33  ;;  %v1613_v22 = vmul.f32 %v7703_v18, %v1480_v6  ;;  %v1318_v25 = vsel %vm9426_vm10, %v9346_v28, %v1314_v43  ;;  %vm1235_vm13 = vweird.f32 %v9360_v34  ;;  %v609_v43 = vpop.xlane.xlu2 %608 }
 0x1b7   :  { %1760 = vst [vmem:[#allocation2 + $0x170] sm:$0xff] %v1696_v55  ;;  %v1231_v7 = vmul.f32 %v9411_v39, %v1230_v2  ;;  %7143 = vrsqrt.f32 %v9435_v16  ;;  %v1501_v1 = vmul.f32 %v1318_v25, %v11816_v36  ;;  %v11817_v55 = vld [vmem:[#allocation72_spill] sm:$0xff]  ;;  %v1243_v33 = vsub.f32 1.5, %v1242_v59  ;;  %v9470_v2 = vpop.xlane.xlu0 %584 }
 0x1b8   :  { %v1695_v54 = vpack.c.bf16 %v1613_v22, %v1612_v0  ;;  %v1502_v12 = vmul.f32 %v1318_v25, %v11817_v55  ;;  %vm1236_vm14 = vweird.f32 %v9411_v39  ;;  %v9464_v28 = vadd.f32 1e-06, %v672_v49  ;;  %v9472_v0 = vld [vmem:[#allocation9 + $0x8] sm:$0xff] }
 0x1b9   :  { %v1232_v20 = vmul.f32 0.5, %v1231_v7  ;;  %v1634_v6 = vmul.f32 %v7696_v30, %v1501_v1  ;;  %v1244_v27 = vmul.f32 %v9382_v31, %v1243_v33  ;;  %v671_v11 = vmul.f32 %v7672_v38, %v576_v57  ;;  %vm9483_vm15 = vmor %vm1235_vm13, %vm1236_vm14  ;;  %v11822_v1 = vld [vmem:[#allocation61_spill] sm:$0xff]  ;;  %v9499_v34 = vpop.f32.mrf.mxu3 }
 0x1ba   :  { %1759 = vst [vmem:[#allocation2 + $0x168] sm:$0xff] %v1695_v54  ;;  %v1635_v53 = vmul.f32 %v7703_v18, %v1502_v12  ;;  %7145 = vrsqrt.f32 %v9464_v28  ;;  %v682_v59 = vmul.f32 %v7672_v38, %v609_v43  ;;  %v675_v54 = vmul.f32 %v7672_v38, %v588_v15  ;;  %v11823_v12 = vld [vmem:[#allocation62_spill] sm:$0xff] }
 0x1bb   :  { %v1233_v22 = vsub.f32 1.5, %v1232_v20  ;;  %v1248_v25 = vsel %vm9458_vm12, %v9382_v31, %v1244_v27  ;;  %v9487_v7 = vadd.f32 1e-06, %v671_v11  ;;  %v9497_v20 = vpop.f32.mrf.mxu2  ;;  %vm1345_vm0 = vweird.f32 %v9435_v16 }
 0x1bc   :  { %v1706_v49 = vpack.c.bf16 %v1635_v53, %v1634_v6  ;;  %v1487_v55 = vmul.f32 %v1248_v25, %v11822_v1  ;;  %v1488_v33 = vmul.f32 %v1248_v25, %v11823_v12  ;;  %v9495_v60 = vadd.f32 1e-06, %v682_v59  ;;  %v597_v53 = vpop.xlane.xlu1 %596  ;;  %v11824_v59 = vld [vmem:[#allocation17_spill] sm:$0xff]  ;;  %v11825_v25 = vld [vmem:[#allocation18_spill] sm:$0xff] }
 0x1bd   :  { %v9490_v36 = vpop.eup %7143  ;;  %v1234_v31 = vmul.f32 %v9411_v39, %v1233_v22  ;;  %v9503_v6 = vmul.f32 %v9472_v0, %v8687_v63  ;;  %7147 = vrsqrt.f32 %v9487_v7  ;;  %v9514_v22 = vpop.f32.mrf.mxu0  ;;  %v9529_v57 = vadd.f32 %v9418_v56, %v9416_v35 }
 0x1be   :  { %1770 = vst [vmem:[#allocation2 + $0x1c0] sm:$0xff] %v1706_v49  ;;  %v1340_v15 = vmul.f32 %v9490_v36, %v9435_v16  ;;  %v1620_v27 = vmul.f32 %v7696_v30, %v1487_v55  ;;  %v1621_v11 = vmul.f32 %v7703_v18, %v1488_v33  ;;  %7149 = vrsqrt.f32 %v9495_v60  ;;  %v9516_v63 = vpop.f32.mrf.mxu1 }
 0x1bf   :  { %v1238_v43 = vsel %vm9483_vm15, %v9411_v39, %v1234_v31  ;;  %vm1346_vm1 = vweird.f32 %v9490_v36  ;;  %v9525_v39 = vadd.f32 1e-06, %v675_v54  ;;  %11826 = vst [vmem:[#allocation49_spill] sm:$0xff] %v9529_v57  ;;  %v6497_v31 = vld [vmem:[#allocation2 + $0xe0] sm:$0xf]  ;;  %vm1275_vm2 = vweird.f32 %v9464_v28  ;;  %4697 = vrot.lane.b32.xlu2 %v9529_v57, %s7455_s4 }
 0x1c0   :  { %v1485_v49 = vmul.f32 %v1238_v43, %v11824_v59  ;;  %v1486_v1 = vmul.f32 %v1238_v43, %v11825_v25  ;;  %v1341_v12 = vmul.f32 %v9490_v36, %v1340_v15  ;;  %v9522_v55 = vpop.eup %7145  ;;  %v1699_v33 = vpack.c.bf16 %v1621_v11, %v1620_v27  ;;  %v6499_v27 = vld [vmem:[#allocation2 + $0xe8] sm:$0xf0]  ;;  %vm9556_vm5 = vmor %vm1345_vm0, %vm1346_vm1 }
 0x1c1   :  { %v1270_v25 = vmul.f32 %v9522_v55, %v9464_v28  ;;  %vm1265_vm3 = vweird.f32 %v9487_v7  ;;  %vm1375_vm4 = vweird.f32 %v9495_v60  ;;  %7151 = vrsqrt.f32 %v9525_v39 }
 0x1c2   :  { %v1618_v59 = vmul.f32 %v7696_v30, %v1485_v49  ;;  %v1619_v43 = vmul.f32 %v7703_v18, %v1486_v1  ;;  %v1342_v15 = vmul.f32 0.5, %v1341_v12  ;;  %1763 = vst [vmem:[#allocation2 + $0x188] sm:$0xff] %v1699_v33  ;;  %v9546_v49 = vadd.f32 %v9439_v40, %v9437_v37  ;;  %v9548_v1 = vpop.xlane.xlu0 %593 }
 0x1c3   :  { %v9541_v35 = vpop.eup %7147  ;;  %v1271_v11 = vmul.f32 %v9522_v55, %v1270_v25  ;;  %vm1276_vm6 = vweird.f32 %v9522_v55  ;;  %v9565_v37 = vor.u32 %v6923_v4, %v6499_v27  ;;  %vm1305_vm7 = vweird.f32 %v9525_v39  ;;  %v4094_v25 = vpop.permute.xlu2 %4093 }
 0x1c4   :  { %v1698_v56 = vpack.c.bf16 %v1619_v43, %v1618_v59  ;;  %v1343_v54 = vsub.f32 1.5, %v1342_v15  ;;  %11827 = vst [vmem:[#allocation46_spill] sm:$0xff] %v9546_v49  ;;  %v9550_v12 = vpop.eup %7149  ;;  %v1260_v59 = vmul.f32 %v9541_v35, %v9487_v7  ;;  %v9563_v43 = vor.u32 %v6924_v32, %v6497_v31  ;;  %v9578_v32 = vld [vmem:[#allocation11 + $0x8] sm:$0xff]  ;;  %v9580_v31 = vpop.f32.mrf.mxu2  ;;  %vm1277_vm10 = vmor %vm1275_vm2, %vm1276_vm6 }
 0x1c5   :  { %11831 = vst [vmem:[#allocation60_spill] sm:$0xff] %v9565_v37  ;;  %v1272_v15 = vmul.f32 0.5, %v1271_v11  ;;  %v1370_v16 = vmul.f32 %v9550_v12, %v9495_v60  ;;  %vm1266_vm8 = vweird.f32 %v9541_v35  ;;  %vm1376_vm9 = vweird.f32 %v9550_v12  ;;  %2793 = vmatmul.bf16.gmra.mxu1 %v9565_v37  ;;  %v9582_v27 = vpop.f32.mrf.mxu3  ;;  %3131 = vmatmul.bf16.gmra.mxu3 %v9565_v37 }
 0x1c6   :  { %11830 = vst [vmem:[#allocation47_spill] sm:$0xff] %v9563_v43  ;;  %v1344_v40 = vmul.f32 %v9490_v36, %v1343_v54  ;;  %v1261_v14 = vmul.f32 %v9541_v35, %v1260_v59  ;;  %2624 = vmatmul.bf16.gmra.mxu0 %v9563_v43  ;;  %v674_v4 = vmul.f32 %v7672_v38, %v9470_v2  ;;  %v9591_v2 = vpop.xlane.xlu1 %605  ;;  %vm9621_vm11 = vmor %vm1265_vm3, %vm1266_vm8 }
 0x1c7   :  { %1762 = vst [vmem:[#allocation2 + $0x180] sm:$0xff] %v1698_v56  ;;  %v1273_v54 = vsub.f32 1.5, %v1272_v15  ;;  %v1371_v11 = vmul.f32 %v9550_v12, %v1370_v16  ;;  %2962 = vmatmul.bf16.gmra.mxu2 %v9563_v43  ;;  %v678_v59 = vmul.f32 %v7672_v38, %v597_v53  ;;  %v9593_v47 = vpop.eup %7151  ;;  %v9605_v15 = vpop.f32.mrf.mxu1  ;;  %4115 = vrot.lane.b32.xlu2 %v9546_v49, %s7455_s4  ;;  %vm1377_vm13 = vmor %vm1375_vm4, %vm1376_vm9 }
 0x1c8   :  { %v1348_v56 = vsel %vm9556_vm5, %v9490_v36, %v1344_v40  ;;  %v1262_v36 = vmul.f32 0.5, %v1261_v14  ;;  %v9601_v33 = vadd.f32 1e-06, %v674_v4  ;;  %v9603_v40 = vpop.f32.mrf.mxu0  ;;  %vm1306_vm12 = vweird.f32 %v9593_v47 }
 0x1c9   :  { %v1507_v13 = vmul.f32 %v1348_v56, %v11832_v26  ;;  %v1508_v29 = vmul.f32 %v1348_v56, %v11833_v61  ;;  %v1274_v53 = vmul.f32 %v9522_v55, %v1273_v54  ;;  %v1372_v16 = vmul.f32 0.5, %v1371_v11  ;;  %v11836_v54 = vld [vmem:[#allocation68_spill] sm:$0xff]  ;;  %vm9660_vm14 = vmor %vm1305_vm7, %vm1306_vm12 }
 0x1ca   :  { %v1300_v26 = vmul.f32 %v9593_v47, %v9525_v39  ;;  %v4220_v61 = vmul.f32 %v4094_v25, %v9578_v32  ;;  %v1263_v37 = vsub.f32 1.5, %v1262_v36  ;;  %7153 = vrsqrt.f32 %v9601_v33  ;;  %v11837_v36 = vld [vmem:[#allocation69_spill] sm:$0xff]  ;;  %v9638_v49 = vpop.xlane.xlu0 %602 }
 0x1cb   :  { %v1640_v56 = vmul.f32 %v7696_v30, %v1507_v13  ;;  %v1641_v28 = vmul.f32 %v7703_v18, %v1508_v29  ;;  %v1278_v14 = vsel %vm1277_vm10, %v9522_v55, %v1274_v53  ;;  %v1373_v25 = vsub.f32 1.5, %v1372_v16 }
 0x1cc   :  { %v1301_v13 = vmul.f32 %v9593_v47, %v1300_v26  ;;  %v1493_v11 = vmul.f32 %v1278_v14, %v11836_v54  ;;  %v1494_v43 = vmul.f32 %v1278_v14, %v11837_v36  ;;  %v1264_v55 = vmul.f32 %v9541_v35, %v1263_v37  ;;  %v11839_v14 = vld [vmem:[#allocation75_spill] sm:$0xff]  ;;  %v11842_v36 = vld [vmem:[#allocation81_spill] sm:$0xff] }
 0x1cd   :  { %v1709_v29 = vpack.c.bf16 %v1641_v28, %v1640_v56  ;;  %v1374_v7 = vmul.f32 %v9550_v12, %v1373_v25  ;;  %v9635_v16 = vadd.f32 1e-06, %v678_v59  ;;  %v4284_v26 = vadd.f32 %v4220_v61, %v9503_v6  ;;  %v11840_v25 = vld [vmem:[#allocation76_spill] sm:$0xff] }
 0x1ce   :  { %v1302_v53 = vmul.f32 0.5, %v1301_v13  ;;  %v1626_v56 = vmul.f32 %v7696_v30, %v1493_v11  ;;  %v1627_v28 = vmul.f32 %v7703_v18, %v1494_v43  ;;  %v1268_v37 = vsel %vm9621_vm11, %v9541_v35, %v1264_v55  ;;  %v11841_v11 = vld [vmem:[#allocation22_spill] sm:$0xff]  ;;  %v9669_v35 = vpop.f32.mrf.mxu3 }
 0x1cf   :  { %1773 = vst [vmem:[#allocation2 + $0x1d8] sm:$0xff] %v1709_v29  ;;  %v9647_v60 = vadd.f32 %v9499_v34, %v9497_v20  ;;  %v1491_v59 = vmul.f32 %v1268_v37, %v11839_v14  ;;  %v1492_v13 = vmul.f32 %v1268_v37, %v11840_v25  ;;  %v1378_v6 = vsel %vm1377_vm13, %v9550_v12, %v1374_v7  ;;  %v9667_v34 = vpop.f32.mrf.mxu2  ;;  %v4680_v7 = vpop.permute.xlu2 %4679 }
 0x1d0   :  { %v1303_v61 = vsub.f32 1.5, %v1302_v53  ;;  %v9652_v29 = vpop.eup %7153  ;;  %v1702_v54 = vpack.c.bf16 %v1627_v28, %v1626_v56  ;;  %v1513_v43 = vmul.f32 %v1378_v6, %v11841_v11  ;;  %v1514_v62 = vmul.f32 %v1378_v6, %v11842_v36  ;;  %v9676_v53 = vpop.permute.xlu1 %4091 }
 0x1d1   :  { %11838 = vst [vmem:[#allocation52_spill] sm:$0xff] %v9647_v60  ;;  %7155 = vrsqrt.f32 %v9635_v16  ;;  %4699 = vrot.lane.b32.xlu1 %v9647_v60, %s7455_s4  ;;  %v1624_v12 = vmul.f32 %v7696_v30, %v1491_v59  ;;  %v1625_v4 = vmul.f32 %v7703_v18, %v1492_v13  ;;  %v1290_v39 = vmul.f32 %v9652_v29, %v9601_v33  ;;  %v9681_v37 = vpop.f32.mrf.mxu0  ;;  %v9683_v14 = vpop.f32.mrf.mxu1 }
 0x1d2   :  { %v1304_v55 = vmul.f32 %v9593_v47, %v1303_v61  ;;  %1766 = vst [vmem:[#allocation2 + $0x1a0] sm:$0xff] %v1702_v54  ;;  %v1646_v56 = vmul.f32 %v7696_v30, %v1513_v43  ;;  %v1647_v28 = vmul.f32 %v7703_v18, %v1514_v62  ;;  %vm1295_vm15 = vweird.f32 %v9601_v33  ;;  %v11845_v54 = vld [vmem:[#allocation73_spill] sm:$0xff]  ;;  %v11846_v43 = vld [vmem:[#allocation74_spill] sm:$0xff] }
 0x1d3   :  { %v1701_v59 = vpack.c.bf16 %v1625_v4, %v1624_v12  ;;  %v1291_v13 = vmul.f32 %v9652_v29, %v1290_v39  ;;  %v4352_v6 = vmul.f32 0.088388346, %v4284_v26  ;;  %vm1296_vm0 = vweird.f32 %v9652_v29  ;;  %v9692_v62 = vld [vmem:[#allocation9] sm:$0xff]  ;;  %v9700_v26 = vpop.xlane.xlu0 %611 }
 0x1d4   :  { %v1308_v25 = vsel %vm9660_vm14, %v9593_v47, %v1304_v55  ;;  %v1712_v61 = vpack.c.bf16 %v1647_v28, %v1646_v56  ;;  %v9696_v12 = vadd.f32 %v9516_v63, %v9514_v22  ;;  %v677_v47 = vmul.f32 %v7672_v38, %v9548_v1  ;;  %v9712_v22 = vld [vmem:[#allocation11 + $0x10] sm:$0xff]  ;;  %vm9726_vm1 = vmor %vm1295_vm15, %vm1296_vm0 }
 0x1d5   :  { %v1499_v11 = vmul.f32 %v1308_v25, %v11845_v54  ;;  %v1500_v36 = vmul.f32 %v1308_v25, %v11846_v43  ;;  %1765 = vst [vmem:[#allocation2 + $0x198] sm:$0xff] %v1701_v59  ;;  %v1292_v60 = vmul.f32 0.5, %v1291_v13  ;;  %v4483_v57 = vpack.c.bf16 %v4352_v6, %v4352_v6  ;;  %v6505_v63 = vld [vmem:[#allocation2 + $0xf0] sm:$0xf]  ;;  %v6926_v25 = vld [vmem:[#allocation2 + $0xf4] sm:$0xf0] }
 0x1d6   :  { %11847 = vst [vmem:[#allocation53_spill] sm:$0xff] %v9696_v12  ;;  %v681_v39 = vmul.f32 %v7672_v38, %v9591_v2  ;;  %v9710_v56 = vadd.f32 %v9582_v27, %v9580_v31  ;;  %v9714_v1 = vld [vmem:[#allocation9 + $0x10] sm:$0xff]  ;;  %v9720_v13 = vmul.f32 %v9692_v62, %v8631_v5  ;;  %v9730_v27 = vadd.f32 1e-06, %v677_v47  ;;  %v9740_v6 = vpop.f32.mrf.mxu3  ;;  %v6507_v43 = vld [vmem:[#allocation2 + $0xf8] sm:$0xf0] }
 0x1d7   :  { %v9702_v20 = vpop.eup %7155  ;;  %1776 = vst [vmem:[#allocation2 + $0x1f0] sm:$0xff] %v1712_v61  ;;  %v1632_v4 = vmul.f32 %v7696_v30, %v1499_v11  ;;  %v1633_v55 = vmul.f32 %v7703_v18, %v1500_v36  ;;  %v1293_v28 = vsub.f32 1.5, %v1292_v60  ;;  %v6925_v5 = vld [vmem:[#allocation2 + $0xf4] sm:$0xf]  ;;  %v4613_v33 = vmul.f32 %v9714_v1, %v8776_v52  ;;  %v6980_v36 = vld [vmem:[#allocation8 + $0xac] sm:$0xf] }
 0x1d8   :  { %11848 = vst [vmem:[#allocation58_spill] sm:$0xff] %v9710_v56  ;;  %v1330_v59 = vmul.f32 %v9702_v20, %v9635_v16  ;;  %v9732_v60 = vadd.f32 1e-06, %v681_v39  ;;  %4701 = vrot.lane.b32.xlu0 %v9710_v56, %s7455_s4  ;;  %v4805_v11 = vmul.f32 %v4680_v7, %v9712_v22  ;;  %v6731_v47 = vld [vmem:[#allocation8 + $0xb8] sm:$0xf0]  ;;  %vm1335_vm2 = vweird.f32 %v9635_v16  ;;  %v9764_v56 = vld [vmem:[#allocation11] sm:$0xff] }
 0x1d9   :  { %4547 = vst [vmem:[#allocation12 + $0x10] sm:$0xf] %v4483_v57  ;;  %v1705_v2 = vpack.c.bf16 %v1633_v55, %v1632_v4  ;;  %4117 = vrot.lane.b32.xlu1 %v9696_v12, %s7455_s4  ;;  %v9738_v57 = vpop.f32.mrf.mxu2  ;;  %v1294_v61 = vmul.f32 %v9652_v29, %v1293_v28  ;;  %vm1336_vm3 = vweird.f32 %v9702_v20  ;;  %7157 = vrsqrt.f32 %v9730_v27  ;;  %v7012_v55 = vld [vmem:[#allocation8 + $0x1ac] sm:$0xf]  ;;  %v6859_v52 = vld [vmem:[#allocation8 + $0x1b8] sm:$0xf0]  ;;  %v9752_v39 = vpop.f32.mrf.mxu0 }
 0x1da   :  { %v1331_v54 = vmul.f32 %v9702_v20, %v1330_v59  ;;  %v9750_v4 = vor.u32 %v6926_v25, %v6505_v63  ;;  %v9754_v28 = vpop.f32.mrf.mxu1  ;;  %7159 = vrsqrt.f32 %v9732_v60  ;;  %v4098_v63 = vpop.permute.xlu2 %4097  ;;  %v11851_v12 = vld [vmem:[#allocation20_spill] sm:$0xff]  ;;  %v4869_v42 = vadd.f32 %v4805_v11, %v4613_v33  ;;  %vm9786_vm4 = vmor %vm1335_vm2, %vm1336_vm3 }
 0x1db   :  { %1769 = vst [vmem:[#allocation2 + $0x1b8] sm:$0xff] %v1705_v2  ;;  %v1298_v7 = vsel %vm9726_vm1, %v9652_v29, %v1294_v61  ;;  %v9762_v2 = vadd.f32 %v9605_v15, %v9603_v40  ;;  %v9766_v25 = vpop.permute.xlu1 %4675  ;;  %v9771_v29 = vor.u32 %v6925_v5, %v6507_v43  ;;  %v9773_v31 = vld [vmem:[#allocation9 + $0x18] sm:$0xff]  ;;  %v680_v40 = vmul.f32 %v7672_v38, %v9638_v49  ;;  %v9778_v17 = vpop.permute.xlu0 %4677 }
 0x1dc   :  { %v1332_v59 = vmul.f32 0.5, %v1331_v54  ;;  %v1497_v19 = vmul.f32 %v1298_v7, %v11851_v12  ;;  %v1498_v24 = vmul.f32 %v1298_v7, %v11852_v8  ;;  %2629 = vmatmul.bf16.gmra.mxu0 %v9750_v4  ;;  %2967 = vmatmul.bf16.gmra.mxu2 %v9750_v4  ;;  %v6734_v15 = vor.u32 %v6980_v36, %v6731_v47  ;;  %v9794_v11 = vld [vmem:[#allocation11 + $0x18] sm:$0xff] }
 0x1dd   :  { %11853 = vst [vmem:[#allocation59_spill] sm:$0xff] %v9771_v29  ;;  %v6862_v54 = vor.u32 %v7012_v55, %v6859_v52  ;;  %v4937_v33 = vmul.f32 0.088388346, %v4869_v42  ;;  %2798 = vmatmul.bf16.gmra.mxu1 %v9771_v29  ;;  %3136 = vmatmul.bf16.gmra.mxu3 %v9771_v29  ;;  %v4219_v49 = vmul.f32 %v9676_v53, %v9764_v56  ;;  %v9801_v16 = vadd.f32 1e-06, %v680_v40 }
 0x1de   :  { %v1333_v61 = vsub.f32 1.5, %v1332_v59  ;;  %v1630_v12 = vmul.f32 %v7696_v30, %v1497_v19  ;;  %v1631_v8 = vmul.f32 %v7703_v18, %v1498_v24  ;;  %v9798_v24 = vmul.f32 %v9692_v62, %v8685_v10  ;;  %3562 = vmatpush.bf16.msrb.mxu2 %v6734_v15  ;;  %v9816_v55 = vpop.f32.mrf.mxu3  ;;  %v11857_v59 = vld [vmem:[#allocation19_spill] sm:$0xff]  ;;  %v6927_v29 = vld [vmem:[#allocation2 + $0x104] sm:$0xf] }
 0x1df   :  { %3731 = vmatpush.bf16.msrb.mxu3 %v6862_v54  ;;  %v9805_v42 = vadd.f32 %v9669_v35, %v9667_v34  ;;  %v9807_v43 = vpop.eup %7157  ;;  %v4030_v53 = vmul.f32 %v9773_v31, %v8809_v23  ;;  %v5068_v47 = vpack.c.bf16 %v4937_v33, %v4937_v33  ;;  %v4283_v10 = vadd.f32 %v4219_v49, %v9720_v13  ;;  %v11856_v13 = vld [vmem:[#allocation80_spill] sm:$0xff] }
 0x1e0   :  { %v1334_v19 = vmul.f32 %v9702_v20, %v1333_v61  ;;  %v1704_v36 = vpack.c.bf16 %v1631_v8, %v1630_v12  ;;  %4119 = vrot.lane.b32.xlu0 %v9762_v2, %s7455_s4  ;;  %v9818_v52 = vpop.eup %7159  ;;  %v1320_v23 = vmul.f32 %v9807_v43, %v9730_v27  ;;  %7161 = vrsqrt.f32 %v9801_v16 }
 0x1e1   :  { %v9814_v62 = vpop.f32.mrf.mxu2  ;;  %4703 = vrot.lane.b32.xlu2 %v9805_v42, %s7455_s4  ;;  %v4222_v35 = vmul.f32 %v4098_v63, %v9794_v11  ;;  %vm1325_vm5 = vweird.f32 %v9730_v27  ;;  %v9834_v40 = vpop.f32.mrf.mxu0  ;;  %vm1326_vm6 = vweird.f32 %v9807_v43  ;;  %vm1365_vm7 = vweird.f32 %v9732_v60  ;;  %5132 = vst [vmem:[#allocation12 + $0x24] sm:$0xf] %v5068_v47  ;;  %v6513_v47 = vld [vmem:[#allocation2 + $0x100] sm:$0xf] }
 0x1e2   :  { %v1338_v34 = vsel %vm9786_vm4, %v9702_v20, %v1334_v19  ;;  %1768 = vst [vmem:[#allocation2 + $0x1b0] sm:$0xff] %v1704_v36  ;;  %v1360_v20 = vmul.f32 %v9818_v52, %v9732_v60  ;;  %v9836_v15 = vpop.f32.mrf.mxu1  ;;  %v1321_v54 = vmul.f32 %v9807_v43, %v1320_v23  ;;  %v4351_v63 = vmul.f32 0.088388346, %v4283_v10  ;;  %v9841_v12 = vpop.permute.xlu2 %4685  ;;  %vm9873_vm9 = vmor %vm1325_vm5, %vm1326_vm6 }
 0x1e3   :  { %v1505_v7 = vmul.f32 %v1338_v34, %v11856_v13  ;;  %v1506_v61 = vmul.f32 %v1338_v34, %v11857_v59  ;;  %v9843_v8 = vpop.permute.xlu1 %4681  ;;  %vm1366_vm8 = vweird.f32 %v9818_v52  ;;  %v4286_v34 = vadd.f32 %v4222_v35, %v4030_v53  ;;  %v9851_v10 = vpop.permute.xlu0 %4095 }
 0x1e4   :  { %v1361_v49 = vmul.f32 %v9818_v52, %v1360_v20  ;;  %v1322_v19 = vmul.f32 0.5, %v1321_v54  ;;  %v4482_v36 = vpack.c.bf16 %v4351_v63, %v4351_v63  ;;  %v683_v23 = vmul.f32 %v7672_v38, %v9700_v26  ;;  %v6928_v20 = vld [vmem:[#allocation2 + $0x104] sm:$0xf0]  ;;  %vm9893_vm11 = vmor %vm1365_vm7, %vm1366_vm8 }
 0x1e5   :  { %v1638_v5 = vmul.f32 %v7696_v30, %v1505_v7  ;;  %v1639_v33 = vmul.f32 %v7703_v18, %v1506_v61  ;;  %v4803_v7 = vmul.f32 %v9766_v25, %v9764_v56  ;;  %v9857_v61 = vadd.f32 %v9740_v6, %v9738_v57 }
 0x1e6   :  { %v1362_v59 = vmul.f32 0.5, %v1361_v49  ;;  %v9859_v54 = vpop.eup %7161  ;;  %v9863_v53 = vmul.f32 %v9472_v0, %v8737_v58  ;;  %v1323_v38 = vsub.f32 1.5, %v1322_v19  ;;  %4546 = vst [vmem:[#allocation12] sm:$0xf] %v4482_v36  ;;  %v9867_v26 = vadd.f32 %v9683_v14, %v9681_v37  ;;  %v6515_v37 = vld [vmem:[#allocation2 + $0x108] sm:$0xf0]  ;;  %v9886_v6 = vpop.f32.mrf.mxu3 }
 0x1e7   :  { %v1708_v13 = vpack.c.bf16 %v1639_v33, %v1638_v5  ;;  %v4354_v35 = vmul.f32 0.088388346, %v4286_v34  ;;  %v1350_v58 = vmul.f32 %v9859_v54, %v9801_v16  ;;  %vm1355_vm10 = vweird.f32 %v9801_v16  ;;  %4705 = vrot.lane.b32.xlu1 %v9857_v61, %s7455_s4  ;;  %v6697_v36 = vld [vmem:[#allocation8 + $0x68] sm:$0xf]  ;;  %v6974_v34 = vld [vmem:[#allocation8 + $0x74] sm:$0xf0] }
 0x1e8   :  { %v1363_v57 = vsub.f32 1.5, %v1362_v59  ;;  %v9880_v0 = vadd.f32 1e-06, %v683_v23  ;;  %v1324_v27 = vmul.f32 %v9807_v43, %v1323_v38  ;;  %v4867_v5 = vadd.f32 %v4803_v7, %v9798_v24  ;;  %v6825_v23 = vld [vmem:[#allocation8 + $0x168] sm:$0xf]  ;;  %v11863_v38 = vld [vmem:[#allocation85_spill] sm:$0xff] }
 0x1e9   :  { %1772 = vst [vmem:[#allocation2 + $0x1d0] sm:$0xff] %v1708_v13  ;;  %v9884_v14 = vpop.f32.mrf.mxu2  ;;  %v4485_v63 = vpack.c.bf16 %v4354_v35, %v4354_v35  ;;  %v9900_v33 = vadd.f32 %v9754_v28, %v9752_v39  ;;  %4121 = vrot.lane.b32.xlu2 %v9867_v26, %s7455_s4  ;;  %v1351_v19 = vmul.f32 %v9859_v54, %v1350_v58  ;;  %v9909_v13 = vpop.f32.mrf.mxu0  ;;  %vm1356_vm12 = vweird.f32 %v9859_v54  ;;  %v7006_v7 = vld [vmem:[#allocation8 + $0x174] sm:$0xf0] }
 0x1ea   :  { %v1364_v49 = vmul.f32 %v9818_v52, %v1363_v57  ;;  %7163 = vrsqrt.f32 %v9880_v0  ;;  %v9907_v60 = vor.u32 %v6928_v20, %v6513_v47  ;;  %v9911_v24 = vpop.f32.mrf.mxu1  ;;  %v1328_v39 = vsel %vm9873_vm9, %v9807_v43, %v1324_v27  ;;  %v11862_v47 = vld [vmem:[#allocation84_spill] sm:$0xff]  ;;  %v9925_v56 = vpop.permute.xlu2 %4103  ;;  %v11864_v43 = vld [vmem:[#allocation82_spill] sm:$0xff]  ;;  %vm9944_vm13 = vmor %vm1355_vm10, %vm1356_vm12 }
 0x1eb   :  { %4549 = vst [vmem:[#allocation12 + $0x30] sm:$0xf] %v4485_v63  ;;  %v4935_v28 = vmul.f32 0.088388346, %v4867_v5  ;;  %v9917_v59 = vor.u32 %v6927_v29, %v6515_v37  ;;  %v1503_v20 = vmul.f32 %v1328_v39, %v11862_v47  ;;  %v1504_v35 = vmul.f32 %v1328_v39, %v11863_v38  ;;  %v11865_v63 = vld [vmem:[#allocation83_spill] sm:$0xff]  ;;  %v9930_v47 = vpop.permute.xlu1 %4099  ;;  %v9932_v39 = vpop.permute.xlu0 %4683 }
 0x1ec   :  { %v1368_v57 = vsel %vm9893_vm11, %v9818_v52, %v1364_v49  ;;  %v1352_v58 = vmul.f32 0.5, %v1351_v19  ;;  %2634 = vmatmul.bf16.gmra.mxu0 %v9907_v60  ;;  %2972 = vmatmul.bf16.gmra.mxu2 %v9907_v60  ;;  %v6698_v37 = vor.u32 %v6974_v34, %v6697_v36  ;;  %v6826_v19 = vor.u32 %v7006_v7, %v6825_v23 }
 0x1ed   :  { %v1511_v27 = vmul.f32 %v1368_v57, %v11864_v43  ;;  %v1512_v5 = vmul.f32 %v1368_v57, %v11865_v63  ;;  %v5066_v29 = vpack.c.bf16 %v4935_v28, %v4935_v28  ;;  %v1636_v25 = vmul.f32 %v7696_v30, %v1503_v20  ;;  %2803 = vmatmul.bf16.gmra.mxu1 %v9917_v59  ;;  %v9959_v43 = vld [vmem:[#allocation9 + $0x28] sm:$0xff] }
 0x1ee   :  { %v1637_v52 = vmul.f32 %v7703_v18, %v1504_v35  ;;  %v1353_v49 = vsub.f32 1.5, %v1352_v58  ;;  %3141 = vmatmul.bf16.gmra.mxu3 %v9917_v59  ;;  %3226 = vmatpush.bf16.msrb.mxu0 %v6698_v37  ;;  %v4804_v34 = vmul.f32 %v9778_v17, %v9578_v32  ;;  %v9955_v35 = vadd.f32 %v9816_v55, %v9814_v62  ;;  %v3107_v57 = vpop.f32.mrf.mxu3  ;;  %v9966_v63 = vld [vmem:[#allocation11 + $0x28] sm:$0xff] }
 0x1ef   :  { %v1644_v38 = vmul.f32 %v7696_v30, %v1511_v27  ;;  %v1645_v28 = vmul.f32 %v7703_v18, %v1512_v5  ;;  %5130 = vst [vmem:[#allocation12 + $0x4] sm:$0xf] %v5066_v29  ;;  %3395 = vmatpush.bf16.msrb.mxu1 %v6826_v19  ;;  %v4029_v58 = vmul.f32 %v9714_v1, %v8769_v9  ;;  %vm1385_vm14 = vweird.f32 %v9880_v0  ;;  %v3902_v5 = vld [vmem:[#allocation9 + $0x20] sm:$0xff]  ;;  %v9982_v29 = vld [vmem:[#allocation9 + $0x30] sm:$0xff] }
 0x1f0   :  { %v9950_v20 = vpop.eup %7163  ;;  %v1707_v23 = vpack.c.bf16 %v1637_v52, %v1636_v25  ;;  %v1354_v7 = vmul.f32 %v9859_v54, %v1353_v49  ;;  %v4868_v32 = vadd.f32 %v4804_v34, %v9863_v53  ;;  %4123 = vrot.lane.b32.xlu1 %v9900_v33, %s7455_s4  ;;  %v4614_v62 = vmul.f32 %v9773_v31, %v8820_v45  ;;  %v11868_v45 = vld [vmem:[#allocation24_spill] sm:$0xff]  ;;  %v11869_v31 = vld [vmem:[#allocation87_spill] sm:$0xff] }
 0x1f1   :  { %v2938_v16 = vpop.f32.mrf.mxu2  ;;  %v1711_v27 = vpack.c.bf16 %v1645_v28, %v1644_v38  ;;  %v1380_v17 = vmul.f32 %v9950_v20, %v9880_v0  ;;  %v4616_v55 = vmul.f32 %v9959_v43, %v9025_v44  ;;  %4707 = vrot.lane.b32.xlu0 %v9955_v35, %s7455_s4  ;;  %v9978_v1 = vpop.f32.mrf.mxu0  ;;  %vm1386_vm15 = vweird.f32 %v9950_v20  ;;  %v9996_v38 = vld [vmem:[#allocation11 + $0x30] sm:$0xff] }
 0x1f2   :  { %1771 = vst [vmem:[#allocation2 + $0x1c8] sm:$0xff] %v1707_v23  ;;  %v1358_v9 = vsel %vm9944_vm13, %v9859_v54, %v1354_v7  ;;  %v9980_v53 = vpop.f32.mrf.mxu1  ;;  %v4936_v54 = vmul.f32 0.088388346, %v4868_v32  ;;  %v4808_v52 = vmul.f32 %v9841_v12, %v9966_v63  ;;  %v4221_v49 = vmul.f32 %v9851_v10, %v9712_v22  ;;  %vm10020_vm0 = vmor %vm1385_vm14, %vm1386_vm15 }
 0x1f3   :  { %1775 = vst [vmem:[#allocation2 + $0x1e8] sm:$0xff] %v1711_v27  ;;  %v1509_v44 = vmul.f32 %v1358_v9, %v11868_v45  ;;  %v1510_v37 = vmul.f32 %v1358_v9, %v11869_v31  ;;  %v1381_v25 = vmul.f32 %v9950_v20, %v1380_v17  ;;  %v9994_v19 = vadd.f32 %v9886_v6, %v9884_v14  ;;  %v10002_v27 = vpop.permute.xlu1 %4687  ;;  %v6521_v6 = vld [vmem:[#allocation2 + $0x110] sm:$0xf]  ;;  %v10009_v17 = vpop.permute.xlu0 %4101  ;;  %v3966_v31 = vld [vmem:[#allocation11 + $0x20] sm:$0xff] }
 0x1f4   :  { %v5067_v23 = vpack.c.bf16 %v4936_v54, %v4936_v54  ;;  %v4031_v12 = vmul.f32 %v3902_v5, %v8893_v21  ;;  %v4033_v22 = vmul.f32 %v9982_v29, %v9058_v46  ;;  %v4872_v10 = vadd.f32 %v4808_v52, %v4616_v55  ;;  %v6929_v54 = vld [vmem:[#allocation2 + $0x114] sm:$0xf]  ;;  %v6523_v52 = vld [vmem:[#allocation2 + $0x118] sm:$0xf0] }
 0x1f5   :  { %v1642_v28 = vmul.f32 %v7696_v30, %v1509_v44  ;;  %v1643_v36 = vmul.f32 %v7703_v18, %v1510_v37  ;;  %v1382_v34 = vmul.f32 0.5, %v1381_v25  ;;  %v4285_v14 = vadd.f32 %v4221_v49, %v4029_v58  ;;  %4709 = vrot.lane.b32.xlu2 %v9994_v19, %s7455_s4  ;;  %v6930_v44 = vld [vmem:[#allocation2 + $0x114] sm:$0xf0] }
 0x1f6   :  { %v10000_v7 = vpop.permute.xlu2 %4691  ;;  %5131 = vst [vmem:[#allocation12 + $0x14] sm:$0xf] %v5067_v23  ;;  %v4806_v45 = vmul.f32 %v9843_v8, %v9794_v11  ;;  %v4225_v21 = vmul.f32 %v9925_v56, %v9996_v38  ;;  %v4615_v46 = vmul.f32 %v3902_v5, %v8943_v48  ;;  %v10026_v55 = vadd.f32 %v9836_v15, %v9834_v40  ;;  %v3109_v56 = vpop.f32.mrf.mxu3 }
 0x1f7   :  { %v1710_v32 = vpack.c.bf16 %v1643_v36, %v1642_v28  ;;  %v1383_v9 = vsub.f32 1.5, %v1382_v34  ;;  %v4940_v11 = vmul.f32 0.088388346, %v4872_v10  ;;  %v4353_v8 = vmul.f32 0.088388346, %v4285_v14 }
 0x1f8   :  { %v4870_v48 = vadd.f32 %v4806_v45, %v4614_v62  ;;  %v4289_v5 = vadd.f32 %v4225_v21, %v4033_v22  ;;  %v10029_v0 = vadd.f32 %v3107_v57, %v2938_v16  ;;  %v10033_v40 = vor.u32 %v6930_v44, %v6521_v6  ;;  %v11872_v22 = vld [vmem:[#allocation25_spill] sm:$0xff] }
 0x1f9   :  { %v2940_v37 = vpop.f32.mrf.mxu2  ;;  %1774 = vst [vmem:[#allocation2 + $0x1e0] sm:$0xff] %v1710_v32  ;;  %v1384_v25 = vmul.f32 %v9950_v20, %v1383_v9  ;;  %v5071_v49 = vpack.c.bf16 %v4940_v11, %v4940_v11  ;;  %v4484_v28 = vpack.c.bf16 %v4353_v8, %v4353_v8  ;;  %4125 = vrot.lane.b32.xlu0 %v10026_v55, %s7455_s4  ;;  %v10036_v36 = vpop.f32.mrf.mxu0  ;;  %v10054_v32 = vld [vmem:[#allocation11 + $0x40] sm:$0xff]  ;;  %v3905_v9 = vld [vmem:[#allocation9 + $0x38] sm:$0xff] }
 0x1fa   :  { %v4223_v15 = vmul.f32 %v9930_v47, %v3966_v31  ;;  %v10038_v34 = vpop.f32.mrf.mxu1  ;;  %v10045_v16 = vadd.f32 %v9911_v24, %v9909_v13  ;;  %v4938_v57 = vmul.f32 0.088388346, %v4870_v48  ;;  %v4357_v23 = vmul.f32 0.088388346, %v4289_v5  ;;  %4711 = vrot.lane.b32.xlu1 %v10029_v0, %s7455_s4  ;;  %v11873_v47 = vld [vmem:[#allocation26_spill] sm:$0xff]  ;;  %v3906_v45 = vld [vmem:[#allocation9 + $0x40] sm:$0xff] }
 0x1fb   :  { %v1388_v62 = vsel %vm10020_vm0, %v9950_v20, %v1384_v25  ;;  %5135 = vst [vmem:[#allocation12 + $0x54] sm:$0xf] %v5071_v49  ;;  %v10052_v6 = vor.u32 %v6929_v54, %v6523_v52  ;;  %v4807_v58 = vmul.f32 %v9932_v39, %v3966_v31  ;;  %v10062_v11 = vpop.permute.xlu0 %4689  ;;  %v4619_v8 = vmul.f32 %v3906_v45, %v9247_v51  ;;  %v10065_v25 = vld [vmem:[#allocation9 + $0x48] sm:$0xff]  ;;  %v4106_v5 = vpop.permute.xlu1 %4105 }
 0x1fc   :  { %v1515_v10 = vmul.f32 %v1388_v62, %v11872_v22  ;;  %v1516_v14 = vmul.f32 %v1388_v62, %v11873_v47  ;;  %2639 = vmatmul.bf16.gmra.mxu0 %v10033_v40  ;;  %4548 = vst [vmem:[#allocation12 + $0x20] sm:$0xf] %v4484_v28  ;;  %v5069_v20 = vpack.c.bf16 %v4938_v57, %v4938_v57  ;;  %v10077_v28 = vld [vmem:[#allocation11 + $0x48] sm:$0xff] }
 0x1fd   :  { %v4488_v13 = vpack.c.bf16 %v4357_v23, %v4357_v23  ;;  %2977 = vmatmul.bf16.gmra.mxu2 %v10033_v40  ;;  %v4287_v24 = vadd.f32 %v4223_v15, %v4031_v12  ;;  %2808 = vmatmul.bf16.gmra.mxu1 %v10052_v6  ;;  %v4032_v39 = vmul.f32 %v9959_v43, %v8953_v50  ;;  %v11874_v50 = vld [vmem:[#allocation44_spill] sm:$0xff]  ;;  %v6932_v23 = vld [vmem:[#allocation2 + $0x124] sm:$0xf0] }
 0x1fe   :  { %v1648_v21 = vmul.f32 %v7696_v30, %v1515_v10  ;;  %v1649_v44 = vmul.f32 %v7703_v18, %v1516_v14  ;;  %3146 = vmatmul.bf16.gmra.mxu3 %v10052_v6  ;;  %5133 = vst [vmem:[#allocation12 + $0x34] sm:$0xf] %v5069_v20  ;;  %4127 = vrot.lane.b32.xlu2 %v10045_v16, %s7455_s4  ;;  %v4110_v48 = vpop.permute.xlu2 %4109  ;;  %v3112_v49 = vpop.f32.mrf.mxu3  ;;  %v11875_v14 = vld [vmem:[#allocation39_spill] sm:$0xff] }
 0x1ff   :  { %v4355_v12 = vmul.f32 0.088388346, %v4287_v24  ;;  %v10069_v30 = vadd.f32 %v3109_v56, %v2940_v37  ;;  %v4811_v18 = vmul.f32 %v10000_v7, %v10054_v32  ;;  %v4617_v51 = vmul.f32 %v9982_v29, %v9060_v41  ;;  %4552 = vst [vmem:[#allocation12 + $0x60] sm:$0xf] %v4488_v13  ;;  %v3969_v37 = vld [vmem:[#allocation11 + $0x38] sm:$0xff] }
 0x200   :  { %v1713_v31 = vpack.c.bf16 %v1649_v44, %v1648_v21  ;;  %v4871_v54 = vadd.f32 %v4807_v58, %v4615_v46  ;;  %v4034_v56 = vmul.f32 %v3905_v9, %v9100_v3  ;;  %v10082_v7 = vadd.f32 %v9980_v53, %v9978_v1  ;;  %v6529_v29 = vld [vmem:[#allocation2 + $0x120] sm:$0xf]  ;;  %v6976_v24 = vld [vmem:[#allocation8 + $0x8c] sm:$0xf] }
 0x201   :  { %v2943_v52 = vpop.f32.mrf.mxu2  ;;  %v4486_v15 = vpack.c.bf16 %v4355_v12, %v4355_v12  ;;  %v4875_v62 = vadd.f32 %v4811_v18, %v4619_v8  ;;  %v4036_v43 = vmul.f32 %v10065_v25, %v11874_v50  ;;  %4713 = vrot.lane.b32.xlu0 %v10069_v30, %s7455_s4  ;;  %v4224_v46 = vmul.f32 %v10009_v17, %v9966_v63  ;;  %v10090_v57 = vpop.f32.mrf.mxu0  ;;  %v6715_v21 = vld [vmem:[#allocation8 + $0x98] sm:$0xf0]  ;;  %v7008_v44 = vld [vmem:[#allocation8 + $0x18c] sm:$0xf] }
 0x202   :  { %1777 = vst [vmem:[#allocation2 + $0x1f8] sm:$0xff] %v1713_v31  ;;  %v4939_v41 = vmul.f32 0.088388346, %v4871_v54  ;;  %v10092_v3 = vpop.f32.mrf.mxu1  ;;  %v4809_v1 = vmul.f32 %v10002_v27, %v9996_v38  ;;  %4129 = vrot.lane.b32.xlu1 %v10082_v7, %s7455_s4  ;;  %v10098_v22 = vadd.f32 %v3112_v49, %v2943_v52  ;;  %v4228_v10 = vmul.f32 %v4110_v48, %v10077_v28  ;;  %v11876_v38 = vld [vmem:[#allocation40_spill] sm:$0xff]  ;;  %v6681_v31 = vld [vmem:[#allocation8 + $0x48] sm:$0xf] }
 0x203   :  { %4550 = vst [vmem:[#allocation12 + $0x40] sm:$0xf] %v4486_v15  ;;  %v4943_v53 = vmul.f32 0.088388346, %v4875_v62  ;;  %v4226_v47 = vmul.f32 %v4106_v5, %v3969_v37  ;;  %v4618_v63 = vmul.f32 %v3905_v9, %v11875_v14  ;;  %v4288_v20 = vadd.f32 %v4224_v46, %v4032_v39  ;;  %v6843_v18 = vld [vmem:[#allocation8 + $0x198] sm:$0xf0] }
 0x204   :  { %v5070_v17 = vpack.c.bf16 %v4939_v41, %v4939_v41  ;;  %v4873_v13 = vadd.f32 %v4809_v1, %v4617_v51  ;;  %v4035_v27 = vmul.f32 %v3906_v45, %v11876_v38  ;;  %v4292_v8 = vadd.f32 %v4228_v10, %v4036_v43  ;;  %v6970_v54 = vld [vmem:[#allocation8 + $0x54] sm:$0xf0]  ;;  %v4108_v51 = vpop.permute.xlu0 %4107  ;;  %v6809_v41 = vld [vmem:[#allocation8 + $0x148] sm:$0xf]  ;;  %v6931_v46 = vld [vmem:[#allocation2 + $0x124] sm:$0xf] }
 0x205   :  { %v5074_v58 = vpack.c.bf16 %v4943_v53, %v4943_v53  ;;  %v4290_v12 = vadd.f32 %v4226_v47, %v4034_v56  ;;  %v10105_v48 = vadd.f32 %v10038_v34, %v10036_v36  ;;  %v10107_v9 = vor.u32 %v6932_v23, %v6529_v29  ;;  %v7002_v29 = vld [vmem:[#allocation8 + $0x154] sm:$0xf0]  ;;  %v6531_v1 = vld [vmem:[#allocation2 + $0x128] sm:$0xf0] }
 0x206   :  { %5134 = vst [vmem:[#allocation12 + $0x44] sm:$0xf] %v5070_v17  ;;  %v4356_v5 = vmul.f32 0.088388346, %v4288_v20  ;;  %v4941_v39 = vmul.f32 0.088388346, %v4873_v13  ;;  %4715 = vrot.lane.b32.xlu2 %v10098_v22, %s7455_s4  ;;  %v4810_v49 = vmul.f32 %v10062_v11, %v3969_v37  ;;  %v6718_v56 = vor.u32 %v6976_v24, %v6715_v21  ;;  %v3114_v43 = vpop.f32.mrf.mxu3 }
 0x207   :  { %11877 = vst [vmem:[#allocation67_spill] sm:$0xff] %v10107_v9  ;;  %v4360_v45 = vmul.f32 0.088388346, %v4292_v8  ;;  %v4358_v52 = vmul.f32 0.088388346, %v4290_v12  ;;  %v6846_v36 = vor.u32 %v7008_v44, %v6843_v18  ;;  %v4227_v34 = vmul.f32 %v4108_v51, %v10054_v32  ;;  %v11879_v18 = vld [vmem:[#allocation43_spill] sm:$0xff] }
 0x208   :  { %5138 = vst [vmem:[#allocation12 + $0x84] sm:$0xf] %v5074_v58  ;;  %v4487_v15 = vpack.c.bf16 %v4356_v5, %v4356_v5  ;;  %v5072_v62 = vpack.c.bf16 %v4941_v39, %v4941_v39  ;;  %v4874_v47 = vadd.f32 %v4810_v49, %v4618_v63  ;;  %3563 = vmatpush.bf16.msrb.mxu2 %v6718_v56  ;;  %v6537_v39 = vld [vmem:[#allocation2 + $0x130] sm:$0xf]  ;;  %v6934_v51 = vld [vmem:[#allocation2 + $0x134] sm:$0xf0] }
 0x209   :  { %v2945_v50 = vpop.f32.mrf.mxu2  ;;  %v4491_v53 = vpack.c.bf16 %v4360_v45, %v4360_v45  ;;  %v4489_v10 = vpack.c.bf16 %v4358_v52, %v4358_v52  ;;  %4131 = vrot.lane.b32.xlu0 %v10105_v48, %s7455_s4  ;;  %v2610_v11 = vpop.f32.mrf.mxu0  ;;  %3732 = vmatpush.bf16.msrb.mxu3 %v6846_v36  ;;  %v4291_v14 = vadd.f32 %v4227_v34, %v4035_v27  ;;  %v3908_v45 = vld [vmem:[#allocation9 + $0x50] sm:$0xff] }
 0x20a   :  { %v10113_v23 = vadd.f32 %v3114_v43, %v2945_v50  ;;  %4551 = vst [vmem:[#allocation12 + $0x50] sm:$0xf] %v4487_v15  ;;  %v2779_v37 = vpop.f32.mrf.mxu1  ;;  %v6682_v17 = vor.u32 %v6970_v54, %v6681_v31  ;;  %v6810_v32 = vor.u32 %v7002_v29, %v6809_v41  ;;  %v4942_v20 = vmul.f32 0.088388346, %v4874_v47  ;;  %v6933_v15 = vld [vmem:[#allocation2 + $0x134] sm:$0xf] }
 0x20b   :  { %5136 = vst [vmem:[#allocation12 + $0x64] sm:$0xf] %v5072_v62  ;;  %v10120_v13 = vor.u32 %v6931_v46, %v6531_v1  ;;  %v4359_v63 = vmul.f32 0.088388346, %v4291_v14  ;;  %v10125_v24 = vadd.f32 %v10092_v3, %v10090_v57  ;;  %v10131_v58 = vadd.f32 %v2779_v37, %v2610_v11  ;;  %v6539_v62 = vld [vmem:[#allocation2 + $0x138] sm:$0xf0] }
 0x20c   :  { %4717 = vrot.lane.b32.xlu1 %v10113_v23, %s7455_s4  ;;  %2644 = vmatmul.bf16.gmra.mxu0 %v10107_v9  ;;  %4555 = vst [vmem:[#allocation12 + $0x90] sm:$0xf] %v4491_v53  ;;  %v5073_v21 = vpack.c.bf16 %v4942_v20, %v4942_v20  ;;  %v4620_v31 = vmul.f32 %v10065_v25, %v11879_v18  ;;  %v3972_v36 = vld [vmem:[#allocation11 + $0x50] sm:$0xff]  ;;  %v3973_v41 = vld [vmem:[#allocation11 + $0x58] sm:$0xff]  ;;  %v11881_v1 = vld [vmem:[#allocation50_spill] sm:$0xff] }
 0x20d   :  { %11878 = vst [vmem:[#allocation56_spill] sm:$0xff] %v10120_v13  ;;  %3396 = vmatpush.bf16.msrb.mxu1 %v6810_v32  ;;  %2982 = vmatmul.bf16.gmra.mxu2 %v10107_v9  ;;  %v4490_v44 = vpack.c.bf16 %v4359_v63, %v4359_v63  ;;  %v10146_v34 = vor.u32 %v6934_v51, %v6537_v39  ;;  %v11883_v14 = vld [vmem:[#allocation49_spill] sm:$0xff]  ;;  %v11884_v63 = vld [vmem:[#allocation42_spill] sm:$0xff] }
 0x20e   :  { %4553 = vst [vmem:[#allocation12 + $0x70] sm:$0xf] %v4489_v10  ;;  %3227 = vmatpush.bf16.msrb.mxu0 %v6682_v17  ;;  %2813 = vmatmul.bf16.gmra.mxu1 %v10120_v13  ;;  %v3117_v27 = vpop.f32.mrf.mxu3  ;;  %v4037_v53 = vmul.f32 %v3908_v45, %v11881_v1  ;;  %v3909_v10 = vld [vmem:[#allocation9 + $0x58] sm:$0xff]  ;;  %v10154_v47 = vor.u32 %v6933_v15, %v6539_v62  ;;  %v10165_v39 = vld [vmem:[#allocation9 + $0x60] sm:$0xff]  ;;  %v6579_v9 = vld [vmem:[#allocation2 + $0x188] sm:$0xf0] }
 0x20f   :  { %3151 = vmatmul.bf16.gmra.mxu3 %v10120_v13  ;;  %4133 = vrot.lane.b32.xlu2 %v10125_v24, %s7455_s4  ;;  %5137 = vst [vmem:[#allocation12 + $0x74] sm:$0xf] %v5073_v21  ;;  %v4622_v17 = vmul.f32 %v3909_v10, %v11883_v14  ;;  %v4621_v21 = vmul.f32 %v3908_v45, %v11884_v63  ;;  %v10167_v51 = vld [vmem:[#allocation11 + $0x60] sm:$0xff]  ;;  %v11886_v1 = vld [vmem:[#allocation48_spill] sm:$0xff] }
 0x210   :  { %4554 = vst [vmem:[#allocation12 + $0x80] sm:$0xf] %v4490_v44  ;;  %v6936_v14 = vld [vmem:[#allocation2 + $0x144] sm:$0xf0]  ;;  %v6943_v13 = vld [vmem:[#allocation2 + $0x184] sm:$0xf] }
 0x211   :  { %v2948_v38 = vpop.f32.mrf.mxu2  ;;  %v2612_v57 = vpop.f32.mrf.mxu0  ;;  %11880 = vst [vmem:[#allocation57_spill] sm:$0xff] %v10146_v34 }
 0x212   :  { %v10133_v8 = vadd.f32 %v3117_v27, %v2948_v38  ;;  %v2781_v3 = vpop.f32.mrf.mxu1  ;;  %v4694_v12 = vpop.permute.xlu1 %4693  ;;  %11882 = vst [vmem:[#allocation63_spill] sm:$0xff] %v10154_v47 }
 0x213   :  { %v4812_v54 = vmul.f32 %v4694_v12, %v10077_v28  ;;  %v10142_v50 = vadd.f32 %v2781_v3, %v2612_v57 }
 0x214   :  { %4135 = vrot.lane.b32.xlu1 %v10131_v58, %s7455_s4  ;;  %4719 = vrot.lane.b32.xlu0 %v10133_v8, %s7455_s4 }
 0x215   :  { %v4876_v5 = vadd.f32 %v4812_v54, %v4620_v31 }
 0x216   :  { %v3119_v49 = vpop.f32.mrf.mxu3 }
 0x217   :  { %v4944_v56 = vmul.f32 0.088388346, %v4876_v5 }
 0x219   :  { %v2950_v52 = vpop.f32.mrf.mxu2  ;;  %v2615_v25 = vpop.f32.mrf.mxu0  ;;  %v5075_v28 = vpack.c.bf16 %v4944_v56, %v4944_v56 }
 0x21a   :  { %v10144_v43 = vadd.f32 %v3119_v49, %v2950_v52  ;;  %v2784_v29 = vpop.f32.mrf.mxu1  ;;  %v4112_v46 = vpop.permute.xlu1 %4111 }
 0x21b   :  { %v4698_v11 = vpop.permute.xlu2 %4697  ;;  %5139 = vst [vmem:[#allocation12 + $0x94] sm:$0xf] %v5075_v28  ;;  %v4229_v37 = vmul.f32 %v4112_v46, %v3972_v36  ;;  %v10161_v54 = vadd.f32 %v2784_v29, %v2615_v25  ;;  %v11885_v25 = vld [vmem:[#allocation46_spill] sm:$0xff] }
 0x21c   :  { %4721 = vrot.lane.b32.xlu2 %v10144_v43, %s7455_s4  ;;  %4137 = vrot.lane.b32.xlu0 %v10142_v50, %s7455_s4  ;;  %v4814_v32 = vmul.f32 %v4698_v11, %v3973_v41  ;;  %v4696_v20 = vpop.permute.xlu0 %4695  ;;  %v4039_v29 = vmul.f32 %v10165_v39, %v11885_v25  ;;  %v6553_v25 = vld [vmem:[#allocation2 + $0x150] sm:$0xf] }
 0x21d   :  { %2649 = vmatmul.bf16.gmra.mxu0 %v10146_v34  ;;  %2987 = vmatmul.bf16.gmra.mxu2 %v10146_v34  ;;  %v4293_v44 = vadd.f32 %v4229_v37, %v4037_v53  ;;  %v4813_v38 = vmul.f32 %v4696_v20, %v3972_v36  ;;  %v4038_v53 = vmul.f32 %v3909_v10, %v11886_v1  ;;  %v6545_v37 = vld [vmem:[#allocation2 + $0x140] sm:$0xf]  ;;  %v10201_v1 = vld [vmem:[#allocation11 + $0x70] sm:$0xff] }
 0x21e   :  { %2818 = vmatmul.bf16.gmra.mxu1 %v10154_v47  ;;  %v4878_v27 = vadd.f32 %v4814_v32, %v4622_v17  ;;  %v3122_v3 = vpop.f32.mrf.mxu3 }
 0x21f   :  { %3156 = vmatmul.bf16.gmra.mxu3 %v10154_v47  ;;  %v4361_v12 = vmul.f32 0.088388346, %v4293_v44  ;;  %v4877_v18 = vadd.f32 %v4813_v38, %v4621_v21  ;;  %v6935_v21 = vld [vmem:[#allocation2 + $0x144] sm:$0xf]  ;;  %v6547_v44 = vld [vmem:[#allocation2 + $0x148] sm:$0xf0] }
 0x220   :  { %v4946_v31 = vmul.f32 0.088388346, %v4878_v27  ;;  %v10188_v10 = vor.u32 %v6935_v21, %v6547_v44 }
 0x221   :  { %v2953_v57 = vpop.f32.mrf.mxu2  ;;  %v2617_v45 = vpop.f32.mrf.mxu0  ;;  %v4492_v49 = vpack.c.bf16 %v4361_v12, %v4361_v12  ;;  %v4945_v56 = vmul.f32 0.088388346, %v4877_v18 }
 0x222   :  { %v10163_v5 = vadd.f32 %v3122_v3, %v2953_v57  ;;  %v2786_v52 = vpop.f32.mrf.mxu1  ;;  %v5077_v15 = vpack.c.bf16 %v4946_v31, %v4946_v31  ;;  %v10181_v3 = vor.u32 %v6936_v14, %v6545_v37  ;;  %11888 = vst [vmem:[#allocation71_spill] sm:$0xff] %v10188_v10 }
 0x223   :  { %v4116_v62 = vpop.permute.xlu2 %4115  ;;  %4556 = vst [vmem:[#allocation12 + $0xa0] sm:$0xf] %v4492_v49  ;;  %v5076_v36 = vpack.c.bf16 %v4945_v56, %v4945_v56  ;;  %v10177_v38 = vadd.f32 %v2786_v52, %v2617_v45 }
 0x224   :  { %4723 = vrot.lane.b32.xlu1 %v10163_v5, %s7455_s4  ;;  %4139 = vrot.lane.b32.xlu2 %v10161_v54, %s7455_s4  ;;  %5141 = vst [vmem:[#allocation12 + $0xb4] sm:$0xf] %v5077_v15  ;;  %v4231_v28 = vmul.f32 %v4116_v62, %v10167_v51 }
 0x225   :  { %5140 = vst [vmem:[#allocation12 + $0xa4] sm:$0xf] %v5076_v36 }
 0x226   :  { %v4295_v11 = vadd.f32 %v4231_v28, %v4039_v29  ;;  %v3124_v20 = vpop.f32.mrf.mxu3  ;;  %11887 = vst [vmem:[#allocation64_spill] sm:$0xff] %v10181_v3  ;;  %v6938_v29 = vld [vmem:[#allocation2 + $0x154] sm:$0xf0] }
 0x227   :  { %v4114_v46 = vpop.permute.xlu0 %4113 }
 0x228   :  { %v4230_v17 = vmul.f32 %v4114_v46, %v3973_v41  ;;  %v4363_v63 = vmul.f32 0.088388346, %v4295_v11  ;;  %v6555_v11 = vld [vmem:[#allocation2 + $0x158] sm:$0xf0] }
 0x229   :  { %v2955_v32 = vpop.f32.mrf.mxu2  ;;  %v2620_v18 = vpop.f32.mrf.mxu0 }
 0x22a   :  { %v10179_v27 = vadd.f32 %v3124_v20, %v2955_v32  ;;  %v4294_v57 = vadd.f32 %v4230_v17, %v4038_v53  ;;  %v4494_v12 = vpack.c.bf16 %v4363_v63, %v4363_v63  ;;  %v2789_v31 = vpop.f32.mrf.mxu1  ;;  %v6937_v53 = vld [vmem:[#allocation2 + $0x154] sm:$0xf]  ;;  %v10207_v17 = vor.u32 %v6938_v29, %v6553_v25  ;;  %v6972_v25 = vld [vmem:[#allocation8 + $0x6c] sm:$0xf]  ;;  %v6699_v29 = vld [vmem:[#allocation8 + $0x78] sm:$0xf0] }
 0x22b   :  { %v10193_v56 = vadd.f32 %v2789_v31, %v2620_v18  ;;  %v10209_v32 = vld [vmem:[#allocation9 + $0x70] sm:$0xff]  ;;  %v10219_v44 = vor.u32 %v6937_v53, %v6555_v11  ;;  %v10226_v18 = vld [vmem:[#allocation11 + $0x78] sm:$0xff]  ;;  %v6702_v11 = vor.u32 %v6972_v25, %v6699_v29  ;;  %v6939_v25 = vld [vmem:[#allocation2 + $0x164] sm:$0xf] }
 0x22c   :  { %4725 = vrot.lane.b32.xlu0 %v10179_v27, %s7455_s4  ;;  %4141 = vrot.lane.b32.xlu1 %v10177_v38, %s7455_s4  ;;  %v4362_v41 = vmul.f32 0.088388346, %v4294_v57  ;;  %4558 = vst [vmem:[#allocation12 + $0xc0] sm:$0xf] %v4494_v12  ;;  %v4625_v63 = vmul.f32 %v10209_v32, %v9805_v42  ;;  %v6563_v29 = vld [vmem:[#allocation2 + $0x168] sm:$0xf0] }
 0x22d   :  { %2654 = vmatmul.bf16.gmra.mxu0 %v10181_v3  ;;  %2992 = vmatmul.bf16.gmra.mxu2 %v10181_v3  ;;  %11889 = vst [vmem:[#allocation72_spill] sm:$0xff] %v10207_v17  ;;  %v10307_v3 = vld [vmem:[#allocation11 + $0xa8] sm:$0xff] }
 0x22e   :  { %v4493_v45 = vpack.c.bf16 %v4362_v41, %v4362_v41  ;;  %2823 = vmatmul.bf16.gmra.mxu1 %v10188_v10  ;;  %v3127_v49 = vpop.f32.mrf.mxu3  ;;  %11890 = vst [vmem:[#allocation61_spill] sm:$0xff] %v10219_v44  ;;  %v10224_v41 = vld [vmem:[#allocation9 + $0x78] sm:$0xff]  ;;  %3564 = vmatpush.bf16.msrb.mxu2 %v6702_v11 }
 0x22f   :  { %3161 = vmatmul.bf16.gmra.mxu3 %v10188_v10 }
 0x230   :  { %4557 = vst [vmem:[#allocation12 + $0xb0] sm:$0xf] %v4493_v45  ;;  %v11891_v45 = vld [vmem:[#allocation52_spill] sm:$0xff] }
 0x231   :  { %v2958_v52 = vpop.f32.mrf.mxu2  ;;  %v2622_v62 = vpop.f32.mrf.mxu0 }
 0x232   :  { %v10195_v15 = vadd.f32 %v3127_v49, %v2958_v52  ;;  %v2791_v36 = vpop.f32.mrf.mxu1  ;;  %v4623_v52 = vmul.f32 %v10165_v39, %v11891_v45  ;;  %v6940_v45 = vld [vmem:[#allocation2 + $0x164] sm:$0xf0] }
 0x233   :  { %v10203_v37 = vadd.f32 %v2791_v36, %v2622_v62 }
 0x234   :  { %4727 = vrot.lane.b32.xlu2 %v10195_v15, %s7455_s4  ;;  %4143 = vrot.lane.b32.xlu0 %v10193_v56, %s7455_s4 }
 0x236   :  { %v3129_v46 = vpop.f32.mrf.mxu3 }
 0x239   :  { %v2960_v28 = vpop.f32.mrf.mxu2 }
 0x23a   :  { %v10205_v14 = vadd.f32 %v3129_v46, %v2960_v28  ;;  %v4042_v28 = vmul.f32 %v10224_v41, %v9867_v26  ;;  %v3911_v26 = vld [vmem:[#allocation9 + $0x68] sm:$0xff] }
 0x23b   :  { %v4704_v20 = vpop.permute.xlu2 %4703 }
 0x23c   :  { %4729 = vrot.lane.b32.xlu1 %v10205_v14, %s7455_s4  ;;  %4145 = vrot.lane.b32.xlu2 %v10203_v37, %s7455_s4  ;;  %v4817_v21 = vmul.f32 %v4704_v20, %v10201_v1  ;;  %v7004_v20 = vld [vmem:[#allocation8 + $0x16c] sm:$0xf] }
 0x23d   :  { %2659 = vmatmul.bf16.gmra.mxu0 %v10207_v17  ;;  %2997 = vmatmul.bf16.gmra.mxu2 %v10207_v17 }
 0x23e   :  { %v4881_v57 = vadd.f32 %v4817_v21, %v4625_v63  ;;  %2828 = vmatmul.bf16.gmra.mxu1 %v10219_v44  ;;  %v6827_v63 = vld [vmem:[#allocation8 + $0x178] sm:$0xf0] }
 0x23f   :  { %3166 = vmatmul.bf16.gmra.mxu3 %v10219_v44  ;;  %v6830_v39 = vor.u32 %v7004_v20, %v6827_v63 }
 0x240   :  { %v4949_v12 = vmul.f32 0.088388346, %v4881_v57 }
 0x241   :  { %3733 = vmatpush.bf16.msrb.mxu3 %v6830_v39 }
 0x242   :  { %v5080_v31 = vpack.c.bf16 %v4949_v12, %v4949_v12  ;;  %v2794_v53 = vpop.f32.mrf.mxu1 }
 0x243   :  { %v4700_v42 = vpop.permute.xlu1 %4699  ;;  %v4122_v62 = vpop.permute.xlu2 %4121 }
 0x244   :  { %v4815_v49 = vmul.f32 %v4700_v42, %v10167_v51  ;;  %v2625_v36 = vpop.f32.mrf.mxu0  ;;  %5144 = vst [vmem:[#allocation12 + $0xe4] sm:$0xf] %v5080_v31  ;;  %v4234_v46 = vmul.f32 %v4122_v62, %v10226_v18  ;;  %v6561_v42 = vld [vmem:[#allocation2 + $0x160] sm:$0xf]  ;;  %v3975_v62 = vld [vmem:[#allocation11 + $0x68] sm:$0xff] }
 0x245   :  { %v10234_v57 = vadd.f32 %v2794_v53, %v2625_v36  ;;  %v11894_v53 = vld [vmem:[#allocation58_spill] sm:$0xff] }
 0x246   :  { %v4879_v21 = vadd.f32 %v4815_v49, %v4623_v52  ;;  %v4298_v12 = vadd.f32 %v4234_v46, %v4042_v28  ;;  %v10238_v49 = vor.u32 %v6940_v45, %v6561_v42  ;;  %v11893_v28 = vld [vmem:[#allocation53_spill] sm:$0xff]  ;;  %v4624_v11 = vmul.f32 %v3911_v26, %v11894_v53  ;;  %v10248_v45 = vld [vmem:[#allocation11 + $0x88] sm:$0xff] }
 0x247   :  { %4147 = vrot.lane.b32.xlu1 %v10234_v57, %s7455_s4  ;;  %v4040_v46 = vmul.f32 %v3911_v26, %v11893_v28  ;;  %v6966_v26 = vld [vmem:[#allocation8 + $0x34] sm:$0xf0]  ;;  %v10254_v28 = vld [vmem:[#allocation9 + $0x88] sm:$0xff] }
 0x248   :  { %v4947_v51 = vmul.f32 0.088388346, %v4879_v21  ;;  %v4366_v31 = vmul.f32 0.088388346, %v4298_v12  ;;  %11892 = vst [vmem:[#allocation62_spill] sm:$0xff] %v10238_v49  ;;  %v3132_v39 = vpop.f32.mrf.mxu3  ;;  %v10243_v12 = vor.u32 %v6939_v25, %v6563_v29 }
 0x249   :  { %v6998_v29 = vld [vmem:[#allocation8 + $0x134] sm:$0xf0] }
 0x24a   :  { %v5078_v44 = vpack.c.bf16 %v4947_v51, %v4947_v51  ;;  %v4497_v17 = vpack.c.bf16 %v4366_v31, %v4366_v31  ;;  %v4702_v36 = vpop.permute.xlu0 %4701  ;;  %v2963_v21 = vpop.f32.mrf.mxu2  ;;  %11895 = vst [vmem:[#allocation17_spill] sm:$0xff] %v10243_v12 }
 0x24b   :  { %v4118_v52 = vpop.permute.xlu1 %4117  ;;  %v4816_v63 = vmul.f32 %v4702_v36, %v3975_v62  ;;  %v10245_v51 = vadd.f32 %v3132_v39, %v2963_v21  ;;  %v2796_v21 = vpop.f32.mrf.mxu1 }
 0x24c   :  { %5142 = vst [vmem:[#allocation12 + $0xc4] sm:$0xf] %v5078_v44  ;;  %v4232_v20 = vmul.f32 %v4118_v52, %v3975_v62  ;;  %v6665_v44 = vld [vmem:[#allocation8 + $0x28] sm:$0xf]  ;;  %v2627_v36 = vpop.f32.mrf.mxu0 }
 0x24d   :  { %4561 = vst [vmem:[#allocation12 + $0xf0] sm:$0xf] %v4497_v17  ;;  %2664 = vmatmul.bf16.gmra.mxu0 %v10238_v49  ;;  %3002 = vmatmul.bf16.gmra.mxu2 %v10238_v49  ;;  %v4880_v42 = vadd.f32 %v4816_v63, %v4624_v11  ;;  %v6793_v62 = vld [vmem:[#allocation8 + $0x128] sm:$0xf]  ;;  %v6666_v25 = vor.u32 %v6966_v26, %v6665_v44 }
 0x24e   :  { %v4296_v31 = vadd.f32 %v4232_v20, %v4040_v46  ;;  %2833 = vmatmul.bf16.gmra.mxu1 %v10243_v12  ;;  %4731 = vrot.lane.b32.xlu0 %v10245_v51, %s7455_s4  ;;  %v6794_v53 = vor.u32 %v6998_v29, %v6793_v62  ;;  %v4628_v11 = vmul.f32 %v10254_v28, %v9994_v19 }
 0x24f   :  { %3171 = vmatmul.bf16.gmra.mxu3 %v10243_v12  ;;  %v4948_v52 = vmul.f32 0.088388346, %v4880_v42  ;;  %v4710_v46 = vpop.permute.xlu2 %4709  ;;  %3228 = vmatpush.bf16.msrb.mxu0 %v6666_v25  ;;  %v4041_v42 = vmul.f32 %v10209_v32, %v9762_v2  ;;  %v10264_v19 = vadd.f32 %v2796_v21, %v2627_v36  ;;  %v6569_v25 = vld [vmem:[#allocation2 + $0x170] sm:$0xf] }
 0x250   :  { %v4364_v17 = vmul.f32 0.088388346, %v4296_v31  ;;  %v4820_v39 = vmul.f32 %v4710_v46, %v10248_v45  ;;  %3397 = vmatpush.bf16.msrb.mxu1 %v6794_v53  ;;  %v3134_v62 = vpop.f32.mrf.mxu3  ;;  %v10268_v46 = vld [vmem:[#allocation9 + $0x90] sm:$0xff] }
 0x251   :  { %v5079_v63 = vpack.c.bf16 %v4948_v52, %v4948_v52  ;;  %v6942_v53 = vld [vmem:[#allocation2 + $0x174] sm:$0xf0]  ;;  %v4045_v21 = vmul.f32 %v10268_v46, %v10045_v16 }
 0x252   :  { %v4495_v20 = vpack.c.bf16 %v4364_v17, %v4364_v17  ;;  %v4120_v31 = vpop.permute.xlu0 %4119  ;;  %v4884_v44 = vadd.f32 %v4820_v39, %v4628_v11  ;;  %v2965_v12 = vpop.f32.mrf.mxu2 }
 0x253   :  { %v4233_v26 = vmul.f32 %v4120_v31, %v10201_v1  ;;  %5143 = vst [vmem:[#allocation12 + $0xd4] sm:$0xf] %v5079_v63  ;;  %v10262_v29 = vadd.f32 %v3134_v62, %v2965_v12  ;;  %v10272_v1 = vld [vmem:[#allocation11 + $0x90] sm:$0xff]  ;;  %v6571_v63 = vld [vmem:[#allocation2 + $0x178] sm:$0xf0] }
 0x254   :  { %4559 = vst [vmem:[#allocation12 + $0xd0] sm:$0xf] %v4495_v20  ;;  %v4952_v17 = vmul.f32 0.088388346, %v4884_v44  ;;  %v6941_v20 = vld [vmem:[#allocation2 + $0x174] sm:$0xf]  ;;  %v4626_v44 = vmul.f32 %v10224_v41, %v9857_v61 }
 0x255   :  { %v4297_v52 = vadd.f32 %v4233_v26, %v4041_v42  ;;  %4733 = vrot.lane.b32.xlu2 %v10262_v29, %s7455_s4  ;;  %v10277_v42 = vor.u32 %v6942_v53, %v6569_v25  ;;  %v10292_v25 = vld [vmem:[#allocation11 + $0xa0] sm:$0xff] }
 0x256   :  { %v5083_v2 = vpack.c.bf16 %v4952_v17, %v4952_v17  ;;  %4149 = vrot.lane.b32.xlu0 %v10264_v19, %s7455_s4  ;;  %v3914_v53 = vld [vmem:[#allocation9 + $0x80] sm:$0xff] }
 0x257   :  { %v4365_v32 = vmul.f32 0.088388346, %v4297_v52  ;;  %11896 = vst [vmem:[#allocation18_spill] sm:$0xff] %v10277_v42  ;;  %v10283_v52 = vor.u32 %v6941_v20, %v6571_v63  ;;  %v3978_v20 = vld [vmem:[#allocation11 + $0x80] sm:$0xff] }
 0x258   :  { %5147 = vst [vmem:[#allocation12 + $0x114] sm:$0xf] %v5083_v2  ;;  %v4128_v11 = vpop.permute.xlu2 %4127  ;;  %v10294_v63 = vld [vmem:[#allocation9 + $0xa0] sm:$0xff] }
 0x259   :  { %v4496_v12 = vpack.c.bf16 %v4365_v32, %v4365_v32  ;;  %v2630_v36 = vpop.f32.mrf.mxu0  ;;  %v4706_v39 = vpop.permute.xlu1 %4705  ;;  %v4237_v31 = vmul.f32 %v4128_v11, %v10272_v1  ;;  %11897 = vst [vmem:[#allocation78_spill] sm:$0xff] %v10283_v52 }
 0x25a   :  { %v2799_v26 = vpop.f32.mrf.mxu1  ;;  %v4818_v62 = vmul.f32 %v4706_v39, %v10226_v18 }
 0x25b   :  { %4560 = vst [vmem:[#allocation12 + $0xe0] sm:$0xf] %v4496_v12  ;;  %v4301_v17 = vadd.f32 %v4237_v31, %v4045_v21  ;;  %v10285_v2 = vadd.f32 %v2799_v26, %v2630_v36  ;;  %v4631_v31 = vmul.f32 %v10294_v63, %v10098_v22  ;;  %v6577_v22 = vld [vmem:[#allocation2 + $0x180] sm:$0xf] }
 0x25c   :  { %v4882_v16 = vadd.f32 %v4818_v62, %v4626_v44 }
 0x25d   :  { %2669 = vmatmul.bf16.gmra.mxu0 %v10277_v42  ;;  %3007 = vmatmul.bf16.gmra.mxu2 %v10277_v42  ;;  %v4369_v32 = vmul.f32 0.088388346, %v4301_v17  ;;  %v4043_v17 = vmul.f32 %v3914_v53, %v9900_v33 }
 0x25e   :  { %2838 = vmatmul.bf16.gmra.mxu1 %v10283_v52  ;;  %v4950_v61 = vmul.f32 0.088388346, %v4882_v16  ;;  %4151 = vrot.lane.b32.xlu2 %v10285_v2, %s7455_s4 }
 0x25f   :  { %3176 = vmatmul.bf16.gmra.mxu3 %v10283_v52  ;;  %v4500_v41 = vpack.c.bf16 %v4369_v32, %v4369_v32  ;;  %v2968_v18 = vpop.f32.mrf.mxu2 }
 0x260   :  { %v5081_v12 = vpack.c.bf16 %v4950_v61, %v4950_v61  ;;  %v3137_v36 = vpop.f32.mrf.mxu3  ;;  %v4716_v39 = vpop.permute.xlu2 %4715  ;;  %v4627_v61 = vmul.f32 %v3914_v53, %v9955_v35 }
 0x261   :  { %v2632_v11 = vpop.f32.mrf.mxu0  ;;  %4564 = vst [vmem:[#allocation12 + $0x120] sm:$0xf] %v4500_v41  ;;  %v10296_v21 = vadd.f32 %v3137_v36, %v2968_v18  ;;  %v4823_v62 = vmul.f32 %v4716_v39, %v10292_v25  ;;  %v6944_v39 = vld [vmem:[#allocation2 + $0x184] sm:$0xf0] }
 0x262   :  { %5145 = vst [vmem:[#allocation12 + $0xf4] sm:$0xf] %v5081_v12  ;;  %v2801_v44 = vpop.f32.mrf.mxu1  ;;  %v4124_v26 = vpop.permute.xlu1 %4123  ;;  %v10305_v12 = vld [vmem:[#allocation9 + $0xa8] sm:$0xff] }
 0x263   :  { %4735 = vrot.lane.b32.xlu1 %v10296_v21, %s7455_s4  ;;  %v4235_v16 = vmul.f32 %v4124_v26, %v3978_v20  ;;  %v4708_v32 = vpop.permute.xlu0 %4707  ;;  %v4887_v18 = vadd.f32 %v4823_v62, %v4631_v31  ;;  %v10309_v35 = vadd.f32 %v2801_v44, %v2632_v11  ;;  %v4048_v62 = vmul.f32 %v10305_v12, %v10125_v24 }
 0x264   :  { %v4819_v41 = vmul.f32 %v4708_v32, %v3978_v20  ;;  %v10315_v32 = vor.u32 %v6944_v39, %v6577_v22  ;;  %v4044_v24 = vmul.f32 %v10254_v28, %v10026_v55  ;;  %v4629_v44 = vmul.f32 %v10268_v46, %v10029_v0  ;;  %v3981_v0 = vld [vmem:[#allocation11 + $0x98] sm:$0xff] }
 0x265   :  { %v4299_v36 = vadd.f32 %v4235_v16, %v4043_v17  ;;  %v4955_v42 = vmul.f32 0.088388346, %v4887_v18  ;;  %v3917_v46 = vld [vmem:[#allocation9 + $0x98] sm:$0xff] }
 0x266   :  { %v4883_v52 = vadd.f32 %v4819_v41, %v4627_v61 }
 0x267   :  { %v4367_v49 = vmul.f32 0.088388346, %v4299_v36  ;;  %v2970_v10 = vpop.f32.mrf.mxu2  ;;  %v5086_v26 = vpack.c.bf16 %v4955_v42, %v4955_v42 }
 0x268   :  { %v4951_v33 = vmul.f32 0.088388346, %v4883_v52  ;;  %v3139_v47 = vpop.f32.mrf.mxu3 }
 0x269   :  { %v2635_v34 = vpop.f32.mrf.mxu0  ;;  %v4498_v53 = vpack.c.bf16 %v4367_v49, %v4367_v49  ;;  %v10311_v20 = vadd.f32 %v3139_v47, %v2970_v10  ;;  %v4134_v31 = vpop.permute.xlu2 %4133  ;;  %5150 = vst [vmem:[#allocation12 + $0x144] sm:$0xf] %v5086_v26  ;;  %v10322_v47 = vor.u32 %v6943_v13, %v6579_v9 }
 0x26a   :  { %v5082_v17 = vpack.c.bf16 %v4951_v33, %v4951_v33  ;;  %v2804_v16 = vpop.f32.mrf.mxu1  ;;  %v4240_v52 = vmul.f32 %v4134_v31, %v10307_v3  ;;  %v10338_v31 = vld [vmem:[#allocation11 + $0xb8] sm:$0xff] }
 0x26b   :  { %4562 = vst [vmem:[#allocation12 + $0x100] sm:$0xf] %v4498_v53  ;;  %4737 = vrot.lane.b32.xlu0 %v10311_v20, %s7455_s4  ;;  %4153 = vrot.lane.b32.xlu1 %v10309_v35, %s7455_s4  ;;  %v4126_v10 = vpop.permute.xlu0 %4125 }
 0x26c   :  { %5146 = vst [vmem:[#allocation12 + $0x104] sm:$0xf] %v5082_v17  ;;  %v4236_v49 = vmul.f32 %v4126_v10, %v10248_v45  ;;  %v4712_v42 = vpop.permute.xlu1 %4711  ;;  %v4304_v11 = vadd.f32 %v4240_v52, %v4048_v62  ;;  %v10334_v45 = vadd.f32 %v2804_v16, %v2635_v34  ;;  %v4630_v34 = vmul.f32 %v3917_v46, %v10069_v30  ;;  %v10345_v17 = vld [vmem:[#allocation9 + $0xb8] sm:$0xff] }
 0x26d   :  { %2674 = vmatmul.bf16.gmra.mxu0 %v10315_v32  ;;  %3012 = vmatmul.bf16.gmra.mxu2 %v10315_v32  ;;  %v4821_v9 = vmul.f32 %v4712_v42, %v10272_v1  ;;  %v6946_v30 = vld [vmem:[#allocation2 + $0x194] sm:$0xf0] }
 0x26e   :  { %2843 = vmatmul.bf16.gmra.mxu1 %v10322_v47  ;;  %v4300_v13 = vadd.f32 %v4236_v49, %v4044_v24  ;;  %v4372_v55 = vmul.f32 0.088388346, %v4304_v11  ;;  %v4046_v24 = vmul.f32 %v3917_v46, %v10082_v7  ;;  %v4634_v49 = vmul.f32 %v10345_v17, %v10144_v43 }
 0x26f   :  { %3181 = vmatmul.bf16.gmra.mxu3 %v10322_v47  ;;  %v2973_v28 = vpop.f32.mrf.mxu2  ;;  %v4885_v61 = vadd.f32 %v4821_v9, %v4629_v44 }
 0x270   :  { %v4368_v41 = vmul.f32 0.088388346, %v4300_v13  ;;  %v4503_v22 = vpack.c.bf16 %v4372_v55, %v4372_v55  ;;  %v6585_v55 = vld [vmem:[#allocation2 + $0x190] sm:$0xf] }
 0x271   :  { %v3142_v18 = vpop.f32.mrf.mxu3  ;;  %v2637_v36 = vpop.f32.mrf.mxu0  ;;  %v4953_v33 = vmul.f32 0.088388346, %v4885_v61 }
 0x272   :  { %v10336_v39 = vadd.f32 %v3142_v18, %v2973_v28  ;;  %v4499_v26 = vpack.c.bf16 %v4368_v41, %v4368_v41  ;;  %v2806_v53 = vpop.f32.mrf.mxu1  ;;  %4567 = vst [vmem:[#allocation12 + $0x150] sm:$0xf] %v4503_v22  ;;  %v6945_v18 = vld [vmem:[#allocation2 + $0x194] sm:$0xf]  ;;  %v6587_v22 = vld [vmem:[#allocation2 + $0x198] sm:$0xf0] }
 0x273   :  { %4155 = vrot.lane.b32.xlu0 %v10334_v45, %s7455_s4  ;;  %v5084_v1 = vpack.c.bf16 %v4953_v33, %v4953_v33  ;;  %v4714_v62 = vpop.permute.xlu0 %4713 }
 0x274   :  { %4739 = vrot.lane.b32.xlu2 %v10336_v39, %s7455_s4  ;;  %4563 = vst [vmem:[#allocation12 + $0x110] sm:$0xf] %v4499_v26  ;;  %v4130_v16 = vpop.permute.xlu1 %4129  ;;  %v4822_v52 = vmul.f32 %v4714_v62, %v3981_v0  ;;  %v10351_v26 = vadd.f32 %v2806_v53, %v2637_v36  ;;  %v10357_v62 = vor.u32 %v6946_v30, %v6585_v55  ;;  %v7000_v55 = vld [vmem:[#allocation8 + $0x14c] sm:$0xf] }
 0x275   :  { %5148 = vst [vmem:[#allocation12 + $0x124] sm:$0xf] %v5084_v1  ;;  %v4238_v42 = vmul.f32 %v4130_v16, %v3981_v0  ;;  %v10355_v0 = vld [vmem:[#allocation9 + $0xc0] sm:$0xff]  ;;  %v10367_v53 = vor.u32 %v6945_v18, %v6587_v22  ;;  %v6811_v18 = vld [vmem:[#allocation8 + $0x158] sm:$0xf0] }
 0x276   :  { %v4722_v10 = vpop.permute.xlu2 %4721  ;;  %v4886_v44 = vadd.f32 %v4822_v52, %v4630_v34  ;;  %v10359_v16 = vld [vmem:[#allocation11 + $0xc0] sm:$0xff]  ;;  %v4047_v52 = vmul.f32 %v10294_v63, %v10105_v48 }
 0x277   :  { %v4826_v11 = vmul.f32 %v4722_v10, %v10338_v31  ;;  %v2975_v9 = vpop.f32.mrf.mxu2  ;;  %v4302_v13 = vadd.f32 %v4238_v42, %v4046_v24  ;;  %v4632_v24 = vmul.f32 %v10305_v12, %v10113_v23 }
 0x278   :  { %v4954_v33 = vmul.f32 0.088388346, %v4886_v44  ;;  %v6968_v44 = vld [vmem:[#allocation8 + $0x4c] sm:$0xf] }
 0x279   :  { %v4890_v28 = vadd.f32 %v4826_v11, %v4634_v49  ;;  %v3144_v61 = vpop.f32.mrf.mxu3  ;;  %v2640_v41 = vpop.f32.mrf.mxu0  ;;  %v4370_v43 = vmul.f32 0.088388346, %v4302_v13  ;;  %v4051_v11 = vmul.f32 %v10355_v0, %v10161_v54  ;;  %v6683_v13 = vld [vmem:[#allocation8 + $0x58] sm:$0xf0] }
 0x27a   :  { %v10353_v7 = vadd.f32 %v3144_v61, %v2975_v9  ;;  %v2809_v1 = vpop.f32.mrf.mxu1  ;;  %v5085_v34 = vpack.c.bf16 %v4954_v33, %v4954_v33  ;;  %v6686_v61 = vor.u32 %v6968_v44, %v6683_v13  ;;  %v6948_v13 = vld [vmem:[#allocation2 + $0x1a4] sm:$0xf0] }
 0x27b   :  { %v4958_v46 = vmul.f32 0.088388346, %v4890_v28  ;;  %v4501_v36 = vpack.c.bf16 %v4370_v43, %v4370_v43  ;;  %v4132_v10 = vpop.permute.xlu0 %4131  ;;  %v6814_v43 = vor.u32 %v7000_v55, %v6811_v18  ;;  %v6595_v18 = vld [vmem:[#allocation2 + $0x1a8] sm:$0xf0] }
 0x27c   :  { %4741 = vrot.lane.b32.xlu1 %v10353_v7, %s7455_s4  ;;  %4157 = vrot.lane.b32.xlu2 %v10351_v26, %s7455_s4  ;;  %5149 = vst [vmem:[#allocation12 + $0x134] sm:$0xf] %v5085_v34  ;;  %v4239_v48 = vmul.f32 %v4132_v10, %v10292_v25  ;;  %v3920_v10 = vld [vmem:[#allocation9 + $0xb0] sm:$0xff] }
 0x27d   :  { %2679 = vmatmul.bf16.gmra.mxu0 %v10357_v62  ;;  %3017 = vmatmul.bf16.gmra.mxu2 %v10357_v62  ;;  %v5089_v49 = vpack.c.bf16 %v4958_v46, %v4958_v46  ;;  %4565 = vst [vmem:[#allocation12 + $0x130] sm:$0xf] %v4501_v36  ;;  %v10380_v46 = vadd.f32 %v2809_v1, %v2640_v41 }
 0x27e   :  { %v4718_v63 = vpop.permute.xlu1 %4717  ;;  %v4140_v42 = vpop.permute.xlu2 %4139  ;;  %2848 = vmatmul.bf16.gmra.mxu1 %v10367_v53  ;;  %v4303_v9 = vadd.f32 %v4239_v48, %v4047_v52  ;;  %3565 = vmatpush.bf16.msrb.mxu2 %v6686_v61  ;;  %v3984_v48 = vld [vmem:[#allocation11 + $0xb0] sm:$0xff]  ;;  %v6947_v61 = vld [vmem:[#allocation2 + $0x1a4] sm:$0xf] }
 0x27f   :  { %3186 = vmatmul.bf16.gmra.mxu3 %v10367_v53  ;;  %v4824_v23 = vmul.f32 %v4718_v63, %v10307_v3  ;;  %v4243_v12 = vmul.f32 %v4140_v42, %v10359_v16  ;;  %5153 = vst [vmem:[#allocation12 + $0x174] sm:$0xf] %v5089_v49  ;;  %v4049_v42 = vmul.f32 %v3920_v10, %v10131_v58 }
 0x280   :  { %v2978_v25 = vpop.f32.mrf.mxu2  ;;  %v4371_v33 = vmul.f32 0.088388346, %v4303_v9  ;;  %3734 = vmatpush.bf16.msrb.mxu3 %v6814_v43  ;;  %v6593_v9 = vld [vmem:[#allocation2 + $0x1a0] sm:$0xf] }
 0x281   :  { %v4888_v30 = vadd.f32 %v4824_v23, %v4632_v24  ;;  %v4307_v28 = vadd.f32 %v4243_v12, %v4051_v11  ;;  %v3147_v54 = vpop.f32.mrf.mxu3  ;;  %v2642_v22 = vpop.f32.mrf.mxu0  ;;  %v4633_v11 = vmul.f32 %v3920_v10, %v10133_v8  ;;  %v10402_v10 = vor.u32 %v6947_v61, %v6595_v18 }
 0x282   :  { %v10382_v34 = vadd.f32 %v3147_v54, %v2978_v25  ;;  %v2811_v52 = vpop.f32.mrf.mxu1  ;;  %v4502_v49 = vpack.c.bf16 %v4371_v33, %v4371_v33 }
 0x283   :  { %v4956_v3 = vmul.f32 0.088388346, %v4888_v30  ;;  %v4375_v36 = vmul.f32 0.088388346, %v4307_v28  ;;  %v10390_v54 = vadd.f32 %v2811_v52, %v2642_v22  ;;  %11898 = vst [vmem:[#allocation79_spill] sm:$0xff] %v10402_v10  ;;  %v4050_v22 = vmul.f32 %v10345_v17, %v10142_v50  ;;  %v10406_v52 = vld [vmem:[#allocation9 + $0xd0] sm:$0xff] }
 0x284   :  { %4159 = vrot.lane.b32.xlu1 %v10380_v46, %s7455_s4  ;;  %4743 = vrot.lane.b32.xlu0 %v10382_v34, %s7455_s4  ;;  %4566 = vst [vmem:[#allocation12 + $0x140] sm:$0xf] %v4502_v49  ;;  %v6649_v17 = vld [vmem:[#allocation8 + $0x8] sm:$0xf] }
 0x285   :  { %v5087_v24 = vpack.c.bf16 %v4956_v3, %v4956_v3  ;;  %v4506_v41 = vpack.c.bf16 %v4375_v36, %v4375_v36  ;;  %v10394_v3 = vor.u32 %v6948_v13, %v6593_v9  ;;  %v10396_v36 = vld [vmem:[#allocation11 + $0xd0] sm:$0xff] }
 0x286   :  { %v4136_v1 = vpop.permute.xlu1 %4135  ;;  %v4720_v63 = vpop.permute.xlu0 %4719 }
 0x287   :  { %5151 = vst [vmem:[#allocation12 + $0x154] sm:$0xf] %v5087_v24  ;;  %v4241_v23 = vmul.f32 %v4136_v1, %v3984_v48  ;;  %v4825_v12 = vmul.f32 %v4720_v63, %v3984_v48  ;;  %v4637_v1 = vmul.f32 %v10406_v52, %v10195_v15 }
 0x288   :  { %4570 = vst [vmem:[#allocation12 + $0x180] sm:$0xf] %v4506_v41  ;;  %v2980_v44 = vpop.f32.mrf.mxu2 }
 0x289   :  { %v4305_v55 = vadd.f32 %v4241_v23, %v4049_v42  ;;  %v4889_v25 = vadd.f32 %v4825_v12, %v4633_v11  ;;  %v3149_v30 = vpop.f32.mrf.mxu3  ;;  %v2645_v28 = vpop.f32.mrf.mxu0  ;;  %v6962_v42 = vld [vmem:[#allocation8 + $0x14] sm:$0xf0]  ;;  %v6777_v23 = vld [vmem:[#allocation8 + $0x108] sm:$0xf] }
 0x28a   :  { %v10392_v33 = vadd.f32 %v3149_v30, %v2980_v44  ;;  %v6650_v11 = vor.u32 %v6962_v42, %v6649_v17  ;;  %v6994_v12 = vld [vmem:[#allocation8 + $0x114] sm:$0xf0]  ;;  %v6601_v17 = vld [vmem:[#allocation2 + $0x1b0] sm:$0xf] }
 0x28b   :  { %v4373_v58 = vmul.f32 0.088388346, %v4305_v55  ;;  %v4957_v43 = vmul.f32 0.088388346, %v4889_v25  ;;  %v2814_v8 = vpop.f32.mrf.mxu1  ;;  %v6778_v55 = vor.u32 %v6994_v12, %v6777_v23  ;;  %v6950_v42 = vld [vmem:[#allocation2 + $0x1b4] sm:$0xf0] }
 0x28c   :  { %4745 = vrot.lane.b32.xlu2 %v10392_v33, %s7455_s4  ;;  %4161 = vrot.lane.b32.xlu0 %v10390_v54, %s7455_s4  ;;  %v10416_v30 = vadd.f32 %v2814_v8, %v2645_v28 }
 0x28d   :  { %v4504_v49 = vpack.c.bf16 %v4373_v58, %v4373_v58  ;;  %2684 = vmatmul.bf16.gmra.mxu0 %v10394_v3  ;;  %3022 = vmatmul.bf16.gmra.mxu2 %v10394_v3  ;;  %v5088_v48 = vpack.c.bf16 %v4957_v43, %v4957_v43 }
 0x28e   :  { %v4728_v24 = vpop.permute.xlu2 %4727  ;;  %v4138_v41 = vpop.permute.xlu0 %4137  ;;  %2853 = vmatmul.bf16.gmra.mxu1 %v10402_v10  ;;  %3229 = vmatpush.bf16.msrb.mxu0 %v6650_v11 }
 0x28f   :  { %3191 = vmatmul.bf16.gmra.mxu3 %v10402_v10  ;;  %4568 = vst [vmem:[#allocation12 + $0x160] sm:$0xf] %v4504_v49  ;;  %v4829_v63 = vmul.f32 %v4728_v24, %v10396_v36  ;;  %v4242_v50 = vmul.f32 %v4138_v41, %v10338_v31  ;;  %3398 = vmatpush.bf16.msrb.mxu1 %v6778_v55  ;;  %v10420_v31 = vld [vmem:[#allocation9 + $0xd8] sm:$0xff]  ;;  %v3923_v55 = vld [vmem:[#allocation9 + $0xc8] sm:$0xff] }
 0x290   :  { %5152 = vst [vmem:[#allocation12 + $0x164] sm:$0xf] %v5088_v48  ;;  %v2983_v44 = vpop.f32.mrf.mxu2  ;;  %v10422_v49 = vld [vmem:[#allocation11 + $0xd8] sm:$0xff]  ;;  %v4635_v24 = vmul.f32 %v10355_v0, %v10163_v5  ;;  %v4054_v41 = vmul.f32 %v10420_v31, %v10203_v37 }
 0x291   :  { %v4893_v9 = vadd.f32 %v4829_v63, %v4637_v1  ;;  %v4306_v13 = vadd.f32 %v4242_v50, %v4050_v22  ;;  %v2647_v25 = vpop.f32.mrf.mxu0 }
 0x292   :  { %v3152_v15 = vpop.f32.mrf.mxu3 }
 0x293   :  { %v10418_v61 = vadd.f32 %v3152_v15, %v2983_v44  ;;  %v4961_v18 = vmul.f32 0.088388346, %v4893_v9  ;;  %v4374_v58 = vmul.f32 0.088388346, %v4306_v13  ;;  %v2816_v43 = vpop.f32.mrf.mxu1  ;;  %v6949_v9 = vld [vmem:[#allocation2 + $0x1b4] sm:$0xf] }
 0x294   :  { %4163 = vrot.lane.b32.xlu2 %v10416_v30, %s7455_s4  ;;  %v6603_v13 = vld [vmem:[#allocation2 + $0x1b8] sm:$0xf0]  ;;  %v10434_v5 = vadd.f32 %v2816_v43, %v2647_v25  ;;  %v4052_v25 = vmul.f32 %v3923_v55, %v10177_v38 }
 0x295   :  { %4747 = vrot.lane.b32.xlu1 %v10418_v61, %s7455_s4  ;;  %v5092_v22 = vpack.c.bf16 %v4961_v18, %v4961_v18  ;;  %v4505_v48 = vpack.c.bf16 %v4374_v58, %v4374_v58  ;;  %v10438_v18 = vor.u32 %v6950_v42, %v6601_v17  ;;  %v3987_v58 = vld [vmem:[#allocation11 + $0xc8] sm:$0xff] }
 0x296   :  { %v4724_v28 = vpop.permute.xlu1 %4723  ;;  %v4146_v8 = vpop.permute.xlu2 %4145 }
 0x297   :  { %5156 = vst [vmem:[#allocation12 + $0x1a4] sm:$0xf] %v5092_v22  ;;  %v4827_v1 = vmul.f32 %v4724_v28, %v10359_v16  ;;  %v4246_v63 = vmul.f32 %v4146_v8, %v10422_v49  ;;  %v10444_v22 = vor.u32 %v6949_v9, %v6603_v13 }
 0x298   :  { %4569 = vst [vmem:[#allocation12 + $0x170] sm:$0xf] %v4505_v48  ;;  %v2985_v50 = vpop.f32.mrf.mxu2 }
 0x299   :  { %v4891_v11 = vadd.f32 %v4827_v1, %v4635_v24  ;;  %v4310_v23 = vadd.f32 %v4246_v63, %v4054_v41  ;;  %11899 = vst [vmem:[#allocation68_spill] sm:$0xff] %v10438_v18  ;;  %v4636_v24 = vmul.f32 %v3923_v55, %v10179_v27 }
 0x29a   :  { %v3154_v12 = vpop.f32.mrf.mxu3  ;;  %v2650_v44 = vpop.f32.mrf.mxu0  ;;  %11900 = vst [vmem:[#allocation69_spill] sm:$0xff] %v10444_v22 }
 0x29b   :  { %v10436_v0 = vadd.f32 %v3154_v12, %v2985_v50  ;;  %v4959_v37 = vmul.f32 0.088388346, %v4891_v11  ;;  %v4378_v15 = vmul.f32 0.088388346, %v4310_v23  ;;  %v2819_v16 = vpop.f32.mrf.mxu1 }
 0x29c   :  { %v10452_v11 = vadd.f32 %v2819_v16, %v2650_v44 }
 0x29d   :  { %4749 = vrot.lane.b32.xlu0 %v10436_v0, %s7455_s4  ;;  %4165 = vrot.lane.b32.xlu1 %v10434_v5, %s7455_s4  ;;  %v5090_v48 = vpack.c.bf16 %v4959_v37, %v4959_v37  ;;  %v4509_v43 = vpack.c.bf16 %v4378_v15, %v4378_v15  ;;  %v4053_v15 = vmul.f32 %v10406_v52, %v10193_v56 }
 0x29e   :  { %2689 = vmatmul.bf16.gmra.mxu0 %v10438_v18  ;;  %3027 = vmatmul.bf16.gmra.mxu2 %v10438_v18  ;;  %v4142_v28 = vpop.permute.xlu1 %4141  ;;  %v4726_v8 = vpop.permute.xlu0 %4725 }
 0x29f   :  { %2858 = vmatmul.bf16.gmra.mxu1 %v10444_v22  ;;  %3196 = vmatmul.bf16.gmra.mxu3 %v10444_v22  ;;  %5154 = vst [vmem:[#allocation12 + $0x184] sm:$0xf] %v5090_v48  ;;  %v4244_v41 = vmul.f32 %v4142_v28, %v3987_v58  ;;  %v4828_v1 = vmul.f32 %v4726_v8, %v3987_v58  ;;  %v6609_v58 = vld [vmem:[#allocation2 + $0x1c0] sm:$0xf]  ;;  %v6952_v48 = vld [vmem:[#allocation2 + $0x1c4] sm:$0xf0] }
 0x2a0   :  { %4573 = vst [vmem:[#allocation12 + $0x1b0] sm:$0xf] %v4509_v43  ;;  %v2988_v63 = vpop.f32.mrf.mxu2  ;;  %v6951_v8 = vld [vmem:[#allocation2 + $0x1c4] sm:$0xf] }
 0x2a1   :  { %v4308_v50 = vadd.f32 %v4244_v41, %v4052_v25  ;;  %v4892_v38 = vadd.f32 %v4828_v1, %v4636_v24  ;;  %v6611_v24 = vld [vmem:[#allocation2 + $0x1c8] sm:$0xf0] }
 0x2a2   :  { %v3157_v17 = vpop.f32.mrf.mxu3  ;;  %v2652_v42 = vpop.f32.mrf.mxu0  ;;  %v10473_v56 = vor.u32 %v6951_v8, %v6611_v24  ;;  %v10497_v8 = vld [vmem:[#allocation9 + $0xf0] sm:$0xff] }
 0x2a3   :  { %v10454_v23 = vadd.f32 %v3157_v17, %v2988_v63  ;;  %v4376_v12 = vmul.f32 0.088388346, %v4308_v50  ;;  %v4960_v9 = vmul.f32 0.088388346, %v4892_v38  ;;  %v2821_v27 = vpop.f32.mrf.mxu1  ;;  %v10467_v38 = vor.u32 %v6952_v48, %v6609_v58 }
 0x2a4   :  { %v10463_v41 = vadd.f32 %v2821_v27, %v2652_v42  ;;  %11902 = vst [vmem:[#allocation76_spill] sm:$0xff] %v10473_v56  ;;  %v4638_v17 = vmul.f32 %v10420_v31, %v10205_v14  ;;  %v10481_v42 = vld [vmem:[#allocation11 + $0xe8] sm:$0xff] }
 0x2a5   :  { %4751 = vrot.lane.b32.xlu2 %v10454_v23, %s7455_s4  ;;  %4167 = vrot.lane.b32.xlu0 %v10452_v11, %s7455_s4  ;;  %v4507_v13 = vpack.c.bf16 %v4376_v12, %v4376_v12  ;;  %v5091_v55 = vpack.c.bf16 %v4960_v9, %v4960_v9  ;;  %11901 = vst [vmem:[#allocation75_spill] sm:$0xff] %v10467_v38  ;;  %v10484_v9 = vld [vmem:[#allocation9 + $0xe8] sm:$0xff] }
 0x2a6   :  { %v4144_v37 = vpop.permute.xlu0 %4143 }
 0x2a7   :  { %4571 = vst [vmem:[#allocation12 + $0x190] sm:$0xf] %v4507_v13  ;;  %v4245_v44 = vmul.f32 %v4144_v37, %v10396_v36  ;;  %v4640_v37 = vmul.f32 %v10484_v9, %v10262_v29  ;;  %v3926_v29 = vld [vmem:[#allocation9 + $0xe0] sm:$0xff] }
 0x2a8   :  { %5155 = vst [vmem:[#allocation12 + $0x194] sm:$0xf] %v5091_v55  ;;  %v2990_v16 = vpop.f32.mrf.mxu2 }
 0x2a9   :  { %v4309_v25 = vadd.f32 %v4245_v44, %v4053_v15 }
 0x2aa   :  { %v3159_v43 = vpop.f32.mrf.mxu3  ;;  %v2655_v28 = vpop.f32.mrf.mxu0 }
 0x2ab   :  { %v10465_v1 = vadd.f32 %v3159_v43, %v2990_v16  ;;  %v4377_v63 = vmul.f32 0.088388346, %v4309_v25  ;;  %v2824_v50 = vpop.f32.mrf.mxu1 }
 0x2ac   :  { %v10489_v31 = vadd.f32 %v2824_v50, %v2655_v28  ;;  %v6617_v28 = vld [vmem:[#allocation2 + $0x1d0] sm:$0xf] }
 0x2ad   :  { %4753 = vrot.lane.b32.xlu1 %v10465_v1, %s7455_s4  ;;  %4169 = vrot.lane.b32.xlu2 %v10463_v41, %s7455_s4  ;;  %v4508_v36 = vpack.c.bf16 %v4377_v63, %v4377_v63  ;;  %v10499_v50 = vld [vmem:[#allocation11 + $0xf0] sm:$0xff] }
 0x2ae   :  { %2694 = vmatmul.bf16.gmra.mxu0 %v10467_v38  ;;  %3032 = vmatmul.bf16.gmra.mxu2 %v10467_v38  ;;  %v4730_v52 = vpop.permute.xlu1 %4729 }
 0x2af   :  { %2863 = vmatmul.bf16.gmra.mxu1 %v10473_v56  ;;  %3201 = vmatmul.bf16.gmra.mxu3 %v10473_v56  ;;  %4572 = vst [vmem:[#allocation12 + $0x1a0] sm:$0xf] %v4508_v36  ;;  %v4830_v12 = vmul.f32 %v4730_v52, %v10422_v49  ;;  %v4734_v13 = vpop.permute.xlu2 %4733  ;;  %v6954_v36 = vld [vmem:[#allocation2 + $0x1d4] sm:$0xf0]  ;;  %v3990_v52 = vld [vmem:[#allocation11 + $0xe0] sm:$0xff] }
 0x2b0   :  { %v2993_v27 = vpop.f32.mrf.mxu2  ;;  %v4832_v14 = vmul.f32 %v4734_v13, %v10481_v42  ;;  %v6619_v13 = vld [vmem:[#allocation2 + $0x1d8] sm:$0xf0]  ;;  %v10509_v56 = vor.u32 %v6954_v36, %v6617_v28 }
 0x2b1   :  { %v4894_v55 = vadd.f32 %v4830_v12, %v4638_v17 }
 0x2b2   :  { %v3162_v15 = vpop.f32.mrf.mxu3  ;;  %v2657_v44 = vpop.f32.mrf.mxu0  ;;  %v4896_v25 = vadd.f32 %v4832_v14, %v4640_v37  ;;  %11903 = vst [vmem:[#allocation22_spill] sm:$0xff] %v10509_v56 }
 0x2b3   :  { %v10491_v16 = vadd.f32 %v3162_v15, %v2993_v27  ;;  %v4962_v58 = vmul.f32 0.088388346, %v4894_v55  ;;  %v2826_v48 = vpop.f32.mrf.mxu1  ;;  %v6953_v27 = vld [vmem:[#allocation2 + $0x1d4] sm:$0xf]  ;;  %v4055_v55 = vmul.f32 %v3926_v29, %v10234_v57 }
 0x2b4   :  { %v4964_v43 = vmul.f32 0.088388346, %v4896_v25  ;;  %v10502_v37 = vadd.f32 %v2826_v48, %v2657_v44  ;;  %v4057_v25 = vmul.f32 %v10497_v8, %v10285_v2  ;;  %v10515_v57 = vor.u32 %v6953_v27, %v6619_v13 }
 0x2b5   :  { %4171 = vrot.lane.b32.xlu1 %v10489_v31, %s7455_s4  ;;  %4755 = vrot.lane.b32.xlu0 %v10491_v16, %s7455_s4  ;;  %v5093_v49 = vpack.c.bf16 %v4962_v58, %v4962_v58 }
 0x2b6   :  { %v5095_v24 = vpack.c.bf16 %v4964_v43, %v4964_v43  ;;  %11904 = vst [vmem:[#allocation81_spill] sm:$0xff] %v10515_v57 }
 0x2b7   :  { %5157 = vst [vmem:[#allocation12 + $0x1b4] sm:$0xf] %v5093_v49 }
 0x2b8   :  { %v2995_v63 = vpop.f32.mrf.mxu2  ;;  %5159 = vst [vmem:[#allocation12 + $0x1d4] sm:$0xf] %v5095_v24  ;;  %v4152_v14 = vpop.permute.xlu2 %4151 }
 0x2b9   :  { %v4148_v58 = vpop.permute.xlu1 %4147  ;;  %v4249_v43 = vmul.f32 %v4152_v14, %v10499_v50 }
 0x2ba   :  { %v3164_v17 = vpop.f32.mrf.mxu3  ;;  %v2660_v12 = vpop.f32.mrf.mxu0  ;;  %v4247_v24 = vmul.f32 %v4148_v58, %v3990_v52 }
 0x2bb   :  { %v10504_v15 = vadd.f32 %v3164_v17, %v2995_v63  ;;  %v2829_v49 = vpop.f32.mrf.mxu1  ;;  %v4313_v44 = vadd.f32 %v4249_v43, %v4057_v25  ;;  %v4639_v25 = vmul.f32 %v3926_v29, %v10245_v51 }
 0x2bc   :  { %v4311_v2 = vadd.f32 %v4247_v24, %v4055_v55  ;;  %v10521_v38 = vadd.f32 %v2829_v49, %v2660_v12  ;;  %v6956_v12 = vld [vmem:[#allocation2 + $0x1e4] sm:$0xf0] }
 0x2bd   :  { %4757 = vrot.lane.b32.xlu2 %v10504_v15, %s7455_s4  ;;  %4173 = vrot.lane.b32.xlu0 %v10502_v37, %s7455_s4  ;;  %v4381_v48 = vmul.f32 0.088388346, %v4313_v44 }
 0x2be   :  { %2699 = vmatmul.bf16.gmra.mxu0 %v10509_v56  ;;  %3037 = vmatmul.bf16.gmra.mxu2 %v10509_v56  ;;  %v4379_v28 = vmul.f32 0.088388346, %v4311_v2  ;;  %v6625_v2 = vld [vmem:[#allocation2 + $0x1e0] sm:$0xf]  ;;  %v4056_v56 = vmul.f32 %v10484_v9, %v10264_v19 }
 0x2bf   :  { %2868 = vmatmul.bf16.gmra.mxu1 %v10515_v57  ;;  %3206 = vmatmul.bf16.gmra.mxu3 %v10515_v57  ;;  %v4512_v36 = vpack.c.bf16 %v4381_v48, %v4381_v48  ;;  %v6964_v48 = vld [vmem:[#allocation8 + $0x2c] sm:$0xf]  ;;  %v6795_v57 = vld [vmem:[#allocation8 + $0x138] sm:$0xf0]  ;;  %v10543_v19 = vld [vmem:[#allocation11 + $0x100] sm:$0xff] }
 0x2c0   :  { %v2998_v63 = vpop.f32.mrf.mxu2  ;;  %v4510_v58 = vpack.c.bf16 %v4379_v28, %v4379_v28  ;;  %v4732_v13 = vpop.permute.xlu0 %4731  ;;  %v6667_v28 = vld [vmem:[#allocation8 + $0x38] sm:$0xf0] }
 0x2c1   :  { %4576 = vst [vmem:[#allocation12 + $0x1e0] sm:$0xf] %v4512_v36  ;;  %v4831_v43 = vmul.f32 %v4732_v13, %v3990_v52  ;;  %v6955_v36 = vld [vmem:[#allocation2 + $0x1e4] sm:$0xf]  ;;  %v6627_v52 = vld [vmem:[#allocation2 + $0x1e8] sm:$0xf0]  ;;  %v6670_v13 = vor.u32 %v6964_v48, %v6667_v28 }
 0x2c2   :  { %v3167_v17 = vpop.f32.mrf.mxu3  ;;  %v2662_v14 = vpop.f32.mrf.mxu0  ;;  %4574 = vst [vmem:[#allocation12 + $0x1c0] sm:$0xf] %v4510_v58  ;;  %v10545_v9 = vor.u32 %v6955_v36, %v6627_v52  ;;  %v6960_v48 = vld [vmem:[#allocation8 + $0xc] sm:$0xf]  ;;  %v6651_v28 = vld [vmem:[#allocation8 + $0x18] sm:$0xf0] }
 0x2c3   :  { %v10523_v27 = vadd.f32 %v3167_v17, %v2998_v63  ;;  %v2831_v55 = vpop.f32.mrf.mxu1  ;;  %v4895_v24 = vadd.f32 %v4831_v43, %v4639_v25  ;;  %v6996_v63 = vld [vmem:[#allocation8 + $0x12c] sm:$0xf]  ;;  %3566 = vmatpush.bf16.msrb.mxu2 %v6670_v13  ;;  %v6654_v36 = vor.u32 %v6960_v48, %v6651_v28  ;;  %v6779_v13 = vld [vmem:[#allocation8 + $0x118] sm:$0xf0] }
 0x2c4   :  { %v10532_v22 = vadd.f32 %v2831_v55, %v2662_v14  ;;  %v6798_v18 = vor.u32 %v6996_v63, %v6795_v57  ;;  %11906 = vst [vmem:[#allocation74_spill] sm:$0xff] %v10545_v9  ;;  %v10549_v55 = vld [vmem:[#allocation9 + $0x100] sm:$0xff]  ;;  %v6992_v52 = vld [vmem:[#allocation8 + $0x10c] sm:$0xf] }
 0x2c5   :  { %4759 = vrot.lane.b32.xlu1 %v10523_v27, %s7455_s4  ;;  %4175 = vrot.lane.b32.xlu2 %v10521_v38, %s7455_s4  ;;  %v4963_v44 = vmul.f32 0.088388346, %v4895_v24  ;;  %v10536_v24 = vor.u32 %v6956_v12, %v6625_v2  ;;  %v4643_v57 = vmul.f32 %v10549_v55, %v10336_v39 }
 0x2c6   :  { %3735 = vmatpush.bf16.msrb.mxu3 %v6798_v18  ;;  %v10560_v18 = vld [vmem:[#allocation9 + $0x108] sm:$0xff] }
 0x2c7   :  { %v5094_v17 = vpack.c.bf16 %v4963_v44, %v4963_v44  ;;  %11905 = vst [vmem:[#allocation73_spill] sm:$0xff] %v10536_v24  ;;  %3567 = vmatpush.bf16.msrb.mxu2 %v6654_v36 }
 0x2c8   :  { %v3000_v49 = vpop.f32.mrf.mxu2  ;;  %v4150_v25 = vpop.permute.xlu0 %4149 }
 0x2c9   :  { %5158 = vst [vmem:[#allocation12 + $0x1c4] sm:$0xf] %v5094_v17  ;;  %v4248_v44 = vmul.f32 %v4150_v25, %v10481_v42 }
 0x2ca   :  { %v3169_v51 = vpop.f32.mrf.mxu3  ;;  %v2665_v29 = vpop.f32.mrf.mxu0 }
 0x2cb   :  { %v10534_v58 = vadd.f32 %v3169_v51, %v3000_v49  ;;  %v2834_v43 = vpop.f32.mrf.mxu1  ;;  %v4312_v14 = vadd.f32 %v4248_v44, %v4056_v56 }
 0x2cc   :  { %v10556_v25 = vadd.f32 %v2834_v43, %v2665_v29 }
 0x2cd   :  { %4761 = vrot.lane.b32.xlu0 %v10534_v58, %s7455_s4  ;;  %4177 = vrot.lane.b32.xlu1 %v10532_v22, %s7455_s4  ;;  %v4380_v12 = vmul.f32 0.088388346, %v4312_v14  ;;  %v10566_v14 = vld [vmem:[#allocation11 + $0x108] sm:$0xff] }
 0x2ce   :  { %2704 = vmatmul.bf16.gmra.mxu0 %v10536_v24  ;;  %3042 = vmatmul.bf16.gmra.mxu2 %v10536_v24  ;;  %v4740_v42 = vpop.permute.xlu2 %4739 }
 0x2cf   :  { %2873 = vmatmul.bf16.gmra.mxu1 %v10545_v9  ;;  %3211 = vmatmul.bf16.gmra.mxu3 %v10545_v9  ;;  %v4835_v2 = vmul.f32 %v4740_v42, %v10543_v19  ;;  %v4511_v17 = vpack.c.bf16 %v4380_v12, %v4380_v12  ;;  %v6782_v9 = vor.u32 %v6992_v52, %v6779_v13  ;;  %v6957_v13 = vld [vmem:[#allocation2 + $0x1f4] sm:$0xf] }
 0x2d0   :  { %v3003_v49 = vpop.f32.mrf.mxu2  ;;  %v4060_v12 = vmul.f32 %v10560_v18, %v10351_v26 }
 0x2d1   :  { %v4899_v63 = vadd.f32 %v4835_v2, %v4643_v57  ;;  %4575 = vst [vmem:[#allocation12 + $0x1d0] sm:$0xf] %v4511_v17  ;;  %3736 = vmatpush.bf16.msrb.mxu3 %v6782_v9  ;;  %v4641_v2 = vmul.f32 %v10497_v8, %v10296_v21  ;;  %v6958_v17 = vld [vmem:[#allocation2 + $0x1f4] sm:$0xf0] }
 0x2d2   :  { %v3172_v56 = vpop.f32.mrf.mxu3  ;;  %v2667_v51 = vpop.f32.mrf.mxu0 }
 0x2d3   :  { %v10558_v44 = vadd.f32 %v3172_v56, %v3003_v49  ;;  %v4967_v39 = vmul.f32 0.088388346, %v4899_v63  ;;  %v2836_v42 = vpop.f32.mrf.mxu1  ;;  %v6633_v63 = vld [vmem:[#allocation2 + $0x1f0] sm:$0xf] }
 0x2d4   :  { %v10574_v24 = vadd.f32 %v2836_v42, %v2667_v51  ;;  %v10578_v10 = vor.u32 %v6958_v17, %v6633_v63 }
 0x2d5   :  { %4763 = vrot.lane.b32.xlu2 %v10558_v44, %s7455_s4  ;;  %4179 = vrot.lane.b32.xlu0 %v10556_v25, %s7455_s4  ;;  %v5098_v57 = vpack.c.bf16 %v4967_v39, %v4967_v39  ;;  %v4736_v29 = vpop.permute.xlu1 %4735  ;;  %v6635_v39 = vld [vmem:[#allocation2 + $0x1f8] sm:$0xf0] }
 0x2d6   :  { %v4158_v43 = vpop.permute.xlu2 %4157  ;;  %v4833_v49 = vmul.f32 %v4736_v29, %v10499_v50  ;;  %11907 = vst [vmem:[#allocation20_spill] sm:$0xff] %v10578_v10  ;;  %v3929_v50 = vld [vmem:[#allocation9 + $0xf8] sm:$0xff] }
 0x2d7   :  { %5162 = vst [vmem:[#allocation12 + $0x204] sm:$0xf] %v5098_v57  ;;  %v4252_v48 = vmul.f32 %v4158_v43, %v10566_v14  ;;  %v3993_v29 = vld [vmem:[#allocation11 + $0xf8] sm:$0xff]  ;;  %v10584_v43 = vor.u32 %v6957_v13, %v6635_v39 }
 0x2d8   :  { %v3005_v28 = vpop.f32.mrf.mxu2  ;;  %v4897_v56 = vadd.f32 %v4833_v49, %v4641_v2  ;;  %v4058_v49 = vmul.f32 %v3929_v50, %v10309_v35  ;;  %v10600_v35 = vld [vmem:[#allocation11 + $0x118] sm:$0xff] }
 0x2d9   :  { %v4316_v36 = vadd.f32 %v4252_v48, %v4060_v12  ;;  %11908 = vst [vmem:[#allocation21_spill] sm:$0xff] %v10584_v43  ;;  %v4642_v48 = vmul.f32 %v3929_v50, %v10311_v20 }
 0x2da   :  { %v3174_v52 = vpop.f32.mrf.mxu3  ;;  %v2670_v9 = vpop.f32.mrf.mxu0  ;;  %v4965_v8 = vmul.f32 0.088388346, %v4897_v56 }
 0x2db   :  { %v10576_v21 = vadd.f32 %v3174_v52, %v3005_v28  ;;  %v4384_v26 = vmul.f32 0.088388346, %v4316_v36  ;;  %v2839_v57 = vpop.f32.mrf.mxu1 }
 0x2dc   :  { %v5096_v2 = vpack.c.bf16 %v4965_v8, %v4965_v8  ;;  %v10592_v39 = vadd.f32 %v2839_v57, %v2670_v9  ;;  %v4059_v57 = vmul.f32 %v10549_v55, %v10334_v45 }
 0x2dd   :  { %4765 = vrot.lane.b32.xlu1 %v10576_v21, %s7455_s4  ;;  %4181 = vrot.lane.b32.xlu2 %v10574_v24, %s7455_s4  ;;  %v4515_v51 = vpack.c.bf16 %v4384_v26, %v4384_v26  ;;  %v4154_v42 = vpop.permute.xlu1 %4153  ;;  %v4738_v12 = vpop.permute.xlu0 %4737 }
 0x2de   :  { %2709 = vmatmul.bf16.gmra.mxu0 %v10578_v10  ;;  %3047 = vmatmul.bf16.gmra.mxu2 %v10578_v10  ;;  %5160 = vst [vmem:[#allocation12 + $0x1e4] sm:$0xf] %v5096_v2  ;;  %v4250_v28 = vmul.f32 %v4154_v42, %v3993_v29  ;;  %v4834_v63 = vmul.f32 %v4738_v12, %v3993_v29  ;;  %v10602_v29 = vld [vmem:[#allocation9 + $0x118] sm:$0xff] }
 0x2df   :  { %2878 = vmatmul.bf16.gmra.mxu1 %v10584_v43  ;;  %3216 = vmatmul.bf16.gmra.mxu3 %v10584_v43  ;;  %4579 = vst [vmem:[#allocation12 + $0x210] sm:$0xf] %v4515_v51  ;;  %v4646_v51 = vmul.f32 %v10602_v29, %v10392_v33  ;;  %v10620_v33 = vld [vmem:[#allocation11 + $0x120] sm:$0xff] }
 0x2e0   :  { %v3008_v17 = vpop.f32.mrf.mxu2  ;;  %v4314_v56 = vadd.f32 %v4250_v28, %v4058_v49  ;;  %v4898_v36 = vadd.f32 %v4834_v63, %v4642_v48 }
 0x2e2   :  { %v3177_v52 = vpop.f32.mrf.mxu3  ;;  %v2672_v13 = vpop.f32.mrf.mxu0  ;;  %v4382_v26 = vmul.f32 0.088388346, %v4314_v56  ;;  %v4966_v43 = vmul.f32 0.088388346, %v4898_v36 }
 0x2e3   :  { %v10594_v8 = vadd.f32 %v3177_v52, %v3008_v17  ;;  %v2841_v10 = vpop.f32.mrf.mxu1  ;;  %v10614_v52 = vld [vmem:[#allocation9 + $0x120] sm:$0xff] }
 0x2e4   :  { %v4513_v20 = vpack.c.bf16 %v4382_v26, %v4382_v26  ;;  %v5097_v50 = vpack.c.bf16 %v4966_v43, %v4966_v43  ;;  %v10610_v63 = vadd.f32 %v2841_v10, %v2672_v13  ;;  %v11909_v10 = vld [vmem:[#allocation32_spill] sm:$0xff] }
 0x2e5   :  { %4183 = vrot.lane.b32.xlu1 %v10592_v39, %s7455_s4  ;;  %4767 = vrot.lane.b32.xlu0 %v10594_v8, %s7455_s4  ;;  %v4156_v9 = vpop.permute.xlu0 %4155 }
 0x2e6   :  { %v4746_v2 = vpop.permute.xlu2 %4745  ;;  %4577 = vst [vmem:[#allocation12 + $0x1f0] sm:$0xf] %v4513_v20  ;;  %v4251_v12 = vmul.f32 %v4156_v9, %v10543_v19  ;;  %v4063_v9 = vmul.f32 %v10614_v52, %v10416_v30  ;;  %v3996_v30 = vld [vmem:[#allocation11 + $0x110] sm:$0xff] }
 0x2e7   :  { %v4838_v42 = vmul.f32 %v4746_v2, %v10600_v35  ;;  %5161 = vst [vmem:[#allocation12 + $0x1f4] sm:$0xf] %v5097_v50  ;;  %v11910_v50 = vld [vmem:[#allocation33_spill] sm:$0xff]  ;;  %v4644_v2 = vmul.f32 %v10560_v18, %v10353_v7 }
 0x2e8   :  { %v3010_v49 = vpop.f32.mrf.mxu2  ;;  %v4315_v28 = vadd.f32 %v4251_v12, %v4059_v57 }
 0x2e9   :  { %v4902_v48 = vadd.f32 %v4838_v42, %v4646_v51 }
 0x2ea   :  { %v3179_v43 = vpop.f32.mrf.mxu3  ;;  %v2675_v56 = vpop.f32.mrf.mxu0  ;;  %v4383_v45 = vmul.f32 0.088388346, %v4315_v28 }
 0x2eb   :  { %v10612_v17 = vadd.f32 %v3179_v43, %v3010_v49  ;;  %v4970_v36 = vmul.f32 0.088388346, %v4902_v48  ;;  %v2844_v55 = vpop.f32.mrf.mxu1 }
 0x2ec   :  { %v4514_v26 = vpack.c.bf16 %v4383_v45, %v4383_v45  ;;  %v10632_v28 = vadd.f32 %v2844_v55, %v2675_v56 }
 0x2ed   :  { %4769 = vrot.lane.b32.xlu2 %v10612_v17, %s7455_s4  ;;  %4185 = vrot.lane.b32.xlu0 %v10610_v63, %s7455_s4  ;;  %v5101_v19 = vpack.c.bf16 %v4970_v36, %v4970_v36 }
 0x2ee   :  { %3230 = vmatmul.bf16.vlgmr.msrb.gmra.mxu0 %v11909_v10  ;;  %3568 = vmatmul.bf16.vlgmr.msrb.gmra.mxu2 %v11909_v10  ;;  %v4742_v13 = vpop.permute.xlu1 %4741  ;;  %v4164_v20 = vpop.permute.xlu2 %4163  ;;  %4578 = vst [vmem:[#allocation12 + $0x200] sm:$0xf] %v4514_v26  ;;  %v3932_v10 = vld [vmem:[#allocation9 + $0x110] sm:$0xff] }
 0x2ef   :  { %3399 = vmatmul.bf16.vlgmr.msrb.gmra.mxu1 %v11910_v50  ;;  %3737 = vmatmul.bf16.vlgmr.msrb.gmra.mxu3 %v11910_v50  ;;  %5165 = vst [vmem:[#allocation12 + $0x234] sm:$0xf] %v5101_v19  ;;  %v4836_v57 = vmul.f32 %v4742_v13, %v10566_v14  ;;  %v4255_v51 = vmul.f32 %v4164_v20, %v10620_v33 }
 0x2f0   :  { %v3013_v42 = vpop.f32.mrf.mxu2  ;;  %v4061_v56 = vmul.f32 %v3932_v10, %v10380_v46  ;;  %v4645_v55 = vmul.f32 %v3932_v10, %v10382_v34  ;;  %v10650_v46 = vld [vmem:[#allocation11 + $0x130] sm:$0xff] }
 0x2f1   :  { %v4900_v12 = vadd.f32 %v4836_v57, %v4644_v2  ;;  %v4319_v49 = vadd.f32 %v4255_v51, %v4063_v9 }
 0x2f2   :  { %v3182_v48 = vpop.f32.mrf.mxu3  ;;  %v2677_v36 = vpop.f32.mrf.mxu0 }
 0x2f3   :  { %v10634_v43 = vadd.f32 %v3182_v48, %v3013_v42  ;;  %v4968_v45 = vmul.f32 0.088388346, %v4900_v12  ;;  %v4387_v7 = vmul.f32 0.088388346, %v4319_v49  ;;  %v2846_v18 = vpop.f32.mrf.mxu1 }
 0x2f4   :  { %v10642_v42 = vadd.f32 %v2846_v18, %v2677_v36  ;;  %v10654_v36 = vld [vmem:[#allocation9 + $0x130] sm:$0xff] }
 0x2f5   :  { %4771 = vrot.lane.b32.xlu1 %v10634_v43, %s7455_s4  ;;  %4187 = vrot.lane.b32.xlu2 %v10632_v28, %s7455_s4  ;;  %v5099_v14 = vpack.c.bf16 %v4968_v45, %v4968_v45  ;;  %v4518_v19 = vpack.c.bf16 %v4387_v7, %v4387_v7 }
 0x2f6   :  { %v4160_v26 = vpop.permute.xlu1 %4159  ;;  %v4744_v13 = vpop.permute.xlu0 %4743 }
 0x2f7   :  { %5163 = vst [vmem:[#allocation12 + $0x214] sm:$0xf] %v5099_v14  ;;  %v4253_v20 = vmul.f32 %v4160_v26, %v3996_v30  ;;  %v4837_v50 = vmul.f32 %v4744_v13, %v3996_v30  ;;  %v11911_v30 = vld [vmem:[#allocation34_spill] sm:$0xff]  ;;  %v11912_v14 = vld [vmem:[#allocation35_spill] sm:$0xff]  ;;  %v4062_v26 = vmul.f32 %v10602_v29, %v10390_v54  ;;  %v4649_v13 = vmul.f32 %v10654_v36, %v10454_v23  ;;  %v10674_v23 = vld [vmem:[#allocation11 + $0x138] sm:$0xff] }
 0x2f8   :  { %4582 = vst [vmem:[#allocation12 + $0x240] sm:$0xf] %v4518_v19  ;;  %v3015_v2 = vpop.f32.mrf.mxu2 }
 0x2f9   :  { %v4317_v9 = vadd.f32 %v4253_v20, %v4061_v56  ;;  %v4901_v57 = vadd.f32 %v4837_v50, %v4645_v55 }
 0x2fa   :  { %v3184_v51 = vpop.f32.mrf.mxu3  ;;  %v2680_v49 = vpop.f32.mrf.mxu0 }
 0x2fb   :  { %v10644_v12 = vadd.f32 %v3184_v51, %v3015_v2  ;;  %v4385_v48 = vmul.f32 0.088388346, %v4317_v9  ;;  %v4969_v45 = vmul.f32 0.088388346, %v4901_v57  ;;  %v2849_v7 = vpop.f32.mrf.mxu1 }
 0x2fc   :  { %v10664_v57 = vadd.f32 %v2849_v7, %v2680_v49 }
 0x2fd   :  { %4773 = vrot.lane.b32.xlu0 %v10644_v12, %s7455_s4  ;;  %4189 = vrot.lane.b32.xlu1 %v10642_v42, %s7455_s4  ;;  %v4516_v34 = vpack.c.bf16 %v4385_v48, %v4385_v48  ;;  %v5100_v10 = vpack.c.bf16 %v4969_v45, %v4969_v45 }
 0x2fe   :  { %3235 = vmatmul.bf16.gmra.mxu0 %v11911_v30  ;;  %3573 = vmatmul.bf16.gmra.mxu2 %v11911_v30  ;;  %v4162_v19 = vpop.permute.xlu0 %4161  ;;  %v10668_v30 = vld [vmem:[#allocation9 + $0x138] sm:$0xff] }
 0x2ff   :  { %v4752_v18 = vpop.permute.xlu2 %4751  ;;  %3404 = vmatmul.bf16.gmra.mxu1 %v11912_v14  ;;  %3742 = vmatmul.bf16.gmra.mxu3 %v11912_v14  ;;  %4580 = vst [vmem:[#allocation12 + $0x220] sm:$0xf] %v4516_v34  ;;  %v4254_v55 = vmul.f32 %v4162_v19, %v10600_v35 }
 0x300   :  { %v4841_v56 = vmul.f32 %v4752_v18, %v10650_v46  ;;  %5164 = vst [vmem:[#allocation12 + $0x224] sm:$0xf] %v5100_v10  ;;  %v3018_v20 = vpop.f32.mrf.mxu2  ;;  %v4647_v10 = vmul.f32 %v10614_v52, %v10418_v61  ;;  %v4066_v18 = vmul.f32 %v10668_v30, %v10463_v41  ;;  %v3999_v41 = vld [vmem:[#allocation11 + $0x128] sm:$0xff] }
 0x301   :  { %v4318_v2 = vadd.f32 %v4254_v55, %v4062_v26 }
 0x302   :  { %v4905_v50 = vadd.f32 %v4841_v56, %v4649_v13  ;;  %v3187_v9 = vpop.f32.mrf.mxu3  ;;  %v2682_v48 = vpop.f32.mrf.mxu0 }
 0x303   :  { %v10666_v51 = vadd.f32 %v3187_v9, %v3018_v20  ;;  %v4386_v54 = vmul.f32 0.088388346, %v4318_v2  ;;  %v2851_v29 = vpop.f32.mrf.mxu1 }
 0x304   :  { %v4973_v45 = vmul.f32 0.088388346, %v4905_v50  ;;  %v10682_v20 = vadd.f32 %v2851_v29, %v2682_v48  ;;  %v11914_v29 = vld [vmem:[#allocation45_spill] sm:$0xff] }
 0x305   :  { %4775 = vrot.lane.b32.xlu2 %v10666_v51, %s7455_s4  ;;  %4191 = vrot.lane.b32.xlu0 %v10664_v57, %s7455_s4  ;;  %v4517_v34 = vpack.c.bf16 %v4386_v54, %v4386_v54 }
 0x306   :  { %v5104_v35 = vpack.c.bf16 %v4973_v45, %v4973_v45  ;;  %v3935_v45 = vld [vmem:[#allocation9 + $0x128] sm:$0xff] }
 0x307   :  { %v4748_v49 = vpop.permute.xlu1 %4747  ;;  %v4170_v7 = vpop.permute.xlu2 %4169  ;;  %4581 = vst [vmem:[#allocation12 + $0x230] sm:$0xf] %v4517_v34 }
 0x308   :  { %5168 = vst [vmem:[#allocation12 + $0x264] sm:$0xf] %v5104_v35  ;;  %v4839_v14 = vmul.f32 %v4748_v49, %v10620_v33  ;;  %v4258_v19 = vmul.f32 %v4170_v7, %v10674_v23  ;;  %v3020_v26 = vpop.f32.mrf.mxu2  ;;  %v11913_v35 = vld [vmem:[#allocation38_spill] sm:$0xff]  ;;  %v4064_v49 = vmul.f32 %v3935_v45, %v10434_v5  ;;  %v4648_v7 = vmul.f32 %v3935_v45, %v10436_v0 }
 0x309   :  { %v10704_v5 = vld [vmem:[#allocation11 + $0x148] sm:$0xff] }
 0x30a   :  { %v4903_v13 = vadd.f32 %v4839_v14, %v4647_v10  ;;  %v4322_v56 = vadd.f32 %v4258_v19, %v4066_v18  ;;  %v3189_v55 = vpop.f32.mrf.mxu3  ;;  %v2685_v2 = vpop.f32.mrf.mxu0 }
 0x30b   :  { %v10684_v50 = vadd.f32 %v3189_v55, %v3020_v26  ;;  %v2854_v52 = vpop.f32.mrf.mxu1 }
 0x30c   :  { %v4971_v9 = vmul.f32 0.088388346, %v4903_v13  ;;  %v4390_v61 = vmul.f32 0.088388346, %v4322_v56  ;;  %v10696_v56 = vadd.f32 %v2854_v52, %v2685_v2 }
 0x30d   :  { %4777 = vrot.lane.b32.xlu1 %v10684_v50, %s7455_s4  ;;  %4193 = vrot.lane.b32.xlu2 %v10682_v20, %s7455_s4 }
 0x30e   :  { %v5102_v33 = vpack.c.bf16 %v4971_v9, %v4971_v9  ;;  %v4521_v54 = vpack.c.bf16 %v4390_v61, %v4390_v61  ;;  %3240 = vmatmul.bf16.gmra.mxu0 %v11913_v35  ;;  %3578 = vmatmul.bf16.gmra.mxu2 %v11913_v35 }
 0x30f   :  { %v4166_v48 = vpop.permute.xlu1 %4165  ;;  %3409 = vmatmul.bf16.gmra.mxu1 %v11914_v29  ;;  %3747 = vmatmul.bf16.gmra.mxu3 %v11914_v29  ;;  %v4750_v34 = vpop.permute.xlu0 %4749 }
 0x310   :  { %5166 = vst [vmem:[#allocation12 + $0x244] sm:$0xf] %v5102_v33  ;;  %v4256_v10 = vmul.f32 %v4166_v48, %v3999_v41  ;;  %v4840_v18 = vmul.f32 %v4750_v34, %v3999_v41  ;;  %v3023_v14 = vpop.f32.mrf.mxu2  ;;  %v10706_v41 = vld [vmem:[#allocation9 + $0x148] sm:$0xff]  ;;  %v4065_v33 = vmul.f32 %v10654_v36, %v10452_v11 }
 0x311   :  { %4585 = vst [vmem:[#allocation12 + $0x270] sm:$0xf] %v4521_v54  ;;  %v4652_v54 = vmul.f32 %v10706_v41, %v10504_v15  ;;  %v10724_v15 = vld [vmem:[#allocation11 + $0x150] sm:$0xff] }
 0x312   :  { %v4320_v19 = vadd.f32 %v4256_v10, %v4064_v49  ;;  %v4904_v26 = vadd.f32 %v4840_v18, %v4648_v7  ;;  %v3192_v13 = vpop.f32.mrf.mxu3  ;;  %v2687_v9 = vpop.f32.mrf.mxu0 }
 0x313   :  { %v10698_v55 = vadd.f32 %v3192_v13, %v3023_v14  ;;  %v2856_v29 = vpop.f32.mrf.mxu1 }
 0x314   :  { %v4388_v61 = vmul.f32 0.088388346, %v4320_v19  ;;  %v4972_v35 = vmul.f32 0.088388346, %v4904_v26  ;;  %v10714_v14 = vadd.f32 %v2856_v29, %v2687_v9  ;;  %v11915_v9 = vld [vmem:[#allocation54_spill] sm:$0xff] }
 0x315   :  { %4195 = vrot.lane.b32.xlu1 %v10696_v56, %s7455_s4  ;;  %4779 = vrot.lane.b32.xlu0 %v10698_v55, %s7455_s4 }
 0x316   :  { %v4519_v0 = vpack.c.bf16 %v4388_v61, %v4388_v61  ;;  %v5103_v45 = vpack.c.bf16 %v4972_v35, %v4972_v35  ;;  %v10718_v61 = vld [vmem:[#allocation9 + $0x150] sm:$0xff] }
 0x317   :  { %v4758_v2 = vpop.permute.xlu2 %4757  ;;  %v4168_v52 = vpop.permute.xlu0 %4167 }
 0x318   :  { %4583 = vst [vmem:[#allocation12 + $0x250] sm:$0xf] %v4519_v0  ;;  %v4844_v48 = vmul.f32 %v4758_v2, %v10704_v5  ;;  %v4257_v34 = vmul.f32 %v4168_v52, %v10650_v46  ;;  %v3025_v49 = vpop.f32.mrf.mxu2  ;;  %v4650_v2 = vmul.f32 %v10668_v30, %v10465_v1  ;;  %v4069_v52 = vmul.f32 %v10718_v61, %v10521_v38  ;;  %v4002_v38 = vld [vmem:[#allocation11 + $0x140] sm:$0xff] }
 0x319   :  { %5167 = vst [vmem:[#allocation12 + $0x254] sm:$0xf] %v5103_v45  ;;  %v11916_v45 = vld [vmem:[#allocation55_spill] sm:$0xff] }
 0x31a   :  { %v4908_v7 = vadd.f32 %v4844_v48, %v4652_v54  ;;  %v4321_v10 = vadd.f32 %v4257_v34, %v4065_v33  ;;  %v3194_v18 = vpop.f32.mrf.mxu3 }
 0x31b   :  { %v10716_v19 = vadd.f32 %v3194_v18, %v3025_v49  ;;  %v2690_v26 = vpop.f32.mrf.mxu0 }
 0x31c   :  { %v4976_v13 = vmul.f32 0.088388346, %v4908_v7  ;;  %v4389_v11 = vmul.f32 0.088388346, %v4321_v10  ;;  %v2859_v36 = vpop.f32.mrf.mxu1 }
 0x31d   :  { %4781 = vrot.lane.b32.xlu2 %v10716_v19, %s7455_s4  ;;  %4197 = vrot.lane.b32.xlu0 %v10714_v14, %s7455_s4  ;;  %v10736_v10 = vadd.f32 %v2859_v36, %v2690_v26 }
 0x31e   :  { %v5107_v46 = vpack.c.bf16 %v4976_v13, %v4976_v13  ;;  %v4520_v35 = vpack.c.bf16 %v4389_v11, %v4389_v11  ;;  %3245 = vmatmul.bf16.gmra.mxu0 %v11915_v9  ;;  %3583 = vmatmul.bf16.gmra.mxu2 %v11915_v9  ;;  %v3938_v9 = vld [vmem:[#allocation9 + $0x140] sm:$0xff] }
 0x31f   :  { %v4754_v29 = vpop.permute.xlu1 %4753  ;;  %v4176_v0 = vpop.permute.xlu2 %4175  ;;  %3414 = vmatmul.bf16.gmra.mxu1 %v11916_v45  ;;  %3752 = vmatmul.bf16.gmra.mxu3 %v11916_v45  ;;  %v4067_v26 = vmul.f32 %v3938_v9, %v10489_v31  ;;  %v4651_v36 = vmul.f32 %v3938_v9, %v10491_v16  ;;  %v10754_v31 = vld [vmem:[#allocation11 + $0x160] sm:$0xff] }
 0x320   :  { %5171 = vst [vmem:[#allocation12 + $0x294] sm:$0xf] %v5107_v46  ;;  %v4842_v33 = vmul.f32 %v4754_v29, %v10674_v23  ;;  %v4261_v54 = vmul.f32 %v4176_v0, %v10724_v15 }
 0x321   :  { %4584 = vst [vmem:[#allocation12 + $0x260] sm:$0xf] %v4520_v35  ;;  %v3028_v48 = vpop.f32.mrf.mxu2 }
 0x322   :  { %v4906_v34 = vadd.f32 %v4842_v33, %v4650_v2  ;;  %v4325_v49 = vadd.f32 %v4261_v54, %v4069_v52  ;;  %v3197_v7 = vpop.f32.mrf.mxu3 }
 0x323   :  { %v10738_v18 = vadd.f32 %v3197_v7, %v3028_v48  ;;  %v2692_v13 = vpop.f32.mrf.mxu0 }
 0x324   :  { %v4974_v11 = vmul.f32 0.088388346, %v4906_v34  ;;  %v4393_v1 = vmul.f32 0.088388346, %v4325_v49  ;;  %v2861_v30 = vpop.f32.mrf.mxu1 }
 0x325   :  { %4783 = vrot.lane.b32.xlu1 %v10738_v18, %s7455_s4  ;;  %4199 = vrot.lane.b32.xlu2 %v10736_v10, %s7455_s4  ;;  %v10746_v48 = vadd.f32 %v2861_v30, %v2692_v13  ;;  %v10758_v13 = vld [vmem:[#allocation9 + $0x160] sm:$0xff] }
 0x326   :  { %v5105_v23 = vpack.c.bf16 %v4974_v11, %v4974_v11  ;;  %v4524_v46 = vpack.c.bf16 %v4393_v1, %v4393_v1 }
 0x327   :  { %v4172_v35 = vpop.permute.xlu1 %4171  ;;  %v4756_v29 = vpop.permute.xlu0 %4755 }
 0x328   :  { %5169 = vst [vmem:[#allocation12 + $0x274] sm:$0xf] %v5105_v23  ;;  %v4259_v0 = vmul.f32 %v4172_v35, %v4002_v38  ;;  %v4843_v45 = vmul.f32 %v4756_v29, %v4002_v38  ;;  %v11917_v38 = vld [vmem:[#allocation65_spill] sm:$0xff]  ;;  %v11918_v23 = vld [vmem:[#allocation66_spill] sm:$0xff]  ;;  %v4068_v35 = vmul.f32 %v10706_v41, %v10502_v37  ;;  %v4655_v29 = vmul.f32 %v10758_v13, %v10558_v44 }
 0x329   :  { %4588 = vst [vmem:[#allocation12 + $0x2a0] sm:$0xf] %v4524_v46  ;;  %v3030_v2 = vpop.f32.mrf.mxu2  ;;  %v10778_v44 = vld [vmem:[#allocation11 + $0x168] sm:$0xff] }
 0x32a   :  { %v4323_v52 = vadd.f32 %v4259_v0, %v4067_v26  ;;  %v4907_v33 = vadd.f32 %v4843_v45, %v4651_v36  ;;  %v3199_v54 = vpop.f32.mrf.mxu3 }
 0x32b   :  { %v10748_v34 = vadd.f32 %v3199_v54, %v3030_v2  ;;  %v2695_v49 = vpop.f32.mrf.mxu0 }
 0x32c   :  { %v4391_v7 = vmul.f32 0.088388346, %v4323_v52  ;;  %v4975_v11 = vmul.f32 0.088388346, %v4907_v33  ;;  %v2864_v1 = vpop.f32.mrf.mxu1 }
 0x32d   :  { %4785 = vrot.lane.b32.xlu0 %v10748_v34, %s7455_s4  ;;  %4201 = vrot.lane.b32.xlu1 %v10746_v48, %s7455_s4  ;;  %v10768_v33 = vadd.f32 %v2864_v1, %v2695_v49 }
 0x32e   :  { %v4522_v16 = vpack.c.bf16 %v4391_v7, %v4391_v7  ;;  %v5106_v9 = vpack.c.bf16 %v4975_v11, %v4975_v11  ;;  %3250 = vmatmul.bf16.gmra.mxu0 %v11917_v38  ;;  %3588 = vmatmul.bf16.gmra.mxu2 %v11917_v38  ;;  %v10772_v38 = vld [vmem:[#allocation9 + $0x168] sm:$0xff] }
 0x32f   :  { %v4764_v30 = vpop.permute.xlu2 %4763  ;;  %3419 = vmatmul.bf16.gmra.mxu1 %v11918_v23  ;;  %3757 = vmatmul.bf16.gmra.mxu3 %v11918_v23  ;;  %v4174_v46 = vpop.permute.xlu0 %4173 }
 0x330   :  { %4586 = vst [vmem:[#allocation12 + $0x280] sm:$0xf] %v4522_v16  ;;  %v4847_v26 = vmul.f32 %v4764_v30, %v10754_v31  ;;  %v4260_v36 = vmul.f32 %v4174_v46, %v10704_v5  ;;  %v4072_v30 = vmul.f32 %v10772_v38, %v10574_v24  ;;  %v4005_v24 = vld [vmem:[#allocation11 + $0x158] sm:$0xff] }
 0x331   :  { %5170 = vst [vmem:[#allocation12 + $0x284] sm:$0xf] %v5106_v9  ;;  %v3033_v0 = vpop.f32.mrf.mxu2  ;;  %v4653_v9 = vmul.f32 %v10718_v61, %v10523_v27 }
 0x332   :  { %v4911_v45 = vadd.f32 %v4847_v26, %v4655_v29  ;;  %v4324_v2 = vadd.f32 %v4260_v36, %v4068_v35  ;;  %v3202_v52 = vpop.f32.mrf.mxu3 }
 0x333   :  { %v10770_v54 = vadd.f32 %v3202_v52, %v3033_v0  ;;  %v2697_v7 = vpop.f32.mrf.mxu0 }
 0x334   :  { %v4979_v11 = vmul.f32 0.088388346, %v4911_v45  ;;  %v4392_v37 = vmul.f32 0.088388346, %v4324_v2  ;;  %v2866_v41 = vpop.f32.mrf.mxu1 }
 0x335   :  { %4787 = vrot.lane.b32.xlu2 %v10770_v54, %s7455_s4  ;;  %4203 = vrot.lane.b32.xlu0 %v10768_v33, %s7455_s4  ;;  %v10786_v0 = vadd.f32 %v2866_v41, %v2697_v7  ;;  %v11920_v41 = vld [vmem:[#allocation77_spill] sm:$0xff] }
 0x336   :  { %v5110_v5 = vpack.c.bf16 %v4979_v11, %v4979_v11  ;;  %v4523_v16 = vpack.c.bf16 %v4392_v37, %v4392_v37  ;;  %v3941_v11 = vld [vmem:[#allocation9 + $0x158] sm:$0xff] }
 0x337   :  { %v4760_v49 = vpop.permute.xlu1 %4759  ;;  %v4182_v1 = vpop.permute.xlu2 %4181 }
 0x338   :  { %5174 = vst [vmem:[#allocation12 + $0x2c4] sm:$0xf] %v5110_v5  ;;  %v4845_v23 = vmul.f32 %v4760_v49, %v10724_v15  ;;  %v4264_v46 = vmul.f32 %v4182_v1, %v10778_v44  ;;  %v11919_v5 = vld [vmem:[#allocation70_spill] sm:$0xff]  ;;  %v4070_v49 = vmul.f32 %v3941_v11, %v10532_v22  ;;  %v4654_v1 = vmul.f32 %v3941_v11, %v10534_v58  ;;  %v10808_v22 = vld [vmem:[#allocation11 + $0x178] sm:$0xff] }
 0x339   :  { %4587 = vst [vmem:[#allocation12 + $0x290] sm:$0xf] %v4523_v16  ;;  %v3035_v35 = vpop.f32.mrf.mxu2 }
 0x33a   :  { %v4909_v29 = vadd.f32 %v4845_v23, %v4653_v9  ;;  %v4328_v26 = vadd.f32 %v4264_v46, %v4072_v30  ;;  %v3204_v36 = vpop.f32.mrf.mxu3 }
 0x33b   :  { %v10788_v45 = vadd.f32 %v3204_v36, %v3035_v35  ;;  %v2700_v2 = vpop.f32.mrf.mxu0 }
 0x33c   :  { %v4977_v52 = vmul.f32 0.088388346, %v4909_v29  ;;  %v4396_v27 = vmul.f32 0.088388346, %v4328_v26  ;;  %v2869_v61 = vpop.f32.mrf.mxu1 }
 0x33d   :  { %4789 = vrot.lane.b32.xlu1 %v10788_v45, %s7455_s4  ;;  %4205 = vrot.lane.b32.xlu2 %v10786_v0, %s7455_s4  ;;  %v10800_v26 = vadd.f32 %v2869_v61, %v2700_v2 }
 0x33e   :  { %v5108_v15 = vpack.c.bf16 %v4977_v52, %v4977_v52  ;;  %v4527_v37 = vpack.c.bf16 %v4396_v27, %v4396_v27  ;;  %3255 = vmatmul.bf16.gmra.mxu0 %v11919_v5  ;;  %3593 = vmatmul.bf16.gmra.mxu2 %v11919_v5 }
 0x33f   :  { %v4178_v7 = vpop.permute.xlu1 %4177  ;;  %3424 = vmatmul.bf16.gmra.mxu1 %v11920_v41  ;;  %3762 = vmatmul.bf16.gmra.mxu3 %v11920_v41  ;;  %v4762_v16 = vpop.permute.xlu0 %4761 }
 0x340   :  { %5172 = vst [vmem:[#allocation12 + $0x2a4] sm:$0xf] %v5108_v15  ;;  %v4262_v9 = vmul.f32 %v4178_v7, %v4005_v24  ;;  %v4846_v30 = vmul.f32 %v4762_v16, %v4005_v24  ;;  %v10810_v24 = vld [vmem:[#allocation9 + $0x178] sm:$0xff]  ;;  %v4071_v15 = vmul.f32 %v10758_v13, %v10556_v25 }
 0x341   :  { %4591 = vst [vmem:[#allocation12 + $0x2d0] sm:$0xf] %v4527_v37  ;;  %v3038_v23 = vpop.f32.mrf.mxu2  ;;  %v4658_v37 = vmul.f32 %v10810_v24, %v10612_v17  ;;  %v10828_v17 = vld [vmem:[#allocation11 + $0x180] sm:$0xff] }
 0x342   :  { %v4326_v46 = vadd.f32 %v4262_v9, %v4070_v49  ;;  %v4910_v35 = vadd.f32 %v4846_v30, %v4654_v1  ;;  %v3207_v29 = vpop.f32.mrf.mxu3 }
 0x343   :  { %v10802_v36 = vadd.f32 %v3207_v29, %v3038_v23  ;;  %v2702_v52 = vpop.f32.mrf.mxu0 }
 0x344   :  { %v4394_v27 = vmul.f32 0.088388346, %v4326_v46  ;;  %v4978_v5 = vmul.f32 0.088388346, %v4910_v35  ;;  %v2871_v41 = vpop.f32.mrf.mxu1 }
 0x345   :  { %4207 = vrot.lane.b32.xlu1 %v10800_v26, %s7455_s4  ;;  %4791 = vrot.lane.b32.xlu0 %v10802_v36, %s7455_s4  ;;  %v10818_v23 = vadd.f32 %v2871_v41, %v2702_v52  ;;  %v11921_v52 = vld [vmem:[#allocation86_spill] sm:$0xff] }
 0x346   :  { %v4525_v58 = vpack.c.bf16 %v4394_v27, %v4394_v27  ;;  %v5109_v11 = vpack.c.bf16 %v4978_v5, %v4978_v5  ;;  %v10822_v27 = vld [vmem:[#allocation9 + $0x180] sm:$0xff] }
 0x347   :  { %v4770_v2 = vpop.permute.xlu2 %4769  ;;  %v4180_v61 = vpop.permute.xlu0 %4179 }
 0x348   :  { %4589 = vst [vmem:[#allocation12 + $0x2b0] sm:$0xf] %v4525_v58  ;;  %v4850_v7 = vmul.f32 %v4770_v2, %v10808_v22  ;;  %v4263_v16 = vmul.f32 %v4180_v61, %v10754_v31  ;;  %v4656_v2 = vmul.f32 %v10772_v38, %v10576_v21  ;;  %v4075_v61 = vmul.f32 %v10822_v27, %v10632_v28  ;;  %v4008_v28 = vld [vmem:[#allocation11 + $0x170] sm:$0xff] }
 0x349   :  { %5173 = vst [vmem:[#allocation12 + $0x2b4] sm:$0xf] %v5109_v11  ;;  %v3040_v49 = vpop.f32.mrf.mxu2  ;;  %v11922_v11 = vld [vmem:[#allocation23_spill] sm:$0xff] }
 0x34a   :  { %v4914_v1 = vadd.f32 %v4850_v7, %v4658_v37  ;;  %v4327_v9 = vadd.f32 %v4263_v16, %v4071_v15  ;;  %v3209_v30 = vpop.f32.mrf.mxu3 }
 0x34b   :  { %v10820_v46 = vadd.f32 %v3209_v30, %v3040_v49  ;;  %v2705_v35 = vpop.f32.mrf.mxu0 }
 0x34c   :  { %v4982_v29 = vmul.f32 0.088388346, %v4914_v1  ;;  %v4395_v25 = vmul.f32 0.088388346, %v4327_v9  ;;  %v2874_v13 = vpop.f32.mrf.mxu1 }
 0x34d   :  { %4793 = vrot.lane.b32.xlu2 %v10820_v46, %s7455_s4  ;;  %4209 = vrot.lane.b32.xlu0 %v10818_v23, %s7455_s4  ;;  %v10840_v9 = vadd.f32 %v2874_v13, %v2705_v35 }
 0x34e   :  { %v5113_v31 = vpack.c.bf16 %v4982_v29, %v4982_v29  ;;  %v4526_v5 = vpack.c.bf16 %v4395_v25, %v4395_v25  ;;  %3260 = vmatmul.bf16.gmra.mxu0 %v11921_v52  ;;  %3598 = vmatmul.bf16.gmra.mxu2 %v11921_v52  ;;  %v3944_v52 = vld [vmem:[#allocation9 + $0x170] sm:$0xff] }
 0x34f   :  { %v4766_v41 = vpop.permute.xlu1 %4765  ;;  %v4188_v58 = vpop.permute.xlu2 %4187  ;;  %3429 = vmatmul.bf16.gmra.mxu1 %v11922_v11  ;;  %3767 = vmatmul.bf16.gmra.mxu3 %v11922_v11  ;;  %v4073_v35 = vmul.f32 %v3944_v52, %v10592_v39  ;;  %v4657_v13 = vmul.f32 %v3944_v52, %v10594_v8  ;;  %v10858_v39 = vld [vmem:[#allocation11 + $0x190] sm:$0xff] }
 0x350   :  { %5177 = vst [vmem:[#allocation12 + $0x2f4] sm:$0xf] %v5113_v31  ;;  %v4848_v15 = vmul.f32 %v4766_v41, %v10778_v44  ;;  %v4267_v37 = vmul.f32 %v4188_v58, %v10828_v17 }
 0x351   :  { %4590 = vst [vmem:[#allocation12 + $0x2c0] sm:$0xf] %v4526_v5  ;;  %v3043_v7 = vpop.f32.mrf.mxu2 }
 0x352   :  { %v4912_v16 = vadd.f32 %v4848_v15, %v4656_v2  ;;  %v4331_v49 = vadd.f32 %v4267_v37, %v4075_v61  ;;  %v3212_v1 = vpop.f32.mrf.mxu3 }
 0x353   :  { %v10842_v30 = vadd.f32 %v3212_v1, %v3043_v7  ;;  %v2707_v29 = vpop.f32.mrf.mxu0 }
 0x354   :  { %v4980_v25 = vmul.f32 0.088388346, %v4912_v16  ;;  %v4399_v21 = vmul.f32 0.088388346, %v4331_v49  ;;  %v2876_v38 = vpop.f32.mrf.mxu1 }
 0x355   :  { %4795 = vrot.lane.b32.xlu1 %v10842_v30, %s7455_s4  ;;  %4211 = vrot.lane.b32.xlu2 %v10840_v9, %s7455_s4  ;;  %v10850_v7 = vadd.f32 %v2876_v38, %v2707_v29  ;;  %v10862_v29 = vld [vmem:[#allocation9 + $0x190] sm:$0xff] }
 0x356   :  { %v5111_v44 = vpack.c.bf16 %v4980_v25, %v4980_v25  ;;  %v4530_v31 = vpack.c.bf16 %v4399_v21, %v4399_v21 }
 0x357   :  { %v4184_v5 = vpop.permute.xlu1 %4183  ;;  %v4768_v41 = vpop.permute.xlu0 %4767 }
 0x358   :  { %5175 = vst [vmem:[#allocation12 + $0x2d4] sm:$0xf] %v5111_v44  ;;  %v4265_v58 = vmul.f32 %v4184_v5, %v4008_v28  ;;  %v4849_v11 = vmul.f32 %v4768_v41, %v4008_v28  ;;  %v11923_v28 = vld [vmem:[#allocation88_spill] sm:$0xff]  ;;  %v11924_v44 = vld [vmem:[#allocation89_spill] sm:$0xff]  ;;  %v4074_v5 = vmul.f32 %v10810_v24, %v10610_v63  ;;  %v4661_v41 = vmul.f32 %v10862_v29, %v10666_v51 }
 0x359   :  { %4594 = vst [vmem:[#allocation12 + $0x300] sm:$0xf] %v4530_v31  ;;  %v3045_v2 = vpop.f32.mrf.mxu2  ;;  %v10882_v51 = vld [vmem:[#allocation11 + $0x198] sm:$0xff] }
 0x35a   :  { %v4329_v61 = vadd.f32 %v4265_v58, %v4073_v35  ;;  %v4913_v15 = vadd.f32 %v4849_v11, %v4657_v13  ;;  %v3214_v37 = vpop.f32.mrf.mxu3 }
 0x35b   :  { %v10852_v16 = vadd.f32 %v3214_v37, %v3045_v2  ;;  %v2710_v49 = vpop.f32.mrf.mxu0 }
 0x35c   :  { %v4397_v1 = vmul.f32 0.088388346, %v4329_v61  ;;  %v4981_v25 = vmul.f32 0.088388346, %v4913_v15  ;;  %v2879_v21 = vpop.f32.mrf.mxu1 }
 0x35d   :  { %4797 = vrot.lane.b32.xlu0 %v10852_v16, %s7455_s4  ;;  %4213 = vrot.lane.b32.xlu1 %v10850_v7, %s7455_s4  ;;  %v10872_v15 = vadd.f32 %v2879_v21, %v2710_v49 }
 0x35e   :  { %v4528_v8 = vpack.c.bf16 %v4397_v1, %v4397_v1  ;;  %v5112_v52 = vpack.c.bf16 %v4981_v25, %v4981_v25  ;;  %3265 = vmatmul.bf16.gmra.mxu0 %v11923_v28  ;;  %3603 = vmatmul.bf16.gmra.mxu2 %v11923_v28  ;;  %v10876_v28 = vld [vmem:[#allocation9 + $0x198] sm:$0xff] }
 0x35f   :  { %v4776_v38 = vpop.permute.xlu2 %4775  ;;  %3434 = vmatmul.bf16.gmra.mxu1 %v11924_v44  ;;  %3772 = vmatmul.bf16.gmra.mxu3 %v11924_v44  ;;  %v4186_v31 = vpop.permute.xlu0 %4185 }
 0x360   :  { %4592 = vst [vmem:[#allocation12 + $0x2e0] sm:$0xf] %v4528_v8  ;;  %v4853_v35 = vmul.f32 %v4776_v38, %v10858_v39  ;;  %v4266_v13 = vmul.f32 %v4186_v31, %v10808_v22  ;;  %v4078_v38 = vmul.f32 %v10876_v28, %v10682_v20 }
 0x361   :  { %5176 = vst [vmem:[#allocation12 + $0x2e4] sm:$0xf] %v5112_v52  ;;  %v3048_v58 = vpop.f32.mrf.mxu2  ;;  %v4659_v52 = vmul.f32 %v10822_v27, %v10634_v43 }
 0x362   :  { %v4917_v11 = vadd.f32 %v4853_v35, %v4661_v41  ;;  %v4330_v2 = vadd.f32 %v4266_v13, %v4074_v5  ;;  %v3217_v61 = vpop.f32.mrf.mxu3 }
 0x363   :  { %v10874_v37 = vadd.f32 %v3217_v61, %v3048_v58  ;;  %v2712_v1 = vpop.f32.mrf.mxu0  ;;  %v3947_v61 = vld [vmem:[#allocation9 + $0x188] sm:$0xff] }
 0x364   :  { %v4985_v25 = vmul.f32 0.088388346, %v4917_v11  ;;  %v4398_v63 = vmul.f32 0.088388346, %v4330_v2  ;;  %v2881_v24 = vpop.f32.mrf.mxu1 }
 0x365   :  { %4799 = vrot.lane.b32.xlu2 %v10874_v37, %s7455_s4  ;;  %4215 = vrot.lane.b32.xlu0 %v10872_v15, %s7455_s4  ;;  %v10890_v58 = vadd.f32 %v2881_v24, %v2712_v1  ;;  %v11925_v1 = vld [vmem:[#allocation27_spill] sm:$0xff]  ;;  %v4076_v24 = vmul.f32 %v3947_v61, %v10642_v42 }
 0x366   :  { %v5116_v22 = vpack.c.bf16 %v4985_v25, %v4985_v25  ;;  %v4529_v8 = vpack.c.bf16 %v4398_v63, %v4398_v63 }
 0x367   :  { %v4772_v49 = vpop.permute.xlu1 %4771  ;;  %v4194_v21 = vpop.permute.xlu2 %4193 }
 0x368   :  { %5180 = vst [vmem:[#allocation12 + $0x324] sm:$0xf] %v5116_v22  ;;  %v4851_v44 = vmul.f32 %v4772_v49, %v10828_v17  ;;  %v4270_v31 = vmul.f32 %v4194_v21, %v10882_v51  ;;  %v4011_v17 = vld [vmem:[#allocation11 + $0x188] sm:$0xff]  ;;  %v11926_v49 = vld [vmem:[#allocation28_spill] sm:$0xff] }
 0x369   :  { %4593 = vst [vmem:[#allocation12 + $0x2f0] sm:$0xf] %v4529_v8  ;;  %v3050_v5 = vpop.f32.mrf.mxu2 }
 0x36a   :  { %v4915_v41 = vadd.f32 %v4851_v44, %v4659_v52  ;;  %v4334_v35 = vadd.f32 %v4270_v31, %v4078_v38  ;;  %v3219_v13 = vpop.f32.mrf.mxu3  ;;  %v4660_v52 = vmul.f32 %v3947_v61, %v10644_v12  ;;  %v10910_v12 = vld [vmem:[#allocation11 + $0x1a8] sm:$0xff] }
 0x36b   :  { %v10892_v11 = vadd.f32 %v3219_v13, %v3050_v5  ;;  %v3231_v2 = vpop.f32.mrf.mxu0 }
 0x36c   :  { %v4983_v43 = vmul.f32 0.088388346, %v4915_v41  ;;  %v4402_v27 = vmul.f32 0.088388346, %v4334_v35  ;;  %v3400_v25 = vpop.f32.mrf.mxu1 }
 0x36d   :  { %v10894_v20 = vadd.f32 %v3400_v25, %v3231_v2  ;;  %4801 = vrot.lane.b32.xlu1 %v10892_v11, %s7455_s4  ;;  %4217 = vrot.lane.b32.xlu2 %v10890_v58, %s7455_s4 }
 0x36e   :  { %v5114_v63 = vpack.c.bf16 %v4983_v43, %v4983_v43  ;;  %v4533_v22 = vpack.c.bf16 %v4402_v27, %v4402_v27  ;;  %3270 = vmatmul.bf16.gmra.mxu0 %v11925_v1  ;;  %3608 = vmatmul.bf16.gmra.mxu2 %v11925_v1 }
 0x36f   :  { %v4190_v8 = vpop.permute.xlu1 %4189  ;;  %3439 = vmatmul.bf16.gmra.mxu1 %v11926_v49  ;;  %3777 = vmatmul.bf16.gmra.mxu3 %v11926_v49  ;;  %v4774_v21 = vpop.permute.xlu0 %4773 }
 0x370   :  { %5178 = vst [vmem:[#allocation12 + $0x304] sm:$0xf] %v5114_v63  ;;  %v4268_v38 = vmul.f32 %v4190_v8, %v4011_v17  ;;  %5259 = vrot.lane.b32.xlu0 %v10894_v20, %s7455_s4  ;;  %v4852_v44 = vmul.f32 %v4774_v21, %v4011_v17  ;;  %v10912_v8 = vld [vmem:[#allocation9 + $0x1a8] sm:$0xff] }
 0x371   :  { %4597 = vst [vmem:[#allocation12 + $0x330] sm:$0xf] %v4533_v22  ;;  %v3569_v31 = vpop.f32.mrf.mxu2  ;;  %v4664_v49 = vmul.f32 %v10912_v8, %v10716_v19  ;;  %v10926_v19 = vld [vmem:[#allocation11 + $0x1b0] sm:$0xff] }
 0x372   :  { %v4332_v5 = vadd.f32 %v4268_v38, %v4076_v24  ;;  %v4916_v41 = vadd.f32 %v4852_v44, %v4660_v52  ;;  %v3738_v35 = vpop.f32.mrf.mxu3  ;;  %v4077_v24 = vmul.f32 %v10862_v29, %v10664_v57 }
 0x373   :  { %v3739_v42 = vadd.f32 %v3738_v35, %v3569_v31  ;;  %v3233_v13 = vpop.f32.mrf.mxu0 }
 0x374   :  { %v4400_v2 = vmul.f32 0.088388346, %v4332_v5  ;;  %v4984_v43 = vmul.f32 0.088388346, %v4916_v41  ;;  %v3402_v27 = vpop.f32.mrf.mxu1 }
 0x375   :  { %v6234_v25 = vpack.c.bf16 %v3739_v42, %v3739_v42  ;;  %v10908_v1 = vadd.f32 %v3402_v27, %v3233_v13 }
 0x376   :  { %v4531_v61 = vpack.c.bf16 %v4400_v2, %v4400_v2  ;;  %v5115_v63 = vpack.c.bf16 %v4984_v43, %v4984_v43  ;;  %v10922_v43 = vld [vmem:[#allocation9 + $0x1b0] sm:$0xff] }
 0x377   :  { %6298 = vst [vmem:[#allocation12 + $0xc] sm:$0xf] %v6234_v25  ;;  %v4782_v17 = vpop.permute.xlu2 %4781  ;;  %5261 = vrot.lane.b32.xlu2 %v10908_v1, %s7455_s4  ;;  %v4192_v22 = vpop.permute.xlu0 %4191 }
 0x378   :  { %4595 = vst [vmem:[#allocation12 + $0x310] sm:$0xf] %v4531_v61  ;;  %v4856_v21 = vmul.f32 %v4782_v17, %v10910_v12  ;;  %v4269_v52 = vmul.f32 %v4192_v22, %v10858_v39  ;;  %v11927_v39 = vld [vmem:[#allocation29_spill] sm:$0xff]  ;;  %v4662_v61 = vmul.f32 %v10876_v28, %v10684_v50  ;;  %v11928_v22 = vld [vmem:[#allocation30_spill] sm:$0xff] }
 0x379   :  { %5179 = vst [vmem:[#allocation12 + $0x314] sm:$0xf] %v5115_v63  ;;  %v3571_v38 = vpop.f32.mrf.mxu2 }
 0x37a   :  { %v4920_v44 = vadd.f32 %v4856_v21, %v4664_v49  ;;  %v4333_v31 = vadd.f32 %v4269_v52, %v4077_v24  ;;  %v3740_v5 = vpop.f32.mrf.mxu3  ;;  %v4081_v24 = vmul.f32 %v10922_v43, %v10736_v10 }
 0x37b   :  { %v3741_v41 = vadd.f32 %v3740_v5, %v3571_v38  ;;  %v3236_v35 = vpop.f32.mrf.mxu0 }
 0x37c   :  { %v4988_v42 = vmul.f32 0.088388346, %v4920_v44  ;;  %v4401_v13 = vmul.f32 0.088388346, %v4333_v31  ;;  %v3405_v2 = vpop.f32.mrf.mxu1 }
 0x37d   :  { %v6235_v57 = vpack.c.bf16 %v3741_v41, %v3741_v41  ;;  %v10924_v29 = vadd.f32 %v3405_v2, %v3236_v35 }
 0x37e   :  { %v5119_v27 = vpack.c.bf16 %v4988_v42, %v4988_v42  ;;  %v4532_v25 = vpack.c.bf16 %v4401_v13, %v4401_v13  ;;  %3275 = vmatmul.bf16.gmra.mxu0 %v11927_v39  ;;  %3613 = vmatmul.bf16.gmra.mxu2 %v11927_v39  ;;  %v3950_v42 = vld [vmem:[#allocation9 + $0x1a0] sm:$0xff] }
 0x37f   :  { %6299 = vst [vmem:[#allocation12 + $0x1c] sm:$0xf] %v6235_v57  ;;  %v4778_v63 = vpop.permute.xlu1 %4777  ;;  %v4200_v17 = vpop.permute.xlu2 %4199  ;;  %3444 = vmatmul.bf16.gmra.mxu1 %v11928_v22  ;;  %3782 = vmatmul.bf16.gmra.mxu3 %v11928_v22  ;;  %v4079_v39 = vmul.f32 %v3950_v42, %v10696_v56 }
 0x380   :  { %5183 = vst [vmem:[#allocation12 + $0x354] sm:$0xf] %v5119_v27  ;;  %v4854_v49 = vmul.f32 %v4778_v63, %v10882_v51  ;;  %v4273_v21 = vmul.f32 %v4200_v17, %v10926_v19  ;;  %5263 = vrot.lane.b32.xlu1 %v10924_v29, %s7455_s4  ;;  %v4014_v51 = vld [vmem:[#allocation11 + $0x1a0] sm:$0xff] }
 0x381   :  { %4596 = vst [vmem:[#allocation12 + $0x320] sm:$0xf] %v4532_v25  ;;  %v3574_v50 = vpop.f32.mrf.mxu2 }
 0x382   :  { %v4918_v28 = vadd.f32 %v4854_v49, %v4662_v61  ;;  %v4337_v52 = vadd.f32 %v4273_v21, %v4081_v24  ;;  %v3743_v38 = vpop.f32.mrf.mxu3  ;;  %v4663_v61 = vmul.f32 %v3950_v42, %v10698_v55  ;;  %v4080_v42 = vmul.f32 %v10912_v8, %v10714_v14 }
 0x383   :  { %v3744_v44 = vadd.f32 %v3743_v38, %v3574_v50  ;;  %v3238_v31 = vpop.f32.mrf.mxu0 }
 0x384   :  { %v4986_v5 = vmul.f32 0.088388346, %v4918_v28  ;;  %v4405_v41 = vmul.f32 0.088388346, %v4337_v52  ;;  %v3407_v35 = vpop.f32.mrf.mxu1 }
 0x385   :  { %v6236_v10 = vpack.c.bf16 %v3744_v44, %v3744_v44  ;;  %v10940_v13 = vadd.f32 %v3407_v35, %v3238_v31  ;;  %v11929_v35 = vld [vmem:[#allocation31_spill] sm:$0xff] }
 0x386   :  { %v5117_v2 = vpack.c.bf16 %v4986_v5, %v4986_v5  ;;  %v4536_v57 = vpack.c.bf16 %v4405_v41, %v4405_v41  ;;  %v10948_v41 = vld [vmem:[#allocation11 + $0x1c0] sm:$0xff] }
 0x387   :  { %6300 = vst [vmem:[#allocation12 + $0x2c] sm:$0xf] %v6236_v10  ;;  %v4196_v27 = vpop.permute.xlu1 %4195  ;;  %5265 = vrot.lane.b32.xlu0 %v10940_v13, %s7455_s4  ;;  %v4780_v25 = vpop.permute.xlu0 %4779  ;;  %v10954_v10 = vld [vmem:[#allocation9 + $0x1c0] sm:$0xff] }
 0x388   :  { %5181 = vst [vmem:[#allocation12 + $0x334] sm:$0xf] %v5117_v2  ;;  %v4271_v63 = vmul.f32 %v4196_v27, %v4014_v51  ;;  %v4855_v17 = vmul.f32 %v4780_v25, %v4014_v51  ;;  %v11930_v2 = vld [vmem:[#allocation90_spill] sm:$0xff]  ;;  %v4667_v27 = vmul.f32 %v10954_v10, %v10770_v54 }
 0x389   :  { %4600 = vst [vmem:[#allocation12 + $0x360] sm:$0xf] %v4536_v57  ;;  %v3576_v22 = vpop.f32.mrf.mxu2 }
 0x38a   :  { %v4335_v24 = vadd.f32 %v4271_v63, %v4079_v39  ;;  %v4919_v49 = vadd.f32 %v4855_v17, %v4663_v61  ;;  %v3745_v21 = vpop.f32.mrf.mxu3 }
 0x38b   :  { %v3746_v50 = vadd.f32 %v3745_v21, %v3576_v22  ;;  %v3241_v28 = vpop.f32.mrf.mxu0 }
 0x38c   :  { %v4403_v52 = vmul.f32 0.088388346, %v4335_v24  ;;  %v4987_v38 = vmul.f32 0.088388346, %v4919_v49  ;;  %v3410_v44 = vpop.f32.mrf.mxu1 }
 0x38d   :  { %v6237_v31 = vpack.c.bf16 %v3746_v50, %v3746_v50  ;;  %v10946_v5 = vadd.f32 %v3410_v44, %v3241_v28  ;;  %v10964_v50 = vld [vmem:[#allocation9 + $0x1c8] sm:$0xff] }
 0x38e   :  { %v4534_v56 = vpack.c.bf16 %v4403_v52, %v4403_v52  ;;  %v5118_v55 = vpack.c.bf16 %v4987_v38, %v4987_v38  ;;  %3280 = vmatmul.bf16.gmra.mxu0 %v11929_v35  ;;  %3618 = vmatmul.bf16.gmra.mxu2 %v11929_v35  ;;  %v10968_v52 = vld [vmem:[#allocation11 + $0x1c8] sm:$0xff] }
 0x38f   :  { %6301 = vst [vmem:[#allocation12 + $0x3c] sm:$0xf] %v6237_v31  ;;  %v4788_v51 = vpop.permute.xlu2 %4787  ;;  %3449 = vmatmul.bf16.gmra.mxu1 %v11930_v2  ;;  %3787 = vmatmul.bf16.gmra.mxu3 %v11930_v2  ;;  %v4198_v57 = vpop.permute.xlu0 %4197 }
 0x390   :  { %4598 = vst [vmem:[#allocation12 + $0x340] sm:$0xf] %v4534_v56  ;;  %v4859_v25 = vmul.f32 %v4788_v51, %v10948_v41  ;;  %5267 = vrot.lane.b32.xlu2 %v10946_v5, %s7455_s4  ;;  %v4272_v14 = vmul.f32 %v4198_v57, %v10910_v12  ;;  %v4665_v56 = vmul.f32 %v10922_v43, %v10738_v18 }
 0x391   :  { %5182 = vst [vmem:[#allocation12 + $0x344] sm:$0xf] %v5118_v55  ;;  %v3579_v8 = vpop.f32.mrf.mxu2  ;;  %v4084_v55 = vmul.f32 %v10964_v50, %v10786_v0  ;;  %v4017_v0 = vld [vmem:[#allocation11 + $0x1b8] sm:$0xff] }
 0x392   :  { %v4923_v39 = vadd.f32 %v4859_v25, %v4667_v27  ;;  %v4336_v61 = vadd.f32 %v4272_v14, %v4080_v42  ;;  %v3748_v63 = vpop.f32.mrf.mxu3 }
 0x393   :  { %v3749_v17 = vadd.f32 %v3748_v63, %v3579_v8  ;;  %v3243_v22 = vpop.f32.mrf.mxu0  ;;  %v3953_v8 = vld [vmem:[#allocation9 + $0x1b8] sm:$0xff] }
 0x394   :  { %v4991_v24 = vmul.f32 0.088388346, %v4923_v39  ;;  %v4404_v49 = vmul.f32 0.088388346, %v4336_v61  ;;  %v3412_v21 = vpop.f32.mrf.mxu1 }
 0x395   :  { %v6238_v54 = vpack.c.bf16 %v3749_v17, %v3749_v17  ;;  %v10966_v28 = vadd.f32 %v3412_v21, %v3243_v22  ;;  %v11932_v21 = vld [vmem:[#allocation92_spill] sm:$0xff] }
 0x396   :  { %v5122_v38 = vpack.c.bf16 %v4991_v24, %v4991_v24  ;;  %v4535_v44 = vpack.c.bf16 %v4404_v49, %v4404_v49  ;;  %v4082_v24 = vmul.f32 %v3953_v8, %v10746_v48 }
 0x397   :  { %6302 = vst [vmem:[#allocation12 + $0x4c] sm:$0xf] %v6238_v54  ;;  %v4784_v12 = vpop.permute.xlu1 %4783  ;;  %v4206_v31 = vpop.permute.xlu2 %4205  ;;  %5269 = vrot.lane.b32.xlu1 %v10966_v28, %s7455_s4 }
 0x398   :  { %5186 = vst [vmem:[#allocation12 + $0x384] sm:$0xf] %v5122_v38  ;;  %v4857_v35 = vmul.f32 %v4784_v12, %v10926_v19  ;;  %v4276_v42 = vmul.f32 %v4206_v31, %v10968_v52  ;;  %v11931_v19 = vld [vmem:[#allocation91_spill] sm:$0xff]  ;;  %v4666_v38 = vmul.f32 %v3953_v8, %v10748_v34  ;;  %v10990_v34 = vld [vmem:[#allocation11 + $0x1d8] sm:$0xff] }
 0x399   :  { %4599 = vst [vmem:[#allocation12 + $0x350] sm:$0xf] %v4535_v44  ;;  %v3581_v51 = vpop.f32.mrf.mxu2 }
 0x39a   :  { %v4921_v2 = vadd.f32 %v4857_v35, %v4665_v56  ;;  %v4340_v57 = vadd.f32 %v4276_v42, %v4084_v55  ;;  %v3750_v27 = vpop.f32.mrf.mxu3 }
 0x39b   :  { %v3751_v25 = vadd.f32 %v3750_v27, %v3581_v51  ;;  %v3246_v14 = vpop.f32.mrf.mxu0 }
 0x39c   :  { %v4989_v39 = vmul.f32 0.088388346, %v4921_v2  ;;  %v4408_v61 = vmul.f32 0.088388346, %v4340_v57  ;;  %v3415_v63 = vpop.f32.mrf.mxu1 }
 0x39d   :  { %v6239_v18 = vpack.c.bf16 %v3751_v25, %v3751_v25  ;;  %v10978_v43 = vadd.f32 %v3415_v63, %v3246_v14 }
 0x39e   :  { %v5120_v17 = vpack.c.bf16 %v4989_v39, %v4989_v39  ;;  %v4539_v22 = vpack.c.bf16 %v4408_v61, %v4408_v61  ;;  %3285 = vmatmul.bf16.gmra.mxu0 %v11931_v19  ;;  %3623 = vmatmul.bf16.gmra.mxu2 %v11931_v19  ;;  %v10992_v39 = vld [vmem:[#allocation9 + $0x1d8] sm:$0xff] }
 0x39f   :  { %6303 = vst [vmem:[#allocation12 + $0x5c] sm:$0xf] %v6239_v18  ;;  %v4202_v49 = vpop.permute.xlu1 %4201  ;;  %3454 = vmatmul.bf16.gmra.mxu1 %v11932_v21  ;;  %3792 = vmatmul.bf16.gmra.mxu3 %v11932_v21  ;;  %v4786_v54 = vpop.permute.xlu0 %4785  ;;  %v4083_v18 = vmul.f32 %v10954_v10, %v10768_v33 }
 0x3a0   :  { %5184 = vst [vmem:[#allocation12 + $0x364] sm:$0xf] %v5120_v17  ;;  %v4274_v44 = vmul.f32 %v4202_v49, %v4017_v0  ;;  %5271 = vrot.lane.b32.xlu0 %v10978_v43, %s7455_s4  ;;  %v4858_v12 = vmul.f32 %v4786_v54, %v4017_v0  ;;  %v4670_v0 = vmul.f32 %v10992_v39, %v10820_v46  ;;  %v11006_v46 = vld [vmem:[#allocation11 + $0x1e0] sm:$0xff] }
 0x3a1   :  { %4603 = vst [vmem:[#allocation12 + $0x390] sm:$0xf] %v4539_v22  ;;  %v3584_v31 = vpop.f32.mrf.mxu2 }
 0x3a2   :  { %v4338_v56 = vadd.f32 %v4274_v44, %v4082_v24  ;;  %v4922_v55 = vadd.f32 %v4858_v12, %v4666_v38  ;;  %v3753_v48 = vpop.f32.mrf.mxu3 }
 0x3a3   :  { %v3754_v35 = vadd.f32 %v3753_v48, %v3584_v31  ;;  %v3248_v42 = vpop.f32.mrf.mxu0 }
 0x3a4   :  { %v4406_v51 = vmul.f32 0.088388346, %v4338_v56  ;;  %v4990_v2 = vmul.f32 0.088388346, %v4922_v55  ;;  %v3417_v57 = vpop.f32.mrf.mxu1  ;;  %v11002_v56 = vld [vmem:[#allocation9 + $0x1e0] sm:$0xff] }
 0x3a5   :  { %v6240_v27 = vpack.c.bf16 %v3754_v35, %v3754_v35  ;;  %v10988_v25 = vadd.f32 %v3417_v57, %v3248_v42  ;;  %v4668_v35 = vmul.f32 %v10964_v50, %v10788_v45  ;;  %v4087_v57 = vmul.f32 %v11002_v56, %v10840_v9 }
 0x3a6   :  { %v4537_v14 = vpack.c.bf16 %v4406_v51, %v4406_v51  ;;  %v5121_v8 = vpack.c.bf16 %v4990_v2, %v4990_v2  ;;  %v11934_v2 = vld [vmem:[#allocation37_spill] sm:$0xff] }
 0x3a7   :  { %6304 = vst [vmem:[#allocation12 + $0x6c] sm:$0xf] %v6240_v27  ;;  %v4794_v61 = vpop.permute.xlu2 %4793  ;;  %5273 = vrot.lane.b32.xlu2 %v10988_v25, %s7455_s4  ;;  %v4204_v63 = vpop.permute.xlu0 %4203 }
 0x3a8   :  { %4601 = vst [vmem:[#allocation12 + $0x370] sm:$0xf] %v4537_v14  ;;  %v4862_v17 = vmul.f32 %v4794_v61, %v10990_v34  ;;  %v4275_v22 = vmul.f32 %v4204_v63, %v10948_v41  ;;  %v11933_v41 = vld [vmem:[#allocation36_spill] sm:$0xff] }
 0x3a9   :  { %5185 = vst [vmem:[#allocation12 + $0x374] sm:$0xf] %v5121_v8  ;;  %v3586_v19 = vpop.f32.mrf.mxu2 }
 0x3aa   :  { %v4926_v24 = vadd.f32 %v4862_v17, %v4670_v0  ;;  %v4339_v49 = vadd.f32 %v4275_v22, %v4083_v18  ;;  %v3755_v21 = vpop.f32.mrf.mxu3 }
 0x3ab   :  { %v3756_v54 = vadd.f32 %v3755_v21, %v3586_v19  ;;  %v3251_v38 = vpop.f32.mrf.mxu0  ;;  %v3956_v19 = vld [vmem:[#allocation9 + $0x1d0] sm:$0xff] }
 0x3ac   :  { %v4994_v44 = vmul.f32 0.088388346, %v4926_v24  ;;  %v4407_v12 = vmul.f32 0.088388346, %v4339_v49  ;;  %v3420_v31 = vpop.f32.mrf.mxu1 }
 0x3ad   :  { %v6241_v33 = vpack.c.bf16 %v3756_v54, %v3756_v54  ;;  %v11004_v10 = vadd.f32 %v3420_v31, %v3251_v38 }
 0x3ae   :  { %v5125_v55 = vpack.c.bf16 %v4994_v44, %v4994_v44  ;;  %v4538_v48 = vpack.c.bf16 %v4407_v12, %v4407_v12  ;;  %3290 = vmatmul.bf16.gmra.mxu0 %v11933_v41  ;;  %3628 = vmatmul.bf16.gmra.mxu2 %v11933_v41  ;;  %v4085_v44 = vmul.f32 %v3956_v19, %v10800_v26 }
 0x3af   :  { %6305 = vst [vmem:[#allocation12 + $0x7c] sm:$0xf] %v6241_v33  ;;  %v4790_v42 = vpop.permute.xlu1 %4789  ;;  %v4212_v51 = vpop.permute.xlu2 %4211  ;;  %3459 = vmatmul.bf16.gmra.mxu1 %v11934_v2  ;;  %3797 = vmatmul.bf16.gmra.mxu3 %v11934_v2  ;;  %v4669_v12 = vmul.f32 %v3956_v19, %v10802_v36 }
 0x3b0   :  { %5189 = vst [vmem:[#allocation12 + $0x3b4] sm:$0xf] %v5125_v55  ;;  %v4860_v27 = vmul.f32 %v4790_v42, %v10968_v52  ;;  %v4279_v14 = vmul.f32 %v4212_v51, %v11006_v46  ;;  %5275 = vrot.lane.b32.xlu1 %v11004_v10, %s7455_s4  ;;  %v4020_v52 = vld [vmem:[#allocation11 + $0x1d0] sm:$0xff] }
 0x3b1   :  { %4602 = vst [vmem:[#allocation12 + $0x380] sm:$0xf] %v4538_v48  ;;  %v3589_v45 = vpop.f32.mrf.mxu2 }
 0x3b2   :  { %v4924_v50 = vadd.f32 %v4860_v27, %v4668_v35  ;;  %v4343_v8 = vadd.f32 %v4279_v14, %v4087_v57  ;;  %v3758_v61 = vpop.f32.mrf.mxu3 }
 0x3b3   :  { %v3759_v63 = vadd.f32 %v3758_v61, %v3589_v45  ;;  %v3253_v18 = vpop.f32.mrf.mxu0  ;;  %v4086_v61 = vmul.f32 %v10992_v39, %v10818_v23 }
 0x3b4   :  { %v4992_v0 = vmul.f32 0.088388346, %v4924_v50  ;;  %v4411_v17 = vmul.f32 0.088388346, %v4343_v8  ;;  %v3422_v22 = vpop.f32.mrf.mxu1  ;;  %v11028_v50 = vld [vmem:[#allocation11 + $0x1f0] sm:$0xff] }
 0x3b5   :  { %v6242_v9 = vpack.c.bf16 %v3759_v63, %v3759_v63  ;;  %v11020_v24 = vadd.f32 %v3422_v22, %v3253_v18  ;;  %v11935_v8 = vld [vmem:[#allocation51_spill] sm:$0xff]  ;;  %v11936_v18 = vld [vmem:[#allocation41_spill] sm:$0xff] }
 0x3b6   :  { %v5123_v49 = vpack.c.bf16 %v4992_v0, %v4992_v0  ;;  %v4542_v21 = vpack.c.bf16 %v4411_v17, %v4411_v17  ;;  %v11034_v63 = vld [vmem:[#allocation9 + $0x1f0] sm:$0xff] }
 0x3b7   :  { %6306 = vst [vmem:[#allocation12 + $0x8c] sm:$0xf] %v6242_v9  ;;  %v4208_v54 = vpop.permute.xlu1 %4207  ;;  %5277 = vrot.lane.b32.xlu0 %v11020_v24, %s7455_s4  ;;  %v4792_v38 = vpop.permute.xlu0 %4791  ;;  %v4673_v22 = vmul.f32 %v11034_v63, %v10874_v37 }
 0x3b8   :  { %5187 = vst [vmem:[#allocation12 + $0x394] sm:$0xf] %v5123_v49  ;;  %v4277_v31 = vmul.f32 %v4208_v54, %v4020_v52  ;;  %v4861_v33 = vmul.f32 %v4792_v38, %v4020_v52 }
 0x3b9   :  { %4606 = vst [vmem:[#allocation12 + $0x3c0] sm:$0xf] %v4542_v21  ;;  %v3591_v55 = vpop.f32.mrf.mxu2 }
 0x3ba   :  { %v4341_v48 = vadd.f32 %v4277_v31, %v4085_v44  ;;  %v4925_v41 = vadd.f32 %v4861_v33, %v4669_v12  ;;  %v3760_v35 = vpop.f32.mrf.mxu3  ;;  %v11044_v31 = vld [vmem:[#allocation9 + $0x1f8] sm:$0xff] }
 0x3bb   :  { %v3761_v42 = vadd.f32 %v3760_v35, %v3591_v55  ;;  %v3256_v51 = vpop.f32.mrf.mxu0  ;;  %v11048_v55 = vld [vmem:[#allocation11 + $0x1f8] sm:$0xff] }
 0x3bc   :  { %v4409_v2 = vmul.f32 0.088388346, %v4341_v48  ;;  %v4993_v57 = vmul.f32 0.088388346, %v4925_v41  ;;  %v3425_v27 = vpop.f32.mrf.mxu1 }
 0x3bd   :  { %v6243_v14 = vpack.c.bf16 %v3761_v42, %v3761_v42  ;;  %v11026_v45 = vadd.f32 %v3425_v27, %v3256_v51  ;;  %v4671_v42 = vmul.f32 %v11002_v56, %v10842_v30  ;;  %v4090_v51 = vmul.f32 %v11044_v31, %v10890_v58  ;;  %v4023_v58 = vld [vmem:[#allocation11 + $0x1e8] sm:$0xff] }
 0x3be   :  { %v4540_v26 = vpack.c.bf16 %v4409_v2, %v4409_v2  ;;  %v5124_v36 = vpack.c.bf16 %v4993_v57, %v4993_v57  ;;  %3295 = vmatmul.bf16.gmra.mxu0 %v11935_v8  ;;  %3633 = vmatmul.bf16.gmra.mxu2 %v11935_v8 }
 0x3bf   :  { %6307 = vst [vmem:[#allocation12 + $0x9c] sm:$0xf] %v6243_v14  ;;  %3802 = vmatmul.bf16.gmra.mxu3 %v11936_v18  ;;  %v4800_v0 = vpop.permute.xlu2 %4799  ;;  %3464 = vmatmul.bf16.gmra.mxu1 %v11936_v18  ;;  %v4210_v17 = vpop.permute.xlu0 %4209  ;;  %v3959_v18 = vld [vmem:[#allocation9 + $0x1e8] sm:$0xff] }
 0x3c0   :  { %4604 = vst [vmem:[#allocation12 + $0x3a0] sm:$0xf] %v4540_v26  ;;  %v4865_v19 = vmul.f32 %v4800_v0, %v11028_v50  ;;  %5279 = vrot.lane.b32.xlu2 %v11026_v45, %s7455_s4  ;;  %v4278_v23 = vmul.f32 %v4210_v17, %v10990_v34 }
 0x3c1   :  { %5188 = vst [vmem:[#allocation12 + $0x3a4] sm:$0xf] %v5124_v36  ;;  %v3594_v39 = vpop.f32.mrf.mxu2 }
 0x3c2   :  { %v4929_v9 = vadd.f32 %v4865_v19, %v4673_v22  ;;  %v4342_v52 = vadd.f32 %v4278_v23, %v4086_v61  ;;  %v3763_v49 = vpop.f32.mrf.mxu3 }
 0x3c3   :  { %v3764_v21 = vadd.f32 %v3763_v49, %v3594_v39  ;;  %v3258_v54 = vpop.f32.mrf.mxu0  ;;  %v4088_v39 = vmul.f32 %v3959_v18, %v10850_v7 }
 0x3c4   :  { %v4997_v38 = vmul.f32 0.088388346, %v4929_v9  ;;  %v4410_v44 = vmul.f32 0.088388346, %v4342_v52  ;;  %v3427_v12 = vpop.f32.mrf.mxu1  ;;  %v11938_v52 = vld [vmem:[#allocation60_spill] sm:$0xff] }
 0x3c5   :  { %v6244_v37 = vpack.c.bf16 %v3764_v21, %v3764_v21  ;;  %v11046_v33 = vadd.f32 %v3427_v12, %v3258_v54  ;;  %v4672_v21 = vmul.f32 %v3959_v18, %v10852_v16 }
 0x3c6   :  { %v5128_v48 = vpack.c.bf16 %v4997_v38, %v4997_v38  ;;  %v4541_v41 = vpack.c.bf16 %v4410_v44, %v4410_v44 }
 0x3c7   :  { %6308 = vst [vmem:[#allocation12 + $0xac] sm:$0xf] %v6244_v37  ;;  %v4796_v34 = vpop.permute.xlu1 %4795  ;;  %5281 = vrot.lane.b32.xlu1 %v11046_v33, %s7455_s4  ;;  %v4218_v35 = vpop.permute.xlu2 %4217  ;;  %v7165_v37 = vld [vmem:[#allocation9 + $0x8] sm:$0xff] }
 0x3c8   :  { %5192 = vst [vmem:[#allocation12 + $0x3e4] sm:$0xf] %v5128_v48  ;;  %v4863_v2 = vmul.f32 %v4796_v34, %v11006_v46  ;;  %v4282_v57 = vmul.f32 %v4218_v35, %v11048_v55  ;;  %v11937_v46 = vld [vmem:[#allocation47_spill] sm:$0xff]  ;;  %v5196_v7 = vmul.f32 %v7165_v37, %v10908_v1  ;;  %v7166_v34 = vld [vmem:[#allocation11 + $0x8] sm:$0xff] }
 0x3c9   :  { %4605 = vst [vmem:[#allocation12 + $0x3b0] sm:$0xf] %v4541_v41  ;;  %v3596_v27 = vpop.f32.mrf.mxu2 }
 0x3ca   :  { %v4927_v14 = vadd.f32 %v4863_v2, %v4671_v42  ;;  %v4346_v26 = vadd.f32 %v4282_v57, %v4090_v51  ;;  %v3765_v36 = vpop.f32.mrf.mxu3 }
 0x3cb   :  { %v3766_v8 = vadd.f32 %v3765_v36, %v3596_v27  ;;  %v3261_v61 = vpop.f32.mrf.mxu0 }
 0x3cc   :  { %v4995_v0 = vmul.f32 0.088388346, %v4927_v14  ;;  %v4414_v17 = vmul.f32 0.088388346, %v4346_v26  ;;  %v3430_v22 = vpop.f32.mrf.mxu1 }
 0x3cd   :  { %v6245_v30 = vpack.c.bf16 %v3766_v8, %v3766_v8  ;;  %v11058_v56 = vadd.f32 %v3430_v22, %v3261_v61 }
 0x3ce   :  { %v5126_v19 = vpack.c.bf16 %v4995_v0, %v4995_v0  ;;  %v4545_v23 = vpack.c.bf16 %v4414_v17, %v4414_v17  ;;  %3300 = vmatmul.bf16.gmra.mxu0 %v11937_v46  ;;  %3638 = vmatmul.bf16.gmra.mxu2 %v11937_v46  ;;  %v4089_v0 = vmul.f32 %v11034_v63, %v10872_v15  ;;  %v11939_v15 = vld [vmem:[#allocation59_spill] sm:$0xff] }
 0x3cf   :  { %6309 = vst [vmem:[#allocation12 + $0xbc] sm:$0xf] %v6245_v30  ;;  %v4214_v9 = vpop.permute.xlu1 %4213  ;;  %3469 = vmatmul.bf16.gmra.mxu1 %v11938_v52  ;;  %3807 = vmatmul.bf16.gmra.mxu3 %v11938_v52  ;;  %v4798_v49 = vpop.permute.xlu0 %4797  ;;  %v4674_v63 = vmul.f32 %v11044_v31, %v10892_v11 }
 0x3d0   :  { %5190 = vst [vmem:[#allocation12 + $0x3c4] sm:$0xf] %v5126_v19  ;;  %v4280_v54 = vmul.f32 %v4214_v9, %v4023_v58  ;;  %5283 = vrot.lane.b32.xlu0 %v11058_v56, %s7455_s4  ;;  %v4864_v38 = vmul.f32 %v4798_v49, %v4023_v58 }
 0x3d1   :  { %4609 = vst [vmem:[#allocation12 + $0x3f0] sm:$0xf] %v4545_v23  ;;  %v5262_v44 = vpop.permute.xlu2 %5261  ;;  %v3599_v12 = vpop.f32.mrf.mxu2 }
 0x3d2   :  { %v4344_v48 = vadd.f32 %v4280_v54, %v4088_v39  ;;  %v4928_v41 = vadd.f32 %v4864_v38, %v4672_v21  ;;  %v5388_v35 = vmul.f32 %v7166_v34, %v5262_v44  ;;  %v3768_v42 = vpop.f32.mrf.mxu3 }
 0x3d3   :  { %v3769_v51 = vadd.f32 %v3768_v42, %v3599_v12  ;;  %v3263_v2 = vpop.f32.mrf.mxu0 }
 0x3d4   :  { %v4412_v16 = vmul.f32 0.088388346, %v4344_v48  ;;  %v4996_v57 = vmul.f32 0.088388346, %v4928_v41  ;;  %v5452_v27 = vadd.f32 %v5388_v35, %v5196_v7  ;;  %v3432_v14 = vpop.f32.mrf.mxu1  ;;  %v7168_v7 = vld [vmem:[#allocation11] sm:$0xff] }
 0x3d5   :  { %v6246_v26 = vpack.c.bf16 %v3769_v51, %v3769_v51  ;;  %v11069_v36 = vadd.f32 %v3432_v14, %v3263_v2 }
 0x3d6   :  { %v4543_v8 = vpack.c.bf16 %v4412_v16, %v4412_v16  ;;  %v5127_v61 = vpack.c.bf16 %v4996_v57, %v4996_v57  ;;  %v5651_v18 = vpack.c.bf16 %v5452_v27, %v5452_v27  ;;  %v7169_v27 = vld [vmem:[#allocation9 + $0x20] sm:$0xff] }
 0x3d7   :  { %6310 = vst [vmem:[#allocation12 + $0xcc] sm:$0xf] %v6246_v26  ;;  %5285 = vrot.lane.b32.xlu2 %v11069_v36, %s7455_s4  ;;  %v4216_v1 = vpop.permute.xlu0 %4215  ;;  %v5199_v14 = vmul.f32 %v7169_v27, %v10946_v5  ;;  %v7170_v26 = vld [vmem:[#allocation11 + $0x20] sm:$0xff] }
 0x3d8   :  { %4607 = vst [vmem:[#allocation12 + $0x3d0] sm:$0xf] %v4543_v8  ;;  %v4281_v17 = vmul.f32 %v4216_v1, %v11028_v50 }
 0x3d9   :  { %5191 = vst [vmem:[#allocation12 + $0x3d4] sm:$0xf] %v5127_v61  ;;  %v3601_v22 = vpop.f32.mrf.mxu2 }
 0x3da   :  { %5715 = vst [vmem:[#allocation12 + $0x18] sm:$0xf] %v5651_v18  ;;  %v4345_v30 = vadd.f32 %v4281_v17, %v4089_v0  ;;  %v3770_v58 = vpop.f32.mrf.mxu3 }
 0x3db   :  { %v3771_v19 = vadd.f32 %v3770_v58, %v3601_v22  ;;  %v3266_v23 = vpop.f32.mrf.mxu0 }
 0x3dc   :  { %v4413_v46 = vmul.f32 0.088388346, %v4345_v30  ;;  %v3435_v39 = vpop.f32.mrf.mxu1 }
 0x3dd   :  { %v6247_v9 = vpack.c.bf16 %v3771_v19, %v3771_v19  ;;  %v11076_v52 = vadd.f32 %v3435_v39, %v3266_v23  ;;  %v7171_v23 = vld [vmem:[#allocation9 + $0x10] sm:$0xff] }
 0x3de   :  { %v4544_v49 = vpack.c.bf16 %v4413_v46, %v4413_v46  ;;  %3305 = vmatmul.bf16.gmra.mxu0 %v9750_v4  ;;  %3643 = vmatmul.bf16.gmra.mxu2 %v9750_v4  ;;  %v7167_v4 = vld [vmem:[#allocation9] sm:$0xff]  ;;  %v5197_v46 = vmul.f32 %v7171_v23, %v10924_v29  ;;  %v7172_v39 = vld [vmem:[#allocation11 + $0x10] sm:$0xff] }
 0x3df   :  { %6311 = vst [vmem:[#allocation12 + $0xdc] sm:$0xf] %v6247_v9  ;;  %3812 = vmatmul.bf16.gmra.mxu3 %v11939_v15  ;;  %v4802_v50 = vpop.permute.xlu1 %4801  ;;  %3474 = vmatmul.bf16.gmra.mxu1 %v11939_v15  ;;  %v5195_v37 = vmul.f32 %v7167_v4, %v10894_v20 }
 0x3e0   :  { %4608 = vst [vmem:[#allocation12 + $0x3e0] sm:$0xf] %v4544_v49  ;;  %v4866_v21 = vmul.f32 %v4802_v50, %v11048_v55  ;;  %5287 = vrot.lane.b32.xlu1 %v11076_v52, %s7455_s4 }
 0x3e1   :  { %v3604_v54 = vpop.f32.mrf.mxu2 }
 0x3e2   :  { %v4930_v38 = vadd.f32 %v4866_v21, %v4674_v63  ;;  %v5260_v44 = vpop.permute.xlu0 %5259  ;;  %v3773_v12 = vpop.f32.mrf.mxu3 }
 0x3e3   :  { %v5387_v48 = vmul.f32 %v7168_v7, %v5260_v44  ;;  %v3774_v41 = vadd.f32 %v3773_v12, %v3604_v54  ;;  %v3268_v34 = vpop.f32.mrf.mxu0  ;;  %v7173_v44 = vld [vmem:[#allocation9 + $0x18] sm:$0xff] }
 0x3e4   :  { %v4998_v35 = vmul.f32 0.088388346, %v4930_v38  ;;  %v3437_v42 = vpop.f32.mrf.mxu1  ;;  %v5198_v29 = vmul.f32 %v7173_v44, %v10940_v13  ;;  %v7174_v12 = vld [vmem:[#allocation11 + $0x18] sm:$0xff] }
 0x3e5   :  { %v5451_v11 = vadd.f32 %v5387_v48, %v5195_v37  ;;  %v6248_v31 = vpack.c.bf16 %v3774_v41, %v3774_v41  ;;  %v11088_v51 = vadd.f32 %v3437_v42, %v3268_v34 }
 0x3e6   :  { %v5129_v55 = vpack.c.bf16 %v4998_v35, %v4998_v35 }
 0x3e7   :  { %v5650_v2 = vpack.c.bf16 %v5451_v11, %v5451_v11  ;;  %6312 = vst [vmem:[#allocation12 + $0xec] sm:$0xf] %v6248_v31  ;;  %5289 = vrot.lane.b32.xlu0 %v11088_v51, %s7455_s4 }
 0x3e8   :  { %5193 = vst [vmem:[#allocation12 + $0x3f4] sm:$0xf] %v5129_v55  ;;  %v7175_v55 = vld [vmem:[#allocation9 + $0x38] sm:$0xff] }
 0x3e9   :  { %5714 = vst [vmem:[#allocation12 + $0x8] sm:$0xf] %v5650_v2  ;;  %v3606_v16 = vpop.f32.mrf.mxu2  ;;  %v5202_v2 = vmul.f32 %v7175_v55, %v10988_v25 }
 0x3ea   :  { %v5268_v20 = vpop.permute.xlu2 %5267  ;;  %v3775_v57 = vpop.f32.mrf.mxu3 }
 0x3eb   :  { %v5391_v8 = vmul.f32 %v7170_v26, %v5268_v20  ;;  %v3776_v61 = vadd.f32 %v3775_v57, %v3606_v16  ;;  %v3271_v18 = vpop.f32.mrf.mxu0  ;;  %v7176_v16 = vld [vmem:[#allocation11 + $0x38] sm:$0xff] }
 0x3ec   :  { %v3440_v1 = vpop.f32.mrf.mxu1 }
 0x3ed   :  { %v5455_v0 = vadd.f32 %v5391_v8, %v5199_v14  ;;  %v6249_v17 = vpack.c.bf16 %v3776_v61, %v3776_v61  ;;  %v11093_v22 = vadd.f32 %v3440_v1, %v3271_v18 }
 0x3ee   :  { %3310 = vmatmul.bf16.gmra.mxu0 %v9907_v60  ;;  %3648 = vmatmul.bf16.gmra.mxu2 %v9907_v60 }
 0x3ef   :  { %v5654_v30 = vpack.c.bf16 %v5455_v0, %v5455_v0  ;;  %6313 = vst [vmem:[#allocation12 + $0xfc] sm:$0xf] %v6249_v17  ;;  %3479 = vmatmul.bf16.gmra.mxu1 %v9917_v59  ;;  %3817 = vmatmul.bf16.gmra.mxu3 %v9917_v59  ;;  %v7177_v0 = vld [vmem:[#allocation9 + $0x28] sm:$0xff] }
 0x3f0   :  { %5291 = vrot.lane.b32.xlu2 %v11093_v22, %s7455_s4  ;;  %v5200_v25 = vmul.f32 %v7177_v0, %v10966_v28  ;;  %v7178_v17 = vld [vmem:[#allocation11 + $0x28] sm:$0xff] }
 0x3f1   :  { %5718 = vst [vmem:[#allocation12 + $0x48] sm:$0xf] %v5654_v30  ;;  %v3609_v5 = vpop.f32.mrf.mxu2 }
 0x3f2   :  { %v5264_v58 = vpop.permute.xlu1 %5263  ;;  %v3778_v19 = vpop.f32.mrf.mxu3 }
 0x3f3   :  { %v5389_v9 = vmul.f32 %v7172_v39, %v5264_v58  ;;  %v3779_v49 = vadd.f32 %v3778_v19, %v3609_v5  ;;  %v3273_v60 = vpop.f32.mrf.mxu0 }
 0x3f4   :  { %v3442_v15 = vpop.f32.mrf.mxu1 }
 0x3f5   :  { %v5453_v50 = vadd.f32 %v5389_v9, %v5197_v46  ;;  %v6250_v63 = vpack.c.bf16 %v3779_v49, %v3779_v49  ;;  %v11102_v21 = vadd.f32 %v3442_v15, %v3273_v60  ;;  %v11940_v60 = vld [vmem:[#allocation67_spill] sm:$0xff]  ;;  %v11941_v15 = vld [vmem:[#allocation56_spill] sm:$0xff] }
 0x3f7   :  { %v5652_v59 = vpack.c.bf16 %v5453_v50, %v5453_v50  ;;  %6314 = vst [vmem:[#allocation12 + $0x10c] sm:$0xf] %v6250_v63  ;;  %5293 = vrot.lane.b32.xlu1 %v11102_v21, %s7455_s4 }
 0x3f9   :  { %5716 = vst [vmem:[#allocation12 + $0x28] sm:$0xf] %v5652_v59  ;;  %v5266_v54 = vpop.permute.xlu0 %5265  ;;  %v3611_v38 = vpop.f32.mrf.mxu2  ;;  %v7179_v59 = vld [vmem:[#allocation9 + $0x30] sm:$0xff] }
 0x3fa   :  { %v5390_v4 = vmul.f32 %v7174_v12, %v5266_v54  ;;  %v3780_v37 = vpop.f32.mrf.mxu3  ;;  %v5201_v54 = vmul.f32 %v7179_v59, %v10978_v43 }
 0x3fb   :  { %v3781_v7 = vadd.f32 %v3780_v37, %v3611_v38  ;;  %v3276_v48 = vpop.f32.mrf.mxu0  ;;  %v7180_v38 = vld [vmem:[#allocation11 + $0x30] sm:$0xff] }
 0x3fc   :  { %v5454_v41 = vadd.f32 %v5390_v4, %v5198_v29  ;;  %v3445_v34 = vpop.f32.mrf.mxu1 }
 0x3fd   :  { %v6251_v35 = vpack.c.bf16 %v3781_v7, %v3781_v7  ;;  %v11107_v42 = vadd.f32 %v3445_v34, %v3276_v48 }
 0x3fe   :  { %v5653_v11 = vpack.c.bf16 %v5454_v41, %v5454_v41  ;;  %3315 = vmatmul.bf16.gmra.mxu0 %v10033_v40  ;;  %3653 = vmatmul.bf16.gmra.mxu2 %v10033_v40 }
 0x3ff   :  { %6315 = vst [vmem:[#allocation12 + $0x11c] sm:$0xf] %v6251_v35  ;;  %3484 = vmatmul.bf16.gmra.mxu1 %v10052_v6  ;;  %3822 = vmatmul.bf16.gmra.mxu3 %v10052_v6 }
 0x400   :  { %5717 = vst [vmem:[#allocation12 + $0x38] sm:$0xf] %v5653_v11  ;;  %5295 = vrot.lane.b32.xlu0 %v11107_v42, %s7455_s4 }
 0x401   :  { %v5274_v13 = vpop.permute.xlu2 %5273  ;;  %v3614_v31 = vpop.f32.mrf.mxu2 }
 0x402   :  { %v5394_v20 = vmul.f32 %v7176_v16, %v5274_v13  ;;  %v3783_v57 = vpop.f32.mrf.mxu3  ;;  %v7181_v13 = vld [vmem:[#allocation9 + $0x50] sm:$0xff] }
 0x403   :  { %v3784_v27 = vadd.f32 %v3783_v57, %v3614_v31  ;;  %v3278_v14 = vpop.f32.mrf.mxu0  ;;  %v5205_v43 = vmul.f32 %v7181_v13, %v11026_v45  ;;  %v7182_v31 = vld [vmem:[#allocation11 + $0x50] sm:$0xff] }
 0x404   :  { %v5458_v40 = vadd.f32 %v5394_v20, %v5202_v2  ;;  %v3447_v26 = vpop.f32.mrf.mxu1 }
 0x405   :  { %v6252_v8 = vpack.c.bf16 %v3784_v27, %v3784_v27  ;;  %v11116_v61 = vadd.f32 %v3447_v26, %v3278_v14 }
 0x406   :  { %v5657_v6 = vpack.c.bf16 %v5458_v40, %v5458_v40  ;;  %v11942_v40 = vld [vmem:[#allocation57_spill] sm:$0xff] }
 0x407   :  { %6316 = vst [vmem:[#allocation12 + $0x12c] sm:$0xf] %v6252_v8  ;;  %5297 = vrot.lane.b32.xlu2 %v11116_v61, %s7455_s4  ;;  %v11943_v8 = vld [vmem:[#allocation63_spill] sm:$0xff] }
 0x408   :  { %5721 = vst [vmem:[#allocation12 + $0x78] sm:$0xf] %v5657_v6 }
 0x409   :  { %v5270_v18 = vpop.permute.xlu1 %5269  ;;  %v3616_v1 = vpop.f32.mrf.mxu2 }
 0x40a   :  { %v5392_v30 = vmul.f32 %v7178_v17, %v5270_v18  ;;  %v3785_v5 = vpop.f32.mrf.mxu3 }
 0x40b   :  { %v3786_v58 = vadd.f32 %v3785_v5, %v3616_v1  ;;  %v3281_v19 = vpop.f32.mrf.mxu0  ;;  %v7183_v1 = vld [vmem:[#allocation9 + $0x40] sm:$0xff] }
 0x40c   :  { %v5456_v23 = vadd.f32 %v5392_v30, %v5200_v25  ;;  %v3450_v46 = vpop.f32.mrf.mxu1  ;;  %v5203_v0 = vmul.f32 %v7183_v1, %v11004_v10  ;;  %v7184_v25 = vld [vmem:[#allocation11 + $0x40] sm:$0xff] }
 0x40d   :  { %v6253_v39 = vpack.c.bf16 %v3786_v58, %v3786_v58  ;;  %v11121_v9 = vadd.f32 %v3450_v46, %v3281_v19 }
 0x40e   :  { %v5655_v49 = vpack.c.bf16 %v5456_v23, %v5456_v23  ;;  %3320 = vmatmul.bf16.gmra.mxu0 %v11940_v60  ;;  %3658 = vmatmul.bf16.gmra.mxu2 %v11940_v60 }
 0x40f   :  { %6317 = vst [vmem:[#allocation12 + $0x13c] sm:$0xf] %v6253_v39  ;;  %3489 = vmatmul.bf16.gmra.mxu1 %v11941_v15  ;;  %3827 = vmatmul.bf16.gmra.mxu3 %v11941_v15  ;;  %v7185_v15 = vld [vmem:[#allocation9 + $0x48] sm:$0xff] }
 0x410   :  { %5719 = vst [vmem:[#allocation12 + $0x58] sm:$0xf] %v5655_v49  ;;  %5299 = vrot.lane.b32.xlu1 %v11121_v9, %s7455_s4  ;;  %v5204_v10 = vmul.f32 %v7185_v15, %v11020_v24 }
 0x411   :  { %v3619_v28 = vpop.f32.mrf.mxu2 }
 0x412   :  { %v5272_v50 = vpop.permute.xlu0 %5271  ;;  %v3788_v63 = vpop.f32.mrf.mxu3 }
 0x413   :  { %v5393_v44 = vmul.f32 %v7180_v38, %v5272_v50  ;;  %v3789_v29 = vadd.f32 %v3788_v63, %v3619_v28  ;;  %v3283_v12 = vpop.f32.mrf.mxu0  ;;  %v7186_v28 = vld [vmem:[#allocation11 + $0x48] sm:$0xff] }
 0x414   :  { %v3452_v4 = vpop.f32.mrf.mxu1 }
 0x415   :  { %v5457_v37 = vadd.f32 %v5393_v44, %v5201_v54  ;;  %v6254_v7 = vpack.c.bf16 %v3789_v29, %v3789_v29  ;;  %v11130_v48 = vadd.f32 %v3452_v4, %v3283_v12 }
 0x417   :  { %v5656_v41 = vpack.c.bf16 %v5457_v37, %v5457_v37  ;;  %6318 = vst [vmem:[#allocation12 + $0x14c] sm:$0xf] %v6254_v7  ;;  %5301 = vrot.lane.b32.xlu0 %v11130_v48, %s7455_s4  ;;  %v11944_v37 = vld [vmem:[#allocation64_spill] sm:$0xff]  ;;  %v11945_v7 = vld [vmem:[#allocation71_spill] sm:$0xff] }
 0x419   :  { %5720 = vst [vmem:[#allocation12 + $0x68] sm:$0xf] %v5656_v41  ;;  %v3621_v34 = vpop.f32.mrf.mxu2 }
 0x41a   :  { %v5280_v35 = vpop.permute.xlu2 %5279  ;;  %v3790_v11 = vpop.f32.mrf.mxu3 }
 0x41b   :  { %v5397_v55 = vmul.f32 %v7182_v31, %v5280_v35  ;;  %v3791_v2 = vadd.f32 %v3790_v11, %v3621_v34  ;;  %v3286_v16 = vpop.f32.mrf.mxu0  ;;  %v7187_v34 = vld [vmem:[#allocation9 + $0x68] sm:$0xff] }
 0x41c   :  { %v3455_v20 = vpop.f32.mrf.mxu1  ;;  %v5208_v35 = vmul.f32 %v7187_v34, %v11069_v36  ;;  %v7188_v11 = vld [vmem:[#allocation11 + $0x68] sm:$0xff] }
 0x41d   :  { %v5461_v57 = vadd.f32 %v5397_v55, %v5205_v43  ;;  %v6255_v27 = vpack.c.bf16 %v3791_v2, %v3791_v2  ;;  %v11135_v14 = vadd.f32 %v3455_v20, %v3286_v16 }
 0x41e   :  { %3325 = vmatmul.bf16.gmra.mxu0 %v11942_v40  ;;  %3663 = vmatmul.bf16.gmra.mxu2 %v11942_v40 }
 0x41f   :  { %v5660_v26 = vpack.c.bf16 %v5461_v57, %v5461_v57  ;;  %6319 = vst [vmem:[#allocation12 + $0x15c] sm:$0xf] %v6255_v27  ;;  %3494 = vmatmul.bf16.gmra.mxu1 %v11943_v8  ;;  %3832 = vmatmul.bf16.gmra.mxu3 %v11943_v8  ;;  %v7189_v8 = vld [vmem:[#allocation9 + $0x58] sm:$0xff] }
 0x420   :  { %5303 = vrot.lane.b32.xlu2 %v11135_v14, %s7455_s4  ;;  %v5206_v36 = vmul.f32 %v7189_v8, %v11046_v33 }
 0x421   :  { %5724 = vst [vmem:[#allocation12 + $0xa8] sm:$0xf] %v5660_v26  ;;  %v3624_v45 = vpop.f32.mrf.mxu2 }
 0x422   :  { %v5276_v6 = vpop.permute.xlu1 %5275  ;;  %v3793_v18 = vpop.f32.mrf.mxu3 }
 0x423   :  { %v5395_v17 = vmul.f32 %v7184_v25, %v5276_v6  ;;  %v3794_v30 = vadd.f32 %v3793_v18, %v3624_v45  ;;  %v3288_v5 = vpop.f32.mrf.mxu0  ;;  %v7190_v45 = vld [vmem:[#allocation11 + $0x58] sm:$0xff] }
 0x424   :  { %v3457_v58 = vpop.f32.mrf.mxu1 }
 0x425   :  { %v5459_v19 = vadd.f32 %v5395_v17, %v5203_v0  ;;  %v6256_v23 = vpack.c.bf16 %v3794_v30, %v3794_v30  ;;  %v11144_v46 = vadd.f32 %v3457_v58, %v3288_v5 }
 0x427   :  { %v5658_v39 = vpack.c.bf16 %v5459_v19, %v5459_v19  ;;  %6320 = vst [vmem:[#allocation12 + $0x16c] sm:$0xf] %v6256_v23  ;;  %5305 = vrot.lane.b32.xlu1 %v11144_v46, %s7455_s4  ;;  %v11946_v19 = vld [vmem:[#allocation72_spill] sm:$0xff]  ;;  %v11947_v23 = vld [vmem:[#allocation61_spill] sm:$0xff] }
 0x429   :  { %5722 = vst [vmem:[#allocation12 + $0x88] sm:$0xf] %v5658_v39  ;;  %v5278_v49 = vpop.permute.xlu0 %5277  ;;  %v3626_v60 = vpop.f32.mrf.mxu2 }
 0x42a   :  { %v5396_v50 = vmul.f32 %v7186_v28, %v5278_v49  ;;  %v3795_v63 = vpop.f32.mrf.mxu3 }
 0x42b   :  { %v3796_v59 = vadd.f32 %v3795_v63, %v3626_v60  ;;  %v3291_v54 = vpop.f32.mrf.mxu0  ;;  %v7191_v60 = vld [vmem:[#allocation9 + $0x60] sm:$0xff] }
 0x42c   :  { %v5460_v38 = vadd.f32 %v5396_v50, %v5204_v10  ;;  %v3460_v44 = vpop.f32.mrf.mxu1  ;;  %v5207_v15 = vmul.f32 %v7191_v60, %v11058_v56  ;;  %v7192_v10 = vld [vmem:[#allocation11 + $0x60] sm:$0xff] }
 0x42d   :  { %v6257_v29 = vpack.c.bf16 %v3796_v59, %v3796_v59  ;;  %v11149_v12 = vadd.f32 %v3460_v44, %v3291_v54 }
 0x42e   :  { %v5659_v4 = vpack.c.bf16 %v5460_v38, %v5460_v38  ;;  %3330 = vmatmul.bf16.gmra.mxu0 %v11944_v37  ;;  %3668 = vmatmul.bf16.gmra.mxu2 %v11944_v37 }
 0x42f   :  { %6321 = vst [vmem:[#allocation12 + $0x17c] sm:$0xf] %v6257_v29  ;;  %3499 = vmatmul.bf16.gmra.mxu1 %v11945_v7  ;;  %3837 = vmatmul.bf16.gmra.mxu3 %v11945_v7 }
 0x430   :  { %5723 = vst [vmem:[#allocation12 + $0x98] sm:$0xf] %v5659_v4  ;;  %5307 = vrot.lane.b32.xlu0 %v11149_v12, %s7455_s4 }
 0x431   :  { %v5286_v24 = vpop.permute.xlu2 %5285  ;;  %v3629_v41 = vpop.f32.mrf.mxu2 }
 0x432   :  { %v5400_v13 = vmul.f32 %v7188_v11, %v5286_v24  ;;  %v3798_v43 = vpop.f32.mrf.mxu3  ;;  %v7193_v24 = vld [vmem:[#allocation9 + $0x80] sm:$0xff] }
 0x433   :  { %v3799_v31 = vadd.f32 %v3798_v43, %v3629_v41  ;;  %v3293_v55 = vpop.f32.mrf.mxu0  ;;  %v5211_v56 = vmul.f32 %v7193_v24, %v11093_v22  ;;  %v7194_v41 = vld [vmem:[#allocation11 + $0x80] sm:$0xff] }
 0x434   :  { %v5464_v2 = vadd.f32 %v5400_v13, %v5208_v35  ;;  %v3462_v16 = vpop.f32.mrf.mxu1 }
 0x435   :  { %v6258_v20 = vpack.c.bf16 %v3799_v31, %v3799_v31  ;;  %v11158_v57 = vadd.f32 %v3462_v16, %v3293_v55 }
 0x436   :  { %v5663_v27 = vpack.c.bf16 %v5464_v2, %v5464_v2  ;;  %v11948_v2 = vld [vmem:[#allocation62_spill] sm:$0xff] }
 0x437   :  { %6322 = vst [vmem:[#allocation12 + $0x18c] sm:$0xf] %v6258_v20  ;;  %5309 = vrot.lane.b32.xlu2 %v11158_v57, %s7455_s4  ;;  %v11949_v20 = vld [vmem:[#allocation17_spill] sm:$0xff] }
 0x438   :  { %5727 = vst [vmem:[#allocation12 + $0xd8] sm:$0xf] %v5663_v27 }
 0x439   :  { %v5282_v40 = vpop.permute.xlu1 %5281  ;;  %v3631_v26 = vpop.f32.mrf.mxu2 }
 0x43a   :  { %v5398_v6 = vmul.f32 %v7190_v45, %v5282_v40  ;;  %v3800_v18 = vpop.f32.mrf.mxu3 }
 0x43b   :  { %v3801_v1 = vadd.f32 %v3800_v18, %v3631_v26  ;;  %v3296_v0 = vpop.f32.mrf.mxu0  ;;  %v7195_v26 = vld [vmem:[#allocation9 + $0x70] sm:$0xff] }
 0x43c   :  { %v5462_v25 = vadd.f32 %v5398_v6, %v5206_v36  ;;  %v3465_v17 = vpop.f32.mrf.mxu1  ;;  %v5209_v8 = vmul.f32 %v7195_v26, %v11076_v52  ;;  %v7196_v36 = vld [vmem:[#allocation11 + $0x70] sm:$0xff] }
 0x43d   :  { %v6259_v30 = vpack.c.bf16 %v3801_v1, %v3801_v1  ;;  %v11163_v5 = vadd.f32 %v3465_v17, %v3296_v0 }
 0x43e   :  { %v5661_v58 = vpack.c.bf16 %v5462_v25, %v5462_v25  ;;  %3335 = vmatmul.bf16.gmra.mxu0 %v11946_v19  ;;  %3673 = vmatmul.bf16.gmra.mxu2 %v11946_v19 }
 0x43f   :  { %6323 = vst [vmem:[#allocation12 + $0x19c] sm:$0xf] %v6259_v30  ;;  %3504 = vmatmul.bf16.gmra.mxu1 %v11947_v23  ;;  %3842 = vmatmul.bf16.gmra.mxu3 %v11947_v23  ;;  %v7197_v23 = vld [vmem:[#allocation9 + $0x78] sm:$0xff] }
 0x440   :  { %5725 = vst [vmem:[#allocation12 + $0xb8] sm:$0xf] %v5661_v58  ;;  %5311 = vrot.lane.b32.xlu1 %v11163_v5, %s7455_s4  ;;  %v5210_v52 = vmul.f32 %v7197_v23, %v11088_v51 }
 0x441   :  { %v3634_v33 = vpop.f32.mrf.mxu2 }
 0x442   :  { %v5284_v39 = vpop.permute.xlu0 %5283  ;;  %v3803_v49 = vpop.f32.mrf.mxu3 }
 0x443   :  { %v5399_v28 = vmul.f32 %v7192_v10, %v5284_v39  ;;  %v3804_v50 = vadd.f32 %v3803_v49, %v3634_v33  ;;  %v3298_v63 = vpop.f32.mrf.mxu0  ;;  %v7198_v33 = vld [vmem:[#allocation11 + $0x78] sm:$0xff] }
 0x444   :  { %v3467_v59 = vpop.f32.mrf.mxu1 }
 0x445   :  { %v5463_v54 = vadd.f32 %v5399_v28, %v5207_v15  ;;  %v6260_v38 = vpack.c.bf16 %v3804_v50, %v3804_v50  ;;  %v11172_v44 = vadd.f32 %v3467_v59, %v3298_v63 }
 0x447   :  { %v5662_v29 = vpack.c.bf16 %v5463_v54, %v5463_v54  ;;  %6324 = vst [vmem:[#allocation12 + $0x1ac] sm:$0xf] %v6260_v38  ;;  %5313 = vrot.lane.b32.xlu0 %v11172_v44, %s7455_s4  ;;  %v11950_v54 = vld [vmem:[#allocation18_spill] sm:$0xff] }
 0x448   :  { %v11951_v38 = vld [vmem:[#allocation78_spill] sm:$0xff] }
 0x449   :  { %5726 = vst [vmem:[#allocation12 + $0xc8] sm:$0xf] %v5662_v29  ;;  %v3636_v4 = vpop.f32.mrf.mxu2 }
 0x44a   :  { %v5292_v37 = vpop.permute.xlu2 %5291  ;;  %v3805_v7 = vpop.f32.mrf.mxu3 }
 0x44b   :  { %v5403_v34 = vmul.f32 %v7194_v41, %v5292_v37  ;;  %v3806_v35 = vadd.f32 %v3805_v7, %v3636_v4  ;;  %v3301_v11 = vpop.f32.mrf.mxu0  ;;  %v7199_v4 = vld [vmem:[#allocation9 + $0x98] sm:$0xff] }
 0x44c   :  { %v3470_v13 = vpop.f32.mrf.mxu1  ;;  %v5214_v37 = vmul.f32 %v7199_v4, %v11116_v61  ;;  %v7200_v7 = vld [vmem:[#allocation11 + $0x98] sm:$0xff] }
 0x44d   :  { %v5467_v43 = vadd.f32 %v5403_v34, %v5211_v56  ;;  %v6261_v31 = vpack.c.bf16 %v3806_v35, %v3806_v35  ;;  %v11177_v55 = vadd.f32 %v3470_v13, %v3301_v11 }
 0x44e   :  { %3340 = vmatmul.bf16.gmra.mxu0 %v11948_v2  ;;  %3678 = vmatmul.bf16.gmra.mxu2 %v11948_v2 }
 0x44f   :  { %v5666_v16 = vpack.c.bf16 %v5467_v43, %v5467_v43  ;;  %6325 = vst [vmem:[#allocation12 + $0x1bc] sm:$0xf] %v6261_v31  ;;  %3509 = vmatmul.bf16.gmra.mxu1 %v11949_v20  ;;  %3847 = vmatmul.bf16.gmra.mxu3 %v11949_v20  ;;  %v7201_v20 = vld [vmem:[#allocation9 + $0x88] sm:$0xff] }
 0x450   :  { %5315 = vrot.lane.b32.xlu2 %v11177_v55, %s7455_s4  ;;  %v5212_v61 = vmul.f32 %v7201_v20, %v11102_v21 }
 0x451   :  { %5730 = vst [vmem:[#allocation12 + $0x108] sm:$0xf] %v5666_v16  ;;  %v3639_v22 = vpop.f32.mrf.mxu2 }
 0x452   :  { %v5288_v27 = vpop.permute.xlu1 %5287  ;;  %v3808_v40 = vpop.f32.mrf.mxu3 }
 0x453   :  { %v5401_v45 = vmul.f32 %v7196_v36, %v5288_v27  ;;  %v3809_v6 = vadd.f32 %v3808_v40, %v3639_v22  ;;  %v3303_v18 = vpop.f32.mrf.mxu0  ;;  %v7202_v22 = vld [vmem:[#allocation11 + $0x88] sm:$0xff] }
 0x454   :  { %v3472_v1 = vpop.f32.mrf.mxu1 }
 0x455   :  { %v5465_v0 = vadd.f32 %v5401_v45, %v5209_v8  ;;  %v6262_v25 = vpack.c.bf16 %v3809_v6, %v3809_v6  ;;  %v11186_v17 = vadd.f32 %v3472_v1, %v3303_v18 }
 0x457   :  { %v5664_v30 = vpack.c.bf16 %v5465_v0, %v5465_v0  ;;  %6326 = vst [vmem:[#allocation12 + $0x1cc] sm:$0xf] %v6262_v25  ;;  %5317 = vrot.lane.b32.xlu1 %v11186_v17, %s7455_s4 }
 0x459   :  { %5728 = vst [vmem:[#allocation12 + $0xe8] sm:$0xf] %v5664_v30  ;;  %v5290_v58 = vpop.permute.xlu0 %5289  ;;  %v3641_v19 = vpop.f32.mrf.mxu2  ;;  %v7203_v30 = vld [vmem:[#allocation9 + $0x90] sm:$0xff] }
 0x45a   :  { %v5402_v39 = vmul.f32 %v7198_v33, %v5290_v58  ;;  %v3810_v49 = vpop.f32.mrf.mxu3  ;;  %v5213_v58 = vmul.f32 %v7203_v30, %v11107_v42 }
 0x45b   :  { %v3811_v60 = vadd.f32 %v3810_v49, %v3641_v19  ;;  %v3306_v15 = vpop.f32.mrf.mxu0  ;;  %v7204_v19 = vld [vmem:[#allocation11 + $0x90] sm:$0xff] }
 0x45c   :  { %v5466_v10 = vadd.f32 %v5402_v39, %v5210_v52  ;;  %v3475_v28 = vpop.f32.mrf.mxu1 }
 0x45d   :  { %v6263_v50 = vpack.c.bf16 %v3811_v60, %v3811_v60  ;;  %v11191_v63 = vadd.f32 %v3475_v28, %v3306_v15 }
 0x45e   :  { %v5665_v59 = vpack.c.bf16 %v5466_v10, %v5466_v10  ;;  %3345 = vmatmul.bf16.gmra.mxu0 %v11950_v54  ;;  %3683 = vmatmul.bf16.gmra.mxu2 %v11950_v54 }
 0x45f   :  { %6327 = vst [vmem:[#allocation12 + $0x1dc] sm:$0xf] %v6263_v50  ;;  %3514 = vmatmul.bf16.gmra.mxu1 %v11951_v38  ;;  %3852 = vmatmul.bf16.gmra.mxu3 %v11951_v38  ;;  %v7205_v50 = vld [vmem:[#allocation9 + $0xb0] sm:$0xff] }
 0x460   :  { %5729 = vst [vmem:[#allocation12 + $0xf8] sm:$0xf] %v5665_v59  ;;  %5319 = vrot.lane.b32.xlu0 %v11191_v63, %s7455_s4  ;;  %v5217_v42 = vmul.f32 %v7205_v50, %v11135_v14  ;;  %v7206_v59 = vld [vmem:[#allocation11 + $0xb0] sm:$0xff] }
 0x461   :  { %v5298_v51 = vpop.permute.xlu2 %5297  ;;  %v3644_v29 = vpop.f32.mrf.mxu2 }
 0x462   :  { %v5406_v24 = vmul.f32 %v7200_v7, %v5298_v51  ;;  %v3813_v56 = vpop.f32.mrf.mxu3 }
 0x463   :  { %v3814_v41 = vadd.f32 %v3813_v56, %v3644_v29  ;;  %v3308_v34 = vpop.f32.mrf.mxu0 }
 0x464   :  { %v5470_v35 = vadd.f32 %v5406_v24, %v5214_v37  ;;  %v3477_v11 = vpop.f32.mrf.mxu1 }
 0x465   :  { %v6264_v13 = vpack.c.bf16 %v3814_v41, %v3814_v41  ;;  %v11200_v43 = vadd.f32 %v3477_v11, %v3308_v34  ;;  %v7207_v34 = vld [vmem:[#allocation9 + $0xa0] sm:$0xff] }
 0x466   :  { %v5669_v31 = vpack.c.bf16 %v5470_v35, %v5470_v35  ;;  %v5215_v35 = vmul.f32 %v7207_v34, %v11121_v9  ;;  %v7208_v11 = vld [vmem:[#allocation11 + $0xa0] sm:$0xff] }
 0x467   :  { %6328 = vst [vmem:[#allocation12 + $0x1ec] sm:$0xf] %v6264_v13  ;;  %5321 = vrot.lane.b32.xlu2 %v11200_v43, %s7455_s4 }
 0x468   :  { %5733 = vst [vmem:[#allocation12 + $0x138] sm:$0xf] %v5669_v31 }
 0x469   :  { %v5294_v2 = vpop.permute.xlu1 %5293  ;;  %v3646_v16 = vpop.f32.mrf.mxu2 }
 0x46a   :  { %v5404_v27 = vmul.f32 %v7202_v22, %v5294_v2  ;;  %v3815_v40 = vpop.f32.mrf.mxu3 }
 0x46b   :  { %v3816_v26 = vadd.f32 %v3815_v40, %v3646_v16  ;;  %v3311_v8 = vpop.f32.mrf.mxu0  ;;  %v7209_v40 = vld [vmem:[#allocation9 + $0xa8] sm:$0xff] }
 0x46c   :  { %v5468_v36 = vadd.f32 %v5404_v27, %v5212_v61  ;;  %v3480_v45 = vpop.f32.mrf.mxu1  ;;  %v5216_v9 = vmul.f32 %v7209_v40, %v11130_v48 }
 0x46d   :  { %v6265_v6 = vpack.c.bf16 %v3816_v26, %v3816_v26  ;;  %v11205_v18 = vadd.f32 %v3480_v45, %v3311_v8  ;;  %v7210_v26 = vld [vmem:[#allocation11 + $0xa8] sm:$0xff] }
 0x46e   :  { %v5667_v1 = vpack.c.bf16 %v5468_v36, %v5468_v36  ;;  %3350 = vmatmul.bf16.gmra.mxu0 %v10315_v32  ;;  %3688 = vmatmul.bf16.gmra.mxu2 %v10315_v32 }
 0x46f   :  { %6329 = vst [vmem:[#allocation12 + $0x1fc] sm:$0xf] %v6265_v6  ;;  %3519 = vmatmul.bf16.gmra.mxu1 %v10322_v47  ;;  %3857 = vmatmul.bf16.gmra.mxu3 %v10322_v47 }
 0x470   :  { %5731 = vst [vmem:[#allocation12 + $0x118] sm:$0xf] %v5667_v1  ;;  %5323 = vrot.lane.b32.xlu1 %v11205_v18, %s7455_s4 }
 0x471   :  { %v3649_v21 = vpop.f32.mrf.mxu2 }
 0x472   :  { %v5296_v0 = vpop.permute.xlu0 %5295  ;;  %v3818_v25 = vpop.f32.mrf.mxu3 }
 0x473   :  { %v5405_v23 = vmul.f32 %v7204_v19, %v5296_v0  ;;  %v3819_v52 = vadd.f32 %v3818_v25, %v3649_v21  ;;  %v3313_v33 = vpop.f32.mrf.mxu0 }
 0x474   :  { %v3482_v32 = vpop.f32.mrf.mxu1 }
 0x475   :  { %v5469_v39 = vadd.f32 %v5405_v23, %v5213_v58  ;;  %v6266_v49 = vpack.c.bf16 %v3819_v52, %v3819_v52  ;;  %v11214_v60 = vadd.f32 %v3482_v32, %v3313_v33  ;;  %v11952_v58 = vld [vmem:[#allocation79_spill] sm:$0xff]  ;;  %v7211_v23 = vld [vmem:[#allocation9 + $0xc8] sm:$0xff] }
 0x476   :  { %v5220_v52 = vmul.f32 %v7211_v23, %v11158_v57  ;;  %v7212_v33 = vld [vmem:[#allocation11 + $0xc8] sm:$0xff] }
 0x477   :  { %v5668_v47 = vpack.c.bf16 %v5469_v39, %v5469_v39  ;;  %6330 = vst [vmem:[#allocation12 + $0x20c] sm:$0xf] %v6266_v49  ;;  %5325 = vrot.lane.b32.xlu0 %v11214_v60, %s7455_s4 }
 0x479   :  { %5732 = vst [vmem:[#allocation12 + $0x128] sm:$0xf] %v5668_v47  ;;  %v3651_v15 = vpop.f32.mrf.mxu2 }
 0x47a   :  { %v5304_v10 = vpop.permute.xlu2 %5303  ;;  %v3820_v28 = vpop.f32.mrf.mxu3 }
 0x47b   :  { %v5409_v54 = vmul.f32 %v7206_v59, %v5304_v10  ;;  %v3821_v38 = vadd.f32 %v3820_v28, %v3651_v15  ;;  %v3316_v51 = vpop.f32.mrf.mxu0 }
 0x47c   :  { %v3485_v29 = vpop.f32.mrf.mxu1 }
 0x47d   :  { %v5473_v4 = vadd.f32 %v5409_v54, %v5217_v42  ;;  %v6267_v37 = vpack.c.bf16 %v3821_v38, %v3821_v38  ;;  %v11219_v7 = vadd.f32 %v3485_v29, %v3316_v51  ;;  %v7213_v54 = vld [vmem:[#allocation9 + $0xb8] sm:$0xff] }
 0x47e   :  { %3355 = vmatmul.bf16.gmra.mxu0 %v10357_v62  ;;  %3693 = vmatmul.bf16.gmra.mxu2 %v10357_v62  ;;  %v5218_v57 = vmul.f32 %v7213_v54, %v11144_v46  ;;  %v7214_v38 = vld [vmem:[#allocation11 + $0xb8] sm:$0xff] }
 0x47f   :  { %v5672_v24 = vpack.c.bf16 %v5473_v4, %v5473_v4  ;;  %6331 = vst [vmem:[#allocation12 + $0x21c] sm:$0xf] %v6267_v37  ;;  %3524 = vmatmul.bf16.gmra.mxu1 %v10367_v53  ;;  %3862 = vmatmul.bf16.gmra.mxu3 %v10367_v53 }
 0x480   :  { %5327 = vrot.lane.b32.xlu2 %v11219_v7, %s7455_s4 }
 0x481   :  { %5736 = vst [vmem:[#allocation12 + $0x168] sm:$0xf] %v5672_v24  ;;  %v3654_v14 = vpop.f32.mrf.mxu2 }
 0x482   :  { %v5300_v56 = vpop.permute.xlu1 %5299  ;;  %v3823_v41 = vpop.f32.mrf.mxu3 }
 0x483   :  { %v5407_v13 = vmul.f32 %v7208_v11, %v5300_v56  ;;  %v3824_v31 = vadd.f32 %v3823_v41, %v3654_v14  ;;  %v3318_v62 = vpop.f32.mrf.mxu0  ;;  %v11954_v11 = vld [vmem:[#allocation69_spill] sm:$0xff] }
 0x484   :  { %v3487_v2 = vpop.f32.mrf.mxu1 }
 0x485   :  { %v5471_v16 = vadd.f32 %v5407_v13, %v5215_v35  ;;  %v6268_v20 = vpack.c.bf16 %v3824_v31, %v3824_v31  ;;  %v11228_v61 = vadd.f32 %v3487_v2, %v3318_v62  ;;  %v11953_v35 = vld [vmem:[#allocation68_spill] sm:$0xff]  ;;  %v7215_v62 = vld [vmem:[#allocation9 + $0xc0] sm:$0xff] }
 0x486   :  { %v5219_v2 = vmul.f32 %v7215_v62, %v11149_v12 }
 0x487   :  { %v5670_v53 = vpack.c.bf16 %v5471_v16, %v5471_v16  ;;  %6332 = vst [vmem:[#allocation12 + $0x22c] sm:$0xf] %v6268_v20  ;;  %5329 = vrot.lane.b32.xlu1 %v11228_v61, %s7455_s4  ;;  %v7216_v16 = vld [vmem:[#allocation11 + $0xc0] sm:$0xff] }
 0x489   :  { %5734 = vst [vmem:[#allocation12 + $0x148] sm:$0xf] %v5670_v53  ;;  %v5302_v22 = vpop.permute.xlu0 %5301  ;;  %v3656_v27 = vpop.f32.mrf.mxu2 }
 0x48a   :  { %v5408_v8 = vmul.f32 %v7210_v26, %v5302_v22  ;;  %v3825_v36 = vpop.f32.mrf.mxu3 }
 0x48b   :  { %v3826_v45 = vadd.f32 %v3825_v36, %v3656_v27  ;;  %v3321_v6 = vpop.f32.mrf.mxu0 }
 0x48c   :  { %v5472_v1 = vadd.f32 %v5408_v8, %v5216_v9  ;;  %v3490_v21 = vpop.f32.mrf.mxu1 }
 0x48d   :  { %v6269_v0 = vpack.c.bf16 %v3826_v45, %v3826_v45  ;;  %v11233_v25 = vadd.f32 %v3490_v21, %v3321_v6  ;;  %v7218_v21 = vld [vmem:[#allocation11 + $0xe0] sm:$0xff] }
 0x48e   :  { %v5671_v30 = vpack.c.bf16 %v5472_v1, %v5472_v1  ;;  %3360 = vmatmul.bf16.gmra.mxu0 %v10394_v3  ;;  %3698 = vmatmul.bf16.gmra.mxu2 %v10394_v3  ;;  %v7217_v1 = vld [vmem:[#allocation9 + $0xe0] sm:$0xff] }
 0x48f   :  { %6333 = vst [vmem:[#allocation12 + $0x23c] sm:$0xf] %v6269_v0  ;;  %3529 = vmatmul.bf16.gmra.mxu1 %v11952_v58  ;;  %3867 = vmatmul.bf16.gmra.mxu3 %v11952_v58  ;;  %v5223_v12 = vmul.f32 %v7217_v1, %v11177_v55 }
 0x490   :  { %5735 = vst [vmem:[#allocation12 + $0x158] sm:$0xf] %v5671_v30  ;;  %5331 = vrot.lane.b32.xlu0 %v11233_v25, %s7455_s4 }
 0x491   :  { %v5310_v48 = vpop.permute.xlu2 %5309  ;;  %v3659_v19 = vpop.f32.mrf.mxu2 }
 0x492   :  { %v5412_v32 = vmul.f32 %v7212_v33, %v5310_v48  ;;  %v3828_v39 = vpop.f32.mrf.mxu3  ;;  %v11955_v33 = vld [vmem:[#allocation75_spill] sm:$0xff] }
 0x493   :  { %v3829_v49 = vadd.f32 %v3828_v39, %v3659_v19  ;;  %v3323_v47 = vpop.f32.mrf.mxu0  ;;  %v11956_v39 = vld [vmem:[#allocation76_spill] sm:$0xff] }
 0x494   :  { %v5476_v3 = vadd.f32 %v5412_v32, %v5220_v52  ;;  %v3492_v15 = vpop.f32.mrf.mxu1 }
 0x495   :  { %v6270_v10 = vpack.c.bf16 %v3829_v49, %v3829_v49  ;;  %v11242_v28 = vadd.f32 %v3492_v15, %v3323_v47 }
 0x496   :  { %v5675_v50 = vpack.c.bf16 %v5476_v3, %v5476_v3  ;;  %v7219_v3 = vld [vmem:[#allocation9 + $0xd0] sm:$0xff] }
 0x497   :  { %6334 = vst [vmem:[#allocation12 + $0x24c] sm:$0xf] %v6270_v10  ;;  %5333 = vrot.lane.b32.xlu2 %v11242_v28, %s7455_s4  ;;  %v5221_v15 = vmul.f32 %v7219_v3, %v11163_v5  ;;  %v7220_v10 = vld [vmem:[#allocation11 + $0xd0] sm:$0xff] }
 0x498   :  { %5739 = vst [vmem:[#allocation12 + $0x198] sm:$0xf] %v5675_v50 }
 0x499   :  { %v5306_v42 = vpop.permute.xlu1 %5305  ;;  %v3661_v59 = vpop.f32.mrf.mxu2 }
 0x49a   :  { %v5410_v51 = vmul.f32 %v7214_v38, %v5306_v42  ;;  %v3830_v29 = vpop.f32.mrf.mxu3 }
 0x49b   :  { %v3831_v4 = vadd.f32 %v3830_v29, %v3661_v59  ;;  %v3326_v37 = vpop.f32.mrf.mxu0 }
 0x49c   :  { %v5474_v24 = vadd.f32 %v5410_v51, %v5218_v57  ;;  %v3495_v14 = vpop.f32.mrf.mxu1 }
 0x49d   :  { %v6271_v56 = vpack.c.bf16 %v3831_v4, %v3831_v4  ;;  %v11247_v41 = vadd.f32 %v3495_v14, %v3326_v37  ;;  %v7222_v14 = vld [vmem:[#allocation11 + $0xd8] sm:$0xff] }
 0x49e   :  { %v5673_v34 = vpack.c.bf16 %v5474_v24, %v5474_v24  ;;  %3365 = vmatmul.bf16.gmra.mxu0 %v11953_v35  ;;  %3703 = vmatmul.bf16.gmra.mxu2 %v11953_v35  ;;  %v7221_v24 = vld [vmem:[#allocation9 + $0xd8] sm:$0xff] }
 0x49f   :  { %6335 = vst [vmem:[#allocation12 + $0x25c] sm:$0xf] %v6271_v56  ;;  %3534 = vmatmul.bf16.gmra.mxu1 %v11954_v11  ;;  %3872 = vmatmul.bf16.gmra.mxu3 %v11954_v11  ;;  %v5222_v5 = vmul.f32 %v7221_v24, %v11172_v44 }
 0x4a0   :  { %5737 = vst [vmem:[#allocation12 + $0x178] sm:$0xf] %v5673_v34  ;;  %5335 = vrot.lane.b32.xlu1 %v11247_v41, %s7455_s4 }
 0x4a1   :  { %v3664_v46 = vpop.f32.mrf.mxu2 }
 0x4a2   :  { %v5308_v13 = vpop.permute.xlu0 %5307  ;;  %v3833_v31 = vpop.f32.mrf.mxu3 }
 0x4a3   :  { %v5411_v20 = vmul.f32 %v7216_v16, %v5308_v13  ;;  %v3834_v53 = vadd.f32 %v3833_v31, %v3664_v46  ;;  %v3328_v22 = vpop.f32.mrf.mxu0  ;;  %v11957_v16 = vld [vmem:[#allocation22_spill] sm:$0xff] }
 0x4a4   :  { %v3497_v27 = vpop.f32.mrf.mxu1 }
 0x4a5   :  { %v5475_v40 = vadd.f32 %v5411_v20, %v5219_v2  ;;  %v6272_v9 = vpack.c.bf16 %v3834_v53, %v3834_v53  ;;  %v11256_v26 = vadd.f32 %v3497_v27, %v3328_v22  ;;  %v11958_v20 = vld [vmem:[#allocation81_spill] sm:$0xff]  ;;  %v7223_v22 = vld [vmem:[#allocation9 + $0xf8] sm:$0xff] }
 0x4a6   :  { %v5226_v27 = vmul.f32 %v7223_v22, %v11200_v43 }
 0x4a7   :  { %v5674_v8 = vpack.c.bf16 %v5475_v40, %v5475_v40  ;;  %6336 = vst [vmem:[#allocation12 + $0x26c] sm:$0xf] %v6272_v9  ;;  %5337 = vrot.lane.b32.xlu0 %v11256_v26, %s7455_s4  ;;  %v7224_v40 = vld [vmem:[#allocation11 + $0xf8] sm:$0xff] }
 0x4a9   :  { %5738 = vst [vmem:[#allocation12 + $0x188] sm:$0xf] %v5674_v8  ;;  %v3666_v36 = vpop.f32.mrf.mxu2 }
 0x4aa   :  { %v5316_v45 = vpop.permute.xlu2 %5315  ;;  %v3835_v6 = vpop.f32.mrf.mxu3 }
 0x4ab   :  { %v5415_v0 = vmul.f32 %v7218_v21, %v5316_v45  ;;  %v3836_v30 = vadd.f32 %v3835_v6, %v3666_v36  ;;  %v3331_v58 = vpop.f32.mrf.mxu0 }
 0x4ac   :  { %v3500_v48 = vpop.f32.mrf.mxu1 }
 0x4ad   :  { %v5479_v19 = vadd.f32 %v5415_v0, %v5223_v12  ;;  %v6273_v23 = vpack.c.bf16 %v3836_v30, %v3836_v30  ;;  %v11261_v52 = vadd.f32 %v3500_v48, %v3331_v58  ;;  %v7225_v48 = vld [vmem:[#allocation9 + $0xe8] sm:$0xff] }
 0x4ae   :  { %3370 = vmatmul.bf16.gmra.mxu0 %v11955_v33  ;;  %3708 = vmatmul.bf16.gmra.mxu2 %v11955_v33  ;;  %v5224_v43 = vmul.f32 %v7225_v48, %v11186_v17 }
 0x4af   :  { %v5678_v32 = vpack.c.bf16 %v5479_v19, %v5479_v19  ;;  %6337 = vst [vmem:[#allocation12 + $0x27c] sm:$0xf] %v6273_v23  ;;  %3539 = vmatmul.bf16.gmra.mxu1 %v11956_v39  ;;  %3877 = vmatmul.bf16.gmra.mxu3 %v11956_v39  ;;  %v7226_v19 = vld [vmem:[#allocation11 + $0xe8] sm:$0xff] }
 0x4b0   :  { %5339 = vrot.lane.b32.xlu2 %v11261_v52, %s7455_s4 }
 0x4b1   :  { %5742 = vst [vmem:[#allocation12 + $0x1c8] sm:$0xf] %v5678_v32  ;;  %v3669_v55 = vpop.f32.mrf.mxu2 }
 0x4b2   :  { %v5312_v49 = vpop.permute.xlu1 %5311  ;;  %v3838_v47 = vpop.f32.mrf.mxu3 }
 0x4b3   :  { %v5413_v50 = vmul.f32 %v7220_v10, %v5312_v49  ;;  %v3839_v42 = vadd.f32 %v3838_v47, %v3669_v55  ;;  %v3333_v59 = vpop.f32.mrf.mxu0  ;;  %v11959_v10 = vld [vmem:[#allocation73_spill] sm:$0xff] }
 0x4b4   :  { %v3502_v54 = vpop.f32.mrf.mxu1 }
 0x4b5   :  { %v5477_v57 = vadd.f32 %v5413_v50, %v5221_v15  ;;  %v6274_v38 = vpack.c.bf16 %v3839_v42, %v3839_v42  ;;  %v11270_v51 = vadd.f32 %v3502_v54, %v3333_v59  ;;  %v11960_v50 = vld [vmem:[#allocation74_spill] sm:$0xff]  ;;  %v7227_v54 = vld [vmem:[#allocation9 + $0xf0] sm:$0xff] }
 0x4b7   :  { %v5676_v29 = vpack.c.bf16 %v5477_v57, %v5477_v57  ;;  %6338 = vst [vmem:[#allocation12 + $0x28c] sm:$0xf] %v6274_v38  ;;  %5341 = vrot.lane.b32.xlu1 %v11270_v51, %s7455_s4  ;;  %v5225_v57 = vmul.f32 %v7227_v54, %v11191_v63  ;;  %v7228_v38 = vld [vmem:[#allocation11 + $0xf0] sm:$0xff] }
 0x4b9   :  { %5740 = vst [vmem:[#allocation12 + $0x1a8] sm:$0xf] %v5676_v29  ;;  %v5314_v4 = vpop.permute.xlu0 %5313  ;;  %v3671_v37 = vpop.f32.mrf.mxu2 }
 0x4ba   :  { %v5414_v56 = vmul.f32 %v7222_v14, %v5314_v4  ;;  %v3840_v34 = vpop.f32.mrf.mxu3 }
 0x4bb   :  { %v3841_v35 = vadd.f32 %v3840_v34, %v3671_v37  ;;  %v3336_v11 = vpop.f32.mrf.mxu0 }
 0x4bc   :  { %v5478_v46 = vadd.f32 %v5414_v56, %v5222_v5  ;;  %v3505_v13 = vpop.f32.mrf.mxu1 }
 0x4bd   :  { %v6275_v31 = vpack.c.bf16 %v3841_v35, %v3841_v35  ;;  %v11275_v62 = vadd.f32 %v3505_v13, %v3336_v11  ;;  %v7229_v13 = vld [vmem:[#allocation9 + $0x110] sm:$0xff] }
 0x4be   :  { %v5677_v2 = vpack.c.bf16 %v5478_v46, %v5478_v46  ;;  %3375 = vmatmul.bf16.gmra.mxu0 %v11957_v16  ;;  %3713 = vmatmul.bf16.gmra.mxu2 %v11957_v16  ;;  %v5229_v63 = vmul.f32 %v7229_v13, %v11219_v7 }
 0x4bf   :  { %6339 = vst [vmem:[#allocation12 + $0x29c] sm:$0xf] %v6275_v31  ;;  %3544 = vmatmul.bf16.gmra.mxu1 %v11958_v20  ;;  %3882 = vmatmul.bf16.gmra.mxu3 %v11958_v20  ;;  %v7230_v31 = vld [vmem:[#allocation11 + $0x110] sm:$0xff] }
 0x4c0   :  { %5741 = vst [vmem:[#allocation12 + $0x1b8] sm:$0xf] %v5677_v2  ;;  %5343 = vrot.lane.b32.xlu0 %v11275_v62, %s7455_s4 }
 0x4c1   :  { %v5322_v44 = vpop.permute.xlu2 %5321  ;;  %v3674_v53 = vpop.f32.mrf.mxu2 }
 0x4c2   :  { %v5418_v9 = vmul.f32 %v7224_v40, %v5322_v44  ;;  %v3843_v8 = vpop.f32.mrf.mxu3  ;;  %v11961_v40 = vld [vmem:[#allocation20_spill] sm:$0xff] }
 0x4c3   :  { %v3844_v36 = vadd.f32 %v3843_v8, %v3674_v53  ;;  %v3338_v45 = vpop.f32.mrf.mxu0  ;;  %v11962_v8 = vld [vmem:[#allocation21_spill] sm:$0xff] }
 0x4c4   :  { %v5482_v6 = vadd.f32 %v5418_v9, %v5226_v27  ;;  %v3507_v1 = vpop.f32.mrf.mxu1 }
 0x4c5   :  { %v6276_v12 = vpack.c.bf16 %v3844_v36, %v3844_v36  ;;  %v11284_v21 = vadd.f32 %v3507_v1, %v3338_v45 }
 0x4c6   :  { %v5681_v0 = vpack.c.bf16 %v5482_v6, %v5482_v6  ;;  %v7231_v6 = vld [vmem:[#allocation9 + $0x100] sm:$0xff] }
 0x4c7   :  { %6340 = vst [vmem:[#allocation12 + $0x2ac] sm:$0xf] %v6276_v12  ;;  %5345 = vrot.lane.b32.xlu2 %v11284_v21, %s7455_s4  ;;  %v5227_v1 = vmul.f32 %v7231_v6, %v11205_v18  ;;  %v7232_v12 = vld [vmem:[#allocation11 + $0x100] sm:$0xff] }
 0x4c8   :  { %5745 = vst [vmem:[#allocation12 + $0x1f8] sm:$0xf] %v5681_v0 }
 0x4c9   :  { %v5318_v30 = vpop.permute.xlu1 %5317  ;;  %v3676_v58 = vpop.f32.mrf.mxu2 }
 0x4ca   :  { %v5416_v23 = vmul.f32 %v7226_v19, %v5318_v30  ;;  %v3845_v33 = vpop.f32.mrf.mxu3 }
 0x4cb   :  { %v3846_v32 = vadd.f32 %v3845_v33, %v3676_v58  ;;  %v3341_v39 = vpop.f32.mrf.mxu0 }
 0x4cc   :  { %v5480_v55 = vadd.f32 %v5416_v23, %v5224_v43  ;;  %v3510_v49 = vpop.f32.mrf.mxu1 }
 0x4cd   :  { %v6277_v47 = vpack.c.bf16 %v3846_v32, %v3846_v32  ;;  %v11289_v3 = vadd.f32 %v3510_v49, %v3341_v39  ;;  %v7234_v49 = vld [vmem:[#allocation11 + $0x108] sm:$0xff] }
 0x4ce   :  { %v5679_v15 = vpack.c.bf16 %v5480_v55, %v5480_v55  ;;  %3380 = vmatmul.bf16.gmra.mxu0 %v11959_v10  ;;  %3718 = vmatmul.bf16.gmra.mxu2 %v11959_v10  ;;  %v7233_v55 = vld [vmem:[#allocation9 + $0x108] sm:$0xff] }
 0x4cf   :  { %6341 = vst [vmem:[#allocation12 + $0x2bc] sm:$0xf] %v6277_v47  ;;  %3549 = vmatmul.bf16.gmra.mxu1 %v11960_v50  ;;  %3887 = vmatmul.bf16.gmra.mxu3 %v11960_v50  ;;  %v5228_v18 = vmul.f32 %v7233_v55, %v11214_v60 }
 0x4d0   :  { %5743 = vst [vmem:[#allocation12 + $0x1d8] sm:$0xf] %v5679_v15  ;;  %5347 = vrot.lane.b32.xlu1 %v11289_v3, %s7455_s4 }
 0x4d1   :  { %v3679_v17 = vpop.f32.mrf.mxu2 }
 0x4d2   :  { %v5320_v42 = vpop.permute.xlu0 %5319  ;;  %v3848_v59 = vpop.f32.mrf.mxu3 }
 0x4d3   :  { %v5417_v29 = vmul.f32 %v7228_v38, %v5320_v42  ;;  %v3849_v4 = vadd.f32 %v3848_v59, %v3679_v17  ;;  %v3343_v37 = vpop.f32.mrf.mxu0 }
 0x4d4   :  { %v3512_v24 = vpop.f32.mrf.mxu1 }
 0x4d5   :  { %v5481_v5 = vadd.f32 %v5417_v29, %v5225_v57  ;;  %v6278_v14 = vpack.c.bf16 %v3849_v4, %v3849_v4  ;;  %v11298_v56 = vadd.f32 %v3512_v24, %v3343_v37  ;;  %v7235_v4 = vld [vmem:[#allocation9 + $0x128] sm:$0xff] }
 0x4d6   :  { %v5232_v60 = vmul.f32 %v7235_v4, %v11242_v28  ;;  %v7236_v37 = vld [vmem:[#allocation11 + $0x128] sm:$0xff] }
 0x4d7   :  { %v5680_v34 = vpack.c.bf16 %v5481_v5, %v5481_v5  ;;  %6342 = vst [vmem:[#allocation12 + $0x2cc] sm:$0xf] %v6278_v14  ;;  %5349 = vrot.lane.b32.xlu0 %v11298_v56, %s7455_s4 }
 0x4d9   :  { %5744 = vst [vmem:[#allocation12 + $0x1e8] sm:$0xf] %v5680_v34  ;;  %v3681_v35 = vpop.f32.mrf.mxu2 }
 0x4da   :  { %v5328_v11 = vpop.permute.xlu2 %5327  ;;  %v3850_v46 = vpop.f32.mrf.mxu3 }
 0x4db   :  { %v5421_v2 = vmul.f32 %v7230_v31, %v5328_v11  ;;  %v3851_v16 = vadd.f32 %v3850_v46, %v3681_v35  ;;  %v3346_v20 = vpop.f32.mrf.mxu0 }
 0x4dc   :  { %v3515_v44 = vpop.f32.mrf.mxu1 }
 0x4dd   :  { %v5485_v53 = vadd.f32 %v5421_v2, %v5229_v63  ;;  %v6279_v22 = vpack.c.bf16 %v3851_v16, %v3851_v16  ;;  %v11303_v27 = vadd.f32 %v3515_v44, %v3346_v20  ;;  %v7237_v16 = vld [vmem:[#allocation9 + $0x118] sm:$0xff] }
 0x4de   :  { %3385 = vmatmul.bf16.gmra.mxu0 %v11961_v40  ;;  %3723 = vmatmul.bf16.gmra.mxu2 %v11961_v40  ;;  %v5230_v28 = vmul.f32 %v7237_v16, %v11228_v61  ;;  %v7238_v20 = vld [vmem:[#allocation11 + $0x118] sm:$0xff]  ;;  %v7239_v61 = vld [vmem:[#allocation9 + $0x120] sm:$0xff] }
 0x4df   :  { %v5684_v9 = vpack.c.bf16 %v5485_v53, %v5485_v53  ;;  %6343 = vst [vmem:[#allocation12 + $0x2dc] sm:$0xf] %v6279_v22  ;;  %3554 = vmatmul.bf16.gmra.mxu1 %v11962_v8  ;;  %3892 = vmatmul.bf16.gmra.mxu3 %v11962_v8 }
 0x4e0   :  { %5351 = vrot.lane.b32.xlu2 %v11303_v27, %s7455_s4 }
 0x4e1   :  { %5748 = vst [vmem:[#allocation12 + $0x228] sm:$0xf] %v5684_v9  ;;  %v3684_v7 = vpop.f32.mrf.mxu2 }
 0x4e2   :  { %v5324_v36 = vpop.permute.xlu1 %5323  ;;  %v3853_v45 = vpop.f32.mrf.mxu3 }
 0x4e3   :  { %v5419_v0 = vmul.f32 %v7232_v12, %v5324_v36  ;;  %v3854_v30 = vadd.f32 %v3853_v45, %v3684_v7  ;;  %v3348_v58 = vpop.f32.mrf.mxu0 }
 0x4e4   :  { %v3517_v48 = vpop.f32.mrf.mxu1 }
 0x4e5   :  { %v5483_v43 = vadd.f32 %v5419_v0, %v5227_v1  ;;  %v6280_v19 = vpack.c.bf16 %v3854_v30, %v3854_v30  ;;  %v11312_v23 = vadd.f32 %v3517_v48, %v3348_v58  ;;  %v5231_v0 = vmul.f32 %v7239_v61, %v11233_v25  ;;  %v7240_v30 = vld [vmem:[#allocation11 + $0x120] sm:$0xff] }
 0x4e7   :  { %v5682_v33 = vpack.c.bf16 %v5483_v43, %v5483_v43  ;;  %6344 = vst [vmem:[#allocation12 + $0x2ec] sm:$0xf] %v6280_v19  ;;  %5353 = vrot.lane.b32.xlu1 %v11312_v23, %s7455_s4 }
 0x4e9   :  { %5746 = vst [vmem:[#allocation12 + $0x208] sm:$0xf] %v5682_v33  ;;  %v5326_v32 = vpop.permute.xlu0 %5325  ;;  %v3686_v39 = vpop.f32.mrf.mxu2 }
 0x4ea   :  { %v5420_v47 = vmul.f32 %v7234_v49, %v5326_v32  ;;  %v3855_v15 = vpop.f32.mrf.mxu3 }
 0x4eb   :  { %v3856_v10 = vadd.f32 %v3855_v15, %v3686_v39  ;;  %v3351_v50 = vpop.f32.mrf.mxu0  ;;  %v7241_v15 = vld [vmem:[#allocation9 + $0x140] sm:$0xff] }
 0x4ec   :  { %v5484_v17 = vadd.f32 %v5420_v47, %v5228_v18  ;;  %v3520_v42 = vpop.f32.mrf.mxu1  ;;  %v5235_v25 = vmul.f32 %v7241_v15, %v11261_v52 }
 0x4ed   :  { %v6281_v59 = vpack.c.bf16 %v3856_v10, %v3856_v10  ;;  %v11317_v54 = vadd.f32 %v3520_v42, %v3351_v50  ;;  %v7242_v10 = vld [vmem:[#allocation11 + $0x140] sm:$0xff] }
 0x4ee   :  { %v5683_v57 = vpack.c.bf16 %v5484_v17, %v5484_v17 }
 0x4ef   :  { %6345 = vst [vmem:[#allocation12 + $0x2fc] sm:$0xf] %v6281_v59  ;;  %5355 = vrot.lane.b32.xlu0 %v11317_v54, %s7455_s4 }
 0x4f0   :  { %5747 = vst [vmem:[#allocation12 + $0x218] sm:$0xf] %v5683_v57 }
 0x4f1   :  { %v5334_v38 = vpop.permute.xlu2 %5333  ;;  %v3689_v29 = vpop.f32.mrf.mxu2 }
 0x4f2   :  { %v5424_v24 = vmul.f32 %v7236_v37, %v5334_v38  ;;  %v3858_v5 = vpop.f32.mrf.mxu3 }
 0x4f3   :  { %v3859_v14 = vadd.f32 %v3858_v5, %v3689_v29  ;;  %v3353_v34 = vpop.f32.mrf.mxu0  ;;  %v7243_v5 = vld [vmem:[#allocation9 + $0x130] sm:$0xff] }
 0x4f4   :  { %v5488_v35 = vadd.f32 %v5424_v24, %v5232_v60  ;;  %v3522_v11 = vpop.f32.mrf.mxu1  ;;  %v5233_v52 = vmul.f32 %v7243_v5, %v11247_v41 }
 0x4f5   :  { %v6282_v46 = vpack.c.bf16 %v3859_v14, %v3859_v14  ;;  %v11322_v13 = vadd.f32 %v3522_v11, %v3353_v34  ;;  %v7244_v14 = vld [vmem:[#allocation11 + $0x130] sm:$0xff] }
 0x4f6   :  { %v5687_v63 = vpack.c.bf16 %v5488_v35, %v5488_v35 }
 0x4f7   :  { %6346 = vst [vmem:[#allocation12 + $0x30c] sm:$0xf] %v6282_v46  ;;  %5357 = vrot.lane.b32.xlu2 %v11322_v13, %s7455_s4 }
 0x4f8   :  { %5751 = vst [vmem:[#allocation12 + $0x258] sm:$0xf] %v5687_v63 }
 0x4f9   :  { %v5330_v31 = vpop.permute.xlu1 %5329  ;;  %v3691_v2 = vpop.f32.mrf.mxu2 }
 0x4fa   :  { %v5422_v44 = vmul.f32 %v7238_v20, %v5330_v31  ;;  %v3860_v53 = vpop.f32.mrf.mxu3 }
 0x4fb   :  { %v3861_v22 = vadd.f32 %v3860_v53, %v3691_v2  ;;  %v3356_v40 = vpop.f32.mrf.mxu0  ;;  %v7246_v53 = vld [vmem:[#allocation11 + $0x138] sm:$0xff] }
 0x4fc   :  { %v5486_v9 = vadd.f32 %v5422_v44, %v5230_v28  ;;  %v3525_v8 = vpop.f32.mrf.mxu1  ;;  %v7245_v44 = vld [vmem:[#allocation9 + $0x138] sm:$0xff] }
 0x4fd   :  { %v6283_v7 = vpack.c.bf16 %v3861_v22, %v3861_v22  ;;  %v11327_v36 = vadd.f32 %v3525_v8, %v3356_v40  ;;  %v5234_v41 = vmul.f32 %v7245_v44, %v11256_v26 }
 0x4fe   :  { %v5685_v45 = vpack.c.bf16 %v5486_v9, %v5486_v9 }
 0x4ff   :  { %6347 = vst [vmem:[#allocation12 + $0x31c] sm:$0xf] %v6283_v7  ;;  %5359 = vrot.lane.b32.xlu1 %v11327_v36, %s7455_s4 }
 0x500   :  { %5749 = vst [vmem:[#allocation12 + $0x238] sm:$0xf] %v5685_v45 }
 0x501   :  { %v3694_v6 = vpop.f32.mrf.mxu2 }
 0x502   :  { %v5332_v1 = vpop.permute.xlu0 %5331  ;;  %v3863_v12 = vpop.f32.mrf.mxu3 }
 0x503   :  { %v5423_v58 = vmul.f32 %v7240_v30, %v5332_v1  ;;  %v3864_v48 = vadd.f32 %v3863_v12, %v3694_v6  ;;  %v3358_v43 = vpop.f32.mrf.mxu0  ;;  %v7247_v30 = vld [vmem:[#allocation9 + $0x158] sm:$0xff] }
 0x504   :  { %v3527_v19 = vpop.f32.mrf.mxu1  ;;  %v5238_v26 = vmul.f32 %v7247_v30, %v11284_v21 }
 0x505   :  { %v5487_v33 = vadd.f32 %v5423_v58, %v5231_v0  ;;  %v6284_v32 = vpack.c.bf16 %v3864_v48, %v3864_v48  ;;  %v11332_v39 = vadd.f32 %v3527_v19, %v3358_v43  ;;  %v7248_v58 = vld [vmem:[#allocation11 + $0x158] sm:$0xff] }
 0x507   :  { %v5686_v55 = vpack.c.bf16 %v5487_v33, %v5487_v33  ;;  %6348 = vst [vmem:[#allocation12 + $0x32c] sm:$0xf] %v6284_v32  ;;  %5361 = vrot.lane.b32.xlu0 %v11332_v39, %s7455_s4 }
 0x509   :  { %5750 = vst [vmem:[#allocation12 + $0x248] sm:$0xf] %v5686_v55  ;;  %v3696_v18 = vpop.f32.mrf.mxu2 }
 0x50a   :  { %v5340_v49 = vpop.permute.xlu2 %5339  ;;  %v3865_v47 = vpop.f32.mrf.mxu3 }
 0x50b   :  { %v5427_v50 = vmul.f32 %v7242_v10, %v5340_v49  ;;  %v3866_v17 = vadd.f32 %v3865_v47, %v3696_v18  ;;  %v3361_v42 = vpop.f32.mrf.mxu0  ;;  %v7249_v10 = vld [vmem:[#allocation9 + $0x148] sm:$0xff] }
 0x50c   :  { %v3530_v59 = vpop.f32.mrf.mxu1  ;;  %v5236_v21 = vmul.f32 %v7249_v10, %v11270_v51  ;;  %v7251_v51 = vld [vmem:[#allocation9 + $0x150] sm:$0xff] }
 0x50d   :  { %v5491_v57 = vadd.f32 %v5427_v50, %v5235_v25  ;;  %v6285_v38 = vpack.c.bf16 %v3866_v17, %v3866_v17  ;;  %v11337_v29 = vadd.f32 %v3530_v59, %v3361_v42  ;;  %v7250_v50 = vld [vmem:[#allocation11 + $0x148] sm:$0xff] }
 0x50f   :  { %v5690_v4 = vpack.c.bf16 %v5491_v57, %v5491_v57  ;;  %6349 = vst [vmem:[#allocation12 + $0x33c] sm:$0xf] %v6285_v38  ;;  %5363 = vrot.lane.b32.xlu2 %v11337_v29, %s7455_s4 }
 0x511   :  { %5754 = vst [vmem:[#allocation12 + $0x288] sm:$0xf] %v5690_v4  ;;  %v3699_v60 = vpop.f32.mrf.mxu2 }
 0x512   :  { %v5336_v37 = vpop.permute.xlu1 %5335  ;;  %v3868_v24 = vpop.f32.mrf.mxu3 }
 0x513   :  { %v5425_v34 = vmul.f32 %v7244_v14, %v5336_v37  ;;  %v3869_v35 = vadd.f32 %v3868_v24, %v3699_v60  ;;  %v3363_v11 = vpop.f32.mrf.mxu0 }
 0x514   :  { %v3532_v46 = vpop.f32.mrf.mxu1 }
 0x515   :  { %v5489_v63 = vadd.f32 %v5425_v34, %v5233_v52  ;;  %v6286_v31 = vpack.c.bf16 %v3869_v35, %v3869_v35  ;;  %v11342_v2 = vadd.f32 %v3532_v46, %v3363_v11  ;;  %v5237_v34 = vmul.f32 %v7251_v51, %v11275_v62  ;;  %v7252_v35 = vld [vmem:[#allocation11 + $0x150] sm:$0xff] }
 0x517   :  { %v5688_v16 = vpack.c.bf16 %v5489_v63, %v5489_v63  ;;  %6350 = vst [vmem:[#allocation12 + $0x34c] sm:$0xf] %v6286_v31  ;;  %5365 = vrot.lane.b32.xlu1 %v11342_v2, %s7455_s4 }
 0x519   :  { %5752 = vst [vmem:[#allocation12 + $0x268] sm:$0xf] %v5688_v16  ;;  %v5338_v28 = vpop.permute.xlu0 %5337  ;;  %v3701_v20 = vpop.f32.mrf.mxu2 }
 0x51a   :  { %v5426_v22 = vmul.f32 %v7246_v53, %v5338_v28  ;;  %v3870_v40 = vpop.f32.mrf.mxu3 }
 0x51b   :  { %v3871_v9 = vadd.f32 %v3870_v40, %v3701_v20  ;;  %v3366_v8 = vpop.f32.mrf.mxu0  ;;  %v7253_v40 = vld [vmem:[#allocation9 + $0x170] sm:$0xff] }
 0x51c   :  { %v5490_v7 = vadd.f32 %v5426_v22, %v5234_v41  ;;  %v3535_v45 = vpop.f32.mrf.mxu1  ;;  %v5241_v62 = vmul.f32 %v7253_v40, %v11303_v27 }
 0x51d   :  { %v6287_v6 = vpack.c.bf16 %v3871_v9, %v3871_v9  ;;  %v11347_v1 = vadd.f32 %v3535_v45, %v3366_v8  ;;  %v7254_v9 = vld [vmem:[#allocation11 + $0x170] sm:$0xff] }
 0x51e   :  { %v5689_v12 = vpack.c.bf16 %v5490_v7, %v5490_v7 }
 0x51f   :  { %6351 = vst [vmem:[#allocation12 + $0x35c] sm:$0xf] %v6287_v6  ;;  %5367 = vrot.lane.b32.xlu0 %v11347_v1, %s7455_s4 }
 0x520   :  { %5753 = vst [vmem:[#allocation12 + $0x278] sm:$0xf] %v5689_v12 }
 0x521   :  { %v5346_v61 = vpop.permute.xlu2 %5345  ;;  %v3704_v0 = vpop.f32.mrf.mxu2 }
 0x522   :  { %v5430_v48 = vmul.f32 %v7248_v58, %v5346_v61  ;;  %v3873_v43 = vpop.f32.mrf.mxu3 }
 0x523   :  { %v3874_v19 = vadd.f32 %v3873_v43, %v3704_v0  ;;  %v3368_v33 = vpop.f32.mrf.mxu0  ;;  %v7255_v43 = vld [vmem:[#allocation9 + $0x160] sm:$0xff] }
 0x524   :  { %v5494_v32 = vadd.f32 %v5430_v48, %v5238_v26  ;;  %v3537_v55 = vpop.f32.mrf.mxu1  ;;  %v5239_v27 = vmul.f32 %v7255_v43, %v11289_v3 }
 0x525   :  { %v6288_v18 = vpack.c.bf16 %v3874_v19, %v3874_v19  ;;  %v11352_v49 = vadd.f32 %v3537_v55, %v3368_v33  ;;  %v7256_v19 = vld [vmem:[#allocation11 + $0x160] sm:$0xff] }
 0x526   :  { %v5693_v47 = vpack.c.bf16 %v5494_v32, %v5494_v32 }
 0x527   :  { %6352 = vst [vmem:[#allocation12 + $0x36c] sm:$0xf] %v6288_v18  ;;  %5369 = vrot.lane.b32.xlu2 %v11352_v49, %s7455_s4 }
 0x528   :  { %5757 = vst [vmem:[#allocation12 + $0x2b8] sm:$0xf] %v5693_v47 }
 0x529   :  { %v5342_v15 = vpop.permute.xlu1 %5341  ;;  %v3706_v25 = vpop.f32.mrf.mxu2 }
 0x52a   :  { %v5428_v17 = vmul.f32 %v7250_v50, %v5342_v15  ;;  %v3875_v42 = vpop.f32.mrf.mxu3 }
 0x52b   :  { %v3876_v59 = vadd.f32 %v3875_v42, %v3706_v25  ;;  %v3371_v57 = vpop.f32.mrf.mxu0  ;;  %v7258_v42 = vld [vmem:[#allocation11 + $0x168] sm:$0xff] }
 0x52c   :  { %v5492_v38 = vadd.f32 %v5428_v17, %v5236_v21  ;;  %v3540_v4 = vpop.f32.mrf.mxu1  ;;  %v7257_v17 = vld [vmem:[#allocation9 + $0x168] sm:$0xff] }
 0x52d   :  { %v6289_v60 = vpack.c.bf16 %v3876_v59, %v3876_v59  ;;  %v11357_v37 = vadd.f32 %v3540_v4, %v3371_v57  ;;  %v5240_v3 = vmul.f32 %v7257_v17, %v11298_v56 }
 0x52e   :  { %v5691_v24 = vpack.c.bf16 %v5492_v38, %v5492_v38 }
 0x52f   :  { %6353 = vst [vmem:[#allocation12 + $0x37c] sm:$0xf] %v6289_v60  ;;  %5371 = vrot.lane.b32.xlu1 %v11357_v37, %s7455_s4 }
 0x530   :  { %5755 = vst [vmem:[#allocation12 + $0x298] sm:$0xf] %v5691_v24 }
 0x531   :  { %v3709_v5 = vpop.f32.mrf.mxu2 }
 0x532   :  { %v5344_v52 = vpop.permute.xlu0 %5343  ;;  %v3878_v14 = vpop.f32.mrf.mxu3 }
 0x533   :  { %v5429_v11 = vmul.f32 %v7252_v35, %v5344_v52  ;;  %v3879_v46 = vadd.f32 %v3878_v14, %v3709_v5  ;;  %v3373_v63 = vpop.f32.mrf.mxu0  ;;  %v7259_v35 = vld [vmem:[#allocation9 + $0x188] sm:$0xff] }
 0x534   :  { %v3542_v31 = vpop.f32.mrf.mxu1  ;;  %v5244_v56 = vmul.f32 %v7259_v35, %v11322_v13 }
 0x535   :  { %v5493_v16 = vadd.f32 %v5429_v11, %v5237_v34  ;;  %v6290_v28 = vpack.c.bf16 %v3879_v46, %v3879_v46  ;;  %v11362_v20 = vadd.f32 %v3542_v31, %v3373_v63  ;;  %v7260_v11 = vld [vmem:[#allocation11 + $0x188] sm:$0xff] }
 0x537   :  { %v5692_v44 = vpack.c.bf16 %v5493_v16, %v5493_v16  ;;  %6354 = vst [vmem:[#allocation12 + $0x38c] sm:$0xf] %v6290_v28  ;;  %5373 = vrot.lane.b32.xlu0 %v11362_v20, %s7455_s4 }
 0x539   :  { %5756 = vst [vmem:[#allocation12 + $0x2a8] sm:$0xf] %v5692_v44  ;;  %v3711_v41 = vpop.f32.mrf.mxu2 }
 0x53a   :  { %v5352_v53 = vpop.permute.xlu2 %5351  ;;  %v3880_v22 = vpop.f32.mrf.mxu3 }
 0x53b   :  { %v5433_v8 = vmul.f32 %v7254_v9, %v5352_v53  ;;  %v3881_v7 = vadd.f32 %v3880_v22, %v3711_v41  ;;  %v3376_v45 = vpop.f32.mrf.mxu0  ;;  %v7261_v9 = vld [vmem:[#allocation9 + $0x178] sm:$0xff] }
 0x53c   :  { %v3545_v6 = vpop.f32.mrf.mxu1  ;;  %v5242_v13 = vmul.f32 %v7261_v9, %v11312_v23 }
 0x53d   :  { %v5497_v12 = vadd.f32 %v5433_v8, %v5241_v62  ;;  %v6291_v61 = vpack.c.bf16 %v3881_v7, %v3881_v7  ;;  %v11367_v0 = vadd.f32 %v3545_v6, %v3376_v45  ;;  %v7262_v8 = vld [vmem:[#allocation11 + $0x178] sm:$0xff] }
 0x53f   :  { %v5696_v30 = vpack.c.bf16 %v5497_v12, %v5497_v12  ;;  %6355 = vst [vmem:[#allocation12 + $0x39c] sm:$0xf] %v6291_v61  ;;  %5375 = vrot.lane.b32.xlu2 %v11367_v0, %s7455_s4 }
 0x541   :  { %5760 = vst [vmem:[#allocation12 + $0x2e8] sm:$0xf] %v5696_v30  ;;  %v3714_v26 = vpop.f32.mrf.mxu2 }
 0x542   :  { %v5348_v58 = vpop.permute.xlu1 %5347  ;;  %v3883_v48 = vpop.f32.mrf.mxu3 }
 0x543   :  { %v5431_v33 = vmul.f32 %v7256_v19, %v5348_v58  ;;  %v3884_v32 = vadd.f32 %v3883_v48, %v3714_v26  ;;  %v3378_v55 = vpop.f32.mrf.mxu0  ;;  %v7263_v19 = vld [vmem:[#allocation9 + $0x180] sm:$0xff] }
 0x544   :  { %v3547_v18 = vpop.f32.mrf.mxu1  ;;  %v5243_v23 = vmul.f32 %v7263_v19, %v11317_v54  ;;  %v7276_v19 = vld [vmem:[#allocation11 + $0x1b0] sm:$0xff] }
 0x545   :  { %v5495_v47 = vadd.f32 %v5431_v33, %v5239_v27  ;;  %v6292_v15 = vpack.c.bf16 %v3884_v32, %v3884_v32  ;;  %v11372_v25 = vadd.f32 %v3547_v18, %v3378_v55  ;;  %v7264_v33 = vld [vmem:[#allocation11 + $0x180] sm:$0xff] }
 0x547   :  { %v5694_v10 = vpack.c.bf16 %v5495_v47, %v5495_v47  ;;  %6356 = vst [vmem:[#allocation12 + $0x3ac] sm:$0xf] %v6292_v15  ;;  %5377 = vrot.lane.b32.xlu1 %v11372_v25, %s7455_s4 }
 0x549   :  { %5758 = vst [vmem:[#allocation12 + $0x2c8] sm:$0xf] %v5694_v10  ;;  %v5350_v21 = vpop.permute.xlu0 %5349  ;;  %v3716_v50 = vpop.f32.mrf.mxu2 }
 0x54a   :  { %v5432_v59 = vmul.f32 %v7258_v42, %v5350_v21  ;;  %v3885_v57 = vpop.f32.mrf.mxu3 }
 0x54b   :  { %v3886_v38 = vadd.f32 %v3885_v57, %v3716_v50  ;;  %v3381_v4 = vpop.f32.mrf.mxu0  ;;  %v7266_v57 = vld [vmem:[#allocation11 + $0x1a0] sm:$0xff] }
 0x54c   :  { %v5496_v60 = vadd.f32 %v5432_v59, %v5240_v3  ;;  %v3550_v24 = vpop.f32.mrf.mxu1  ;;  %v7265_v59 = vld [vmem:[#allocation9 + $0x1a0] sm:$0xff] }
 0x54d   :  { %v6293_v5 = vpack.c.bf16 %v3886_v38, %v3886_v38  ;;  %v11377_v52 = vadd.f32 %v3550_v24, %v3381_v4  ;;  %v5247_v54 = vmul.f32 %v7265_v59, %v11337_v29  ;;  %v7269_v29 = vld [vmem:[#allocation9 + $0x198] sm:$0xff] }
 0x54e   :  { %v5695_v14 = vpack.c.bf16 %v5496_v60, %v5496_v60 }
 0x54f   :  { %6357 = vst [vmem:[#allocation12 + $0x3bc] sm:$0xf] %v6293_v5  ;;  %5379 = vrot.lane.b32.xlu0 %v11377_v52, %s7455_s4 }
 0x550   :  { %5759 = vst [vmem:[#allocation12 + $0x2d8] sm:$0xf] %v5695_v14 }
 0x551   :  { %v5358_v51 = vpop.permute.xlu2 %5357  ;;  %v3719_v34 = vpop.f32.mrf.mxu2 }
 0x552   :  { %v5436_v46 = vmul.f32 %v7260_v11, %v5358_v51  ;;  %v3888_v63 = vpop.f32.mrf.mxu3 }
 0x553   :  { %v3889_v31 = vadd.f32 %v3888_v63, %v3719_v34  ;;  %v3383_v16 = vpop.f32.mrf.mxu0  ;;  %v7267_v34 = vld [vmem:[#allocation9 + $0x190] sm:$0xff] }
 0x554   :  { %v5500_v28 = vadd.f32 %v5436_v46, %v5244_v56  ;;  %v3552_v44 = vpop.f32.mrf.mxu1  ;;  %v5245_v35 = vmul.f32 %v7267_v34, %v11327_v36  ;;  %v7268_v56 = vld [vmem:[#allocation11 + $0x190] sm:$0xff] }
 0x555   :  { %v6294_v41 = vpack.c.bf16 %v3889_v31, %v3889_v31  ;;  %v11382_v53 = vadd.f32 %v3552_v44, %v3383_v16  ;;  %v5246_v16 = vmul.f32 %v7269_v29, %v11332_v39  ;;  %v7286_v29 = vld [vmem:[#allocation11 + $0x1d8] sm:$0xff] }
 0x556   :  { %v5699_v22 = vpack.c.bf16 %v5500_v28, %v5500_v28  ;;  %v7270_v28 = vld [vmem:[#allocation11 + $0x198] sm:$0xff] }
 0x557   :  { %6358 = vst [vmem:[#allocation12 + $0x3cc] sm:$0xf] %v6294_v41  ;;  %5381 = vrot.lane.b32.xlu2 %v11382_v53, %s7455_s4 }
 0x558   :  { %5763 = vst [vmem:[#allocation12 + $0x318] sm:$0xf] %v5699_v22 }
 0x559   :  { %v5354_v40 = vpop.permute.xlu1 %5353  ;;  %v3721_v62 = vpop.f32.mrf.mxu2 }
 0x55a   :  { %v5434_v7 = vmul.f32 %v7262_v8, %v5354_v40  ;;  %v3890_v45 = vpop.f32.mrf.mxu3 }
 0x55b   :  { %v3891_v6 = vadd.f32 %v3890_v45, %v3721_v62  ;;  %v3386_v12 = vpop.f32.mrf.mxu0  ;;  %v7271_v62 = vld [vmem:[#allocation9 + $0x1b8] sm:$0xff] }
 0x55c   :  { %v5498_v61 = vadd.f32 %v5434_v7, %v5242_v13  ;;  %v3555_v30 = vpop.f32.mrf.mxu1  ;;  %v5250_v9 = vmul.f32 %v7271_v62, %v11352_v49  ;;  %v7272_v13 = vld [vmem:[#allocation11 + $0x1b8] sm:$0xff] }
 0x55d   :  { %v6295_v26 = vpack.c.bf16 %v3891_v6, %v3891_v6  ;;  %v11387_v58 = vadd.f32 %v3555_v30, %v3386_v12  ;;  %v7273_v6 = vld [vmem:[#allocation9 + $0x1a8] sm:$0xff] }
 0x55e   :  { %v5697_v48 = vpack.c.bf16 %v5498_v61, %v5498_v61  ;;  %v5248_v12 = vmul.f32 %v7273_v6, %v11342_v2  ;;  %v7274_v61 = vld [vmem:[#allocation11 + $0x1a8] sm:$0xff] }
 0x55f   :  { %6359 = vst [vmem:[#allocation12 + $0x3dc] sm:$0xf] %v6295_v26  ;;  %5383 = vrot.lane.b32.xlu1 %v11387_v58, %s7455_s4 }
 0x560   :  { %5761 = vst [vmem:[#allocation12 + $0x2f8] sm:$0xf] %v5697_v48 }
 0x561   :  { %v5356_v43 = vpop.permute.xlu0 %5355  ;;  %v3724_v27 = vpop.f32.mrf.mxu2 }
 0x562   :  { %v5435_v32 = vmul.f32 %v7264_v33, %v5356_v43  ;;  %v3893_v55 = vpop.f32.mrf.mxu3  ;;  %v7275_v43 = vld [vmem:[#allocation9 + $0x1b0] sm:$0xff] }
 0x563   :  { %v3894_v18 = vadd.f32 %v3893_v55, %v3724_v27  ;;  %v3388_v47 = vpop.f32.mrf.mxu0  ;;  %v5249_v27 = vmul.f32 %v7275_v43, %v11347_v1  ;;  %v7277_v55 = vld [vmem:[#allocation9 + $0x1d0] sm:$0xff] }
 0x564   :  { %v5499_v15 = vadd.f32 %v5435_v32, %v5243_v23  ;;  %v3557_v10 = vpop.f32.mrf.mxu1 }
 0x565   :  { %v6296_v21 = vpack.c.bf16 %v3894_v18, %v3894_v18  ;;  %v11392_v50 = vadd.f32 %v3557_v10, %v3388_v47  ;;  %v5253_v18 = vmul.f32 %v7277_v55, %v11367_v0  ;;  %v7278_v47 = vld [vmem:[#allocation11 + $0x1d0] sm:$0xff] }
 0x566   :  { %v5698_v17 = vpack.c.bf16 %v5499_v15, %v5499_v15 }
 0x567   :  { %6360 = vst [vmem:[#allocation12 + $0x3ec] sm:$0xf] %v6296_v21  ;;  %5385 = vrot.lane.b32.xlu0 %v11392_v50, %s7455_s4 }
 0x568   :  { %5762 = vst [vmem:[#allocation12 + $0x308] sm:$0xf] %v5698_v17  ;;  %v7279_v17 = vld [vmem:[#allocation9 + $0x1c0] sm:$0xff] }
 0x569   :  { %v5364_v3 = vpop.permute.xlu2 %5363  ;;  %v3726_v42 = vpop.f32.mrf.mxu2 }
 0x56a   :  { %v5439_v38 = vmul.f32 %v7266_v57, %v5364_v3  ;;  %v3895_v4 = vpop.f32.mrf.mxu3  ;;  %v5251_v3 = vmul.f32 %v7279_v17, %v11357_v37 }
 0x56b   :  { %v3896_v60 = vadd.f32 %v3895_v4, %v3726_v42  ;;  %v7280_v42 = vld [vmem:[#allocation11 + $0x1c0] sm:$0xff] }
 0x56c   :  { %v5503_v24 = vadd.f32 %v5439_v38, %v5247_v54  ;;  %v7281_v38 = vld [vmem:[#allocation9 + $0x1c8] sm:$0xff] }
 0x56d   :  { %v6297_v5 = vpack.c.bf16 %v3896_v60, %v3896_v60  ;;  %v5252_v4 = vmul.f32 %v7281_v38, %v11362_v20  ;;  %v7282_v60 = vld [vmem:[#allocation11 + $0x1c8] sm:$0xff] }
 0x56e   :  { %v5702_v14 = vpack.c.bf16 %v5503_v24, %v5503_v24 }
 0x56f   :  { %6361 = vst [vmem:[#allocation12 + $0x3fc] sm:$0xf] %v6297_v5 }
 0x570   :  { %5766 = vst [vmem:[#allocation12 + $0x348] sm:$0xf] %v5702_v14 }
 0x571   :  { %v5360_v51 = vpop.permute.xlu1 %5359 }
 0x572   :  { %v5437_v11 = vmul.f32 %v7268_v56, %v5360_v51  ;;  %v7283_v51 = vld [vmem:[#allocation9 + $0x1e8] sm:$0xff] }
 0x573   :  { %v5256_v34 = vmul.f32 %v7283_v51, %v11382_v53 }
 0x574   :  { %v5501_v46 = vadd.f32 %v5437_v11, %v5245_v35  ;;  %v7284_v35 = vld [vmem:[#allocation11 + $0x1e8] sm:$0xff] }
 0x576   :  { %v5700_v63 = vpack.c.bf16 %v5501_v46, %v5501_v46 }
 0x578   :  { %5764 = vst [vmem:[#allocation12 + $0x328] sm:$0xf] %v5700_v63  ;;  %v7285_v63 = vld [vmem:[#allocation9 + $0x1d8] sm:$0xff] }
 0x579   :  { %v5362_v31 = vpop.permute.xlu0 %5361 }
 0x57a   :  { %v5438_v44 = vmul.f32 %v7270_v28, %v5362_v31  ;;  %v5254_v31 = vmul.f32 %v7285_v63, %v11372_v25 }
 0x57c   :  { %v5502_v41 = vadd.f32 %v5438_v44, %v5246_v16 }
 0x57e   :  { %v5701_v22 = vpack.c.bf16 %v5502_v41, %v5502_v41  ;;  %v7287_v41 = vld [vmem:[#allocation9 + $0x1e0] sm:$0xff] }
 0x580   :  { %5765 = vst [vmem:[#allocation12 + $0x338] sm:$0xf] %v5701_v22  ;;  %v5255_v22 = vmul.f32 %v7287_v41, %v11377_v52 }
 0x581   :  { %v5370_v40 = vpop.permute.xlu2 %5369 }
 0x582   :  { %v5442_v36 = vmul.f32 %v7272_v13, %v5370_v40  ;;  %v7288_v40 = vld [vmem:[#allocation11 + $0x1e0] sm:$0xff] }
 0x584   :  { %v5506_v8 = vadd.f32 %v5442_v36, %v5250_v9  ;;  %v7289_v36 = vld [vmem:[#allocation9 + $0x1f0] sm:$0xff] }
 0x586   :  { %v5705_v7 = vpack.c.bf16 %v5506_v8, %v5506_v8  ;;  %v5257_v8 = vmul.f32 %v7289_v36, %v11387_v58 }
 0x588   :  { %5769 = vst [vmem:[#allocation12 + $0x378] sm:$0xf] %v5705_v7  ;;  %v7290_v7 = vld [vmem:[#allocation11 + $0x1f0] sm:$0xff] }
 0x589   :  { %v5366_v45 = vpop.permute.xlu1 %5365 }
 0x58a   :  { %v5440_v39 = vmul.f32 %v7274_v61, %v5366_v45  ;;  %v7291_v61 = vld [vmem:[#allocation9 + $0x1f8] sm:$0xff] }
 0x58c   :  { %v5504_v30 = vadd.f32 %v5440_v39, %v5248_v12  ;;  %v5258_v39 = vmul.f32 %v7291_v61, %v11392_v50 }
 0x58e   :  { %v5703_v26 = vpack.c.bf16 %v5504_v30, %v5504_v30  ;;  %v7292_v30 = vld [vmem:[#allocation11 + $0x1f8] sm:$0xff] }
 0x590   :  { %5767 = vst [vmem:[#allocation12 + $0x358] sm:$0xf] %v5703_v26 }
 0x591   :  { %v5368_v48 = vpop.permute.xlu0 %5367 }
 0x592   :  { %v5441_v49 = vmul.f32 %v7276_v19, %v5368_v48 }
 0x594   :  { %v5505_v23 = vadd.f32 %v5441_v49, %v5249_v27 }
 0x596   :  { %v5704_v33 = vpack.c.bf16 %v5505_v23, %v5505_v23 }
 0x598   :  { %5768 = vst [vmem:[#allocation12 + $0x368] sm:$0xf] %v5704_v33 }
 0x599   :  { %v5376_v32 = vpop.permute.xlu2 %5375 }
 0x59a   :  { %v5445_v2 = vmul.f32 %v7278_v47, %v5376_v32 }
 0x59c   :  { %v5509_v15 = vadd.f32 %v5445_v2, %v5253_v18 }
 0x59e   :  { %v5708_v10 = vpack.c.bf16 %v5509_v15, %v5509_v15 }
 0x5a0   :  { %5772 = vst [vmem:[#allocation12 + $0x3a8] sm:$0xf] %v5708_v10 }
 0x5a1   :  { %v5372_v21 = vpop.permute.xlu1 %5371 }
 0x5a2   :  { %v5443_v1 = vmul.f32 %v7280_v42, %v5372_v21 }
 0x5a4   :  { %v5507_v59 = vadd.f32 %v5443_v1, %v5251_v3 }
 0x5a6   :  { %v5706_v54 = vpack.c.bf16 %v5507_v59, %v5507_v59 }
 0x5a8   :  { %5770 = vst [vmem:[#allocation12 + $0x388] sm:$0xf] %v5706_v54 }
 0x5a9   :  { %v5374_v57 = vpop.permute.xlu0 %5373 }
 0x5aa   :  { %v5444_v0 = vmul.f32 %v7282_v60, %v5374_v57 }
 0x5ac   :  { %v5508_v24 = vadd.f32 %v5444_v0, %v5252_v4 }
 0x5ae   :  { %v5707_v5 = vpack.c.bf16 %v5508_v24, %v5508_v24 }
 0x5b0   :  { %5771 = vst [vmem:[#allocation12 + $0x398] sm:$0xf] %v5707_v5 }
 0x5b1   :  { %v5382_v14 = vpop.permute.xlu2 %5381 }
 0x5b2   :  { %v5448_v37 = vmul.f32 %v7284_v35, %v5382_v14 }
 0x5b4   :  { %v5512_v56 = vadd.f32 %v5448_v37, %v5256_v34 }
 0x5b6   :  { %v5711_v11 = vpack.c.bf16 %v5512_v56, %v5512_v56 }
 0x5b8   :  { %5775 = vst [vmem:[#allocation12 + $0x3d8] sm:$0xf] %v5711_v11 }
 0x5b9   :  { %v5378_v46 = vpop.permute.xlu1 %5377 }
 0x5ba   :  { %v5446_v20 = vmul.f32 %v7286_v29, %v5378_v46 }
 0x5bc   :  { %v5510_v16 = vadd.f32 %v5446_v20, %v5254_v31 }
 0x5be   :  { %v5709_v28 = vpack.c.bf16 %v5510_v16, %v5510_v16 }
 0x5c0   :  { %5773 = vst [vmem:[#allocation12 + $0x3b8] sm:$0xf] %v5709_v28 }
 0x5c1   :  { %v5380_v44 = vpop.permute.xlu0 %5379 }
 0x5c2   :  { %v5447_v53 = vmul.f32 %v7288_v40, %v5380_v44 }
 0x5c4   :  { %v5511_v62 = vadd.f32 %v5447_v53, %v5255_v22 }
 0x5c6   :  { %v5710_v9 = vpack.c.bf16 %v5511_v62, %v5511_v62 }
 0x5c8   :  { %5774 = vst [vmem:[#allocation12 + $0x3c8] sm:$0xf] %v5710_v9 }
 0x5d1   :  { %v5384_v13 = vpop.permute.xlu1 %5383 }
 0x5d2   :  { %v5449_v25 = vmul.f32 %v7290_v7, %v5384_v13 }
 0x5d4   :  { %v5513_v45 = vadd.f32 %v5449_v25, %v5257_v8 }
 0x5d6   :  { %v5712_v6 = vpack.c.bf16 %v5513_v45, %v5513_v45 }
 0x5d8   :  { %5776 = vst [vmem:[#allocation12 + $0x3e8] sm:$0xf] %v5712_v6 }
 0x5d9   :  { %v5386_v12 = vpop.permute.xlu0 %5385 }
 0x5da   :  { %v5450_v52 = vmul.f32 %v7292_v30, %v5386_v12 }
 0x5dc   :  { %v5514_v26 = vadd.f32 %v5450_v52, %v5258_v39 }
 0x5de   :  { %v5713_v48 = vpack.c.bf16 %v5514_v26, %v5514_v26 }
 0x5e0   :  { %5777 = vst [vmem:[#allocation12 + $0x3f8] sm:$0xf] %v5713_v48 }
 0x5e1   :  { %6374 = dma.vmem_to_hbm [thread:$0]  %s6367_s19, 16384, %s6369_s22, [#allocation5], %s7451_s13, %s7451_s13, %s7452_s14  }
 0x5e2   :  { %7443 = dma.done.wait [#allocation5], 16384  }
 0x5e3   :  { %7444 = vsyncadd [#allocation5], 4294950912 }
 0x5e4   :  { %6379 = vsyncpa [#allocation4], 1 }
 0x5e5   :  { %6380 = vsyncpa [#allocation7], 1 }
 0x5e6   :  { %6381 = vsyncpa [#allocation10], 1 }
 0x5e7   :  { %6382 = vsyncpa [#allocation5], 1 }

</bundles_post_ra>
